<compile_context>
chip_gen: v5e
topology: v5e:2x2
jax: 0.10.0
libtpu: 0.0.40
codegen_flags: <defaults>
</compile_context>

<pallas_src>
import functools

import jax
import jax.numpy as jnp
from jax.experimental import pallas as pl
from jax.experimental.pallas import tpu as pltpu

GRID_SIZE = 4
SPLINE_ORDER = 3
GRID_RANGE = (-1.0, 1.0)
EDGE_DIM = 384            # fixed by the module (nn.Linear(384, out_feat))
LANE = 128
SUBLANE = 8


def _round_up(v, m):
    return (v + m - 1) // m * m


def _gckan_kernel(knots, spline_order, gs_dtype,
                  row_ref, col_ref, x_ref, ea_ref,
                  wn_ref, bn_ref, we_ref, be_ref, wb_ref, wsp_ref,
                  out_ref, xt_ref):
    """One edge tile per grid step; KAN head fused into the last step."""
    t = pl.program_id(0)
    n_tiles = pl.num_programs(0)
    f32 = jnp.float32
    TE = ea_ref.shape[0]
    Np = xt_ref.shape[0]

    @pl.when(t == 0)
    def _init():
        # Node transform: computed once, kept VMEM-resident for all gathers.
        xt_ref[...] = (jnp.dot(x_ref[...], wn_ref[...],
                               preferred_element_type=f32) + bn_ref[...])
        # out_ref doubles as the aggregation accumulator (constant index_map
        # => resident across the whole edge reduction; no separate scratch).
        out_ref[...] = jnp.zeros_like(out_ref)

    # ---- edge transform for this tile: (TE, 384) @ (384, F_pad), f32 --------
    ea_t = (jnp.dot(ea_ref[...], we_ref[...], preferred_element_type=f32)
            + be_ref[...])

    # ---- gather x_t[row]: one-hot (TE, Np) @ (Np, F_pad) --------------------
    # One-hots are exact in bf16, so the dominant matmuls run at 2x MXU rate on
    # v6e/v7x while accumulating in f32.
    # TODO(synk): for large N replace the O(TE*N) one-hot gather/scatter with
    # an SMEM scalar-prefetch dynamic row gather / scatter-add (O(TE*F) per
    # tile); when that lands, padded edges must be masked explicitly (the
    # col = -1 padding is only safe with the one-hot compare below).
    gather_oh = (jax.lax.broadcasted_iota(jnp.int32, (TE, Np), 1)
                 == row_ref[...]).astype(gs_dtype)                # (TE, Np)
    x_row = jnp.dot(gather_oh, xt_ref[...].astype(gs_dtype),
                    preferred_element_type=f32)                   # (TE, F_pad)

    msgs = ea_t * x_row                                           # (TE, F_pad)

    # ---- scatter-add over col: transposed one-hot (Np, TE) @ (TE, F_pad) ----
    # Padded edges carry col = -1 and therefore match no node (zero column).
    scatter_oh = (jax.lax.broadcasted_iota(jnp.int32, (Np, TE), 0)
                  == col_ref[...]).astype(gs_dtype)               # (Np, TE)
    out_ref[...] += jnp.dot(scatter_oh, msgs.astype(gs_dtype),
                            preferred_element_type=f32)

    # ---- KAN head, only after the full edge reduction -----------------------
    @pl.when(t == n_tiles - 1)
    def _finish():
        agg = out_ref[...]
        base = jnp.dot(jax.nn.silu(agg), wb_ref[...],
                       preferred_element_type=f32)
        # Cox-de Boor B-spline bases; denominators folded into Python-float
        # reciprocal constants (multiplies only, no full-tile divides).
        g = knots
        bases = [jnp.logical_and(agg >= g[j], agg < g[j + 1]).astype(f32)
                 for j in range(len(g) - 1)]
        for k in range(1, spline_order + 1):
            nxt = []
            for j in range(len(bases) - 1):
                inv_l = 1.0 / (g[j + k] - g[j])
                inv_r = 1.0 / (g[j + k + 1] - g[j + 1])
                nxt.append((agg - g[j]) * inv_l * bases[j]
                           + (g[j + k + 1] - agg) * inv_r * bases[j + 1])
            bases = nxt
        # J separate (N,F)@(F,F) dots accumulated in f32: no (N, J*F) concat
        # slab in VMEM (matters under v7x's 64 MiB budget).
        # TODO(synk): for very large N, tile this epilogue over node-row chunks
        # to also bound the Cox-de Boor intermediates.
        spline = jnp.dot(bases[0], wsp_ref[0], preferred_element_type=f32)
        for j in range(1, len(bases)):
            spline = spline + jnp.dot(bases[j], wsp_ref[j],
                                      preferred_element_type=f32)
        out_ref[...] = base + spline


def init_params(key, in_feat, out_feat,
                grid_size=GRID_SIZE, spline_order=SPLINE_ORDER):
    """Deterministic synthetic parameters, shaped like the PyTorch module."""
    ks = jax.random.split(key, 7)
    J = grid_size + spline_order
    # edge_transform: Linear(384, out_feat)  -> stored transposed (in, out)
    we = jax.random.normal(ks[0], (EDGE_DIM, out_feat), jnp.float32) * 0.05
    be = jax.random.normal(ks[1], (1, out_feat), jnp.float32) * 0.05
    # node_transform: Linear(in_feat, out_feat)
    wn = jax.random.normal(ks[2], (in_feat, out_feat), jnp.float32) * 0.1
    bn = jax.random.normal(ks[3], (1, out_feat), jnp.float32) * 0.1
    # KANLinear(out_feat, out_feat): base_weight (out, in) -> transposed (in, out)
    wb = jax.random.normal(ks[4], (out_feat, out_feat), jnp.float32) * 0.1
    # spline_weight (out, in, J) and spline_scaler (out, in), folded and laid
    # out as (J, in, out).
    spline_w = jax.random.normal(ks[5], (out_feat, out_feat, J), jnp.float32) * 0.1
    scaler = 1.0 + jax.random.normal(ks[6], (out_feat, out_feat), jnp.float32) * 0.1
    wsp = jnp.transpose(spline_w * scaler[..., None], (2, 1, 0))  # (J, in, out)
    return dict(we=we, be=be, wn=wn, bn=bn, wb=wb, wsp=wsp)


def _pick_vmem_limit(needed_bytes):
    """Generation-aware VMEM limit: footprint-based, capped below physical."""
    phys = 64 * 1024 * 1024                      # conservative fallback (v7x)
    try:
        cap = getattr(pltpu.get_tpu_info(), "vmem_capacity_bytes", None)
        if cap:
            phys = int(cap)
    except Exception:
        pass
    budget = phys * 3 // 4                       # ~96 MiB v5e/v6e, ~48 MiB v7x
    return max(32 * 1024 * 1024, min(int(needed_bytes), budget))


def gckan_forward(x, edge_index, edge_attr, params,
                  grid_size=GRID_SIZE, spline_order=SPLINE_ORDER,
                  grid_range=GRID_RANGE, edge_tile=512,
                  gather_scatter_dtype=jnp.bfloat16):
    """GCKANLayer forward.

    edge_tile: main sweep knob (512-1024 on v6e/v7x, 256-512 on v5e).
    gather_scatter_dtype: dtype of the dominant one-hot gather/scatter matmuls
    (bf16 = 2x MXU throughput on v6e/v7x; accumulation stays f32).
    """
    N, in_feat = x.shape
    E = edge_index.shape[1]
    F = params["wn"].shape[1]
    J = grid_size + spline_order

    # NOTE: if out_feat << 128 the lane padding wastes MXU columns in every
    # matmul; batching independent heads/graphs along the lane axis is the
    # only real fix (accepted here).
    F_pad = _round_up(F, LANE)        # lane-dense output features
    N_pad = _round_up(N, SUBLANE)
    TE = max(LANE, min(_round_up(edge_tile, LANE), _round_up(E, LANE)))
    E_pad = _round_up(max(E, TE), TE)
    n_tiles = E_pad // TE

    # ---- host-side zero padding / weight layout (layout plumbing only) ------
    def pad2(a, r, c):
        return jnp.pad(a, ((0, r - a.shape[0]), (0, c - a.shape[1])))

    wn_p = pad2(params["wn"], in_feat, F_pad)
    bn_p = pad2(params["bn"], 1, F_pad)
    we_p = pad2(params["we"], EDGE_DIM, F_pad)
    be_p = pad2(params["be"], 1, F_pad)
    wb_p = pad2(params["wb"], F_pad, F_pad)
    wsp_p = jnp.pad(params["wsp"], ((0, 0), (0, F_pad - F), (0, F_pad - F)))

    x_p = pad2(x, N_pad, in_feat)
    ea_p = pad2(edge_attr, E_pad, EDGE_DIM)
    row_p = jnp.pad(edge_index[0].astype(jnp.int32), (0, E_pad - E),
                    constant_values=0).reshape(E_pad, 1)
    col_p = jnp.pad(edge_index[1].astype(jnp.int32), (0, E_pad - E),
                    constant_values=-1).reshape(1, E_pad)   # -1 => scatters nowhere

    h = (grid_range[1] - grid_range[0]) / grid_size
    knots = tuple(float(i * h + grid_range[0])
                  for i in range(-spline_order, grid_size + spline_order + 1))

    kernel = functools.partial(_gckan_kernel, knots, spline_order,
                               gather_scatter_dtype)

    # Constant index_map => DMA'd once, VMEM-resident across the edge grid.
    # TODO(synk): single-buffer these residents (pipeline_mode=pl.Buffered(1))
    # once confirmed supported on all target jax versions; they are fetched
    # exactly once so double-buffering only costs VMEM.
    def resident(shape):
        return pl.BlockSpec(shape, lambda t: (0,) * len(shape))

    grid_spec = pltpu.PrefetchScalarGridSpec(
        num_scalar_prefetch=0,
        grid=(n_tiles,),
        in_specs=[
            pl.BlockSpec((TE, 1), lambda t: (t, 0)),          # row (gather idx)
            pl.BlockSpec((1, TE), lambda t: (0, t)),          # col (scatter idx)
            resident((N_pad, in_feat)),                       # x
            pl.BlockSpec((TE, EDGE_DIM), lambda t: (t, 0)),   # edge_attr (stream)
            resident((in_feat, F_pad)),                       # wn
            resident((1, F_pad)),                             # bn
            resident((EDGE_DIM, F_pad)),                      # we
            resident((1, F_pad)),                             # be
            resident((F_pad, F_pad)),                         # wb (KAN base)
            resident((J, F_pad, F_pad)),                      # spline weights
        ],
        out_specs=pl.BlockSpec((N_pad, F_pad), lambda t: (0, 0)),
        scratch_shapes=[
            pltpu.VMEM((N_pad, F_pad), jnp.float32),          # x_t (resident)
        ],
    )

    # ---- footprint-based, generation-aware VMEM budget -----------------------
    itemsize = 4
    gs_itemsize = jnp.dtype(gather_scatter_dtype).itemsize
    resident_bytes = 2 * itemsize * (x_p.size + wn_p.size + bn_p.size
                                     + we_p.size + be_p.size + wb_p.size
                                     + wsp_p.size)            # double-buffered
    streamed_bytes = 2 * itemsize * (TE * EDGE_DIM + 2 * TE)  # edge_attr/row/col
    state_bytes = itemsize * N_pad * F_pad * 3                # x_t + out buffers
    work_bytes = (2 * TE * N_pad * gs_itemsize                # one-hots
                  + 4 * TE * F_pad * itemsize                 # ea_t/x_row/msgs
                  + (grid_size + 2 * spline_order + 6)        # KAN epilogue temps
                  * N_pad * F_pad * itemsize)
    vmem_limit = _pick_vmem_limit(
        (resident_bytes + streamed_bytes + state_bytes + work_bytes) * 5 // 4)

    flops = (2 * N_pad * in_feat * F_pad          # node transform
             + 2 * E_pad * EDGE_DIM * F_pad       # edge transform
             + 4 * E_pad * N_pad * F_pad          # one-hot gather + scatter
             + 2 * N_pad * F_pad * F_pad          # KAN base
             + 2 * N_pad * J * F_pad * F_pad)     # spline dots
    bytes_accessed = itemsize * (x_p.size + ea_p.size + wn_p.size + we_p.size
                                 + wb_p.size + wsp_p.size + N_pad * F_pad
                                 + 2 * E_pad)

    out = pl.pallas_call(
        kernel,
        out_shape=jax.ShapeDtypeStruct((N_pad, F_pad), jnp.float32),
        grid_spec=grid_spec,
        compiler_params=pltpu.CompilerParams(
            # Single sequential edge-reduction axis.
            # TODO(synk): on v7x (2 TensorCores) add a "parallel" grid axis —
            # e.g. split output-feature columns across cores with a small
            # combine before the KAN head — so the second core is not idle.
            dimension_semantics=("arbitrary",),
            vmem_limit_bytes=int(vmem_limit)),
        cost_estimate=pl.CostEstimate(
            flops=int(flops),
            transcendentals=int(N_pad * F_pad),
            bytes_accessed=int(bytes_accessed)),
    )(row_p, col_p, x_p, ea_p, wn_p, bn_p, we_p, be_p, wb_p, wsp_p)

    return out[:N, :F]


def reference(x, edge_index, edge_attr, params,
              grid_size=GRID_SIZE, spline_order=SPLINE_ORDER,
              grid_range=GRID_RANGE):
    """Pure-JAX reference matching the PyTorch forward semantics."""
    row, col = edge_index[0], edge_index[1]
    N = x.shape[0]
    x_t = x @ params["wn"] + params["bn"]
    ea_t = edge_attr @ params["we"] + params["be"]
    msgs = ea_t * x_t[row]
    agg = jax.ops.segment_sum(msgs, col, num_segments=N)
    base = jax.nn.silu(agg) @ params["wb"]
    h = (grid_range[1] - grid_range[0]) / grid_size
    g = [i * h + grid_range[0]
         for i in range(-spline_order, grid_size + spline_order + 1)]
    bases = [((agg >= g[j]) & (agg < g[j + 1])).astype(jnp.float32)
             for j in range(len(g) - 1)]
    for k in range(1, spline_order + 1):
        bases = [(agg - g[j]) / (g[j + k] - g[j]) * bases[j]
                 + (g[j + k + 1] - agg) / (g[j + k + 1] - g[j + 1]) * bases[j + 1]
                 for j in range(len(bases) - 1)]
    spline = sum(bases[j] @ params["wsp"][j] for j in range(len(bases)))
    return base + spline


if __name__ == "__main__":
    key = jax.random.PRNGKey(0)
    # Small but multi-tile: E_pad = 1536 -> 3 edge tiles of 512.
    N, in_feat, out_feat, E = 64, 16, 32, 1100

    k1, k2, k3, k4, kp = jax.random.split(key, 5)
    x = jax.random.normal(k1, (N, in_feat), jnp.float32)
    edge_attr = jax.random.normal(k2, (E, EDGE_DIM), jnp.float32) * 0.1
    row = jax.random.randint(k3, (E,), 0, N, dtype=jnp.int32)
    col = jax.random.randint(k4, (E,), 0, N, dtype=jnp.int32)
    edge_index = jnp.stack([row, col], axis=0)

    params = init_params(kp, in_feat, out_feat)
    ref = jax.block_until_ready(reference(x, edge_index, edge_attr, params))

    # Exact (f32) gather/scatter path: tight tolerance.
    out_f32 = jax.block_until_ready(
        gckan_forward(x, edge_index, edge_attr, params,
                      gather_scatter_dtype=jnp.float32))
    assert out_f32.shape == (N, out_feat)
    assert jnp.allclose(out_f32, ref, atol=2e-3, rtol=2e-3), (
        float(jnp.max(jnp.abs(out_f32 - ref))))

    # Default fast path: bf16 one-hot gather/scatter (f32 accumulation).
    out = jax.block_until_ready(gckan_forward(x, edge_index, edge_attr, params))
    assert out.shape == (N, out_feat)
    assert jnp.allclose(out, ref, atol=2e-2, rtol=2e-2), (
        float(jnp.max(jnp.abs(out - ref))))

    print("KERNEL_OK")
</pallas_src>

<mosaic_0001>
module attributes {stable_mosaic.version = 11 : i64} {
  func.func @_gckan_kernel(%arg0: i32, %arg1: memref<512x1xi32, #tpu.memory_space<vmem>>, %arg2: memref<1x512xi32, #tpu.memory_space<vmem>>, %arg3: memref<64x16xf32, #tpu.memory_space<vmem>>, %arg4: memref<512x384xf32, #tpu.memory_space<vmem>>, %arg5: memref<16x128xf32, #tpu.memory_space<vmem>>, %arg6: memref<1x128xf32, #tpu.memory_space<vmem>>, %arg7: memref<384x128xf32, #tpu.memory_space<vmem>>, %arg8: memref<1x128xf32, #tpu.memory_space<vmem>>, %arg9: memref<128x128xf32, #tpu.memory_space<vmem>>, %arg10: memref<7x128x128xf32, #tpu.memory_space<vmem>>, %arg11: memref<64x128xf32, #tpu.memory_space<vmem>>, %arg12: memref<64x128xf32, #tpu.memory_space<vmem>>) attributes {dimension_semantics = [#tpu.dimension_semantics<arbitrary>], iteration_bounds = array<i64: 3>, scalar_prefetch = 0 : i64, scratch_operands = 1 : i64, tpu.core_type = #tpu.core_type<tc>, window_params = [{transform_indices = @transform_0, window_bounds = array<i64: 512, 1>}, {transform_indices = @transform_1, window_bounds = array<i64: 1, 512>}, {pipeline_mode = #tpu.pipeline_mode<synchronous>, transform_indices = @transform_2, window_bounds = array<i64: 64, 16>}, {transform_indices = @transform_3, window_bounds = array<i64: 512, 384>}, {pipeline_mode = #tpu.pipeline_mode<synchronous>, transform_indices = @transform_4, window_bounds = array<i64: 16, 128>}, {pipeline_mode = #tpu.pipeline_mode<synchronous>, transform_indices = @transform_5, window_bounds = array<i64: 1, 128>}, {pipeline_mode = #tpu.pipeline_mode<synchronous>, transform_indices = @transform_6, window_bounds = array<i64: 384, 128>}, {pipeline_mode = #tpu.pipeline_mode<synchronous>, transform_indices = @transform_7, window_bounds = array<i64: 1, 128>}, {pipeline_mode = #tpu.pipeline_mode<synchronous>, transform_indices = @transform_8, window_bounds = array<i64: 128, 128>}, {pipeline_mode = #tpu.pipeline_mode<synchronous>, transform_indices = @transform_9, window_bounds = array<i64: 7, 128, 128>}, {pipeline_mode = #tpu.pipeline_mode<synchronous>, transform_indices = @transform_10, window_bounds = array<i64: 64, 128>}]} {
    %c0_i32 = arith.constant 0 : i32
    %0 = arith.cmpi eq, %arg0, %c0_i32 : i32
    %1 = arith.extui %0 : i1 to i32
    %c0_i32_0 = arith.constant 0 : i32
    %2 = arith.cmpi ne, %1, %c0_i32_0 : i32
    scf.if %2 {
      %c0_19 = arith.constant 0 : index
      %c0_20 = arith.constant 0 : index
      %31 = vector.load %arg3[%c0_19, %c0_20] : memref<64x16xf32, #tpu.memory_space<vmem>>, vector<64x16xf32>
      %c0_21 = arith.constant 0 : index
      %c0_22 = arith.constant 0 : index
      %32 = vector.load %arg5[%c0_21, %c0_22] : memref<16x128xf32, #tpu.memory_space<vmem>>, vector<16x128xf32>
      %cst_23 = arith.constant dense<0.000000e+00> : vector<64x128xf32>
      %33 = tpu.matmul %31, %32, %cst_23 {dimension_numbers = #tpu.dot_dimension_numbers<[1], [0], [0], [1], [0, 0, 1, 1], [], []>} : vector<64x16xf32>, vector<16x128xf32>, vector<64x128xf32> -> vector<64x128xf32>
      %c0_24 = arith.constant 0 : index
      %c0_25 = arith.constant 0 : index
      %34 = vector.load %arg6[%c0_24, %c0_25] : memref<1x128xf32, #tpu.memory_space<vmem>>, vector<1x128xf32>
      %35 = vector.broadcast %34 : vector<1x128xf32> to vector<64x128xf32>
      %36 = arith.addf %33, %35 : vector<64x128xf32>
      %c0_26 = arith.constant 0 : index
      %c0_27 = arith.constant 0 : index
      %37 = vector.load %arg12[%c0_26, %c0_27] : memref<64x128xf32, #tpu.memory_space<vmem>>, vector<64x128xf32>
      tpu.vector_store %arg12[%c0_26, %c0_27], %36 {strides = array<i32>} : memref<64x128xf32, #tpu.memory_space<vmem>>, vector<64x128xf32>,
      %cst_28 = arith.constant 0.000000e+00 : f32
      %38 = vector.broadcast %cst_28 : f32 to vector<64x128xf32>
      %c0_29 = arith.constant 0 : index
      %c0_30 = arith.constant 0 : index
      %39 = vector.load %arg11[%c0_29, %c0_30] : memref<64x128xf32, #tpu.memory_space<vmem>>, vector<64x128xf32>
      tpu.vector_store %arg11[%c0_29, %c0_30], %38 {strides = array<i32>} : memref<64x128xf32, #tpu.memory_space<vmem>>, vector<64x128xf32>,
    } else {
    }
    %c0 = arith.constant 0 : index
    %c0_1 = arith.constant 0 : index
    %3 = vector.load %arg4[%c0, %c0_1] : memref<512x384xf32, #tpu.memory_space<vmem>>, vector<512x384xf32>
    %c0_2 = arith.constant 0 : index
    %c0_3 = arith.constant 0 : index
    %4 = vector.load %arg7[%c0_2, %c0_3] : memref<384x128xf32, #tpu.memory_space<vmem>>, vector<384x128xf32>
    %cst = arith.constant dense<0.000000e+00> : vector<512x128xf32>
    %5 = tpu.matmul %3, %4, %cst {dimension_numbers = #tpu.dot_dimension_numbers<[1], [0], [0], [1], [0, 0, 1, 1], [], []>} : vector<512x384xf32>, vector<384x128xf32>, vector<512x128xf32> -> vector<512x128xf32>
    %c0_4 = arith.constant 0 : index
    %c0_5 = arith.constant 0 : index
    %6 = vector.load %arg8[%c0_4, %c0_5] : memref<1x128xf32, #tpu.memory_space<vmem>>, vector<1x128xf32>
    %7 = vector.broadcast %6 : vector<1x128xf32> to vector<512x128xf32>
    %8 = arith.addf %5, %7 : vector<512x128xf32>
    %9 = tpu.iota {dimensions = array<i32: 1>} : vector<512x64xi32>
    %c0_6 = arith.constant 0 : index
    %c0_7 = arith.constant 0 : index
    %10 = vector.load %arg1[%c0_6, %c0_7] : memref<512x1xi32, #tpu.memory_space<vmem>>, vector<512x1xi32>
    %11 = vector.broadcast %10 : vector<512x1xi32> to vector<512x64xi32>
    %12 = arith.cmpi eq, %9, %11 : vector<512x64xi32>
    %13 = arith.extui %12 : vector<512x64xi1> to vector<512x64xi32>
    %14 = arith.sitofp %13 : vector<512x64xi32> to vector<512x64xf32>
    %c0_8 = arith.constant 0 : index
    %c0_9 = arith.constant 0 : index
    %15 = vector.load %arg12[%c0_8, %c0_9] : memref<64x128xf32, #tpu.memory_space<vmem>>, vector<64x128xf32>
    %cst_10 = arith.constant dense<0.000000e+00> : vector<512x128xf32>
    %16 = tpu.matmul %14, %15, %cst_10 {dimension_numbers = #tpu.dot_dimension_numbers<[1], [0], [0], [1], [0, 0, 1, 1], [], []>} : vector<512x64xf32>, vector<64x128xf32>, vector<512x128xf32> -> vector<512x128xf32>
    %17 = arith.mulf %8, %16 : vector<512x128xf32>
    %18 = tpu.iota {dimensions = array<i32: 0>} : vector<64x512xi32>
    %c0_11 = arith.constant 0 : index
    %c0_12 = arith.constant 0 : index
    %19 = vector.load %arg2[%c0_11, %c0_12] : memref<1x512xi32, #tpu.memory_space<vmem>>, vector<1x512xi32>
    %20 = vector.broadcast %19 : vector<1x512xi32> to vector<64x512xi32>
    %21 = arith.cmpi eq, %18, %20 : vector<64x512xi32>
    %22 = arith.extui %21 : vector<64x512xi1> to vector<64x512xi32>
    %23 = arith.sitofp %22 : vector<64x512xi32> to vector<64x512xf32>
    %c0_13 = arith.constant 0 : index
    %c0_14 = arith.constant 0 : index
    %24 = vector.load %arg11[%c0_13, %c0_14] : memref<64x128xf32, #tpu.memory_space<vmem>>, vector<64x128xf32>
    %cst_15 = arith.constant dense<0.000000e+00> : vector<64x128xf32>
    %25 = tpu.matmul %23, %17, %cst_15 {dimension_numbers = #tpu.dot_dimension_numbers<[1], [0], [0], [1], [0, 0, 1, 1], [], []>} : vector<64x512xf32>, vector<512x128xf32>, vector<64x128xf32> -> vector<64x128xf32>
    %26 = arith.addf %24, %25 : vector<64x128xf32>
    %c0_16 = arith.constant 0 : index
    %c0_17 = arith.constant 0 : index
    %27 = vector.load %arg11[%c0_16, %c0_17] : memref<64x128xf32, #tpu.memory_space<vmem>>, vector<64x128xf32>
    tpu.vector_store %arg11[%c0_16, %c0_17], %26 {strides = array<i32>} : memref<64x128xf32, #tpu.memory_space<vmem>>, vector<64x128xf32>,
    %c2_i32 = arith.constant 2 : i32
    %28 = arith.cmpi eq, %arg0, %c2_i32 : i32
    %29 = arith.extui %28 : i1 to i32
    %c0_i32_18 = arith.constant 0 : i32
    %30 = arith.cmpi ne, %29, %c0_i32_18 : i32
    scf.if %30 {
      %c0_19 = arith.constant 0 : index
      %c0_20 = arith.constant 0 : index
      %31 = vector.load %arg11[%c0_19, %c0_20] : memref<64x128xf32, #tpu.memory_space<vmem>>, vector<64x128xf32>
      %32 = arith.negf %31 : vector<64x128xf32>
      %33 = math.exp %32 : vector<64x128xf32>
      %cst_21 = arith.constant 1.000000e+00 : f32
      %34 = vector.broadcast %cst_21 : f32 to vector<64x128xf32>
      %35 = arith.addf %34, %33 : vector<64x128xf32>
      %36 = arith.divf %34, %35 : vector<64x128xf32>
      %37 = arith.mulf %31, %36 : vector<64x128xf32>
      %c0_22 = arith.constant 0 : index
      %c0_23 = arith.constant 0 : index
      %38 = vector.load %arg9[%c0_22, %c0_23] : memref<128x128xf32, #tpu.memory_space<vmem>>, vector<128x128xf32>
      %cst_24 = arith.constant dense<0.000000e+00> : vector<64x128xf32>
      %39 = tpu.matmul %37, %38, %cst_24 {dimension_numbers = #tpu.dot_dimension_numbers<[1], [0], [0], [1], [0, 0, 1, 1], [], []>} : vector<64x128xf32>, vector<128x128xf32>, vector<64x128xf32> -> vector<64x128xf32>
      %cst_25 = arith.constant -2.500000e+00 : f32
      %40 = vector.broadcast %cst_25 : f32 to vector<64x128xf32>
      %41 = arith.cmpf oge, %31, %40 : vector<64x128xf32>
      %cst_26 = arith.constant -2.000000e+00 : f32
      %42 = vector.broadcast %cst_26 : f32 to vector<64x128xf32>
      %43 = arith.cmpf olt, %31, %42 : vector<64x128xf32>
      %44 = arith.andi %41, %43 : vector<64x128xi1>
      %45 = arith.extui %44 : vector<64x128xi1> to vector<64x128xi32>
      %46 = arith.sitofp %45 : vector<64x128xi32> to vector<64x128xf32>
      %cst_27 = arith.constant -2.000000e+00 : f32
      %47 = vector.broadcast %cst_27 : f32 to vector<64x128xf32>
      %48 = arith.cmpf oge, %31, %47 : vector<64x128xf32>
      %cst_28 = arith.constant -1.500000e+00 : f32
      %49 = vector.broadcast %cst_28 : f32 to vector<64x128xf32>
      %50 = arith.cmpf olt, %31, %49 : vector<64x128xf32>
      %51 = arith.andi %48, %50 : vector<64x128xi1>
      %52 = arith.extui %51 : vector<64x128xi1> to vector<64x128xi32>
      %53 = arith.sitofp %52 : vector<64x128xi32> to vector<64x128xf32>
      %cst_29 = arith.constant -1.500000e+00 : f32
      %54 = vector.broadcast %cst_29 : f32 to vector<64x128xf32>
      %55 = arith.cmpf oge, %31, %54 : vector<64x128xf32>
      %cst_30 = arith.constant -1.000000e+00 : f32
      %56 = vector.broadcast %cst_30 : f32 to vector<64x128xf32>
      %57 = arith.cmpf olt, %31, %56 : vector<64x128xf32>
      %58 = arith.andi %55, %57 : vector<64x128xi1>
      %59 = arith.extui %58 : vector<64x128xi1> to vector<64x128xi32>
      %60 = arith.sitofp %59 : vector<64x128xi32> to vector<64x128xf32>
      %cst_31 = arith.constant -1.000000e+00 : f32
      %61 = vector.broadcast %cst_31 : f32 to vector<64x128xf32>
      %62 = arith.cmpf oge, %31, %61 : vector<64x128xf32>
      %cst_32 = arith.constant -5.000000e-01 : f32
      %63 = vector.broadcast %cst_32 : f32 to vector<64x128xf32>
      %64 = arith.cmpf olt, %31, %63 : vector<64x128xf32>
      %65 = arith.andi %62, %64 : vector<64x128xi1>
      %66 = arith.extui %65 : vector<64x128xi1> to vector<64x128xi32>
      %67 = arith.sitofp %66 : vector<64x128xi32> to vector<64x128xf32>
      %cst_33 = arith.constant -5.000000e-01 : f32
      %68 = vector.broadcast %cst_33 : f32 to vector<64x128xf32>
      %69 = arith.cmpf oge, %31, %68 : vector<64x128xf32>
      %cst_34 = arith.constant 0.000000e+00 : f32
      %70 = vector.broadcast %cst_34 : f32 to vector<64x128xf32>
      %71 = arith.cmpf olt, %31, %70 : vector<64x128xf32>
      %72 = arith.andi %69, %71 : vector<64x128xi1>
      %73 = arith.extui %72 : vector<64x128xi1> to vector<64x128xi32>
      %74 = arith.sitofp %73 : vector<64x128xi32> to vector<64x128xf32>
      %cst_35 = arith.constant 0.000000e+00 : f32
      %75 = vector.broadcast %cst_35 : f32 to vector<64x128xf32>
      %76 = arith.cmpf oge, %31, %75 : vector<64x128xf32>
      %cst_36 = arith.constant 5.000000e-01 : f32
      %77 = vector.broadcast %cst_36 : f32 to vector<64x128xf32>
      %78 = arith.cmpf olt, %31, %77 : vector<64x128xf32>
      %79 = arith.andi %76, %78 : vector<64x128xi1>
      %80 = arith.extui %79 : vector<64x128xi1> to vector<64x128xi32>
      %81 = arith.sitofp %80 : vector<64x128xi32> to vector<64x128xf32>
      %cst_37 = arith.constant 5.000000e-01 : f32
      %82 = vector.broadcast %cst_37 : f32 to vector<64x128xf32>
      %83 = arith.cmpf oge, %31, %82 : vector<64x128xf32>
      %cst_38 = arith.constant 1.000000e+00 : f32
      %84 = vector.broadcast %cst_38 : f32 to vector<64x128xf32>
      %85 = arith.cmpf olt, %31, %84 : vector<64x128xf32>
      %86 = arith.andi %83, %85 : vector<64x128xi1>
      %87 = arith.extui %86 : vector<64x128xi1> to vector<64x128xi32>
      %88 = arith.sitofp %87 : vector<64x128xi32> to vector<64x128xf32>
      %cst_39 = arith.constant 1.000000e+00 : f32
      %89 = vector.broadcast %cst_39 : f32 to vector<64x128xf32>
      %90 = arith.cmpf oge, %31, %89 : vector<64x128xf32>
      %cst_40 = arith.constant 1.500000e+00 : f32
      %91 = vector.broadcast %cst_40 : f32 to vector<64x128xf32>
      %92 = arith.cmpf olt, %31, %91 : vector<64x128xf32>
      %93 = arith.andi %90, %92 : vector<64x128xi1>
      %94 = arith.extui %93 : vector<64x128xi1> to vector<64x128xi32>
      %95 = arith.sitofp %94 : vector<64x128xi32> to vector<64x128xf32>
      %cst_41 = arith.constant 1.500000e+00 : f32
      %96 = vector.broadcast %cst_41 : f32 to vector<64x128xf32>
      %97 = arith.cmpf oge, %31, %96 : vector<64x128xf32>
      %cst_42 = arith.constant 2.000000e+00 : f32
      %98 = vector.broadcast %cst_42 : f32 to vector<64x128xf32>
      %99 = arith.cmpf olt, %31, %98 : vector<64x128xf32>
      %100 = arith.andi %97, %99 : vector<64x128xi1>
      %101 = arith.extui %100 : vector<64x128xi1> to vector<64x128xi32>
      %102 = arith.sitofp %101 : vector<64x128xi32> to vector<64x128xf32>
      %cst_43 = arith.constant 2.000000e+00 : f32
      %103 = vector.broadcast %cst_43 : f32 to vector<64x128xf32>
      %104 = arith.cmpf oge, %31, %103 : vector<64x128xf32>
      %cst_44 = arith.constant 2.500000e+00 : f32
      %105 = vector.broadcast %cst_44 : f32 to vector<64x128xf32>
      %106 = arith.cmpf olt, %31, %105 : vector<64x128xf32>
      %107 = arith.andi %104, %106 : vector<64x128xi1>
      %108 = arith.extui %107 : vector<64x128xi1> to vector<64x128xi32>
      %109 = arith.sitofp %108 : vector<64x128xi32> to vector<64x128xf32>
      %cst_45 = arith.constant -2.500000e+00 : f32
      %110 = vector.broadcast %cst_45 : f32 to vector<64x128xf32>
      %111 = arith.subf %31, %110 : vector<64x128xf32>
      %cst_46 = arith.constant 2.000000e+00 : f32
      %112 = vector.broadcast %cst_46 : f32 to vector<64x128xf32>
      %113 = arith.mulf %111, %112 : vector<64x128xf32>
      %114 = arith.mulf %113, %46 : vector<64x128xf32>
      %cst_47 = arith.constant -1.500000e+00 : f32
      %115 = vector.broadcast %cst_47 : f32 to vector<64x128xf32>
      %116 = arith.subf %115, %31 : vector<64x128xf32>
      %cst_48 = arith.constant 2.000000e+00 : f32
      %117 = vector.broadcast %cst_48 : f32 to vector<64x128xf32>
      %118 = arith.mulf %116, %117 : vector<64x128xf32>
      %119 = arith.mulf %118, %53 : vector<64x128xf32>
      %120 = arith.addf %114, %119 : vector<64x128xf32>
      %cst_49 = arith.constant -2.000000e+00 : f32
      %121 = vector.broadcast %cst_49 : f32 to vector<64x128xf32>
      %122 = arith.subf %31, %121 : vector<64x128xf32>
      %cst_50 = arith.constant 2.000000e+00 : f32
      %123 = vector.broadcast %cst_50 : f32 to vector<64x128xf32>
      %124 = arith.mulf %122, %123 : vector<64x128xf32>
      %125 = arith.mulf %124, %53 : vector<64x128xf32>
      %cst_51 = arith.constant -1.000000e+00 : f32
      %126 = vector.broadcast %cst_51 : f32 to vector<64x128xf32>
      %127 = arith.subf %126, %31 : vector<64x128xf32>
      %cst_52 = arith.constant 2.000000e+00 : f32
      %128 = vector.broadcast %cst_52 : f32 to vector<64x128xf32>
      %129 = arith.mulf %127, %128 : vector<64x128xf32>
      %130 = arith.mulf %129, %60 : vector<64x128xf32>
      %131 = arith.addf %125, %130 : vector<64x128xf32>
      %cst_53 = arith.constant -1.500000e+00 : f32
      %132 = vector.broadcast %cst_53 : f32 to vector<64x128xf32>
      %133 = arith.subf %31, %132 : vector<64x128xf32>
      %cst_54 = arith.constant 2.000000e+00 : f32
      %134 = vector.broadcast %cst_54 : f32 to vector<64x128xf32>
      %135 = arith.mulf %133, %134 : vector<64x128xf32>
      %136 = arith.mulf %135, %60 : vector<64x128xf32>
      %cst_55 = arith.constant -5.000000e-01 : f32
      %137 = vector.broadcast %cst_55 : f32 to vector<64x128xf32>
      %138 = arith.subf %137, %31 : vector<64x128xf32>
      %cst_56 = arith.constant 2.000000e+00 : f32
      %139 = vector.broadcast %cst_56 : f32 to vector<64x128xf32>
      %140 = arith.mulf %138, %139 : vector<64x128xf32>
      %141 = arith.mulf %140, %67 : vector<64x128xf32>
      %142 = arith.addf %136, %141 : vector<64x128xf32>
      %cst_57 = arith.constant -1.000000e+00 : f32
      %143 = vector.broadcast %cst_57 : f32 to vector<64x128xf32>
      %144 = arith.subf %31, %143 : vector<64x128xf32>
      %cst_58 = arith.constant 2.000000e+00 : f32
      %145 = vector.broadcast %cst_58 : f32 to vector<64x128xf32>
      %146 = arith.mulf %144, %145 : vector<64x128xf32>
      %147 = arith.mulf %146, %67 : vector<64x128xf32>
      %cst_59 = arith.constant 0.000000e+00 : f32
      %148 = vector.broadcast %cst_59 : f32 to vector<64x128xf32>
      %149 = arith.subf %148, %31 : vector<64x128xf32>
      %cst_60 = arith.constant 2.000000e+00 : f32
      %150 = vector.broadcast %cst_60 : f32 to vector<64x128xf32>
      %151 = arith.mulf %149, %150 : vector<64x128xf32>
      %152 = arith.mulf %151, %74 : vector<64x128xf32>
      %153 = arith.addf %147, %152 : vector<64x128xf32>
      %cst_61 = arith.constant -5.000000e-01 : f32
      %154 = vector.broadcast %cst_61 : f32 to vector<64x128xf32>
      %155 = arith.subf %31, %154 : vector<64x128xf32>
      %cst_62 = arith.constant 2.000000e+00 : f32
      %156 = vector.broadcast %cst_62 : f32 to vector<64x128xf32>
      %157 = arith.mulf %155, %156 : vector<64x128xf32>
      %158 = arith.mulf %157, %74 : vector<64x128xf32>
      %cst_63 = arith.constant 5.000000e-01 : f32
      %159 = vector.broadcast %cst_63 : f32 to vector<64x128xf32>
      %160 = arith.subf %159, %31 : vector<64x128xf32>
      %cst_64 = arith.constant 2.000000e+00 : f32
      %161 = vector.broadcast %cst_64 : f32 to vector<64x128xf32>
      %162 = arith.mulf %160, %161 : vector<64x128xf32>
      %163 = arith.mulf %162, %81 : vector<64x128xf32>
      %164 = arith.addf %158, %163 : vector<64x128xf32>
      %cst_65 = arith.constant 0.000000e+00 : f32
      %165 = vector.broadcast %cst_65 : f32 to vector<64x128xf32>
      %166 = arith.subf %31, %165 : vector<64x128xf32>
      %cst_66 = arith.constant 2.000000e+00 : f32
      %167 = vector.broadcast %cst_66 : f32 to vector<64x128xf32>
      %168 = arith.mulf %166, %167 : vector<64x128xf32>
      %169 = arith.mulf %168, %81 : vector<64x128xf32>
      %cst_67 = arith.constant 1.000000e+00 : f32
      %170 = vector.broadcast %cst_67 : f32 to vector<64x128xf32>
      %171 = arith.subf %170, %31 : vector<64x128xf32>
      %cst_68 = arith.constant 2.000000e+00 : f32
      %172 = vector.broadcast %cst_68 : f32 to vector<64x128xf32>
      %173 = arith.mulf %171, %172 : vector<64x128xf32>
      %174 = arith.mulf %173, %88 : vector<64x128xf32>
      %175 = arith.addf %169, %174 : vector<64x128xf32>
      %cst_69 = arith.constant 5.000000e-01 : f32
      %176 = vector.broadcast %cst_69 : f32 to vector<64x128xf32>
      %177 = arith.subf %31, %176 : vector<64x128xf32>
      %cst_70 = arith.constant 2.000000e+00 : f32
      %178 = vector.broadcast %cst_70 : f32 to vector<64x128xf32>
      %179 = arith.mulf %177, %178 : vector<64x128xf32>
      %180 = arith.mulf %179, %88 : vector<64x128xf32>
      %cst_71 = arith.constant 1.500000e+00 : f32
      %181 = vector.broadcast %cst_71 : f32 to vector<64x128xf32>
      %182 = arith.subf %181, %31 : vector<64x128xf32>
      %cst_72 = arith.constant 2.000000e+00 : f32
      %183 = vector.broadcast %cst_72 : f32 to vector<64x128xf32>
      %184 = arith.mulf %182, %183 : vector<64x128xf32>
      %185 = arith.mulf %184, %95 : vector<64x128xf32>
      %186 = arith.addf %180, %185 : vector<64x128xf32>
      %cst_73 = arith.constant 1.000000e+00 : f32
      %187 = vector.broadcast %cst_73 : f32 to vector<64x128xf32>
      %188 = arith.subf %31, %187 : vector<64x128xf32>
      %cst_74 = arith.constant 2.000000e+00 : f32
      %189 = vector.broadcast %cst_74 : f32 to vector<64x128xf32>
      %190 = arith.mulf %188, %189 : vector<64x128xf32>
      %191 = arith.mulf %190, %95 : vector<64x128xf32>
      %cst_75 = arith.constant 2.000000e+00 : f32
      %192 = vector.broadcast %cst_75 : f32 to vector<64x128xf32>
      %193 = arith.subf %192, %31 : vector<64x128xf32>
      %cst_76 = arith.constant 2.000000e+00 : f32
      %194 = vector.broadcast %cst_76 : f32 to vector<64x128xf32>
      %195 = arith.mulf %193, %194 : vector<64x128xf32>
      %196 = arith.mulf %195, %102 : vector<64x128xf32>
      %197 = arith.addf %191, %196 : vector<64x128xf32>
      %cst_77 = arith.constant 1.500000e+00 : f32
      %198 = vector.broadcast %cst_77 : f32 to vector<64x128xf32>
      %199 = arith.subf %31, %198 : vector<64x128xf32>
      %cst_78 = arith.constant 2.000000e+00 : f32
      %200 = vector.broadcast %cst_78 : f32 to vector<64x128xf32>
      %201 = arith.mulf %199, %200 : vector<64x128xf32>
      %202 = arith.mulf %201, %102 : vector<64x128xf32>
      %cst_79 = arith.constant 2.500000e+00 : f32
      %203 = vector.broadcast %cst_79 : f32 to vector<64x128xf32>
      %204 = arith.subf %203, %31 : vector<64x128xf32>
      %cst_80 = arith.constant 2.000000e+00 : f32
      %205 = vector.broadcast %cst_80 : f32 to vector<64x128xf32>
      %206 = arith.mulf %204, %205 : vector<64x128xf32>
      %207 = arith.mulf %206, %109 : vector<64x128xf32>
      %208 = arith.addf %202, %207 : vector<64x128xf32>
      %cst_81 = arith.constant -2.500000e+00 : f32
      %209 = vector.broadcast %cst_81 : f32 to vector<64x128xf32>
      %210 = arith.subf %31, %209 : vector<64x128xf32>
      %cst_82 = arith.constant 1.000000e+00 : f32
      %211 = vector.broadcast %cst_82 : f32 to vector<64x128xf32>
      %212 = arith.mulf %210, %211 : vector<64x128xf32>
      %213 = arith.mulf %212, %120 : vector<64x128xf32>
      %cst_83 = arith.constant -1.000000e+00 : f32
      %214 = vector.broadcast %cst_83 : f32 to vector<64x128xf32>
      %215 = arith.subf %214, %31 : vector<64x128xf32>
      %cst_84 = arith.constant 1.000000e+00 : f32
      %216 = vector.broadcast %cst_84 : f32 to vector<64x128xf32>
      %217 = arith.mulf %215, %216 : vector<64x128xf32>
      %218 = arith.mulf %217, %131 : vector<64x128xf32>
      %219 = arith.addf %213, %218 : vector<64x128xf32>
      %cst_85 = arith.constant -2.000000e+00 : f32
      %220 = vector.broadcast %cst_85 : f32 to vector<64x128xf32>
      %221 = arith.subf %31, %220 : vector<64x128xf32>
      %cst_86 = arith.constant 1.000000e+00 : f32
      %222 = vector.broadcast %cst_86 : f32 to vector<64x128xf32>
      %223 = arith.mulf %221, %222 : vector<64x128xf32>
      %224 = arith.mulf %223, %131 : vector<64x128xf32>
      %cst_87 = arith.constant -5.000000e-01 : f32
      %225 = vector.broadcast %cst_87 : f32 to vector<64x128xf32>
      %226 = arith.subf %225, %31 : vector<64x128xf32>
      %cst_88 = arith.constant 1.000000e+00 : f32
      %227 = vector.broadcast %cst_88 : f32 to vector<64x128xf32>
      %228 = arith.mulf %226, %227 : vector<64x128xf32>
      %229 = arith.mulf %228, %142 : vector<64x128xf32>
      %230 = arith.addf %224, %229 : vector<64x128xf32>
      %cst_89 = arith.constant -1.500000e+00 : f32
      %231 = vector.broadcast %cst_89 : f32 to vector<64x128xf32>
      %232 = arith.subf %31, %231 : vector<64x128xf32>
      %cst_90 = arith.constant 1.000000e+00 : f32
      %233 = vector.broadcast %cst_90 : f32 to vector<64x128xf32>
      %234 = arith.mulf %232, %233 : vector<64x128xf32>
      %235 = arith.mulf %234, %142 : vector<64x128xf32>
      %cst_91 = arith.constant 0.000000e+00 : f32
      %236 = vector.broadcast %cst_91 : f32 to vector<64x128xf32>
      %237 = arith.subf %236, %31 : vector<64x128xf32>
      %cst_92 = arith.constant 1.000000e+00 : f32
      %238 = vector.broadcast %cst_92 : f32 to vector<64x128xf32>
      %239 = arith.mulf %237, %238 : vector<64x128xf32>
      %240 = arith.mulf %239, %153 : vector<64x128xf32>
      %241 = arith.addf %235, %240 : vector<64x128xf32>
      %cst_93 = arith.constant -1.000000e+00 : f32
      %242 = vector.broadcast %cst_93 : f32 to vector<64x128xf32>
      %243 = arith.subf %31, %242 : vector<64x128xf32>
      %cst_94 = arith.constant 1.000000e+00 : f32
      %244 = vector.broadcast %cst_94 : f32 to vector<64x128xf32>
      %245 = arith.mulf %243, %244 : vector<64x128xf32>
      %246 = arith.mulf %245, %153 : vector<64x128xf32>
      %cst_95 = arith.constant 5.000000e-01 : f32
      %247 = vector.broadcast %cst_95 : f32 to vector<64x128xf32>
      %248 = arith.subf %247, %31 : vector<64x128xf32>
      %cst_96 = arith.constant 1.000000e+00 : f32
      %249 = vector.broadcast %cst_96 : f32 to vector<64x128xf32>
      %250 = arith.mulf %248, %249 : vector<64x128xf32>
      %251 = arith.mulf %250, %164 : vector<64x128xf32>
      %252 = arith.addf %246, %251 : vector<64x128xf32>
      %cst_97 = arith.constant -5.000000e-01 : f32
      %253 = vector.broadcast %cst_97 : f32 to vector<64x128xf32>
      %254 = arith.subf %31, %253 : vector<64x128xf32>
      %cst_98 = arith.constant 1.000000e+00 : f32
      %255 = vector.broadcast %cst_98 : f32 to vector<64x128xf32>
      %256 = arith.mulf %254, %255 : vector<64x128xf32>
      %257 = arith.mulf %256, %164 : vector<64x128xf32>
      %cst_99 = arith.constant 1.000000e+00 : f32
      %258 = vector.broadcast %cst_99 : f32 to vector<64x128xf32>
      %259 = arith.subf %258, %31 : vector<64x128xf32>
      %cst_100 = arith.constant 1.000000e+00 : f32
      %260 = vector.broadcast %cst_100 : f32 to vector<64x128xf32>
      %261 = arith.mulf %259, %260 : vector<64x128xf32>
      %262 = arith.mulf %261, %175 : vector<64x128xf32>
      %263 = arith.addf %257, %262 : vector<64x128xf32>
      %cst_101 = arith.constant 0.000000e+00 : f32
      %264 = vector.broadcast %cst_101 : f32 to vector<64x128xf32>
      %265 = arith.subf %31, %264 : vector<64x128xf32>
      %cst_102 = arith.constant 1.000000e+00 : f32
      %266 = vector.broadcast %cst_102 : f32 to vector<64x128xf32>
      %267 = arith.mulf %265, %266 : vector<64x128xf32>
      %268 = arith.mulf %267, %175 : vector<64x128xf32>
      %cst_103 = arith.constant 1.500000e+00 : f32
      %269 = vector.broadcast %cst_103 : f32 to vector<64x128xf32>
      %270 = arith.subf %269, %31 : vector<64x128xf32>
      %cst_104 = arith.constant 1.000000e+00 : f32
      %271 = vector.broadcast %cst_104 : f32 to vector<64x128xf32>
      %272 = arith.mulf %270, %271 : vector<64x128xf32>
      %273 = arith.mulf %272, %186 : vector<64x128xf32>
      %274 = arith.addf %268, %273 : vector<64x128xf32>
      %cst_105 = arith.constant 5.000000e-01 : f32
      %275 = vector.broadcast %cst_105 : f32 to vector<64x128xf32>
      %276 = arith.subf %31, %275 : vector<64x128xf32>
      %cst_106 = arith.constant 1.000000e+00 : f32
      %277 = vector.broadcast %cst_106 : f32 to vector<64x128xf32>
      %278 = arith.mulf %276, %277 : vector<64x128xf32>
      %279 = arith.mulf %278, %186 : vector<64x128xf32>
      %cst_107 = arith.constant 2.000000e+00 : f32
      %280 = vector.broadcast %cst_107 : f32 to vector<64x128xf32>
      %281 = arith.subf %280, %31 : vector<64x128xf32>
      %cst_108 = arith.constant 1.000000e+00 : f32
      %282 = vector.broadcast %cst_108 : f32 to vector<64x128xf32>
      %283 = arith.mulf %281, %282 : vector<64x128xf32>
      %284 = arith.mulf %283, %197 : vector<64x128xf32>
      %285 = arith.addf %279, %284 : vector<64x128xf32>
      %cst_109 = arith.constant 1.000000e+00 : f32
      %286 = vector.broadcast %cst_109 : f32 to vector<64x128xf32>
      %287 = arith.subf %31, %286 : vector<64x128xf32>
      %cst_110 = arith.constant 1.000000e+00 : f32
      %288 = vector.broadcast %cst_110 : f32 to vector<64x128xf32>
      %289 = arith.mulf %287, %288 : vector<64x128xf32>
      %290 = arith.mulf %289, %197 : vector<64x128xf32>
      %cst_111 = arith.constant 2.500000e+00 : f32
      %291 = vector.broadcast %cst_111 : f32 to vector<64x128xf32>
      %292 = arith.subf %291, %31 : vector<64x128xf32>
      %cst_112 = arith.constant 1.000000e+00 : f32
      %293 = vector.broadcast %cst_112 : f32 to vector<64x128xf32>
      %294 = arith.mulf %292, %293 : vector<64x128xf32>
      %295 = arith.mulf %294, %208 : vector<64x128xf32>
      %296 = arith.addf %290, %295 : vector<64x128xf32>
      %cst_113 = arith.constant -2.500000e+00 : f32
      %297 = vector.broadcast %cst_113 : f32 to vector<64x128xf32>
      %298 = arith.subf %31, %297 : vector<64x128xf32>
      %cst_114 = arith.constant 0.666666686 : f32
      %299 = vector.broadcast %cst_114 : f32 to vector<64x128xf32>
      %300 = arith.mulf %298, %299 : vector<64x128xf32>
      %301 = arith.mulf %300, %219 : vector<64x128xf32>
      %cst_115 = arith.constant -5.000000e-01 : f32
      %302 = vector.broadcast %cst_115 : f32 to vector<64x128xf32>
      %303 = arith.subf %302, %31 : vector<64x128xf32>
      %cst_116 = arith.constant 0.666666686 : f32
      %304 = vector.broadcast %cst_116 : f32 to vector<64x128xf32>
      %305 = arith.mulf %303, %304 : vector<64x128xf32>
      %306 = arith.mulf %305, %230 : vector<64x128xf32>
      %307 = arith.addf %301, %306 : vector<64x128xf32>
      %cst_117 = arith.constant -2.000000e+00 : f32
      %308 = vector.broadcast %cst_117 : f32 to vector<64x128xf32>
      %309 = arith.subf %31, %308 : vector<64x128xf32>
      %cst_118 = arith.constant 0.666666686 : f32
      %310 = vector.broadcast %cst_118 : f32 to vector<64x128xf32>
      %311 = arith.mulf %309, %310 : vector<64x128xf32>
      %312 = arith.mulf %311, %230 : vector<64x128xf32>
      %cst_119 = arith.constant 0.000000e+00 : f32
      %313 = vector.broadcast %cst_119 : f32 to vector<64x128xf32>
      %314 = arith.subf %313, %31 : vector<64x128xf32>
      %cst_120 = arith.constant 0.666666686 : f32
      %315 = vector.broadcast %cst_120 : f32 to vector<64x128xf32>
      %316 = arith.mulf %314, %315 : vector<64x128xf32>
      %317 = arith.mulf %316, %241 : vector<64x128xf32>
      %318 = arith.addf %312, %317 : vector<64x128xf32>
      %cst_121 = arith.constant -1.500000e+00 : f32
      %319 = vector.broadcast %cst_121 : f32 to vector<64x128xf32>
      %320 = arith.subf %31, %319 : vector<64x128xf32>
      %cst_122 = arith.constant 0.666666686 : f32
      %321 = vector.broadcast %cst_122 : f32 to vector<64x128xf32>
      %322 = arith.mulf %320, %321 : vector<64x128xf32>
      %323 = arith.mulf %322, %241 : vector<64x128xf32>
      %cst_123 = arith.constant 5.000000e-01 : f32
      %324 = vector.broadcast %cst_123 : f32 to vector<64x128xf32>
      %325 = arith.subf %324, %31 : vector<64x128xf32>
      %cst_124 = arith.constant 0.666666686 : f32
      %326 = vector.broadcast %cst_124 : f32 to vector<64x128xf32>
      %327 = arith.mulf %325, %326 : vector<64x128xf32>
      %328 = arith.mulf %327, %252 : vector<64x128xf32>
      %329 = arith.addf %323, %328 : vector<64x128xf32>
      %cst_125 = arith.constant -1.000000e+00 : f32
      %330 = vector.broadcast %cst_125 : f32 to vector<64x128xf32>
      %331 = arith.subf %31, %330 : vector<64x128xf32>
      %cst_126 = arith.constant 0.666666686 : f32
      %332 = vector.broadcast %cst_126 : f32 to vector<64x128xf32>
      %333 = arith.mulf %331, %332 : vector<64x128xf32>
      %334 = arith.mulf %333, %252 : vector<64x128xf32>
      %cst_127 = arith.constant 1.000000e+00 : f32
      %335 = vector.broadcast %cst_127 : f32 to vector<64x128xf32>
      %336 = arith.subf %335, %31 : vector<64x128xf32>
      %cst_128 = arith.constant 0.666666686 : f32
      %337 = vector.broadcast %cst_128 : f32 to vector<64x128xf32>
      %338 = arith.mulf %336, %337 : vector<64x128xf32>
      %339 = arith.mulf %338, %263 : vector<64x128xf32>
      %340 = arith.addf %334, %339 : vector<64x128xf32>
      %cst_129 = arith.constant -5.000000e-01 : f32
      %341 = vector.broadcast %cst_129 : f32 to vector<64x128xf32>
      %342 = arith.subf %31, %341 : vector<64x128xf32>
      %cst_130 = arith.constant 0.666666686 : f32
      %343 = vector.broadcast %cst_130 : f32 to vector<64x128xf32>
      %344 = arith.mulf %342, %343 : vector<64x128xf32>
      %345 = arith.mulf %344, %263 : vector<64x128xf32>
      %cst_131 = arith.constant 1.500000e+00 : f32
      %346 = vector.broadcast %cst_131 : f32 to vector<64x128xf32>
      %347 = arith.subf %346, %31 : vector<64x128xf32>
      %cst_132 = arith.constant 0.666666686 : f32
      %348 = vector.broadcast %cst_132 : f32 to vector<64x128xf32>
      %349 = arith.mulf %347, %348 : vector<64x128xf32>
      %350 = arith.mulf %349, %274 : vector<64x128xf32>
      %351 = arith.addf %345, %350 : vector<64x128xf32>
      %cst_133 = arith.constant 0.000000e+00 : f32
      %352 = vector.broadcast %cst_133 : f32 to vector<64x128xf32>
      %353 = arith.subf %31, %352 : vector<64x128xf32>
      %cst_134 = arith.constant 0.666666686 : f32
      %354 = vector.broadcast %cst_134 : f32 to vector<64x128xf32>
      %355 = arith.mulf %353, %354 : vector<64x128xf32>
      %356 = arith.mulf %355, %274 : vector<64x128xf32>
      %cst_135 = arith.constant 2.000000e+00 : f32
      %357 = vector.broadcast %cst_135 : f32 to vector<64x128xf32>
      %358 = arith.subf %357, %31 : vector<64x128xf32>
      %cst_136 = arith.constant 0.666666686 : f32
      %359 = vector.broadcast %cst_136 : f32 to vector<64x128xf32>
      %360 = arith.mulf %358, %359 : vector<64x128xf32>
      %361 = arith.mulf %360, %285 : vector<64x128xf32>
      %362 = arith.addf %356, %361 : vector<64x128xf32>
      %cst_137 = arith.constant 5.000000e-01 : f32
      %363 = vector.broadcast %cst_137 : f32 to vector<64x128xf32>
      %364 = arith.subf %31, %363 : vector<64x128xf32>
      %cst_138 = arith.constant 0.666666686 : f32
      %365 = vector.broadcast %cst_138 : f32 to vector<64x128xf32>
      %366 = arith.mulf %364, %365 : vector<64x128xf32>
      %367 = arith.mulf %366, %285 : vector<64x128xf32>
      %cst_139 = arith.constant 2.500000e+00 : f32
      %368 = vector.broadcast %cst_139 : f32 to vector<64x128xf32>
      %369 = arith.subf %368, %31 : vector<64x128xf32>
      %cst_140 = arith.constant 0.666666686 : f32
      %370 = vector.broadcast %cst_140 : f32 to vector<64x128xf32>
      %371 = arith.mulf %369, %370 : vector<64x128xf32>
      %372 = arith.mulf %371, %296 : vector<64x128xf32>
      %373 = arith.addf %367, %372 : vector<64x128xf32>
      %c0_141 = arith.constant 0 : index
      %c0_142 = arith.constant 0 : index
      %c0_143 = arith.constant 0 : index
      %374 = vector.load %arg10[%c0_141, %c0_142, %c0_143] : memref<7x128x128xf32, #tpu.memory_space<vmem>>, vector<1x128x128xf32>
      %375 = vector.shape_cast %374 : vector<1x128x128xf32> to vector<128x128xf32>
      %cst_144 = arith.constant dense<0.000000e+00> : vector<64x128xf32>
      %376 = tpu.matmul %307, %375, %cst_144 {dimension_numbers = #tpu.dot_dimension_numbers<[1], [0], [0], [1], [0, 0, 1, 1], [], []>} : vector<64x128xf32>, vector<128x128xf32>, vector<64x128xf32> -> vector<64x128xf32>
      %c1 = arith.constant 1 : index
      %c0_145 = arith.constant 0 : index
      %c0_146 = arith.constant 0 : index
      %377 = vector.load %arg10[%c1, %c0_145, %c0_146] : memref<7x128x128xf32, #tpu.memory_space<vmem>>, vector<1x128x128xf32>
      %378 = vector.shape_cast %377 : vector<1x128x128xf32> to vector<128x128xf32>
      %cst_147 = arith.constant dense<0.000000e+00> : vector<64x128xf32>
      %379 = tpu.matmul %318, %378, %cst_147 {dimension_numbers = #tpu.dot_dimension_numbers<[1], [0], [0], [1], [0, 0, 1, 1], [], []>} : vector<64x128xf32>, vector<128x128xf32>, vector<64x128xf32> -> vector<64x128xf32>
      %380 = arith.addf %376, %379 : vector<64x128xf32>
      %c2 = arith.constant 2 : index
      %c0_148 = arith.constant 0 : index
      %c0_149 = arith.constant 0 : index
      %381 = vector.load %arg10[%c2, %c0_148, %c0_149] : memref<7x128x128xf32, #tpu.memory_space<vmem>>, vector<1x128x128xf32>
      %382 = vector.shape_cast %381 : vector<1x128x128xf32> to vector<128x128xf32>
      %cst_150 = arith.constant dense<0.000000e+00> : vector<64x128xf32>
      %383 = tpu.matmul %329, %382, %cst_150 {dimension_numbers = #tpu.dot_dimension_numbers<[1], [0], [0], [1], [0, 0, 1, 1], [], []>} : vector<64x128xf32>, vector<128x128xf32>, vector<64x128xf32> -> vector<64x128xf32>
      %384 = arith.addf %380, %383 : vector<64x128xf32>
      %c3 = arith.constant 3 : index
      %c0_151 = arith.constant 0 : index
      %c0_152 = arith.constant 0 : index
      %385 = vector.load %arg10[%c3, %c0_151, %c0_152] : memref<7x128x128xf32, #tpu.memory_space<vmem>>, vector<1x128x128xf32>
      %386 = vector.shape_cast %385 : vector<1x128x128xf32> to vector<128x128xf32>
      %cst_153 = arith.constant dense<0.000000e+00> : vector<64x128xf32>
      %387 = tpu.matmul %340, %386, %cst_153 {dimension_numbers = #tpu.dot_dimension_numbers<[1], [0], [0], [1], [0, 0, 1, 1], [], []>} : vector<64x128xf32>, vector<128x128xf32>, vector<64x128xf32> -> vector<64x128xf32>
      %388 = arith.addf %384, %387 : vector<64x128xf32>
      %c4 = arith.constant 4 : index
      %c0_154 = arith.constant 0 : index
      %c0_155 = arith.constant 0 : index
      %389 = vector.load %arg10[%c4, %c0_154, %c0_155] : memref<7x128x128xf32, #tpu.memory_space<vmem>>, vector<1x128x128xf32>
      %390 = vector.shape_cast %389 : vector<1x128x128xf32> to vector<128x128xf32>
      %cst_156 = arith.constant dense<0.000000e+00> : vector<64x128xf32>
      %391 = tpu.matmul %351, %390, %cst_156 {dimension_numbers = #tpu.dot_dimension_numbers<[1], [0], [0], [1], [0, 0, 1, 1], [], []>} : vector<64x128xf32>, vector<128x128xf32>, vector<64x128xf32> -> vector<64x128xf32>
      %392 = arith.addf %388, %391 : vector<64x128xf32>
      %c5 = arith.constant 5 : index
      %c0_157 = arith.constant 0 : index
      %c0_158 = arith.constant 0 : index
      %393 = vector.load %arg10[%c5, %c0_157, %c0_158] : memref<7x128x128xf32, #tpu.memory_space<vmem>>, vector<1x128x128xf32>
      %394 = vector.shape_cast %393 : vector<1x128x128xf32> to vector<128x128xf32>
      %cst_159 = arith.constant dense<0.000000e+00> : vector<64x128xf32>
      %395 = tpu.matmul %362, %394, %cst_159 {dimension_numbers = #tpu.dot_dimension_numbers<[1], [0], [0], [1], [0, 0, 1, 1], [], []>} : vector<64x128xf32>, vector<128x128xf32>, vector<64x128xf32> -> vector<64x128xf32>
      %396 = arith.addf %392, %395 : vector<64x128xf32>
      %c6 = arith.constant 6 : index
      %c0_160 = arith.constant 0 : index
      %c0_161 = arith.constant 0 : index
      %397 = vector.load %arg10[%c6, %c0_160, %c0_161] : memref<7x128x128xf32, #tpu.memory_space<vmem>>, vector<1x128x128xf32>
      %398 = vector.shape_cast %397 : vector<1x128x128xf32> to vector<128x128xf32>
      %cst_162 = arith.constant dense<0.000000e+00> : vector<64x128xf32>
      %399 = tpu.matmul %373, %398, %cst_162 {dimension_numbers = #tpu.dot_dimension_numbers<[1], [0], [0], [1], [0, 0, 1, 1], [], []>} : vector<64x128xf32>, vector<128x128xf32>, vector<64x128xf32> -> vector<64x128xf32>
      %400 = arith.addf %396, %399 : vector<64x128xf32>
      %401 = arith.addf %39, %400 : vector<64x128xf32>
      %c0_163 = arith.constant 0 : index
      %c0_164 = arith.constant 0 : index
      %402 = vector.load %arg11[%c0_163, %c0_164] : memref<64x128xf32, #tpu.memory_space<vmem>>, vector<64x128xf32>
      tpu.vector_store %arg11[%c0_163, %c0_164], %401 {strides = array<i32>} : memref<64x128xf32, #tpu.memory_space<vmem>>, vector<64x128xf32>,
    } else {
    }
    return
  }
  func.func @transform_0(%arg0: i32) -> (i32, i32) {
    %c0_i32 = arith.constant 0 : i32
    %c0_i32_0 = arith.constant 0 : i32
    return %arg0, %c0_i32 : i32, i32
  }
  func.func @transform_1(%arg0: i32) -> (i32, i32) {
    %c0_i32 = arith.constant 0 : i32
    %c0_i32_0 = arith.constant 0 : i32
    return %c0_i32, %arg0 : i32, i32
  }
  func.func @transform_2(%arg0: i32) -> (i32, i32) {
    %c0_i32 = arith.constant 0 : i32
    %c0_i32_0 = arith.constant 0 : i32
    %c0_i32_1 = arith.constant 0 : i32
    return %c0_i32, %c0_i32_0 : i32, i32
  }
  func.func @transform_3(%arg0: i32) -> (i32, i32) {
    %c0_i32 = arith.constant 0 : i32
    %c0_i32_0 = arith.constant 0 : i32
    return %arg0, %c0_i32 : i32, i32
  }
  func.func @transform_4(%arg0: i32) -> (i32, i32) {
    %c0_i32 = arith.constant 0 : i32
    %c0_i32_0 = arith.constant 0 : i32
    %c0_i32_1 = arith.constant 0 : i32
    return %c0_i32, %c0_i32_0 : i32, i32
  }
  func.func @transform_5(%arg0: i32) -> (i32, i32) {
    %c0_i32 = arith.constant 0 : i32
    %c0_i32_0 = arith.constant 0 : i32
    %c0_i32_1 = arith.constant 0 : i32
    return %c0_i32, %c0_i32_0 : i32, i32
  }
  func.func @transform_6(%arg0: i32) -> (i32, i32) {
    %c0_i32 = arith.constant 0 : i32
    %c0_i32_0 = arith.constant 0 : i32
    %c0_i32_1 = arith.constant 0 : i32
    return %c0_i32, %c0_i32_0 : i32, i32
  }
  func.func @transform_7(%arg0: i32) -> (i32, i32) {
    %c0_i32 = arith.constant 0 : i32
    %c0_i32_0 = arith.constant 0 : i32
    %c0_i32_1 = arith.constant 0 : i32
    return %c0_i32, %c0_i32_0 : i32, i32
  }
  func.func @transform_8(%arg0: i32) -> (i32, i32) {
    %c0_i32 = arith.constant 0 : i32
    %c0_i32_0 = arith.constant 0 : i32
    %c0_i32_1 = arith.constant 0 : i32
    return %c0_i32, %c0_i32_0 : i32, i32
  }
  func.func @transform_9(%arg0: i32) -> (i32, i32, i32) {
    %c0_i32 = arith.constant 0 : i32
    %c0_i32_0 = arith.constant 0 : i32
    %c0_i32_1 = arith.constant 0 : i32
    %c0_i32_2 = arith.constant 0 : i32
    return %c0_i32, %c0_i32_0, %c0_i32_1 : i32, i32, i32
  }
  func.func @transform_10(%arg0: i32) -> (i32, i32) {
    %c0_i32 = arith.constant 0 : i32
    %c0_i32_0 = arith.constant 0 : i32
    %c0_i32_1 = arith.constant 0 : i32
    return %c0_i32, %c0_i32_0 : i32, i32
  }
}

</mosaic_0001>

<bundles_post_ra>
// kernel: tpu_custom_call.1
= control target key start
LH: loop header
LB: loop body
LE: loop exit
PB: predicated region body
PF: predicated region fallthrough
CT: control target
= control target key end

     0   :  { %s8126_s0 = inlined_call_operand.vmem [shape: s32[1536,1], index: 0, kind: input, shape index: {}]   ;;  %s8127_s1 = inlined_call_operand.hbm [shape: s32[1,1536], index: 1, kind: input, shape index: {}]   ;;  %s8128_s2 = inlined_call_operand.vmem [shape: f32[64,16], index: 2, kind: input, shape index: {}]   ;;  %s8129_s3 = inlined_call_operand.hbm [shape: f32[1536,384], index: 3, kind: input, shape index: {}]   ;;  %s8130_s4 = inlined_call_operand.hbm [shape: f32[16,128], index: 4, kind: input, shape index: {}]   ;;  %s8131_s5 = inlined_call_operand.hbm [shape: f32[1,128], index: 5, kind: input, shape index: {}]   ;;  %s8132_s6 = inlined_call_operand.hbm [shape: f32[384,128], index: 6, kind: input, shape index: {}]   ;;  %s8133_s7 = inlined_call_operand.hbm [shape: f32[1,128], index: 7, kind: input, shape index: {}]   ;;  %s8134_s8 = inlined_call_operand.hbm [shape: f32[128,128], index: 8, kind: input, shape index: {}]   ;;  %s8135_s9 = inlined_call_operand.hbm [shape: f32[7,128,128], index: 9, kind: input, shape index: {}]   ;;  %s8136_s10 = inlined_call_operand.hbm [shape: f32[64,128], index: 10, kind: output, shape index: {}]  }
   0x1   :  { %8138 = sst [smem:[#allocation26_spill]] %s8130_s4 }
   0x2   :  { %8139 = sst [smem:[#allocation27_spill]] %s8131_s5 }
   0x3   :  { %8140 = sst [smem:[#allocation28_spill]] %s8132_s6 }
   0x4   :  { %8141 = sst [smem:[#allocation29_spill]] %s8133_s7 }
   0x5   :  { %8142 = sst [smem:[#allocation30_spill]] %s8134_s8 }
   0x6   :  { %8143 = sst [smem:[#allocation31_spill]] %s8135_s9 }
   0x7   :  { %15 = vsyncpa [#allocation4], 0 }
   0x8   :  { %17 = vsyncpa [#allocation4 + $0x1], 0 }
   0x9   :  { %18 = vsyncpa [#allocation7], 0 }
   0xa   :  { %20 = vsyncpa [#allocation7 + $0x1], 0 }
   0xb   :  { %21 = vsyncpa [#allocation10], 0 }
   0xc   :  { %22 = vsyncpa [#allocation13], 0 }
   0xd   :  { %23 = vsyncpa [#allocation16], 0 }
   0xe   :  { %24 = vsyncpa [#allocation5], 0  ;;  %s5884_s13 = smov 0   ;;  %s5886_s14 = smov 0  }
   0xf   :  { %s5888_s15 = smov 0   ;;  %s5890_s16 = smov 0  }
  0x10 LB: > { %s8144_s4 = sld [smem:[#allocation26_spill]]  ;;  %s5908_s20 = sadd.s32 4294967295, %s5809_s16   ;;  %s5809_s16 = sphi %s5890_s16, %s8197_s16   ;;  %s5805_s15 = sphi %s5888_s15, %s8196_s15   ;;  %s5801_s14 = sphi %s5886_s14, %s8195_s14   ;;  %s5797_s13 = sphi %s5884_s13, %s8194_s13  }
  0x11   : > { %p4924_p0 = scmp.ge.s32.totalorder %s5809_s16, 1  ;;  %p77_p1 = scmp.eq.s32.totalorder %s5908_s20, 0 }
  0x12   : > { %p281_p2 = scmp.lt.s32.totalorder %s5809_s16, 4  ;;  %p4925_p3 = scmp.ne.s32.totalorder %s5908_s20, 0 }
  0x13   : > { %s5811_s22 = smov [#allocation8]   ;;  %s8146_s5 = sld [smem:[#allocation27_spill]] }
  0x14   : > { %p5914_p4 = pnand %p4924_p0, %p281_p2  ;;  %s297_s23 = sshll.u32 %s5811_s22, 4  ;;  %s298_s23 = int_to_ptr.vmem [resolvable:$true] %s297_s23 }
  0x15   : > { %s8148_s7 = sld [smem:[#allocation29_spill]]  ;;  %s5812_s11 = smov [#allocation9]  }
  0x16   : > { %s295_s19 = sshll.u32 %s8144_s4, 4  ;;  %p5346_p5 = pneg %p5914_p4  ;;  %s296_s19 = int_to_ptr.hbm [resolvable:$true] %s295_s19 }
  0x17   : > { %s312_s12 = sshll.u32 %s5812_s11, 4  ;;  %s5813_s17 = smov 128   ;;  %s313_s12 = int_to_ptr.vmem [resolvable:$true] %s312_s12 }
  0x18   : > { %p5925_p6 = pnand %p5346_p5, %p77_p1  ;;  %s5814_s18 = smov 8  }
  0x19   : > { %s310_s26 = sshll.u32 %s8146_s5, 4  ;;  %s8149_s6 = sld [smem:[#allocation28_spill]]  ;;  %s311_s26 = int_to_ptr.hbm [resolvable:$true] %s310_s26 }
  0x1a   : > { %5349 = dma.hbm_to_vmem [thread:$0]  (!%p5925_p6), %s296_s19, 256, %s298_s23, [#allocation7], %s5813_s17, %s5813_s17, %s5814_s18  }
  0x1b   : > { %s336_s30 = sshll.u32 %s8148_s7, 4  ;;  %s5815_s28 = smov [#allocation12]   ;;  %s337_s30 = int_to_ptr.hbm [resolvable:$true] %s336_s30 }
  0x1c   : > { %5352 = dma.hbm_to_vmem [thread:$0]  (!%p5925_p6), %s311_s26, 16, %s313_s12, [#allocation10]  }
  0x1d   : > { %s338_s29 = sshll.u32 %s5815_s28, 4  ;;  %s5816_s11 = smov [#allocation11]   ;;  %s339_s29 = int_to_ptr.vmem [resolvable:$true] %s338_s29 }
  0x1e   : > { %5358 = dma.hbm_to_vmem [thread:$0]  (!%p5925_p6), %s337_s30, 16, %s339_s29, [#allocation13]  }
  0x1f   : > { %s321_s25 = sshll.u32 %s8149_s6, 4  ;;  %s323_s4 = sshll.u32 %s5816_s11, 4  ;;  %s322_s25 = int_to_ptr.hbm [resolvable:$true] %s321_s25  ;;  %s324_s4 = int_to_ptr.vmem [resolvable:$true] %s323_s4 }
  0x20   : > { %s8150_s8 = sld [smem:[#allocation30_spill]]  ;;  %s5817_s24 = smov [#allocation14]  }
  0x21   : > { %5355 = dma.hbm_to_vmem [thread:$0]  (!%p5925_p6), %s322_s25, 6144, %s324_s4, [#allocation10], %s5813_s17, %s5813_s17, %s5814_s18  }
  0x22   : > { %s8151_s9 = sld [smem:[#allocation31_spill]]  ;;  %s349_s28 = sshll.u32 %s5817_s24, 4  ;;  %s350_s28 = int_to_ptr.vmem [resolvable:$true] %s349_s28 }
  0x23   : > { %s5818_s4 = smov [#allocation15]   ;;  %s5966_s29 = sadd.s32 1, %s5809_s16  }
  0x24   : > { %s363_s25 = sshll.u32 %s5818_s4, 4  ;;  %s63_s11 = sadd.s32 1, %s5805_s15  ;;  %s364_s25 = int_to_ptr.vmem [resolvable:$true] %s363_s25 }
  0x25   : > { %s60_s19 = ssub.s32 %s5809_s16, %s5966_s29  ;;  %p70_p7 = scmp.ne.s32.totalorder %s5805_s15, %s5801_s14 }
  0x26   : > { %s347_s26 = sshll.u32 %s8150_s8, 4  ;;  %p61_p8 = scmp.eq.s32.totalorder %s60_s19, 0  ;;  %s348_s26 = int_to_ptr.hbm [resolvable:$true] %s347_s26 }
  0x27   : > { %5361 = dma.hbm_to_vmem [thread:$0]  (!%p5925_p6), %s348_s26, 2048, %s350_s28, [#allocation13], %s5813_s17, %s5813_s17, %s5814_s18  }
  0x28   : > { %s361_s22 = sshll.u32 %s8151_s9, 4  ;;  %p71_p9 = scmp.eq.s32.totalorder %s5809_s16, 0  ;;  %s362_s22 = int_to_ptr.hbm [resolvable:$true] %s361_s22 }
  0x29   : > { %5364 = dma.hbm_to_vmem [thread:$0]  (!%p5925_p6), %s362_s22, 14336, %s364_s25, [#allocation16], %s5813_s17, %s5813_s17, %s5814_s18  }
  0x2a   : > { %p76_p10 = scmp.ne.s32.totalorder %s5801_s14, %s5797_s13  ;;  %p5378_p11 = scmp.lt.s32.totalorder %s5809_s16, 3 }
  0x2b   : > { %s5978_s23 = scalar_select %p61_p8, %s5805_s15, %s63_s11  }
  0x2c   : > { %p72_p12 = por %p71_p9, %p70_p7  ;;  %p5982_p13 = por %p77_p1, %p76_p10 }
  0x2d   : > { %s5987_s17 = sand.u32 1, %s5805_s15   ;;  %s4933_s18 = sshll.u32 %s5809_s16, 2 }
  0x2e   : > { %s4932_s26 = sshll.u32 %s5987_s17, 2  ;;  %s394_s12 = scalar_lea.hbm %s8127_s1, %s4933_s18 }
  0x2f   : > { %s396_s22 = sshll.u32 %s394_s12, 4  ;;  %s390_s24 = scalar_lea.vmem [#allocation3], %s4932_s26  ;;  %s397_s22 = int_to_ptr.hbm [resolvable:$true] %s396_s22 }
  0x30   : > { %s398_s28 = sshll.u32 %s390_s24, 4  ;;  %p5996_p0 = pnand %p5378_p11, %p72_p12  ;;  %s399_s28 = int_to_ptr.vmem [resolvable:$true] %s398_s28 }
  0x31   : > { %s5311_s25 = smul.u32 1536, %s5987_s17  ;;  %s405_s11 = sand.u32 1, %s5809_s16  }
  0x32   : > { %s5312_s19 = smul.u32 1536, %s5809_s16  ;;  %s387_s5 = scalar_lea.sflag [#allocation4], %s5987_s17 }
  0x33   : > { %s5663_s6 = sshra.s32 %s397_s22, 4  ;;  %p5667_p5 = pneg %p5996_p0  ;;  %s5664_s6 = int_to_ptr.hbm [resolvable:$true] %s5663_s6 }
  0x34   : > { %s5665_s30 = scalar_lea.hbm %s5664_s6, 4  ;;  %s5670_s13 = scalar_lea.hbm %s8127_s1, 12 }
  0x35   : > { %p5666_p2 = scmp.ne.s32.totalorder %s5664_s6, %s5665_s30  ;;  %p5671_p8 = scmp.lt.s32.totalorder %s5664_s6, %s8127_s1 }
  0x36   : > { %p5672_p9 = scmp.lt.s32.totalorder %s5670_s13, %s5665_s30 }
  0x37   : > { %p5668_p6 = pnand %p5667_p5, %p5666_p2 }
  0x38   : > { %p5673_p10 = por %p5672_p9, %p5671_p8 }
  0x39   : > { %p5669_p7 = pneg %p5668_p6 }
  0x3b   : > { %p5674_p11 = pnand %p5673_p10, %p5669_p7 }
  0x3d   : > { %5677 = shalt.err (!%p5674_p11)
}
  0x3e   : > { %5368 = dma.hbm_to_vmem [thread:$0]  (!%p5996_p0), %s397_s22, 64, %s399_s28, %s387_s5  }
  0x3f   : > { %s409_s16 = scalar_lea.vmem [#allocation6], %s5311_s25  ;;  %s415_s18 = scalar_lea.hbm %s8129_s3, %s5312_s19 }
  0x40   : > { %s418_s17 = sshll.u32 %s409_s16, 4  ;;  %s416_s26 = sshll.u32 %s415_s18, 4  ;;  %s419_s17 = int_to_ptr.vmem [resolvable:$true] %s418_s17  ;;  %s417_s26 = int_to_ptr.hbm [resolvable:$true] %s416_s26 }
  0x41   : > { %s406_s9 = scalar_lea.sflag [#allocation7], %s405_s11  ;;  %s5693_s12 = sshra.s32 %s417_s26, 4  ;;  %s5694_s12 = int_to_ptr.hbm [resolvable:$true] %s5693_s12 }
  0x42   : > { %s5695_s6 = scalar_lea.hbm %s5694_s12, 1536  ;;  %s5700_s22 = scalar_lea.hbm %s8129_s3, 4608 }
  0x43   : > { %p5696_p12 = scmp.ne.s32.totalorder %s5694_s12, %s5695_s6  ;;  %p5701_p7 = scmp.lt.s32.totalorder %s5694_s12, %s8129_s3 }
  0x44   : > { %p5702_p8 = scmp.lt.s32.totalorder %s5700_s22, %s5695_s6 }
  0x45   : > { %p5698_p2 = pnand %p5696_p12, %p5667_p5 }
  0x46   : > { %p5703_p9 = por %p5702_p8, %p5701_p7 }
  0x47   : > { %p5699_p6 = pneg %p5698_p2 }
  0x49   : > { %p5704_p10 = pnand %p5703_p9, %p5699_p6 }
  0x4b   : > { %5707 = shalt.err (!%p5704_p10)
}
  0x4c   : > { %s5819_s7 = smov 384   ;;  %s5820_s8 = smov 24  }
  0x4d   : > { %5371 = dma.hbm_to_vmem [thread:$0]  (!%p5996_p0), %s417_s26, 24576, %s419_s17, %s406_s9, %s5819_s7, %s5819_s7, %s5820_s8  }
  0x4e   : > { %430 = sbr.rel (%p5914_p4) target bundleno = 1743 (0x6cf), region = 60  ;;  %s432_s11 = sand.u32 (!%p5914_p4), 1, %s5801_s14  }
  0x4f   : > { %s4938_s19 = sshll.u32 (!%p5914_p4), %s432_s11, 2  ;;  %s433_s13 = scalar_lea.sflag (!%p5914_p4), [#allocation4], %s432_s11 }
  0x50   : > { %s6034_s24 = scalar_lea.vmem (!%p5914_p4), [#allocation3], %s4938_s19 }
  0x53   : > { %5768 = dma.done.wait (%p5982_p13), %s433_s13, 64  }
  0x54   : > { %5770 = vsyncadd (%p5982_p13), %s433_s13, 4294967232  ;;  %s442_s16 = sand.u32 1, %s5908_s20   ;;  %s5313_s4 = smul.u32 1536, %s432_s11 }
  0x55   : > { %s443_s9 = scalar_lea.sflag [#allocation7], %s442_s16 }
  0x56   : > { %s6041_s17 = scalar_lea.vmem [#allocation6], %s5313_s4 }
  0x57   : > { %5772 = dma.done.wait (%p5982_p13), %s443_s9, 24576  }
  0x58   : > { %5774 = vsyncadd (%p5982_p13), %s443_s9, 4294942720 }
  0x59   : > { %5776 = dma.done.wait (%p77_p1), [#allocation7], 256  }
  0x5a   : > { %5778 = vsyncadd (%p77_p1), [#allocation7], 4294967040 }
  0x5b   : > { %5780 = dma.done.wait (%p77_p1), [#allocation10], 6160  }
  0x5c   : > { %5782 = vsyncadd (%p77_p1), [#allocation10], 4294961136 }
  0x5d   : > { %5784 = dma.done.wait (%p77_p1), [#allocation13], 2064  }
  0x5e   : > { %5786 = vsyncadd (%p77_p1), [#allocation13], 4294965232 }
  0x5f   : > { %5788 = dma.done.wait (%p77_p1), [#allocation16], 14336  }
  0x60   : > { %5790 = vsyncadd (%p77_p1), [#allocation16], 4294952960  ;;  %s4945_s21 = sshll.u32 %s5908_s20, 6 }
  0x61   : > { %p520_p4 = scmp.lt.s32.totalorder %s4945_s21, 191  ;;  %530 = sbr.rel (%p4925_p3) target bundleno = 250 (0xfa), region = 96 }
  0x63   : > { %s8199_s21 = smov (!%p520_p4, %s4945_s21), 191 }
  0x64   : > { %s4946_s27 = sshll.u32 %s8199_s21, 3 }
  0x65   : > { %s6067_s12 = scalar_lea.vmem %s8126_s0, %s4946_s27 }
  0x66   : > { %v540_v0 = vld [vmem:[#allocation8 + $0x8] sm:$0xff]  ;;  %v539_v1 = vld [vmem:[#allocation8] sm:$0xff]  ;;  %v535_v2 = vld [vmem:[%s8128_s2 + $0x20] sm:$0xff]  ;;  %vm545_vm0 = vcmask 130048   ;;  %v5821_v10 = vmov 0.0  }
  0x67   : > { %5306 = vmatpush.msra.mxu2 %v540_v0  ;;  %5307 = vmatpush.msra.mxu3 %v540_v0  ;;  %v537_v3 = vld [vmem:[%s8128_s2 + $0x30] sm:$0xff]  ;;  %v531_v4 = vld [vmem:[%s8128_s2] sm:$0xff]  ;;  %v536_v6 = vld [vmem:[%s8128_s2 + $0x28] sm:$0xff]  ;;  %619 = vst [vmem:[#allocation17] sm:$0xff] %v5821_v10 }
  0x68   : > { %584 = vmatpush.msra.mxu0 %v540_v0  ;;  %5305 = vmatpush.msra.mxu1 %v540_v0  ;;  %v533_v5 = vld [vmem:[%s8128_s2 + $0x10] sm:$0xff]  ;;  %v538_v7 = vld [vmem:[%s8128_s2 + $0x38] sm:$0xff]  ;;  %v532_v8 = vld [vmem:[%s8128_s2 + $0x8] sm:$0xff]  ;;  %620 = vst [vmem:[#allocation17 + $0x8] sm:$0xff] %v5821_v10 }
  0x69   : > { %5309 = vmatpush.msra.mxu2 %v539_v1  ;;  %5310 = vmatpush.msra.mxu3 %v539_v1  ;;  %v534_v9 = vld [vmem:[%s8128_s2 + $0x18] sm:$0xff]  ;;  %621 = vst [vmem:[#allocation17 + $0x10] sm:$0xff] %v5821_v10 }
  0x6a   : > { %4952 = vmatmul.msk.f32.vlgmr.msra.gmra.mxu2 %vm545_vm0, %v535_v2  ;;  %4954 = vmatmul.msk.f32.vlgmr.msra.gmra.mxu3 %vm545_vm0, %v537_v3  ;;  %622 = vst [vmem:[#allocation17 + $0x18] sm:$0xff] %v5821_v10  ;;  %v5437_v11 = vld [vmem:[#allocation9] ss:$0 sm:$0xff] }
  0x6b   : > { %585 = vmatpush.msra.mxu0 %v539_v1  ;;  %5308 = vmatpush.msra.mxu1 %v539_v1  ;;  %623 = vst [vmem:[#allocation17 + $0x20] sm:$0xff] %v5821_v10 }
  0x6c   : > { %4948 = vmatmul.msk.f32.vlgmr.msra.gmra.mxu0 %vm545_vm0, %v531_v4  ;;  %4950 = vmatmul.msk.f32.vlgmr.msra.gmra.mxu1 %vm545_vm0, %v533_v5  ;;  %624 = vst [vmem:[#allocation17 + $0x28] sm:$0xff] %v5821_v10 }
  0x6d   : > { %625 = vst [vmem:[#allocation17 + $0x30] sm:$0xff] %v5821_v10 }
  0x6e   : > { %626 = vst [vmem:[#allocation17 + $0x38] sm:$0xff] %v5821_v10 }
  0x72   : > { %4953 = vmatmul.msk.f32.gmra.mxu2 %vm545_vm0, %v536_v6  ;;  %4955 = vmatmul.msk.f32.gmra.mxu3 %vm545_vm0, %v538_v7 }
  0x74   : > { %4949 = vmatmul.msk.f32.gmra.mxu0 %vm545_vm0, %v532_v8  ;;  %4951 = vmatmul.msk.f32.gmra.mxu1 %vm545_vm0, %v534_v9 }
  0xe9   : > { %v587_v12 = vpop.f32.mrf.mxu0  ;;  %v593_v13 = vpop.f32.mrf.mxu1 }
  0xea   : > { %v588_v14 = vadd.f32 %v5437_v11, %v587_v12  ;;  %v594_v15 = vadd.f32 %v5437_v11, %v593_v13 }
  0xec   : > { %611 = vst [vmem:[#allocation2 + $0x30] sm:$0xff] %v588_v14 }
  0xed   : > { %613 = vst [vmem:[#allocation2 + $0x18] sm:$0xff] %v594_v15  ;;  %v599_v16 = vpop.f32.mrf.mxu2  ;;  %v605_v17 = vpop.f32.mrf.mxu3 }
  0xee   : > { %v600_v18 = vadd.f32 %v5437_v11, %v599_v16  ;;  %v606_v19 = vadd.f32 %v5437_v11, %v605_v17 }
  0xf0   : > { %615 = vst [vmem:[#allocation2 + $0x8] sm:$0xff] %v600_v18 }
  0xf1   : > { %617 = vst [vmem:[#allocation2 + $0x28] sm:$0xff] %v606_v19  ;;  %v590_v20 = vpop.f32.mrf.mxu0  ;;  %v596_v21 = vpop.f32.mrf.mxu1 }
  0xf2   : > { %v591_v22 = vadd.f32 %v5437_v11, %v590_v20  ;;  %v597_v23 = vadd.f32 %v5437_v11, %v596_v21 }
  0xf4   : > { %612 = vst [vmem:[#allocation2] sm:$0xff] %v591_v22 }
  0xf5   : > { %614 = vst [vmem:[#allocation2 + $0x10] sm:$0xff] %v597_v23  ;;  %v602_v24 = vpop.f32.mrf.mxu2  ;;  %v608_v25 = vpop.f32.mrf.mxu3 }
  0xf6   : > { %v603_v26 = vadd.f32 %v5437_v11, %v602_v24  ;;  %v609_v27 = vadd.f32 %v5437_v11, %v608_v25 }
  0xf8   : > { %616 = vst [vmem:[#allocation2 + $0x20] sm:$0xff] %v603_v26 }
  0xf9   : > { %618 = vst [vmem:[#allocation2 + $0x38] sm:$0xff] %v609_v27 }
  0xfa PF: > { %v1504_v28 = vld [vmem:[%s6067_s12 + $0x20] sm:$0xff]  ;;  %v1502_v29 = vld [vmem:[%s6067_s12 + $0x10] sm:$0xff]  ;;  %v5822_v31 = vmov 0   ;;  %v1505_v32 = vld [vmem:[%s6067_s12 + $0x28] sm:$0xff]  ;;  %vm1956_vm1 = vcmask 523264   ;;  %p5148_p1 = scmp.ne.s32.totalorder %s5908_s20, 2 }
  0xfb   : > { %v1500_v30 = vld [vmem:[%s6067_s12] sm:$0xff]  ;;  %5440 = vset.pattern.permute.xlu2 %v5822_v31  ;;  %5439 = vset.pattern.permute.xlu1 %v5822_v31  ;;  %v1503_v33 = vld [vmem:[%s6067_s12 + $0x18] sm:$0xff]  ;;  %v1501_v34 = vld [vmem:[%s6067_s12 + $0x8] sm:$0xff] }
  0xfc   : > { %5438 = vset.pattern.permute.xlu0 %v5822_v31  ;;  %1577 = vperm.xlu2 %5440, %v1504_v28   ;;  %v1508_v35 = vld [vmem:[%s6067_s12 + $0x40] sm:$0xff]  ;;  %v1507_v36 = vld [vmem:[%s6067_s12 + $0x38] sm:$0xff]  ;;  %v1506_v37 = vld [vmem:[%s6067_s12 + $0x30] sm:$0xff] }
  0xfd   : > { %1571 = vperm.xlu1 %5439, %v1502_v29   ;;  %1565 = vperm.xlu0 %5438, %v1500_v30   ;;  %v1511_v38 = vld [vmem:[%s6067_s12 + $0x58] sm:$0xff]  ;;  %v1510_v39 = vld [vmem:[%s6067_s12 + $0x50] sm:$0xff]  ;;  %v1509_v40 = vld [vmem:[%s6067_s12 + $0x48] sm:$0xff] }
  0xfe   : > { %v1514_v41 = vld [vmem:[%s6067_s12 + $0x70] sm:$0xff]  ;;  %v1513_v42 = vld [vmem:[%s6067_s12 + $0x68] sm:$0xff]  ;;  %v1512_v43 = vld [vmem:[%s6067_s12 + $0x60] sm:$0xff] }
  0xff   : > { %v1517_v44 = vld [vmem:[%s6067_s12 + $0x88] sm:$0xff]  ;;  %v1516_v45 = vld [vmem:[%s6067_s12 + $0x80] sm:$0xff]  ;;  %v1515_v46 = vld [vmem:[%s6067_s12 + $0x78] sm:$0xff] }
 0x100   : > { %v1520_v47 = vld [vmem:[%s6067_s12 + $0xa0] sm:$0xff]  ;;  %v1519_v48 = vld [vmem:[%s6067_s12 + $0x98] sm:$0xff]  ;;  %v1518_v49 = vld [vmem:[%s6067_s12 + $0x90] sm:$0xff] }
 0x101   : > { %v866_v50 = vld [vmem:[#allocation11 + $0x178] sm:$0xff]  ;;  %v865_v52 = vld [vmem:[#allocation11 + $0x170] sm:$0xff]  ;;  %v864_v58 = vld [vmem:[#allocation11 + $0x168] sm:$0xff] }
 0x102   : > { %v834_v51 = vld [vmem:[#allocation11 + $0x78] sm:$0xff]  ;;  %1289 = vmatpush.msra.mxu2 %v866_v50  ;;  %v1521_v55 = vld [vmem:[%s6067_s12 + $0xa8] sm:$0xff]  ;;  %v863_v61 = vld [vmem:[#allocation11 + $0x160] sm:$0xff] }
 0x103   : > { %871 = vmatpush.msra.mxu0 %v834_v51  ;;  %v1523_v53 = vld [vmem:[%s6067_s12 + $0xb8] sm:$0xff]  ;;  %v1522_v54 = vld [vmem:[%s6067_s12 + $0xb0] sm:$0xff]  ;;  %v832_v59 = vld [vmem:[#allocation11 + $0x68] sm:$0xff] }
 0x104   : > { %1580 = vperm.xlu2 %5440, %v1505_v32   ;;  %1290 = vmatpush.msra.mxu2 %v865_v52  ;;  %v833_v56 = vld [vmem:[#allocation11 + $0x70] sm:$0xff]  ;;  %v850_v57 = vld [vmem:[#allocation11 + $0xf8] sm:$0xff]  ;;  %v831_v62 = vld [vmem:[#allocation11 + $0x60] sm:$0xff] }
 0x105   : > { %1574 = vperm.xlu1 %5439, %v1503_v33   ;;  %1568 = vperm.xlu0 %5438, %v1501_v34   ;;  %v849_v60 = vld [vmem:[#allocation11 + $0xf0] sm:$0xff]  ;;  %v848_v63 = vld [vmem:[#allocation11 + $0xe8] sm:$0xff]  ;;  %v862_v0 = vld [vmem:[#allocation11 + $0x158] sm:$0xff] }
 0x106   : > { %872 = vmatpush.msra.mxu0 %v833_v56  ;;  %1080 = vmatpush.msra.mxu1 %v850_v57  ;;  %v1526_v1 = vld [vmem:[%s6067_s12 + $0xd0] sm:$0xff]  ;;  %v1525_v3 = vld [vmem:[%s6067_s12 + $0xc8] sm:$0xff]  ;;  %v1524_v4 = vld [vmem:[%s6067_s12 + $0xc0] sm:$0xff] }
 0x107   : > { %1291 = vmatpush.msra.mxu2 %v864_v58  ;;  %v830_v2 = vld [vmem:[#allocation11 + $0x58] sm:$0xff]  ;;  %v847_v5 = vld [vmem:[#allocation11 + $0xe0] sm:$0xff]  ;;  %v861_v6 = vld [vmem:[#allocation11 + $0x150] sm:$0xff] }
 0x108   : > { %873 = vmatpush.msra.mxu0 %v832_v59  ;;  %1081 = vmatpush.msra.mxu1 %v849_v60  ;;  %v829_v7 = vld [vmem:[#allocation11 + $0x50] sm:$0xff]  ;;  %v846_v8 = vld [vmem:[#allocation11 + $0xd8] sm:$0xff]  ;;  %v860_v9 = vld [vmem:[#allocation11 + $0x148] sm:$0xff] }
 0x109   : > { %1292 = vmatpush.msra.mxu2 %v863_v61  ;;  %v828_v10 = vld [vmem:[#allocation11 + $0x48] sm:$0xff]  ;;  %v845_v11 = vld [vmem:[#allocation11 + $0xd0] sm:$0xff]  ;;  %v859_v12 = vld [vmem:[#allocation11 + $0x140] sm:$0xff] }
 0x10a   : > { %874 = vmatpush.msra.mxu0 %v831_v62  ;;  %1082 = vmatpush.msra.mxu1 %v848_v63  ;;  %v827_v13 = vld [vmem:[#allocation11 + $0x40] sm:$0xff]  ;;  %v1529_v14 = vld [vmem:[%s6067_s12 + $0xe8] sm:$0xff]  ;;  %v858_v19 = vld [vmem:[#allocation11 + $0x138] sm:$0xff] }
 0x10b   : > { %1293 = vmatpush.msra.mxu2 %v862_v0  ;;  %v844_v15 = vld [vmem:[#allocation11 + $0xc8] sm:$0xff]  ;;  %v1527_v17 = vld [vmem:[%s6067_s12 + $0xd8] sm:$0xff]  ;;  %v857_v23 = vld [vmem:[#allocation11 + $0x130] sm:$0xff] }
 0x10c   : > { %1589 = vperm.xlu2 %5440, %v1508_v35   ;;  %875 = vmatpush.msra.mxu0 %v830_v2  ;;  %v1528_v16 = vld [vmem:[%s6067_s12 + $0xe0] sm:$0xff]  ;;  %v1955_v18 = vld [vmem:[#allocation2 + $0x38] sm:$0xff]  ;;  %v1954_v22 = vld [vmem:[#allocation2 + $0x28] sm:$0xff] }
 0x10d   : > { %1586 = vperm.xlu1 %5439, %v1507_v36   ;;  %1583 = vperm.xlu0 %5438, %v1506_v37   ;;  %v826_v20 = vld [vmem:[#allocation11 + $0x38] sm:$0xff]  ;;  %v843_v21 = vld [vmem:[#allocation11 + $0xc0] sm:$0xff]  ;;  %v825_v24 = vld [vmem:[#allocation11 + $0x30] sm:$0xff] }
 0x10e   : > { %1083 = vmatpush.msra.mxu1 %v847_v5  ;;  %1294 = vmatpush.msra.mxu2 %v861_v6  ;;  %v842_v25 = vld [vmem:[#allocation11 + $0xb8] sm:$0xff]  ;;  %v1953_v26 = vld [vmem:[#allocation2 + $0x20] sm:$0xff]  ;;  %v841_v29 = vld [vmem:[#allocation11 + $0xb0] sm:$0xff] }
 0x10f   : > { %876 = vmatpush.msra.mxu0 %v829_v7  ;;  %2157 = vmatpush.msra.mxu3 %v1955_v18  ;;  %v856_v27 = vld [vmem:[#allocation11 + $0x128] sm:$0xff]  ;;  %v855_v31 = vld [vmem:[#allocation11 + $0x120] sm:$0xff]  ;;  %v1530_v34 = vld [vmem:[%s6067_s12 + $0xf0] sm:$0xff]  ;;  %v1498_v7 = vlaneseq }
 0x110   : > { %1084 = vmatpush.msra.mxu1 %v846_v8  ;;  %1295 = vmatpush.msra.mxu2 %v860_v9  ;;  %v824_v28 = vld [vmem:[#allocation11 + $0x28] sm:$0xff]  ;;  %v1531_v33 = vld [vmem:[%s6067_s12 + $0xf8] sm:$0xff]  ;;  %v837_v51 = vld [vmem:[#allocation11 + $0x90] sm:$0xff] }
 0x111   : > { %877 = vmatpush.msra.mxu0 %v828_v10  ;;  %2158 = vmatpush.msra.mxu3 %v1954_v22  ;;  %v1532_v30 = vld [vmem:[%s6067_s12 + $0x100] sm:$0xff]  ;;  %v1952_v32 = vld [vmem:[#allocation2 + $0x8] sm:$0xff]  ;;  %v854_v37 = vld [vmem:[#allocation11 + $0x118] sm:$0xff] }
 0x112   : > { %1085 = vmatpush.msra.mxu1 %v845_v11  ;;  %1296 = vmatpush.msra.mxu2 %v859_v12  ;;  %v823_v35 = vld [vmem:[#allocation11 + $0x20] sm:$0xff]  ;;  %v840_v36 = vld [vmem:[#allocation11 + $0xa8] sm:$0xff]  ;;  %v1948_v56 = vld [vmem:[#allocation2 + $0x30] sm:$0xff]  ;;  %v6158_v12 = vand.u32 127, %v1498_v7 }
 0x113   : > { %878 = vmatpush.msra.mxu0 %v827_v13  ;;  %2159 = vmatpush.msra.mxu3 %v1953_v26  ;;  %v1533_v50 = vld [vmem:[%s6067_s12 + $0x108] sm:$0xff]  ;;  %v851_v52 = vld [vmem:[#allocation11 + $0x100] sm:$0xff]  ;;  %v628_v59 = vld [vmem:[%s6041_s17 + $0x8] sm:$0xff] }
 0x114   : > { %1598 = vperm.xlu2 %5440, %v1511_v38   ;;  %1086 = vmatpush.msra.mxu1 %v844_v15  ;;  %v1951_v38 = vld [vmem:[#allocation2 + $0x10] sm:$0xff]  ;;  %v627_v57 = vld [vmem:[%s6041_s17] sm:$0xff]  ;;  %v835_v58 = vld [vmem:[#allocation11 + $0x80] sm:$0xff] }
 0x115   : > { %1595 = vperm.xlu1 %5439, %v1510_v39   ;;  %1592 = vperm.xlu0 %5438, %v1509_v40   ;;  %v822_v39 = vld [vmem:[#allocation11 + $0x18] sm:$0xff]  ;;  %v839_v40 = vld [vmem:[#allocation11 + $0xa0] sm:$0xff]  ;;  %v1537_v61 = vld [vmem:[%s6067_s12 + $0x128] sm:$0xff] }
 0x116   : > { %1297 = vmatpush.msra.mxu2 %v858_v19  ;;  %879 = vmatpush.msra.mxu0 %v826_v20  ;;  %v1538_v60 = vld [vmem:[%s6067_s12 + $0x130] sm:$0xff]  ;;  %v1536_v62 = vld [vmem:[%s6067_s12 + $0x120] sm:$0xff]  ;;  %v1541_v2 = vld [vmem:[%s6067_s12 + $0x148] sm:$0xff] }
 0x117   : > { %1087 = vmatpush.msra.mxu1 %v843_v21  ;;  %2160 = vmatpush.msra.mxu3 %v1952_v32  ;;  %v632_v63 = vld [vmem:[%s6041_s17 + $0x28] sm:$0xff]  ;;  %v630_v0 = vld [vmem:[%s6041_s17 + $0x18] sm:$0xff]  ;;  %v635_v5 = vld [vmem:[%s6041_s17 + $0x40] sm:$0xff] }
 0x118   : > { %1298 = vmatpush.msra.mxu2 %v857_v23  ;;  %880 = vmatpush.msra.mxu0 %v825_v24  ;;  %v633_v6 = vld [vmem:[%s6041_s17 + $0x30] sm:$0xff]  ;;  %v634_v8 = vld [vmem:[%s6041_s17 + $0x38] sm:$0xff]  ;;  %v1542_v11 = vld [vmem:[%s6067_s12 + $0x150] sm:$0xff] }
 0x119   : > { %1088 = vmatpush.msra.mxu1 %v842_v25  ;;  %2161 = vmatpush.msra.mxu3 %v1951_v38  ;;  %v1544_v9 = vld [vmem:[%s6067_s12 + $0x160] sm:$0xff]  ;;  %v1543_v10 = vld [vmem:[%s6067_s12 + $0x158] sm:$0xff]  ;;  %v1546_v20 = vld [vmem:[%s6067_s12 + $0x170] sm:$0xff] }
 0x11a   : > { %1299 = vmatpush.msra.mxu2 %v856_v27  ;;  %881 = vmatpush.msra.mxu0 %v824_v28  ;;  %v638_v13 = vld [vmem:[%s6041_s17 + $0x58] sm:$0xff]  ;;  %v1547_v19 = vld [vmem:[%s6067_s12 + $0x178] sm:$0xff]  ;;  %v1545_v21 = vld [vmem:[%s6067_s12 + $0x168] sm:$0xff] }
 0x11b   : > { %1089 = vmatpush.msra.mxu1 %v841_v29  ;;  %v641_v22 = vld [vmem:[%s6041_s17 + $0x70] sm:$0xff]  ;;  %v639_v23 = vld [vmem:[%s6041_s17 + $0x60] sm:$0xff]  ;;  %v640_v25 = vld [vmem:[%s6041_s17 + $0x68] sm:$0xff] }
 0x11c   : > { %1607 = vperm.xlu2 %5440, %v1514_v41   ;;  %1300 = vmatpush.msra.mxu2 %v855_v31  ;;  %v853_v41 = vld [vmem:[#allocation11 + $0x110] sm:$0xff]  ;;  %v1548_v29 = vld [vmem:[%s6067_s12 + $0x180] sm:$0xff] }
 0x11d   : > { %1604 = vperm.xlu1 %5439, %v1513_v42   ;;  %1601 = vperm.xlu0 %5438, %v1512_v43   ;;  %v1950_v42 = vld [vmem:[#allocation2 + $0x18] sm:$0xff]  ;;  %v821_v43 = vld [vmem:[#allocation11 + $0x10] sm:$0xff]  ;;  %v642_v32 = vld [vmem:[%s6041_s17 + $0x78] sm:$0xff] }
 0x11e   : > { %882 = vmatpush.msra.mxu0 %v823_v35  ;;  %1090 = vmatpush.msra.mxu1 %v840_v36  ;;  %v1550_v27 = vld [vmem:[%s6067_s12 + $0x190] sm:$0xff]  ;;  %v1549_v28 = vld [vmem:[%s6067_s12 + $0x188] sm:$0xff]  ;;  %v1552_v36 = vld [vmem:[%s6067_s12 + $0x1a0] sm:$0xff] }
 0x11f   : > { %1301 = vmatpush.msra.mxu2 %v854_v37  ;;  %2162 = vmatpush.msra.mxu3 %v1950_v42  ;;  %v644_v31 = vld [vmem:[%s6041_s17 + $0x88] sm:$0xff]  ;;  %v1553_v35 = vld [vmem:[%s6067_s12 + $0x1a8] sm:$0xff]  ;;  %v1551_v37 = vld [vmem:[%s6067_s12 + $0x198] sm:$0xff] }
 0x120   : > { %883 = vmatpush.msra.mxu0 %v822_v39  ;;  %1091 = vmatpush.msra.mxu1 %v839_v40  ;;  %v647_v38 = vld [vmem:[%s6041_s17 + $0xa0] sm:$0xff]  ;;  %v645_v40 = vld [vmem:[%s6041_s17 + $0x90] sm:$0xff] }
 0x121   : > { %1302 = vmatpush.msra.mxu2 %v853_v41  ;;  %v646_v41 = vld [vmem:[%s6041_s17 + $0x98] sm:$0xff] }
 0x122   : > { %884 = vmatpush.msra.mxu0 %v821_v43  ;;  %v1556_v43 = vld [vmem:[%s6067_s12 + $0x1c0] sm:$0xff] }
 0x124   : > { %1616 = vperm.xlu2 %5440, %v1517_v44   ;;  %v838_v44 = vld [vmem:[#allocation11 + $0x98] sm:$0xff] }
 0x125   : > { %1613 = vperm.xlu1 %5439, %v1516_v45   ;;  %1610 = vperm.xlu0 %5438, %v1515_v46   ;;  %v852_v45 = vld [vmem:[#allocation11 + $0x108] sm:$0xff] }
 0x126   : > { %v1949_v46 = vld [vmem:[#allocation2] sm:$0xff]  ;;  %1092 = vmatpush.msra.mxu1 %v838_v44  ;;  %1303 = vmatpush.msra.mxu2 %v852_v45  ;;  %v1555_v44 = vld [vmem:[%s6067_s12 + $0x1b8] sm:$0xff]  ;;  %v1554_v45 = vld [vmem:[%s6067_s12 + $0x1b0] sm:$0xff] }
 0x127   : > { %2163 = vmatpush.msra.mxu3 %v1949_v46 }
 0x128   : > { %1093 = vmatpush.msra.mxu1 %v837_v51  ;;  %1304 = vmatpush.msra.mxu2 %v851_v52  ;;  %v1559_v51 = vld [vmem:[%s6067_s12 + $0x1d8] sm:$0xff]  ;;  %v1558_v52 = vld [vmem:[%s6067_s12 + $0x1d0] sm:$0xff] }
 0x129   : > { %2164 = vmatpush.msra.mxu3 %v1948_v56  ;;  %v651_v56 = vld [vmem:[%s6041_s17 + $0xc0] sm:$0xff] }
 0x12c   : > { %1625 = vperm.xlu2 %5440, %v1520_v47   ;;  %v1535_v47 = vld [vmem:[%s6067_s12 + $0x118] sm:$0xff] }
 0x12d   : > { %1622 = vperm.xlu1 %5439, %v1519_v48   ;;  %1619 = vperm.xlu0 %5438, %v1518_v49   ;;  %v820_v48 = vld [vmem:[#allocation11 + $0x8] sm:$0xff]  ;;  %v1534_v49 = vld [vmem:[%s6067_s12 + $0x110] sm:$0xff] }
 0x12e   : > { %885 = vmatpush.msra.mxu0 %v820_v48  ;;  %v648_v48 = vld [vmem:[%s6041_s17 + $0xa8] sm:$0xff] }
 0x134   : > { %1634 = vperm.xlu2 %5440, %v1523_v53   ;;  %v629_v53 = vld [vmem:[%s6041_s17 + $0x10] sm:$0xff] }
 0x135   : > { %1631 = vperm.xlu1 %5439, %v1522_v54   ;;  %1628 = vperm.xlu0 %5438, %v1521_v55   ;;  %v819_v54 = vld [vmem:[#allocation11] sm:$0xff]  ;;  %v836_v55 = vld [vmem:[#allocation11 + $0x88] sm:$0xff] }
 0x136   : > { %1305 = vmatmul.f32.vlgmr.msra.gmra.mxu2 %v629_v53  ;;  %886 = vmatpush.msra.mxu0 %v819_v54  ;;  %v1557_v53 = vld [vmem:[%s6067_s12 + $0x1c8] sm:$0xff]  ;;  %v653_v54 = vld [vmem:[%s6041_s17 + $0xd0] sm:$0xff] }
 0x137   : > { %1094 = vmatpush.msra.mxu1 %v836_v55  ;;  %887 = vmatmul.f32.vlgmr.msra.gmra.mxu0 %v627_v57  ;;  %v652_v57 = vld [vmem:[%s6041_s17 + $0xc8] sm:$0xff] }
 0x139   : > { %1095 = vmatpush.msra.mxu1 %v835_v58 }
 0x13a   : > { %1096 = vmatmul.f32.vlgmr.msra.gmra.mxu1 %v628_v59  ;;  %v1562_v59 = vld [vmem:[%s6067_s12 + $0x1f0] sm:$0xff] }
 0x13c   : > { %1643 = vperm.xlu2 %5440, %v1526_v1   ;;  %v631_v1 = vld [vmem:[%s6041_s17 + $0x20] sm:$0xff] }
 0x13d   : > { %1640 = vperm.xlu1 %5439, %v1525_v3   ;;  %1637 = vperm.xlu0 %5438, %v1524_v4   ;;  %v1540_v3 = vld [vmem:[%s6067_s12 + $0x140] sm:$0xff]  ;;  %v1539_v4 = vld [vmem:[%s6067_s12 + $0x138] sm:$0xff] }
 0x13e   : > { %1308 = vmatmul.f32.gmra.mxu2 %v632_v63  ;;  %v656_v63 = vld [vmem:[%s6041_s17 + $0xe8] sm:$0xff] }
 0x13f   : > { %890 = vmatmul.f32.gmra.mxu0 %v630_v0  ;;  %v654_v0 = vld [vmem:[%s6041_s17 + $0xd8] sm:$0xff] }
 0x142   : > { %1099 = vmatmul.f32.gmra.mxu1 %v631_v1  ;;  %v655_v1 = vld [vmem:[%s6041_s17 + $0xe0] sm:$0xff] }
 0x144   : > { %1652 = vperm.xlu2 %5440, %v1529_v14   ;;  %v636_v14 = vld [vmem:[%s6041_s17 + $0x48] sm:$0xff] }
 0x145   : > { %1649 = vperm.xlu1 %5439, %v1528_v16   ;;  %1646 = vperm.xlu0 %5438, %v1527_v17   ;;  %v637_v16 = vld [vmem:[%s6041_s17 + $0x50] sm:$0xff]  ;;  %v5823_v17 = vmov 0.0  }
 0x146   : > { %1311 = vmatmul.f32.gmra.mxu2 %v635_v5  ;;  %v659_v5 = vld [vmem:[%s6041_s17 + $0x100] sm:$0xff] }
 0x147   : > { %893 = vmatmul.f32.gmra.mxu0 %v633_v6  ;;  %v657_v6 = vld [vmem:[%s6041_s17 + $0xf0] sm:$0xff] }
 0x14a   : > { %1102 = vmatmul.f32.gmra.mxu1 %v634_v8  ;;  %v658_v8 = vld [vmem:[%s6041_s17 + $0xf8] sm:$0xff] }
 0x14c   : > { %1661 = vperm.xlu2 %5440, %v1532_v30  }
 0x14d   : > { %1658 = vperm.xlu1 %5439, %v1531_v33   ;;  %1655 = vperm.xlu0 %5438, %v1530_v34   ;;  %v643_v34 = vld [vmem:[%s6041_s17 + $0x80] sm:$0xff] }
 0x14e   : > { %1314 = vmatmul.f32.gmra.mxu2 %v638_v13  ;;  %v660_v13 = vld [vmem:[%s6041_s17 + $0x108] sm:$0xff] }
 0x14f   : > { %896 = vmatmul.f32.gmra.mxu0 %v636_v14  ;;  %v661_v14 = vld [vmem:[%s6041_s17 + $0x110] sm:$0xff] }
 0x152   : > { %1105 = vmatmul.f32.gmra.mxu1 %v637_v16 }
 0x154   : > { %1670 = vperm.xlu2 %5440, %v1535_v47   ;;  %v650_v47 = vld [vmem:[%s6041_s17 + $0xb8] sm:$0xff] }
 0x155   : > { %1667 = vperm.xlu1 %5439, %v1534_v49   ;;  %1664 = vperm.xlu0 %5438, %v1533_v50   ;;  %v649_v50 = vld [vmem:[%s6041_s17 + $0xb0] sm:$0xff] }
 0x156   : > { %1317 = vmatmul.f32.gmra.mxu2 %v641_v22  ;;  %v1578_v46 = vpop.permute.xlu2 %1577 }
 0x157   : > { %899 = vmatmul.f32.gmra.mxu0 %v639_v23  ;;  %vm1760_vm6 = vcmp.eq.s32.totalorder %v6158_v12, %v1578_v46  ;;  %v668_v23 = vld [vmem:[%s6041_s17 + $0x148] sm:$0xff] }
 0x158   : > { %v4960_v49 = vsel %vm1760_vm6, 1.0, %v5823_v17 }
 0x15a   : > { %1108 = vmatmul.f32.gmra.mxu1 %v640_v25  ;;  %v667_v25 = vld [vmem:[%s6041_s17 + $0x140] sm:$0xff] }
 0x15c   : > { %1679 = vperm.xlu2 %5440, %v1538_v60   ;;  %v1561_v60 = vld [vmem:[%s6067_s12 + $0x1e8] sm:$0xff] }
 0x15d   : > { %1676 = vperm.xlu1 %5439, %v1537_v61   ;;  %1673 = vperm.xlu0 %5438, %v1536_v62   ;;  %v1560_v61 = vld [vmem:[%s6067_s12 + $0x1e0] sm:$0xff] }
 0x15e   : > { %1320 = vmatmul.f32.gmra.mxu2 %v644_v31  ;;  %v1581_v55 = vpop.permute.xlu2 %1580 }
 0x15f   : > { %902 = vmatmul.f32.gmra.mxu0 %v642_v32  ;;  %vm1761_vm7 = vcmp.eq.s32.totalorder %v6158_v12, %v1581_v55  ;;  %v6271_v55 = vld [vmem:[#allocation12] ss:$0 sm:$0xff] }
 0x160   : > { %v4961_v58 = vsel %vm1761_vm7, 1.0, %v5823_v17 }
 0x162   : > { %1111 = vmatmul.f32.gmra.mxu1 %v643_v34  ;;  %v672_v34 = vld [vmem:[%s6041_s17 + $0x168] sm:$0xff] }
 0x164   : > { %1688 = vperm.xlu2 %5440, %v1541_v2  }
 0x165   : > { %1685 = vperm.xlu1 %5439, %v1540_v3   ;;  %1682 = vperm.xlu0 %5438, %v1539_v4   ;;  %v1563_v3 = vld [vmem:[%s6067_s12 + $0x1f8] sm:$0xff] }
 0x166   : > { %1323 = vmatmul.f32.gmra.mxu2 %v647_v38  ;;  %v677_v38 = vld [vmem:[%s6041_s17 + $0x190] sm:$0xff] }
 0x167   : > { %905 = vmatmul.f32.gmra.mxu0 %v645_v40  ;;  %v675_v40 = vld [vmem:[%s6041_s17 + $0x180] sm:$0xff] }
 0x16a   : > { %1114 = vmatmul.f32.gmra.mxu1 %v646_v41 }
 0x16c   : > { %1697 = vperm.xlu2 %5440, %v1544_v9  }
 0x16d   : > { %1694 = vperm.xlu1 %5439, %v1543_v10   ;;  %1691 = vperm.xlu0 %5438, %v1542_v11   ;;  %v662_v10 = vld [vmem:[%s6041_s17 + $0x118] sm:$0xff]  ;;  %v1590_v11 = vpop.permute.xlu2 %1589 }
 0x16e   : > { %1326 = vmatmul.f32.gmra.mxu2 %v650_v47  ;;  %vm1764_vm10 = vcmp.eq.s32.totalorder %v6158_v12, %v1590_v11  ;;  %v689_v11 = vld [vmem:[%s6041_s17 + $0x1f0] sm:$0xff] }
 0x16f   : > { %v1566_v15 = vpop.permute.xlu0 %1565  ;;  %v1572_v30 = vpop.permute.xlu1 %1571  ;;  %908 = vmatmul.f32.gmra.mxu0 %v648_v48  ;;  %v678_v48 = vld [vmem:[%s6041_s17 + $0x198] sm:$0xff] }
 0x170   : > { %vm1756_vm2 = vcmp.eq.s32.totalorder %v6158_v12, %v1566_v15  ;;  %vm1758_vm4 = vcmp.eq.s32.totalorder %v6158_v12, %v1572_v30  ;;  %v4964_v15 = vsel %vm1764_vm10, 1.0, %v5823_v17  ;;  %v670_v30 = vld [vmem:[%s6041_s17 + $0x158] sm:$0xff] }
 0x171   : > { %v4956_v18 = vsel %vm1756_vm2, 1.0, %v5823_v17  ;;  %v4958_v33 = vsel %vm1758_vm4, 1.0, %v5823_v17 }
 0x172   : > { %5020 = vmatmul.msk.f32.vlgmr.msra.gmra.mxu3 %vm1956_vm1, %v4956_v18  ;;  %1117 = vmatmul.f32.gmra.mxu1 %v649_v50  ;;  %v665_v18 = vld [vmem:[%s6041_s17 + $0x130] sm:$0xff]  ;;  %v679_v50 = vld [vmem:[%s6041_s17 + $0x1a0] sm:$0xff] }
 0x174   : > { %1706 = vperm.xlu2 %5440, %v1547_v19   ;;  %v663_v19 = vld [vmem:[%s6041_s17 + $0x120] sm:$0xff] }
 0x175   : > { %1703 = vperm.xlu1 %5439, %v1546_v20   ;;  %1700 = vperm.xlu0 %5438, %v1545_v21   ;;  %v664_v20 = vld [vmem:[%s6041_s17 + $0x128] sm:$0xff] }
 0x176   : > { %1329 = vmatmul.f32.gmra.mxu2 %v653_v54  ;;  %v683_v54 = vld [vmem:[%s6041_s17 + $0x1c0] sm:$0xff] }
 0x177   : > { %v1569_v24 = vpop.permute.xlu0 %1568  ;;  %v1575_v39 = vpop.permute.xlu1 %1574  ;;  %911 = vmatmul.f32.gmra.mxu0 %v651_v56 }
 0x178   : > { %vm1757_vm3 = vcmp.eq.s32.totalorder %v6158_v12, %v1569_v24  ;;  %vm1759_vm5 = vcmp.eq.s32.totalorder %v6158_v12, %v1575_v39  ;;  %v666_v24 = vld [vmem:[%s6041_s17 + $0x138] sm:$0xff] }
 0x179   : > { %v4957_v26 = vsel %vm1757_vm3, 1.0, %v5823_v17  ;;  %v4959_v42 = vsel %vm1759_vm5, 1.0, %v5823_v17 }
 0x17a   : > { %5021 = vmatmul.msk.f32.gmra.mxu3 %vm1956_vm1, %v4957_v26  ;;  %1120 = vmatmul.f32.gmra.mxu1 %v652_v57  ;;  %v681_v57 = vld [vmem:[%s6041_s17 + $0x1b0] sm:$0xff] }
 0x17c   : > { %1715 = vperm.xlu2 %5440, %v1550_v27   ;;  %v671_v27 = vld [vmem:[%s6041_s17 + $0x160] sm:$0xff] }
 0x17d   : > { %1712 = vperm.xlu1 %5439, %v1549_v28   ;;  %1709 = vperm.xlu0 %5438, %v1548_v29   ;;  %v1599_v28 = vpop.permute.xlu2 %1598  ;;  %v669_v29 = vld [vmem:[%s6041_s17 + $0x150] sm:$0xff] }
 0x17e   : > { %1332 = vmatmul.f32.gmra.mxu2 %v656_v63  ;;  %vm1767_vm13 = vcmp.eq.s32.totalorder %v6158_v12, %v1599_v28 }
 0x17f   : > { %v1584_v62 = vpop.permute.xlu0 %1583  ;;  %914 = vmatmul.f32.gmra.mxu0 %v654_v0  ;;  %v1587_v4 = vpop.permute.xlu1 %1586  ;;  %v4967_v31 = vsel %vm1767_vm13, 1.0, %v5823_v17  ;;  %v686_v0 = vld [vmem:[%s6041_s17 + $0x1d8] sm:$0xff] }
 0x180   : > { %vm1762_vm8 = vcmp.eq.s32.totalorder %v6158_v12, %v1584_v62  ;;  %vm1763_vm9 = vcmp.eq.s32.totalorder %v6158_v12, %v1587_v4 }
 0x181   : > { %v4962_v2 = vsel %vm1762_vm8, 1.0, %v5823_v17  ;;  %v4963_v9 = vsel %vm1763_vm9, 1.0, %v5823_v17 }
 0x182   : > { %5022 = vmatmul.msk.f32.gmra.mxu3 %vm1956_vm1, %v4958_v33  ;;  %1123 = vmatmul.f32.gmra.mxu1 %v655_v1  ;;  %v674_v33 = vld [vmem:[%s6041_s17 + $0x178] sm:$0xff] }
 0x184   : > { %1724 = vperm.xlu2 %5440, %v1553_v35   ;;  %v673_v35 = vld [vmem:[%s6041_s17 + $0x170] sm:$0xff] }
 0x185   : > { %1721 = vperm.xlu1 %5439, %v1552_v36   ;;  %1718 = vperm.xlu0 %5438, %v1551_v37   ;;  %v1608_v46 = vpop.permute.xlu2 %1607 }
 0x186   : > { %1335 = vmatmul.f32.gmra.mxu2 %v659_v5  ;;  %vm1770_vm0 = vcmp.eq.s32.totalorder %v6158_v12, %v1608_v46  ;;  %v685_v5 = vld [vmem:[%s6041_s17 + $0x1d0] sm:$0xff] }
 0x187   : > { %917 = vmatmul.f32.gmra.mxu0 %v657_v6  ;;  %v1593_v16 = vpop.permute.xlu0 %1592  ;;  %v1596_v22 = vpop.permute.xlu1 %1595 }
 0x188   : > { %vm1765_vm11 = vcmp.eq.s32.totalorder %v6158_v12, %v1593_v16  ;;  %vm1766_vm12 = vcmp.eq.s32.totalorder %v6158_v12, %v1596_v22 }
 0x189   : > { %v4965_v21 = vsel %vm1765_vm11, 1.0, %v5823_v17  ;;  %v4966_v26 = vsel %vm1766_vm12, 1.0, %v5823_v17 }
 0x18a   : > { %5023 = vmatmul.msk.f32.gmra.mxu3 %vm1956_vm1, %v4959_v42  ;;  %1126 = vmatmul.f32.gmra.mxu1 %v658_v8  ;;  %v676_v42 = vld [vmem:[%s6041_s17 + $0x188] sm:$0xff] }
 0x18c   : > { %1733 = vperm.xlu2 %5440, %v1556_v43  }
 0x18d   : > { %1730 = vperm.xlu1 %5439, %v1555_v44   ;;  %1727 = vperm.xlu0 %5438, %v1554_v45   ;;  %v680_v45 = vld [vmem:[%s6041_s17 + $0x1a8] sm:$0xff] }
 0x18e   : > { %1338 = vmatmul.f32.gmra.mxu2 %v662_v10 }
 0x18f   : > { %920 = vmatmul.f32.gmra.mxu0 %v660_v13  ;;  %v1602_v32 = vpop.permute.xlu0 %1601  ;;  %v1605_v37 = vpop.permute.xlu1 %1604 }
 0x190   : > { %vm1768_vm14 = vcmp.eq.s32.totalorder %v6158_v12, %v1602_v32  ;;  %vm1769_vm15 = vcmp.eq.s32.totalorder %v6158_v12, %v1605_v37  ;;  %v1617_v13 = vpop.permute.xlu2 %1616 }
 0x191   : > { %v4968_v36 = vsel %vm1768_vm14, 1.0, %v5823_v17  ;;  %v4969_v43 = vsel %vm1769_vm15, 1.0, %v5823_v17  ;;  %vm1773_vm4 = vcmp.eq.s32.totalorder %v6158_v12, %v1617_v13  ;;  %v700_v13 = vld [vmem:[%s6041_s17 + $0x248] sm:$0xff] }
 0x192   : > { %5024 = vmatmul.msk.f32.gmra.mxu3 %vm1956_vm1, %v4960_v49  ;;  %1129 = vmatmul.f32.gmra.mxu1 %v661_v14  ;;  %v4973_v22 = vsel %vm1773_vm4, 1.0, %v5823_v17 }
 0x194   : > { %1742 = vperm.xlu2 %5440, %v1559_v51   ;;  %v4970_v51 = vsel %vm1770_vm0, 1.0, %v5823_v17 }
 0x195   : > { %1739 = vperm.xlu1 %5439, %v1558_v52   ;;  %1736 = vperm.xlu0 %5438, %v1557_v53  }
 0x196   : > { %1341 = vmatmul.f32.gmra.mxu2 %v665_v18  ;;  %v687_v18 = vld [vmem:[%s6041_s17 + $0x1e0] sm:$0xff] }
 0x197   : > { %923 = vmatmul.f32.gmra.mxu0 %v663_v19  ;;  %v1611_v53 = vpop.permute.xlu0 %1610  ;;  %v1614_v63 = vpop.permute.xlu1 %1613 }
 0x198   : > { %vm1771_vm2 = vcmp.eq.s32.totalorder %v6158_v12, %v1611_v53  ;;  %vm1772_vm3 = vcmp.eq.s32.totalorder %v6158_v12, %v1614_v63  ;;  %v1626_v53 = vpop.permute.xlu2 %1625 }
 0x199   : > { %v4972_v6 = vsel %vm1772_vm3, 1.0, %v5823_v17  ;;  %vm1776_vm7 = vcmp.eq.s32.totalorder %v6158_v12, %v1626_v53  ;;  %v708_v53 = vld [vmem:[%s6041_s17 + $0x288] sm:$0xff] }
 0x19a   : > { %5025 = vmatmul.msk.f32.gmra.mxu3 %vm1956_vm1, %v4961_v58  ;;  %1132 = vmatmul.f32.gmra.mxu1 %v664_v20 }
 0x19c   : > { %1751 = vperm.xlu2 %5440, %v1562_v59   ;;  %v682_v59 = vld [vmem:[%s6041_s17 + $0x1b8] sm:$0xff] }
 0x19d   : > { %1748 = vperm.xlu1 %5439, %v1561_v60   ;;  %1745 = vperm.xlu0 %5438, %v1560_v61   ;;  %v4971_v60 = vsel %vm1771_vm2, 1.0, %v5823_v17 }
 0x19e   : > { %1344 = vmatmul.f32.gmra.mxu2 %v668_v23 }
 0x19f   : > { %926 = vmatmul.f32.gmra.mxu0 %v666_v24 }
 0x1a2   : > { %5026 = vmatmul.msk.f32.gmra.mxu3 %vm1956_vm1, %v4962_v2  ;;  %1135 = vmatmul.f32.gmra.mxu1 %v667_v25 }
 0x1a5   : > { %1754 = vperm.xlu0 %5438, %v1563_v3   ;;  %v684_v3 = vld [vmem:[%s6041_s17 + $0x1c8] sm:$0xff] }
 0x1a6   : > { %1347 = vmatmul.f32.gmra.mxu2 %v671_v27  ;;  %v692_v27 = vld [vmem:[%s6041_s17 + $0x208] sm:$0xff] }
 0x1a7   : > { %929 = vmatmul.f32.gmra.mxu0 %v669_v29 }
 0x1aa   : > { %5027 = vmatmul.msk.f32.gmra.mxu3 %vm1956_vm1, %v4963_v9  ;;  %1138 = vmatmul.f32.gmra.mxu1 %v670_v30 }
 0x1ae   : > { %1350 = vmatmul.f32.gmra.mxu2 %v674_v33 }
 0x1af   : > { %932 = vmatmul.f32.gmra.mxu0 %v672_v34  ;;  %v691_v34 = vld [vmem:[%s6041_s17 + $0x200] sm:$0xff] }
 0x1b2   : > { %5028 = vmatmul.msk.f32.gmra.mxu3 %vm1956_vm1, %v4964_v15  ;;  %1141 = vmatmul.f32.gmra.mxu1 %v673_v35 }
 0x1b4   : > { %v888_v39 = vpop.f32.mrf.mxu0 }
 0x1b5   : > { %v889_v61 = vadd.f32 %v6271_v55, %v888_v39  ;;  %v1623_v39 = vpop.permute.xlu1 %1622 }
 0x1b6   : > { %1353 = vmatmul.f32.gmra.mxu2 %v677_v38  ;;  %vm1775_vm6 = vcmp.eq.s32.totalorder %v6158_v12, %v1623_v39 }
 0x1b7   : > { %v1097_v41 = vpop.f32.mrf.mxu1  ;;  %935 = vmatmul.f32.gmra.mxu0 %v675_v40  ;;  %v695_v40 = vld [vmem:[%s6041_s17 + $0x220] sm:$0xff] }
 0x1b8   : > { %v1098_v1 = vadd.f32 %v1097_v41, %v889_v61  ;;  %v697_v61 = vld [vmem:[%s6041_s17 + $0x230] sm:$0xff] }
 0x1b9   : > { %v1306_v44 = vpop.f32.mrf.mxu2 }
 0x1ba   : > { %5029 = vmatmul.msk.f32.gmra.mxu3 %vm1956_vm1, %v4965_v21  ;;  %1144 = vmatmul.f32.gmra.mxu1 %v676_v42  ;;  %v1307_v8 = vadd.f32 %v1306_v44, %v1098_v1  ;;  %v688_v21 = vld [vmem:[%s6041_s17 + $0x1e8] sm:$0xff]  ;;  %v693_v44 = vld [vmem:[%s6041_s17 + $0x210] sm:$0xff] }
 0x1bc   : > { %v891_v47 = vpop.f32.mrf.mxu0 }
 0x1bd   : > { %v892_v9 = vadd.f32 %v6271_v55, %v891_v47  ;;  %v694_v47 = vld [vmem:[%s6041_s17 + $0x218] sm:$0xff] }
 0x1be   : > { %1356 = vmatmul.f32.gmra.mxu2 %v680_v45 }
 0x1bf   : > { %v1100_v49 = vpop.f32.mrf.mxu1  ;;  %938 = vmatmul.f32.gmra.mxu0 %v678_v48  ;;  %v4975_v48 = vsel %vm1775_vm6, 1.0, %v5823_v17 }
 0x1c0   : > { %v1101_v15 = vadd.f32 %v1100_v49, %v892_v9 }
 0x1c1   : > { %v1309_v52 = vpop.f32.mrf.mxu2 }
 0x1c2   : > { %5030 = vmatmul.msk.f32.gmra.mxu3 %vm1956_vm1, %v4966_v26  ;;  %1147 = vmatmul.f32.gmra.mxu1 %v679_v50  ;;  %v1310_v23 = vadd.f32 %v1309_v52, %v1101_v15  ;;  %v1620_v26 = vpop.permute.xlu0 %1619  ;;  %v698_v52 = vld [vmem:[%s6041_s17 + $0x238] sm:$0xff] }
 0x1c3   : > { %vm1774_vm5 = vcmp.eq.s32.totalorder %v6158_v12, %v1620_v26 }
 0x1c4   : > { %v894_v56 = vpop.f32.mrf.mxu0  ;;  %v4974_v35 = vsel %vm1774_vm5, 1.0, %v5823_v17 }
 0x1c5   : > { %v895_v24 = vadd.f32 %v6271_v55, %v894_v56 }
 0x1c6   : > { %1359 = vmatmul.f32.gmra.mxu2 %v683_v54 }
 0x1c7   : > { %v1103_v58 = vpop.f32.mrf.mxu1  ;;  %941 = vmatmul.f32.gmra.mxu0 %v681_v57 }
 0x1c8   : > { %v1104_v29 = vadd.f32 %v1103_v58, %v895_v24  ;;  %v696_v58 = vld [vmem:[%s6041_s17 + $0x228] sm:$0xff] }
 0x1c9   : > { %v1312_v62 = vpop.f32.mrf.mxu2 }
 0x1ca   : > { %5031 = vmatmul.msk.f32.gmra.mxu3 %vm1956_vm1, %v4967_v31  ;;  %1150 = vmatmul.f32.gmra.mxu1 %v682_v59  ;;  %v690_v31 = vld [vmem:[%s6041_s17 + $0x1f8] sm:$0xff] }
 0x1cc   : > { %v897_v2 = vpop.f32.mrf.mxu0 }
 0x1cd   : > { %v898_v37 = vadd.f32 %v6271_v55, %v897_v2  ;;  %v1629_v2 = vpop.permute.xlu0 %1628 }
 0x1ce   : > { %1362 = vmatmul.f32.gmra.mxu2 %v686_v0  ;;  %vm1777_vm8 = vcmp.eq.s32.totalorder %v6158_v12, %v1629_v2 }
 0x1cf   : > { %v1106_v4 = vpop.f32.mrf.mxu1  ;;  %944 = vmatmul.f32.gmra.mxu0 %v684_v3  ;;  %v701_v3 = vld [vmem:[%s6041_s17 + $0x250] sm:$0xff] }
 0x1d0   : > { %v1107_v42 = vadd.f32 %v1106_v4, %v898_v37  ;;  %v707_v37 = vld [vmem:[%s6041_s17 + $0x280] sm:$0xff] }
 0x1d1   : > { %v1315_v10 = vpop.f32.mrf.mxu2 }
 0x1d2   : > { %5032 = vmatmul.msk.f32.gmra.mxu3 %vm1956_vm1, %v4968_v36  ;;  %1153 = vmatmul.f32.gmra.mxu1 %v685_v5  ;;  %v1313_v36 = vadd.f32 %v1312_v62, %v1104_v29  ;;  %v1316_v49 = vadd.f32 %v1315_v10, %v1107_v42  ;;  %v4976_v62 = vsel %vm1776_vm7, 1.0, %v5823_v17 }
 0x1d4   : > { %v900_v16 = vpop.f32.mrf.mxu0 }
 0x1d5   : > { %v901_v50 = vadd.f32 %v6271_v55, %v900_v16 }
 0x1d6   : > { %1365 = vmatmul.f32.gmra.mxu2 %v689_v11 }
 0x1d7   : > { %v1109_v20 = vpop.f32.mrf.mxu1  ;;  %947 = vmatmul.f32.gmra.mxu0 %v687_v18 }
 0x1d8   : > { %v1110_v56 = vadd.f32 %v1109_v20, %v901_v50  ;;  %v710_v50 = vld [vmem:[%s6041_s17 + $0x298] sm:$0xff] }
 0x1d9   : > { %v1318_v25 = vpop.f32.mrf.mxu2 }
 0x1da   : > { %5033 = vmatmul.msk.f32.gmra.mxu3 %vm1956_vm1, %v4969_v43  ;;  %1156 = vmatmul.f32.gmra.mxu1 %v688_v21  ;;  %v1319_v63 = vadd.f32 %v1318_v25, %v1110_v56  ;;  %v1632_v21 = vpop.permute.xlu1 %1631 }
 0x1db   : > { %vm1778_vm9 = vcmp.eq.s32.totalorder %v6158_v12, %v1632_v21 }
 0x1dc   : > { %v903_v30 = vpop.f32.mrf.mxu0 }
 0x1dd   : > { %v904_v0 = vadd.f32 %v6271_v55, %v903_v30  ;;  %v703_v30 = vld [vmem:[%s6041_s17 + $0x260] sm:$0xff] }
 0x1de   : > { %1368 = vmatmul.f32.gmra.mxu2 %v692_v27  ;;  %v702_v27 = vld [vmem:[%s6041_s17 + $0x258] sm:$0xff] }
 0x1df   : > { %v1112_v33 = vpop.f32.mrf.mxu1  ;;  %950 = vmatmul.f32.gmra.mxu0 %v690_v31  ;;  %v4978_v31 = vsel %vm1778_vm9, 1.0, %v5823_v17 }
 0x1e0   : > { %v1113_v5 = vadd.f32 %v1112_v33, %v904_v0 }
 0x1e1   : > { %v1321_v38 = vpop.f32.mrf.mxu2 }
 0x1e2   : > { %5034 = vmatmul.msk.f32.gmra.mxu3 %vm1956_vm1, %v4970_v51  ;;  %1159 = vmatmul.f32.gmra.mxu1 %v691_v34  ;;  %v1322_v16 = vadd.f32 %v1321_v38, %v1113_v5 }
 0x1e4   : > { %v906_v43 = vpop.f32.mrf.mxu0 }
 0x1e5   : > { %v907_v18 = vadd.f32 %v6271_v55, %v906_v43 }
 0x1e6   : > { %1371 = vmatmul.f32.gmra.mxu2 %v695_v40 }
 0x1e7   : > { %v1115_v46 = vpop.f32.mrf.mxu1  ;;  %953 = vmatmul.f32.gmra.mxu0 %v693_v44  ;;  %v706_v44 = vld [vmem:[%s6041_s17 + $0x278] sm:$0xff] }
 0x1e8   : > { %v1116_v25 = vadd.f32 %v1115_v46, %v907_v18 }
 0x1e9   : > { %v1324_v51 = vpop.f32.mrf.mxu2 }
 0x1ea   : > { %5035 = vmatmul.msk.f32.gmra.mxu3 %vm1956_vm1, %v4971_v60  ;;  %1162 = vmatmul.f32.gmra.mxu1 %v694_v47  ;;  %v1325_v33 = vadd.f32 %v1324_v51, %v1116_v25  ;;  %v717_v25 = vld [vmem:[%s6041_s17 + $0x2d0] sm:$0xff] }
 0x1ec   : > { %v909_v57 = vpop.f32.mrf.mxu0 }
 0x1ed   : > { %v910_v34 = vadd.f32 %v6271_v55, %v909_v57  ;;  %v709_v57 = vld [vmem:[%s6041_s17 + $0x290] sm:$0xff] }
 0x1ee   : > { %1374 = vmatmul.f32.gmra.mxu2 %v698_v52 }
 0x1ef   : > { %v1118_v60 = vpop.f32.mrf.mxu1  ;;  %956 = vmatmul.f32.gmra.mxu0 %v696_v58 }
 0x1f0   : > { %v1119_v39 = vadd.f32 %v1118_v60, %v910_v34 }
 0x1f1   : > { %v1327_v1 = vpop.f32.mrf.mxu2 }
 0x1f2   : > { %5036 = vmatmul.msk.f32.gmra.mxu3 %vm1956_vm1, %v4972_v6  ;;  %1165 = vmatmul.f32.gmra.mxu1 %v697_v61  ;;  %v1328_v47 = vadd.f32 %v1327_v1, %v1119_v39  ;;  %v1641_v61 = vpop.permute.xlu1 %1640  ;;  %v711_v1 = vld [vmem:[%s6041_s17 + $0x2a0] sm:$0xff]  ;;  %v720_v39 = vld [vmem:[%s6041_s17 + $0x2e8] sm:$0xff] }
 0x1f3   : > { %vm1781_vm12 = vcmp.eq.s32.totalorder %v6158_v12, %v1641_v61  ;;  %v724_v61 = vld [vmem:[%s6041_s17 + $0x308] sm:$0xff] }
 0x1f4   : > { %v912_v6 = vpop.f32.mrf.mxu0  ;;  %v4981_v5 = vsel %vm1781_vm12, 1.0, %v5823_v17 }
 0x1f5   : > { %v2166_v14 = vpop.f32.mrf.mxu3  ;;  %v913_v10 = vadd.f32 %v6271_v55, %v912_v6 }
 0x1f6   : > { %v6288_v19 = vmul.f32 %v2166_v14, %v1307_v8  ;;  %v699_v8 = vld [vmem:[%s6041_s17 + $0x240] sm:$0xff]  ;;  %1377 = vmatmul.f32.gmra.mxu2 %v701_v3  ;;  %v4977_v14 = vsel %vm1777_vm8, 1.0, %v5823_v17 }
 0x1f7   : > { %v1121_v11 = vpop.f32.mrf.mxu1  ;;  %959 = vmatmul.f32.gmra.mxu0 %v699_v8 }
 0x1f8   : > { %v1122_v15 = vadd.f32 %v1121_v11, %v913_v10  ;;  %v716_v10 = vld [vmem:[%s6041_s17 + $0x2c8] sm:$0xff] }
 0x1f9   : > { %v1330_v20 = vpop.f32.mrf.mxu2 }
 0x1fa   : > { %5037 = vmatmul.msk.f32.gmra.mxu3 %vm1956_vm1, %v4973_v22  ;;  %v1331_v22 = vadd.f32 %v1330_v20, %v1122_v15  ;;  %1168 = vmatmul.f32.gmra.mxu1 %v700_v13  ;;  %v1650_v34 = vpop.permute.xlu1 %1649 }
 0x1fb   : > { %vm1784_vm15 = vcmp.eq.s32.totalorder %v6158_v12, %v1650_v34 }
 0x1fc   : > { %v6333_v26 = vpop.f32.mrf.mxu0 }
 0x1fd   : > { %v2169_v28 = vpop.f32.mrf.mxu3 }
 0x1fe   : > { %v6297_v32 = vmul.f32 %v2169_v28, %v1310_v23  ;;  %v704_v23 = vld [vmem:[%s6041_s17 + $0x268] sm:$0xff] }
 0x1ff   : > { %1380 = vmatmul.f32.gmra.mxu2 %v704_v23  ;;  %v6338_v29 = vpop.f32.mrf.mxu1  ;;  %962 = vmatmul.f32.gmra.mxu0 %v702_v27 }
 0x202   : > { %5038 = vmatmul.msk.f32.gmra.mxu3 %vm1956_vm1, %v4974_v35  ;;  %v6344_v35 = vpop.f32.mrf.mxu2  ;;  %1171 = vmatmul.f32.gmra.mxu1 %v703_v30  ;;  %v718_v30 = vld [vmem:[%s6041_s17 + $0x2d8] sm:$0xff] }
 0x204   : > { %v6348_v40 = vpop.f32.mrf.mxu0 }
 0x205   : > { %v2172_v41 = vpop.f32.mrf.mxu3 }
 0x206   : > { %v6306_v45 = vmul.f32 %v2172_v41, %v1313_v36  ;;  %v1635_v36 = vpop.permute.xlu2 %1634  ;;  %v705_v41 = vld [vmem:[%s6041_s17 + $0x270] sm:$0xff] }
 0x207   : > { %vm1779_vm10 = vcmp.eq.s32.totalorder %v6158_v12, %v1635_v36  ;;  %1383 = vmatmul.f32.gmra.mxu2 %v707_v37  ;;  %v6353_v43 = vpop.f32.mrf.mxu1  ;;  %965 = vmatmul.f32.gmra.mxu0 %v705_v41  ;;  %v722_v36 = vld [vmem:[%s6041_s17 + $0x2f8] sm:$0xff] }
 0x208   : > { %v4979_v46 = vsel %vm1779_vm10, 1.0, %v5823_v17 }
 0x20a   : > { %5039 = vmatmul.msk.f32.gmra.mxu3 %vm1956_vm1, %v4975_v48  ;;  %v6358_v48 = vpop.f32.mrf.mxu2  ;;  %1174 = vmatmul.f32.gmra.mxu1 %v706_v44  ;;  %v721_v44 = vld [vmem:[%s6041_s17 + $0x2f0] sm:$0xff] }
 0x20c   : > { %v6362_v52 = vpop.f32.mrf.mxu0 }
 0x20d   : > { %v2175_v54 = vpop.f32.mrf.mxu3 }
 0x20e   : > { %v6315_v59 = vmul.f32 %v2175_v54, %v1316_v49  ;;  %v1638_v49 = vpop.permute.xlu0 %1637  ;;  %v1644_v8 = vpop.permute.xlu2 %1643 }
 0x20f   : > { %vm1780_vm11 = vcmp.eq.s32.totalorder %v6158_v12, %v1638_v49  ;;  %1386 = vmatmul.f32.gmra.mxu2 %v710_v50  ;;  %v6367_v56 = vpop.f32.mrf.mxu1  ;;  %968 = vmatmul.f32.gmra.mxu0 %v708_v53  ;;  %vm1782_vm13 = vcmp.eq.s32.totalorder %v6158_v12, %v1644_v8  ;;  %v725_v50 = vld [vmem:[%s6041_s17 + $0x310] sm:$0xff] }
 0x210   : > { %v4980_v58 = vsel %vm1780_vm11, 1.0, %v5823_v17  ;;  %v4982_v18 = vsel %vm1782_vm13, 1.0, %v5823_v17 }
 0x212   : > { %5040 = vmatmul.msk.f32.gmra.mxu3 %vm1956_vm1, %v4976_v62  ;;  %v6372_v60 = vpop.f32.mrf.mxu2  ;;  %1177 = vmatmul.f32.gmra.mxu1 %v709_v57  ;;  %v713_v62 = vld [vmem:[%s6041_s17 + $0x2b0] sm:$0xff]  ;;  %v723_v57 = vld [vmem:[%s6041_s17 + $0x300] sm:$0xff] }
 0x214   : > { %v6376_v0 = vpop.f32.mrf.mxu0 }
 0x215   : > { %v2178_v4 = vpop.f32.mrf.mxu3 }
 0x216   : > { %v6324_v9 = vmul.f32 %v2178_v4, %v1319_v63  ;;  %v712_v4 = vld [vmem:[%s6041_s17 + $0x2a8] sm:$0xff]  ;;  %v1647_v21 = vpop.permute.xlu0 %1646  ;;  %v1653_v49 = vpop.permute.xlu2 %1652 }
 0x217   : > { %1389 = vmatmul.f32.gmra.mxu2 %v713_v62  ;;  %v6381_v3 = vpop.f32.mrf.mxu1  ;;  %971 = vmatmul.f32.gmra.mxu0 %v711_v1  ;;  %vm1783_vm14 = vcmp.eq.s32.totalorder %v6158_v12, %v1647_v21  ;;  %vm1785_vm0 = vcmp.eq.s32.totalorder %v6158_v12, %v1653_v49  ;;  %v730_v49 = vld [vmem:[%s6041_s17 + $0x338] sm:$0xff] }
 0x218   : > { %v4985_v62 = vsel %vm1785_vm0, 1.0, %v5823_v17 }
 0x21a   : > { %5041 = vmatmul.msk.f32.gmra.mxu3 %vm1956_vm1, %v4977_v14  ;;  %v6386_v6 = vpop.f32.mrf.mxu2  ;;  %1180 = vmatmul.f32.gmra.mxu1 %v712_v4  ;;  %v714_v14 = vld [vmem:[%s6041_s17 + $0x2b8] sm:$0xff]  ;;  %v728_v4 = vld [vmem:[%s6041_s17 + $0x328] sm:$0xff] }
 0x21c   : > { %v6392_v13 = vpop.f32.mrf.mxu0 }
 0x21d   : > { %v2181_v24 = vpop.f32.mrf.mxu3 }
 0x21e   : > { %v6336_v28 = vmul.f32 %v2181_v24, %v1322_v16  ;;  %v715_v16 = vld [vmem:[%s6041_s17 + $0x2c0] sm:$0xff]  ;;  %v1656_v1 = vpop.permute.xlu0 %1655 }
 0x21f   : > { %1392 = vmatmul.f32.gmra.mxu2 %v716_v10  ;;  %v6395_v15 = vpop.f32.mrf.mxu1  ;;  %974 = vmatmul.f32.gmra.mxu0 %v714_v14  ;;  %vm1786_vm2 = vcmp.eq.s32.totalorder %v6158_v12, %v1656_v1  ;;  %v726_v10 = vld [vmem:[%s6041_s17 + $0x318] sm:$0xff]  ;;  %v922_v1 = vadd.f32 %v6271_v55, %v6362_v52  ;;  %v732_v52 = vld [vmem:[%s6041_s17 + $0x348] sm:$0xff] }
 0x222   : > { %5042 = vmatmul.msk.f32.gmra.mxu3 %vm1956_vm1, %v4978_v31  ;;  %v6400_v20 = vpop.f32.mrf.mxu2  ;;  %1183 = vmatmul.f32.gmra.mxu1 %v715_v16  ;;  %v4983_v31 = vsel %vm1783_vm14, 1.0, %v5823_v17  ;;  %v727_v16 = vld [vmem:[%s6041_s17 + $0x320] sm:$0xff] }
 0x224   : > { %v930_v24 = vpop.f32.mrf.mxu0 }
 0x225   : > { %v2184_v38 = vpop.f32.mrf.mxu3 }
 0x226   : > { %v6351_v42 = vmul.f32 %v2184_v38, %v1325_v33 }
 0x227   : > { %v6407_v27 = vpop.f32.mrf.mxu1  ;;  %977 = vmatmul.f32.gmra.mxu0 %v717_v25  ;;  %v1659_v25 = vpop.permute.xlu1 %1658 }
 0x228   : > { %vm1787_vm3 = vcmp.eq.s32.totalorder %v6158_v12, %v1659_v25  ;;  %v1131_v25 = vadd.f32 %v6367_v56, %v922_v1 }
 0x22a   : > { %5043 = vmatmul.msk.f32.gmra.mxu3 %vm1956_vm1, %v4979_v46  ;;  %v6412_v33 = vpop.f32.mrf.mxu2  ;;  %1186 = vmatmul.f32.gmra.mxu1 %v718_v30  ;;  %v4984_v46 = vsel %vm1784_vm15, 1.0, %v5823_v17  ;;  %v731_v30 = vld [vmem:[%s6041_s17 + $0x340] sm:$0xff] }
 0x22c   : > { %v933_v38 = vpop.f32.mrf.mxu0 }
 0x22d   : > { %v2187_v51 = vpop.f32.mrf.mxu3  ;;  %v934_v21 = vadd.f32 %v6271_v55, %v933_v38 }
 0x22e   : > { %v6365_v54 = vmul.f32 %v2187_v51, %v1328_v47 }
 0x22f   : > { %v1142_v41 = vpop.f32.mrf.mxu1  ;;  %980 = vmatmul.f32.gmra.mxu0 %v720_v39 }
 0x232   : > { %5044 = vmatmul.msk.f32.gmra.mxu3 %vm1956_vm1, %v4980_v58  ;;  %v1351_v47 = vpop.f32.mrf.mxu2  ;;  %1189 = vmatmul.f32.gmra.mxu1 %v721_v44  ;;  %v729_v44 = vld [vmem:[%s6041_s17 + $0x330] sm:$0xff] }
 0x234   : > { %v936_v53 = vpop.f32.mrf.mxu0 }
 0x235   : > { %v2190_v63 = vpop.f32.mrf.mxu3 }
 0x236   : > { %v6379_v2 = vmul.f32 %v2190_v63, %v1331_v22  ;;  %v719_v22 = vld [vmem:[%s6041_s17 + $0x2e0] sm:$0xff] }
 0x237   : > { %1395 = vmatmul.f32.gmra.mxu2 %v719_v22  ;;  %v1145_v58 = vpop.f32.mrf.mxu1  ;;  %983 = vmatmul.f32.gmra.mxu0 %v723_v57 }
 0x23a   : > { %5045 = vmatmul.msk.f32.gmra.mxu3 %vm1956_vm1, %v4981_v5  ;;  %v6430_v63 = vpop.f32.mrf.mxu2  ;;  %1192 = vmatmul.f32.gmra.mxu1 %v724_v61  ;;  %v937_v61 = vadd.f32 %v6271_v55, %v936_v53 }
 0x23c   : > { %v939_v8 = vpop.f32.mrf.mxu0 }
 0x23d   : > { %v6389_v11 = vpop.f32.mrf.mxu3  ;;  %v940_v56 = vadd.f32 %v6271_v55, %v939_v8 }
 0x23f   : > { %1398 = vmatmul.f32.gmra.mxu2 %v722_v36  ;;  %v6437_v14 = vpop.f32.mrf.mxu1  ;;  %986 = vmatmul.f32.gmra.mxu0 %v726_v10  ;;  %v1143_v36 = vadd.f32 %v1142_v41, %v934_v21  ;;  %v734_v10 = vld [vmem:[%s6041_s17 + $0x358] sm:$0xff] }
 0x241   : > { %v1352_v41 = vadd.f32 %v1351_v47, %v1143_v36 }
 0x242   : > { %5046 = vmatmul.msk.f32.gmra.mxu3 %vm1956_vm1, %v4982_v18  ;;  %v4986_v18 = vsel %vm1786_vm2, 1.0, %v5823_v17  ;;  %v6443_v22 = vpop.f32.mrf.mxu2  ;;  %1195 = vmatmul.f32.gmra.mxu1 %v727_v16 }
 0x244   : > { %v6448_v39 = vpop.f32.mrf.mxu0 }
 0x245   : > { %v6403_v23 = vpop.f32.mrf.mxu3 }
 0x247   : > { %1401 = vmatmul.f32.gmra.mxu2 %v725_v50  ;;  %v6453_v38 = vpop.f32.mrf.mxu1  ;;  %v4987_v50 = vsel %vm1787_vm3, 1.0, %v5823_v17  ;;  %989 = vmatmul.f32.gmra.mxu0 %v729_v44  ;;  %v1665_v44 = vpop.permute.xlu0 %1664 }
 0x248   : > { %vm1789_vm5 = vcmp.eq.s32.totalorder %v6158_v12, %v1665_v44 }
 0x24a   : > { %5047 = vmatmul.msk.f32.gmra.mxu3 %vm1956_vm1, %v4983_v31  ;;  %v931_v31 = vadd.f32 %v6271_v55, %v930_v24  ;;  %v925_v24 = vadd.f32 %v6271_v55, %v6376_v0  ;;  %1198 = vmatmul.f32.gmra.mxu1 %v730_v49  ;;  %v919_v0 = vadd.f32 %v6271_v55, %v6348_v40 }
 0x24b   : > { %v1340_v49 = vadd.f32 %v6372_v60, %v1131_v25  ;;  %v741_v25 = vld [vmem:[%s6041_s17 + $0x390] sm:$0xff] }
 0x24c   : > { %v1140_v57 = vadd.f32 %v6407_v27, %v931_v31  ;;  %v1134_v27 = vadd.f32 %v6381_v3, %v925_v24  ;;  %v6473_v21 = vpop.f32.mrf.mxu0  ;;  %v733_v3 = vld [vmem:[%s6041_s17 + $0x350] sm:$0xff] }
 0x24d   : > { %v6415_v37 = vpop.f32.mrf.mxu3 }
 0x24e   : > { %v1349_v47 = vadd.f32 %v6412_v33, %v1140_v57  ;;  %v1343_v31 = vadd.f32 %v6386_v6, %v1134_v27  ;;  %v737_v6 = vld [vmem:[%s6041_s17 + $0x370] sm:$0xff] }
 0x24f   : > { %1404 = vmatmul.f32.gmra.mxu2 %v728_v4  ;;  %v6480_v40 = vpop.f32.mrf.mxu1  ;;  %992 = vmatmul.f32.gmra.mxu0 %v732_v52 }
 0x252   : > { %5048 = vmatmul.msk.f32.gmra.mxu3 %vm1956_vm1, %v4984_v46  ;;  %v928_v46 = vadd.f32 %v6271_v55, %v6392_v13  ;;  %v6462_v13 = vpop.f32.mrf.mxu2  ;;  %1201 = vmatmul.f32.gmra.mxu1 %v733_v3 }
 0x254   : > { %v1137_v4 = vadd.f32 %v6395_v15, %v928_v46  ;;  %v916_v15 = vadd.f32 %v6271_v55, %v6333_v26  ;;  %v948_v24 = vpop.f32.mrf.mxu0 }
 0x255   : > { %v6423_v51 = vpop.f32.mrf.mxu3 }
 0x256   : > { %v1125_v46 = vadd.f32 %v6338_v29, %v916_v15  ;;  %v2370_v8 = vmul.f32 %v6423_v51, %v1343_v31  ;;  %v735_v29 = vld [vmem:[%s6041_s17 + $0x360] sm:$0xff] }
 0x257   : > { %1407 = vmatmul.f32.gmra.mxu2 %v731_v30  ;;  %v1346_v30 = vadd.f32 %v6400_v20, %v1137_v4  ;;  %995 = vmatmul.f32.gmra.mxu0 %v735_v29  ;;  %v740_v4 = vld [vmem:[%s6041_s17 + $0x388] sm:$0xff] }
 0x258   : > { %v1334_v60 = vadd.f32 %v6344_v35, %v1125_v46  ;;  %v943_v35 = vadd.f32 %v6271_v55, %v6448_v39  ;;  %v748_v29 = vld [vmem:[%s6041_s17 + $0x3c8] sm:$0xff] }
 0x25a   : > { %5049 = vmatmul.msk.f32.gmra.mxu3 %vm1956_vm1, %v4985_v62  ;;  %v1662_v62 = vpop.permute.xlu2 %1661  ;;  %v6489_v20 = vpop.f32.mrf.mxu2  ;;  %v2367_v1 = vmul.f32 %v6389_v11, %v1334_v60 }
 0x25b   : > { %vm1788_vm4 = vcmp.eq.s32.totalorder %v6158_v12, %v1662_v62 }
 0x25c   : > { %v4988_v33 = vsel %vm1788_vm4, 1.0, %v5823_v17 }
 0x25d   : > { %v6433_v5 = vpop.f32.mrf.mxu3 }
 0x25f   : > { %1410 = vmatmul.f32.gmra.mxu2 %v734_v10  ;;  %v1152_v10 = vadd.f32 %v6453_v38, %v943_v35  ;;  %v752_v35 = vld [vmem:[%s6041_s17 + $0x3e8] sm:$0xff] }
 0x261   : > { %v1361_v38 = vadd.f32 %v6462_v13, %v1152_v10 }
 0x262   : > { %5050 = vmatmul.msk.f32.gmra.mxu3 %vm1956_vm1, %v4986_v18  ;;  %v1146_v18 = vadd.f32 %v1145_v58, %v937_v61  ;;  %v1128_v58 = vadd.f32 %v6353_v43, %v919_v0  ;;  %v2371_v43 = vmul.f32 %v6433_v5, %v1346_v30  ;;  %v2369_v5 = vmul.f32 %v6415_v37, %v1340_v49  ;;  %v6511_v62 = vpop.f32.mrf.mxu2  ;;  %v1668_v37 = vpop.permute.xlu1 %1667  ;;  %v742_v30 = vld [vmem:[%s6041_s17 + $0x398] sm:$0xff] }
 0x263   : > { %v4989_v61 = vsel %vm1789_vm5, 1.0, %v5823_v17  ;;  %vm1790_vm6 = vcmp.eq.s32.totalorder %v6158_v12, %v1668_v37  ;;  %v951_v0 = vpop.f32.mrf.mxu0 }
 0x264   : > { %v1355_v26 = vadd.f32 %v6430_v63, %v1146_v18  ;;  %v4990_v11 = vsel %vm1790_vm6, 1.0, %v5823_v17  ;;  %v1671_v18 = vpop.permute.xlu2 %1670  ;;  %v952_v44 = vadd.f32 %v6271_v55, %v951_v0  ;;  %v751_v0 = vld [vmem:[%s6041_s17 + $0x3e0] sm:$0xff] }
 0x265   : > { %v2208_v34 = vpop.f32.mrf.mxu3  ;;  %vm1791_vm7 = vcmp.eq.s32.totalorder %v6158_v12, %v1671_v18 }
 0x266   : > { %v2372_v36 = vmul.f32 %v2208_v34, %v1349_v47  ;;  %v1337_v34 = vadd.f32 %v6358_v48, %v1128_v58  ;;  %v1157_v48 = vpop.f32.mrf.mxu1  ;;  %v739_v47 = vld [vmem:[%s6041_s17 + $0x380] sm:$0xff] }
 0x267   : > { %1413 = vmatmul.f32.gmra.mxu2 %v737_v6 }
 0x268   : > { %v2368_v51 = vmul.f32 %v6403_v23, %v1337_v34 }
 0x26a   : > { %5051 = vmatmul.msk.f32.gmra.mxu3 %vm1956_vm1, %v4987_v50  ;;  %v1149_v50 = vadd.f32 %v6437_v14, %v940_v56  ;;  %v1677_v49 = vpop.permute.xlu1 %1676 }
 0x26b   : > { %v954_v15 = vpop.f32.mrf.mxu0  ;;  %vm1793_vm9 = vcmp.eq.s32.totalorder %v6158_v12, %v1677_v49 }
 0x26c   : > { %v1358_v14 = vadd.f32 %v6443_v22, %v1149_v50  ;;  %v738_v22 = vld [vmem:[%s6041_s17 + $0x378] sm:$0xff]  ;;  %v4993_v60 = vsel %vm1793_vm9, 1.0, %v5823_v17 }
 0x26d   : > { %v2211_v16 = vpop.f32.mrf.mxu3  ;;  %998 = vmatmul.f32.gmra.mxu0 %v738_v22 }
 0x26e   : > { %v2373_v53 = vmul.f32 %v2211_v16, %v1352_v41  ;;  %v736_v41 = vld [vmem:[%s6041_s17 + $0x368] sm:$0xff]  ;;  %v1160_v39 = vpop.f32.mrf.mxu1  ;;  %v946_v16 = vadd.f32 %v6271_v55, %v6473_v21 }
 0x26f   : > { %1204 = vmatmul.f32.gmra.mxu1 %v736_v41  ;;  %1416 = vmatmul.f32.gmra.mxu2 %v740_v4  ;;  %v955_v41 = vadd.f32 %v6271_v55, %v954_v15  ;;  %v750_v4 = vld [vmem:[%s6041_s17 + $0x3d8] sm:$0xff] }
 0x270   : > { %2540 = vmatpush.msrb.mxu3 %v2373_v53  ;;  %v1369_v53 = vpop.f32.mrf.mxu2 }
 0x272   : > { %5052 = vmatmul.msk.f32.gmra.mxu3 %vm1956_vm1, %v4988_v33  ;;  %v1674_v33 = vpop.permute.xlu0 %1673 }
 0x273   : > { %2541 = vmatpush.msrb.mxu3 %v2372_v36  ;;  %vm1792_vm8 = vcmp.eq.s32.totalorder %v6158_v12, %v1674_v33  ;;  %v957_v31 = vpop.f32.mrf.mxu0  ;;  %v744_v36 = vld [vmem:[%s6041_s17 + $0x3a8] sm:$0xff] }
 0x274   : > { %v756_v33 = vld [vmem:[%s6041_s17 + $0x408] sm:$0xff] }
 0x275   : > { %2542 = vmatpush.msrb.mxu3 %v2371_v43  ;;  %v2214_v63 = vpop.f32.mrf.mxu3  ;;  %1001 = vmatmul.f32.gmra.mxu0 %v741_v25  ;;  %v749_v43 = vld [vmem:[%s6041_s17 + $0x3d0] sm:$0xff] }
 0x276   : > { %v6500_v57 = vmul.f32 %v2214_v63, %v1355_v26  ;;  %v1163_v21 = vpop.f32.mrf.mxu1  ;;  %v747_v63 = vld [vmem:[%s6041_s17 + $0x3c0] sm:$0xff] }
 0x277   : > { %2543 = vmatpush.msrb.mxu3 %v2370_v8  ;;  %1207 = vmatmul.f32.gmra.mxu1 %v739_v47  ;;  %v1164_v37 = vadd.f32 %v1163_v21, %v955_v41  ;;  %v958_v47 = vadd.f32 %v6271_v55, %v957_v31 }
 0x278   : > { %v1372_v3 = vpop.f32.mrf.mxu2 }
 0x279   : > { %2544 = vmatpush.msrb.mxu3 %v2369_v5 }
 0x27a   : > { %5053 = vmatmul.msk.f32.gmra.mxu3 %vm1956_vm1, %v4989_v61 }
 0x27b   : > { %2545 = vmatpush.msrb.mxu3 %v2368_v51  ;;  %v960_v34 = vpop.f32.mrf.mxu0  ;;  %v1680_v51 = vpop.permute.xlu2 %1679 }
 0x27c   : > { %v961_v50 = vadd.f32 %v6271_v55, %v960_v34  ;;  %vm1794_vm10 = vcmp.eq.s32.totalorder %v6158_v12, %v1680_v51  ;;  %v767_v51 = vld [vmem:[%s6041_s17 + $0x460] sm:$0xff] }
 0x27d   : > { %2546 = vmatpush.msrb.mxu3 %v2367_v1  ;;  %v2217_v23 = vpop.f32.mrf.mxu3  ;;  %1004 = vmatmul.f32.gmra.mxu0 %v744_v36  ;;  %v4994_v22 = vsel %vm1794_vm10, 1.0, %v5823_v17 }
 0x27e   : > { %v6518_v27 = vmul.f32 %v2217_v23, %v1358_v14  ;;  %v1166_v56 = vpop.f32.mrf.mxu1 }
 0x27f   : > { %2547 = vmatpush.msrb.mxu3 %v6379_v2  ;;  %v743_v2 = vld [vmem:[%s6041_s17 + $0x3a0] sm:$0xff]  ;;  %1210 = vmatmul.f32.gmra.mxu1 %v742_v30  ;;  %v1167_v18 = vadd.f32 %v1166_v56, %v958_v47  ;;  %v770_v47 = vld [vmem:[%s6041_s17 + $0x478] sm:$0xff] }
 0x280   : > { %1419 = vmatmul.f32.gmra.mxu2 %v743_v2  ;;  %v1375_v46 = vpop.f32.mrf.mxu2 }
 0x281   : > { %2548 = vmatpush.msrb.mxu3 %v6365_v54  ;;  %v1155_v54 = vadd.f32 %v6480_v40, %v946_v16  ;;  %v949_v40 = vadd.f32 %v6271_v55, %v948_v24  ;;  %v755_v16 = vld [vmem:[%s6041_s17 + $0x400] sm:$0xff]  ;;  %v754_v55 = vld [vmem:[%s6041_s17 + $0x3f8] sm:$0xff]  ;;  %v1376_v21 = vadd.f32 %v1375_v46, %v1167_v18 }
 0x282   : > { %5054 = vmatmul.msk.f32.gmra.mxu3 %vm1956_vm1, %v4990_v11 }
 0x283   : > { %2549 = vmatpush.msrb.mxu3 %v6351_v42  ;;  %v4991_v42 = vsel %vm1791_vm7, 1.0, %v5823_v17  ;;  %v6568_v1 = vpop.f32.mrf.mxu0  ;;  %v1689_v56 = vpop.permute.xlu2 %1688 }
 0x284   : > { %vm1797_vm13 = vcmp.eq.s32.totalorder %v6158_v12, %v1689_v56 }
 0x285   : > { %2550 = vmatpush.msrb.mxu3 %v6336_v28  ;;  %v2220_v52 = vpop.f32.mrf.mxu3  ;;  %v1364_v28 = vadd.f32 %v6489_v20, %v1155_v54  ;;  %v745_v20 = vld [vmem:[%s6041_s17 + $0x3b0] sm:$0xff]  ;;  %1007 = vmatmul.f32.gmra.mxu0 %v747_v63  ;;  %v764_v63 = vld [vmem:[%s6041_s17 + $0x448] sm:$0xff] }
 0x286   : > { %v6534_v13 = vmul.f32 %v2220_v52, %v1361_v38  ;;  %v1169_v24 = vpop.f32.mrf.mxu1  ;;  %v1683_v38 = vpop.permute.xlu0 %1682  ;;  %v753_v52 = vld [vmem:[%s6041_s17 + $0x3f0] sm:$0xff] }
 0x287   : > { %2551 = vmatpush.msrb.mxu3 %v6324_v9  ;;  %v746_v9 = vld [vmem:[%s6041_s17 + $0x3b8] sm:$0xff]  ;;  %1213 = vmatmul.f32.gmra.mxu1 %v745_v20  ;;  %v1170_v5 = vadd.f32 %v1169_v24, %v961_v50  ;;  %vm1795_vm11 = vcmp.eq.s32.totalorder %v6158_v12, %v1683_v38  ;;  %v761_v20 = vld [vmem:[%s6041_s17 + $0x430] sm:$0xff] }
 0x288   : > { %1422 = vmatmul.f32.gmra.mxu2 %v746_v9  ;;  %v1378_v61 = vpop.f32.mrf.mxu2  ;;  %v4995_v25 = vsel %vm1795_vm11, 1.0, %v5823_v17 }
 0x289   : > { %2552 = vmatpush.msrb.mxu3 %v6315_v59  ;;  %v1158_v59 = vadd.f32 %v1157_v48, %v949_v40  ;;  %v1379_v14 = vadd.f32 %v1378_v61, %v1170_v5  ;;  %v763_v5 = vld [vmem:[%s6041_s17 + $0x440] sm:$0xff] }
 0x28a   : > { %5055 = vmatmul.msk.f32.gmra.mxu3 %vm1956_vm1, %v4991_v42  ;;  %v1686_v42 = vpop.permute.xlu1 %1685 }
 0x28b   : > { %2553 = vmatpush.msrb.mxu3 %v6306_v45  ;;  %v4992_v45 = vsel %vm1792_vm8, 1.0, %v5823_v17  ;;  %v6583_v2 = vpop.f32.mrf.mxu0  ;;  %vm1796_vm12 = vcmp.eq.s32.totalorder %v6158_v12, %v1686_v42  ;;  %v773_v42 = vld [vmem:[%s6041_s17 + $0x490] sm:$0xff] }
 0x28c   : > { %v4996_v31 = vsel %vm1796_vm12, 1.0, %v5823_v17 }
 0x28d   : > { %2554 = vmatpush.msrb.mxu3 %v6297_v32  ;;  %v2223_v58 = vpop.f32.mrf.mxu3  ;;  %v1367_v32 = vadd.f32 %v6511_v62, %v1158_v59  ;;  %1010 = vmatmul.f32.gmra.mxu0 %v750_v4  ;;  %v757_v59 = vld [vmem:[%s6041_s17 + $0x410] sm:$0xff]  ;;  %v766_v4 = vld [vmem:[%s6041_s17 + $0x458] sm:$0xff] }
 0x28e   : > { %v6548_v26 = vmul.f32 %v2223_v58, %v1364_v28  ;;  %v6573_v10 = vpop.f32.mrf.mxu1  ;;  %v758_v28 = vld [vmem:[%s6041_s17 + $0x418] sm:$0xff]  ;;  %v1692_v34 = vpop.permute.xlu0 %1691 }
 0x28f   : > { %2555 = vmatpush.msrb.mxu3 %v6288_v19  ;;  %v1161_v19 = vadd.f32 %v1160_v39, %v952_v44  ;;  %1216 = vmatmul.f32.gmra.mxu1 %v748_v29  ;;  %v1373_v39 = vadd.f32 %v1372_v3, %v1164_v37  ;;  %v759_v44 = vld [vmem:[%s6041_s17 + $0x420] sm:$0xff]  ;;  %vm1798_vm14 = vcmp.eq.s32.totalorder %v6158_v12, %v1692_v34  ;;  %v762_v29 = vld [vmem:[%s6041_s17 + $0x438] sm:$0xff] }
 0x290   : > { %1425 = vmatmul.f32.gmra.mxu2 %v749_v43  ;;  %v6579_v11 = vpop.f32.mrf.mxu2  ;;  %v760_v43 = vld [vmem:[%s6041_s17 + $0x428] sm:$0xff]  ;;  %v774_v34 = vld [vmem:[%s6041_s17 + $0x498] sm:$0xff] }
 0x291   : > { %v1370_v48 = vadd.f32 %v1369_v53, %v1161_v19 }
 0x292   : > { %5056 = vmatmul.msk.f32.gmra.mxu3 %vm1956_vm1, %v4992_v45  ;;  %v1695_v61 = vpop.permute.xlu1 %1694 }
 0x293   : > { %v6597_v3 = vpop.f32.mrf.mxu0  ;;  %vm1799_vm15 = vcmp.eq.s32.totalorder %v6158_v12, %v1695_v61 }
 0x295   : > { %v2226_v6 = vpop.f32.mrf.mxu3  ;;  %1013 = vmatmul.f32.gmra.mxu0 %v753_v52  ;;  %v769_v52 = vld [vmem:[%s6041_s17 + $0x470] sm:$0xff] }
 0x296   : > { %v6559_v8 = vmul.f32 %v2226_v6, %v1367_v32  ;;  %v6588_v15 = vpop.f32.mrf.mxu1  ;;  %v4997_v6 = vsel %vm1797_vm13, 1.0, %v5823_v17 }
 0x297   : > { %1219 = vmatmul.f32.gmra.mxu1 %v751_v0  ;;  %v4999_v0 = vsel %vm1799_vm15, 1.0, %v5823_v17 }
 0x298   : > { %1428 = vmatmul.f32.gmra.mxu2 %v752_v35  ;;  %v6593_v30 = vpop.f32.mrf.mxu2 }
 0x29a   : > { %5057 = vmatmul.msk.f32.gmra.mxu3 %vm1956_vm1, %v4993_v60 }
 0x29b   : > { %v6611_v32 = vpop.f32.mrf.mxu0 }
 0x29d   : > { %v2229_v62 = vpop.f32.mrf.mxu3  ;;  %1016 = vmatmul.f32.gmra.mxu0 %v756_v33  ;;  %v771_v33 = vld [vmem:[%s6041_s17 + $0x480] sm:$0xff] }
 0x29e   : > { %v6571_v23 = vmul.f32 %v2229_v62, %v1370_v48  ;;  %v6602_v58 = vpop.f32.mrf.mxu1  ;;  %v4998_v48 = vsel %vm1798_vm14, 1.0, %v5823_v17  ;;  %v765_v62 = vld [vmem:[%s6041_s17 + $0x450] sm:$0xff] }
 0x29f   : > { %1222 = vmatmul.f32.gmra.mxu1 %v754_v55 }
 0x2a0   : > { %1431 = vmatmul.f32.gmra.mxu2 %v755_v16  ;;  %v6607_v36 = vpop.f32.mrf.mxu2 }
 0x2a2   : > { %5058 = vmatmul.msk.f32.gmra.mxu3 %vm1956_vm1, %v4994_v22 }
 0x2a3   : > { %v6627_v24 = vpop.f32.mrf.mxu0 }
 0x2a5   : > { %v2232_v53 = vpop.f32.mrf.mxu3  ;;  %1019 = vmatmul.f32.gmra.mxu0 %v759_v44  ;;  %v776_v44 = vld [vmem:[%s6041_s17 + $0x4a8] sm:$0xff] }
 0x2a6   : > { %v6586_v54 = vmul.f32 %v2232_v53, %v1373_v39  ;;  %v6616_v49 = vpop.f32.mrf.mxu1  ;;  %v1698_v39 = vpop.permute.xlu2 %1697  ;;  %v768_v53 = vld [vmem:[%s6041_s17 + $0x468] sm:$0xff] }
 0x2a7   : > { %1225 = vmatmul.f32.gmra.mxu1 %v757_v59  ;;  %vm1800_vm0 = vcmp.eq.s32.totalorder %v6158_v12, %v1698_v39 }
 0x2a8   : > { %1434 = vmatmul.f32.gmra.mxu2 %v758_v28  ;;  %v6621_v19 = vpop.f32.mrf.mxu2  ;;  %v5000_v55 = vsel %vm1800_vm0, 1.0, %v5823_v17 }
 0x2aa   : > { %5059 = vmatmul.msk.f32.gmra.mxu3 %vm1956_vm1, %v4995_v25 }
 0x2ab   : > { %v978_v35 = vpop.f32.mrf.mxu0 }
 0x2ad   : > { %v2235_v40 = vpop.f32.mrf.mxu3  ;;  %1022 = vmatmul.f32.gmra.mxu0 %v762_v29  ;;  %v775_v29 = vld [vmem:[%s6041_s17 + $0x4a0] sm:$0xff] }
 0x2ae   : > { %v6600_v9 = vmul.f32 %v2235_v40, %v1376_v21  ;;  %v6630_v60 = vpop.f32.mrf.mxu1  ;;  %v1701_v21 = vpop.permute.xlu0 %1700 }
 0x2af   : > { %1228 = vmatmul.f32.gmra.mxu1 %v760_v43  ;;  %vm1801_vm2 = vcmp.eq.s32.totalorder %v6158_v12, %v1701_v21 }
 0x2b0   : > { %1437 = vmatmul.f32.gmra.mxu2 %v761_v20  ;;  %v6635_v41 = vpop.f32.mrf.mxu2  ;;  %v5001_v56 = vsel %vm1801_vm2, 1.0, %v5823_v17 }
 0x2b2   : > { %5060 = vmatmul.msk.f32.gmra.mxu3 %vm1956_vm1, %v4996_v31  ;;  %v772_v31 = vld [vmem:[%s6041_s17 + $0x488] sm:$0xff] }
 0x2b3   : > { %v981_v16 = vpop.f32.mrf.mxu0 }
 0x2b5   : > { %v2238_v45 = vpop.f32.mrf.mxu3  ;;  %1025 = vmatmul.f32.gmra.mxu0 %v765_v62  ;;  %v1707_v62 = vpop.permute.xlu2 %1706 }
 0x2b6   : > { %v6614_v46 = vmul.f32 %v2238_v45, %v1379_v14  ;;  %v1187_v37 = vpop.f32.mrf.mxu1  ;;  %v1704_v45 = vpop.permute.xlu1 %1703  ;;  %vm1803_vm4 = vcmp.eq.s32.totalorder %v6158_v12, %v1707_v62 }
 0x2b7   : > { %1231 = vmatmul.f32.gmra.mxu1 %v763_v5  ;;  %vm1802_vm3 = vcmp.eq.s32.totalorder %v6158_v12, %v1704_v45 }
 0x2b8   : > { %1440 = vmatmul.f32.gmra.mxu2 %v764_v63  ;;  %v5002_v5 = vsel %vm1802_vm3, 1.0, %v5823_v17 }
 0x2ba   : > { %5061 = vmatmul.msk.f32.gmra.mxu3 %vm1956_vm1, %v4997_v6  ;;  %v6645_v22 = vpop.f32.mrf.mxu2 }
 0x2bb   : > { %v984_v40 = vpop.f32.mrf.mxu0 }
 0x2bd   : > { %v6624_v50 = vpop.f32.mrf.mxu3  ;;  %1028 = vmatmul.f32.gmra.mxu0 %v768_v53 }
 0x2be   : > { %v1190_v18 = vpop.f32.mrf.mxu1 }
 0x2bf   : > { %1234 = vmatmul.f32.gmra.mxu1 %v766_v4 }
 0x2c0   : > { %1443 = vmatmul.f32.gmra.mxu2 %v767_v51 }
 0x2c2   : > { %5062 = vmatmul.msk.f32.gmra.mxu3 %vm1956_vm1, %v4998_v48  ;;  %v1399_v25 = vpop.f32.mrf.mxu2  ;;  %v6677_v48 = vld [vmem:[#allocation12] ss:$0 sm:$0xff] }
 0x2c3   : > { %v6669_v6 = vpop.f32.mrf.mxu0  ;;  %v982_v61 = vadd.f32 %v6677_v48, %v981_v16  ;;  %v979_v4 = vadd.f32 %v6677_v48, %v978_v35  ;;  %v973_v16 = vadd.f32 %v6677_v48, %v6611_v32  ;;  %v778_v35 = vld [vmem:[%s6041_s17 + $0x4b8] sm:$0xff]  ;;  %v967_v45 = vadd.f32 %v6677_v48, %v6583_v2  ;;  %v780_v2 = vld [vmem:[%s6041_s17 + $0x4c8] sm:$0xff] }
 0x2c5   : > { %v6638_v14 = vpop.f32.mrf.mxu3  ;;  %1031 = vmatmul.f32.gmra.mxu0 %v771_v33  ;;  %v1191_v53 = vadd.f32 %v1190_v18, %v982_v61  ;;  %v1188_v21 = vadd.f32 %v1187_v37, %v979_v4  ;;  %v5003_v33 = vsel %vm1803_vm4, 1.0, %v5823_v17  ;;  %v1710_v37 = vpop.permute.xlu0 %1709 }
 0x2c6   : > { %v1193_v59 = vpop.f32.mrf.mxu1  ;;  %vm1804_vm5 = vcmp.eq.s32.totalorder %v6158_v12, %v1710_v37 }
 0x2c7   : > { %1237 = vmatmul.f32.gmra.mxu1 %v769_v52  ;;  %v1400_v18 = vadd.f32 %v1399_v25, %v1191_v53 }
 0x2c8   : > { %1446 = vmatmul.f32.gmra.mxu2 %v770_v47  ;;  %v976_v47 = vadd.f32 %v6677_v48, %v6627_v24 }
 0x2ca   : > { %5063 = vmatmul.msk.f32.gmra.mxu3 %vm1956_vm1, %v4999_v0  ;;  %v6663_v20 = vpop.f32.mrf.mxu2  ;;  %v779_v0 = vld [vmem:[%s6041_s17 + $0x4c0] sm:$0xff]  ;;  %v1185_v24 = vadd.f32 %v6630_v60, %v976_v47  ;;  %v964_v60 = vadd.f32 %v6677_v48, %v6568_v1  ;;  %v1713_v47 = vpop.permute.xlu1 %1712 }
 0x2cb   : > { %v6687_v52 = vpop.f32.mrf.mxu0  ;;  %vm1805_vm6 = vcmp.eq.s32.totalorder %v6158_v12, %v1713_v47 }
 0x2cd   : > { %v6648_v38 = vpop.f32.mrf.mxu3  ;;  %1034 = vmatmul.f32.gmra.mxu0 %v774_v34  ;;  %v782_v34 = vld [vmem:[%s6041_s17 + $0x4d8] sm:$0xff] }
 0x2ce   : > { %v6672_v63 = vpop.f32.mrf.mxu1 }
 0x2cf   : > { %1240 = vmatmul.f32.gmra.mxu1 %v772_v31  ;;  %v970_v31 = vadd.f32 %v6677_v48, %v6597_v3  ;;  %v1397_v3 = vadd.f32 %v6645_v22, %v1188_v21 }
 0x2d0   : > { %1449 = vmatmul.f32.gmra.mxu2 %v773_v42 }
 0x2d1   : > { %v1179_v25 = vadd.f32 %v6602_v58, %v970_v31  ;;  %v781_v58 = vld [vmem:[%s6041_s17 + $0x4d0] sm:$0xff]  ;;  %v784_v31 = vld [vmem:[%s6041_s17 + $0x4e8] sm:$0xff] }
 0x2d2   : > { %5064 = vmatmul.msk.f32.gmra.mxu3 %vm1956_vm1, %v5000_v55  ;;  %v6680_v51 = vpop.f32.mrf.mxu2  ;;  %v777_v55 = vld [vmem:[%s6041_s17 + $0x4b0] sm:$0xff] }
 0x2d3   : > { %v6713_v62 = vpop.f32.mrf.mxu0 }
 0x2d5   : > { %v6656_v28 = vpop.f32.mrf.mxu3  ;;  %1037 = vmatmul.f32.gmra.mxu0 %v777_v55  ;;  %v785_v55 = vld [vmem:[%s6041_s17 + $0x4f0] sm:$0xff] }
 0x2d6   : > { %v6692_v42 = vpop.f32.mrf.mxu1 }
 0x2d7   : > { %1243 = vmatmul.f32.gmra.mxu1 %v775_v29  ;;  %v1394_v29 = vadd.f32 %v6635_v41, %v1185_v24  ;;  %v1173_v41 = vadd.f32 %v6573_v10, %v964_v60  ;;  %v5005_v24 = vsel %vm1805_vm6, 1.0, %v5823_v17 }
 0x2d8   : > { %1452 = vmatmul.f32.gmra.mxu2 %v776_v44  ;;  %v1182_v44 = vadd.f32 %v6616_v49, %v973_v16  ;;  %v1176_v49 = vadd.f32 %v6588_v15, %v967_v45 }
 0x2da   : > { %5065 = vmatmul.msk.f32.gmra.mxu3 %vm1956_vm1, %v5001_v56  ;;  %v985_v56 = vadd.f32 %v6677_v48, %v984_v40  ;;  %v6701_v32 = vpop.f32.mrf.mxu2  ;;  %v1391_v22 = vadd.f32 %v6621_v19, %v1182_v44  ;;  %v1385_v10 = vadd.f32 %v6593_v30, %v1176_v49 }
 0x2db   : > { %v996_v21 = vpop.f32.mrf.mxu0 }
 0x2dc   : > { %v1194_v61 = vadd.f32 %v1193_v59, %v985_v56  ;;  %v1388_v59 = vadd.f32 %v6607_v36, %v1179_v25  ;;  %v2386_v36 = vmul.f32 %v6656_v28, %v1391_v22  ;;  %v2384_v30 = vmul.f32 %v6638_v14, %v1385_v10  ;;  %v1716_v56 = vpop.permute.xlu2 %1715  ;;  %v788_v14 = vld [vmem:[%s6041_s17 + $0x508] sm:$0xff]  ;;  %v1719_v25 = vpop.permute.xlu0 %1718 }
 0x2dd   : > { %v6666_v43 = vpop.f32.mrf.mxu3  ;;  %1040 = vmatmul.f32.gmra.mxu0 %v780_v2  ;;  %vm1806_vm7 = vcmp.eq.s32.totalorder %v6158_v12, %v1716_v56  ;;  %vm1807_vm8 = vcmp.eq.s32.totalorder %v6158_v12, %v1719_v25  ;;  %v997_v2 = vadd.f32 %v6677_v48, %v996_v21  ;;  %v1722_v22 = vpop.permute.xlu1 %1721 }
 0x2de   : > { %v6718_v1 = vpop.f32.mrf.mxu1  ;;  %v1403_v15 = vadd.f32 %v6663_v20, %v1194_v61  ;;  %v2387_v19 = vmul.f32 %v6666_v43, %v1394_v29  ;;  %v1382_v20 = vadd.f32 %v6579_v11, %v1173_v41  ;;  %v2385_v43 = vmul.f32 %v6648_v38, %v1388_v59  ;;  %v793_v59 = vld [vmem:[%s6041_s17 + $0x530] sm:$0xff] }
 0x2df   : > { %1246 = vmatmul.f32.gmra.mxu1 %v778_v35  ;;  %v783_v35 = vld [vmem:[%s6041_s17 + $0x4e0] sm:$0xff]  ;;  %vm1808_vm9 = vcmp.eq.s32.totalorder %v6158_v12, %v1722_v22 }
 0x2e0   : > { %1455 = vmatmul.f32.gmra.mxu2 %v779_v0  ;;  %v5004_v0 = vsel %vm1804_vm5, 1.0, %v5823_v17  ;;  %v2383_v38 = vmul.f32 %v6624_v50, %v1382_v20  ;;  %v5008_v47 = vsel %vm1808_vm9, 1.0, %v5823_v17 }
 0x2e2   : > { %5066 = vmatmul.msk.f32.gmra.mxu3 %vm1956_vm1, %v5002_v5  ;;  %v6729_v53 = vpop.f32.mrf.mxu2 }
 0x2e5   : > { %v2256_v39 = vpop.f32.mrf.mxu3  ;;  %1043 = vmatmul.f32.gmra.mxu0 %v783_v35 }
 0x2e6   : > { %v2388_v4 = vmul.f32 %v2256_v39, %v1397_v3  ;;  %v988_v39 = vadd.f32 %v6677_v48, %v6669_v6  ;;  %v787_v3 = vld [vmem:[%s6041_s17 + $0x500] sm:$0xff] }
 0x2e7   : > { %1249 = vmatmul.f32.gmra.mxu1 %v781_v58 }
 0x2e8   : > { %1458 = vmatmul.f32.gmra.mxu2 %v782_v34  ;;  %v1197_v6 = vadd.f32 %v6672_v63, %v988_v39  ;;  %v991_v63 = vadd.f32 %v6677_v48, %v6687_v52  ;;  %v5006_v34 = vsel %vm1806_vm7, 1.0, %v5823_v17  ;;  %v797_v39 = vld [vmem:[%s6041_s17 + $0x550] sm:$0xff] }
 0x2ea   : > { %5067 = vmatmul.msk.f32.gmra.mxu3 %vm1956_vm1, %v5003_v33  ;;  %v1406_v11 = vadd.f32 %v6680_v51, %v1197_v6  ;;  %v1200_v45 = vadd.f32 %v6692_v42, %v991_v63  ;;  %v999_v44 = vpop.f32.mrf.mxu0  ;;  %v786_v51 = vld [vmem:[%s6041_s17 + $0x4f8] sm:$0xff]  ;;  %v994_v42 = vadd.f32 %v6677_v48, %v6713_v62 }
 0x2eb   : > { %v790_v62 = vld [vmem:[%s6041_s17 + $0x518] sm:$0xff] }
 0x2ec   : > { %v1205_v28 = vpop.f32.mrf.mxu1  ;;  %v1203_v29 = vadd.f32 %v6718_v1, %v994_v42  ;;  %v798_v63 = vld [vmem:[%s6041_s17 + $0x558] sm:$0xff] }
 0x2ed   : > { %v2259_v40 = vpop.f32.mrf.mxu3  ;;  %1046 = vmatmul.f32.gmra.mxu0 %v786_v51  ;;  %v1206_v1 = vadd.f32 %v1205_v28, %v997_v2  ;;  %v1728_v28 = vpop.permute.xlu0 %1727  ;;  %v804_v2 = vld [vmem:[%s6041_s17 + $0x588] sm:$0xff] }
 0x2ee   : > { %v2389_v5 = vmul.f32 %v2259_v40, %v1400_v18  ;;  %v1414_v18 = vpop.f32.mrf.mxu2  ;;  %vm1810_vm11 = vcmp.eq.s32.totalorder %v6158_v12, %v1728_v28 }
 0x2ef   : > { %1252 = vmatmul.f32.gmra.mxu1 %v784_v31  ;;  %v800_v31 = vld [vmem:[%s6041_s17 + $0x568] sm:$0xff] }
 0x2f0   : > { %2581 = vmatpush.msrb.mxu0 %v2389_v5  ;;  %1461 = vmatmul.f32.gmra.mxu2 %v785_v55  ;;  %v789_v5 = vld [vmem:[%s6041_s17 + $0x510] sm:$0xff]  ;;  %v795_v55 = vld [vmem:[%s6041_s17 + $0x540] sm:$0xff] }
 0x2f2   : > { %5068 = vmatmul.msk.f32.gmra.mxu3 %vm1956_vm1, %v5004_v0  ;;  %2582 = vmatpush.msrb.mxu0 %v2388_v4 }
 0x2f4   : > { %2583 = vmatpush.msrb.mxu0 %v2387_v19  ;;  %v1208_v52 = vpop.f32.mrf.mxu1  ;;  %v1725_v19 = vpop.permute.xlu2 %1724 }
 0x2f5   : > { %v2262_v16 = vpop.f32.mrf.mxu3  ;;  %1049 = vmatmul.f32.gmra.mxu0 %v789_v5  ;;  %vm1809_vm10 = vcmp.eq.s32.totalorder %v6158_v12, %v1725_v19 }
 0x2f6   : > { %2584 = vmatpush.msrb.mxu0 %v2386_v36  ;;  %v6739_v33 = vmul.f32 %v2262_v16, %v1403_v15  ;;  %v1417_v60 = vpop.f32.mrf.mxu2  ;;  %v1000_v15 = vadd.f32 %v6677_v48, %v999_v44  ;;  %v5009_v6 = vsel %vm1809_vm10, 1.0, %v5823_v17 }
 0x2f7   : > { %1255 = vmatmul.f32.gmra.mxu1 %v787_v3  ;;  %v803_v3 = vld [vmem:[%s6041_s17 + $0x580] sm:$0xff] }
 0x2f8   : > { %2585 = vmatpush.msrb.mxu0 %v2385_v43  ;;  %1464 = vmatmul.f32.gmra.mxu2 %v788_v14  ;;  %v1209_v10 = vadd.f32 %v1208_v52, %v1000_v15  ;;  %v796_v43 = vld [vmem:[%s6041_s17 + $0x548] sm:$0xff]  ;;  %v799_v14 = vld [vmem:[%s6041_s17 + $0x560] sm:$0xff]  ;;  %v1731_v52 = vpop.permute.xlu1 %1730 }
 0x2f9   : > { %vm1811_vm12 = vcmp.eq.s32.totalorder %v6158_v12, %v1731_v52  ;;  %v808_v15 = vld [vmem:[%s6041_s17 + $0x5a8] sm:$0xff] }
 0x2fa   : > { %5069 = vmatmul.msk.f32.gmra.mxu3 %vm1956_vm1, %v5005_v24  ;;  %2586 = vmatpush.msrb.mxu0 %v2384_v30  ;;  %v1418_v21 = vadd.f32 %v1417_v60, %v1209_v10  ;;  %v801_v60 = vld [vmem:[%s6041_s17 + $0x570] sm:$0xff] }
 0x2fc   : > { %2587 = vmatpush.msrb.mxu0 %v2383_v38  ;;  %v1211_v61 = vpop.f32.mrf.mxu1 }
 0x2fd   : > { %v2265_v37 = vpop.f32.mrf.mxu3 }
 0x2fe   : > { %2588 = vmatpush.msrb.mxu0 %v6614_v46  ;;  %v6754_v50 = vmul.f32 %v2265_v37, %v1406_v11  ;;  %v1409_v46 = vadd.f32 %v6701_v32, %v1200_v45  ;;  %v5010_v37 = vsel %vm1810_vm11, 1.0, %v5823_v17 }
 0x2ff   : > { %1258 = vmatmul.f32.gmra.mxu1 %v790_v62  ;;  %v806_v62 = vld [vmem:[%s6041_s17 + $0x598] sm:$0xff] }
 0x300   : > { %2589 = vmatpush.msrb.mxu0 %v6600_v9  ;;  %v791_v9 = vld [vmem:[%s6041_s17 + $0x520] sm:$0xff] }
 0x301   : > { %1467 = vmatmul.f32.gmra.mxu2 %v791_v9 }
 0x302   : > { %5070 = vmatmul.msk.f32.gmra.mxu3 %vm1956_vm1, %v5006_v34  ;;  %2590 = vmatpush.msrb.mxu0 %v6586_v54  ;;  %v1002_v54 = vpop.f32.mrf.mxu0 }
 0x303   : > { %v1420_v49 = vpop.f32.mrf.mxu2  ;;  %v1003_v35 = vadd.f32 %v6677_v48, %v1002_v54 }
 0x304   : > { %2591 = vmatpush.msrb.mxu0 %v6571_v23  ;;  %v5007_v23 = vsel %vm1807_vm8, 1.0, %v5823_v17  ;;  %v1214_v41 = vpop.f32.mrf.mxu1 }
 0x305   : > { %v2268_v40 = vpop.f32.mrf.mxu3  ;;  %v1212_v11 = vadd.f32 %v1211_v61, %v1003_v35  ;;  %v1734_v61 = vpop.permute.xlu2 %1733 }
 0x306   : > { %2592 = vmatpush.msrb.mxu0 %v6559_v8  ;;  %v6770_v32 = vmul.f32 %v2268_v40, %v1409_v46  ;;  %v1412_v8 = vadd.f32 %v6729_v53, %v1203_v29  ;;  %v802_v40 = vld [vmem:[%s6041_s17 + $0x578] sm:$0xff]  ;;  %v5011_v29 = vsel %vm1811_vm12, 1.0, %v5823_v17  ;;  %vm1812_vm13 = vcmp.eq.s32.totalorder %v6158_v12, %v1734_v61 }
 0x307   : > { %1261 = vmatmul.f32.gmra.mxu1 %v793_v59  ;;  %v1421_v45 = vadd.f32 %v1420_v49, %v1212_v11 }
 0x308   : > { %2593 = vmatpush.msrb.mxu0 %v6548_v26  ;;  %v794_v26 = vld [vmem:[%s6041_s17 + $0x538] sm:$0xff] }
 0x309   : > { %1470 = vmatmul.f32.gmra.mxu2 %v794_v26  ;;  %v805_v26 = vld [vmem:[%s6041_s17 + $0x590] sm:$0xff] }
 0x30a   : > { %5071 = vmatmul.msk.f32.gmra.mxu3 %vm1956_vm1, %v5007_v23  ;;  %2594 = vmatpush.msrb.mxu0 %v6534_v13  ;;  %v1005_v58 = vpop.f32.mrf.mxu0  ;;  %v792_v13 = vld [vmem:[%s6041_s17 + $0x528] sm:$0xff] }
 0x30b   : > { %1052 = vmatmul.f32.gmra.mxu0 %v792_v13  ;;  %v1006_v44 = vadd.f32 %v6677_v48, %v1005_v58  ;;  %v1737_v58 = vpop.permute.xlu0 %1736  ;;  %v809_v13 = vld [vmem:[%s6041_s17 + $0x5b0] sm:$0xff] }
 0x30c   : > { %2595 = vmatpush.msrb.mxu0 %v6518_v27  ;;  %v1415_v27 = vadd.f32 %v1414_v18, %v1206_v1  ;;  %v6797_v20 = vpop.f32.mrf.mxu1  ;;  %vm1813_vm14 = vcmp.eq.s32.totalorder %v6158_v12, %v1737_v58 }
 0x30d   : > { %v2271_v4 = vpop.f32.mrf.mxu3  ;;  %v1215_v46 = vadd.f32 %v1214_v41, %v1006_v44 }
 0x30e   : > { %2596 = vmatpush.msrb.mxu0 %v6500_v57  ;;  %v6784_v0 = vmul.f32 %v2271_v4, %v1412_v8  ;;  %v1423_v57 = vpop.f32.mrf.mxu2  ;;  %v5012_v4 = vsel %vm1812_vm13, 1.0, %v5823_v17 }
 0x30f   : > { %1264 = vmatmul.f32.gmra.mxu1 %v796_v43  ;;  %v1424_v54 = vadd.f32 %v1423_v57, %v1215_v46  ;;  %v5013_v57 = vsel %vm1813_vm14, 1.0, %v5823_v17  ;;  %v810_v43 = vld [vmem:[%s6041_s17 + $0x5b8] sm:$0xff] }
 0x311   : > { %1473 = vmatmul.f32.gmra.mxu2 %v797_v39  ;;  %v1740_v39 = vpop.permute.xlu1 %1739 }
 0x312   : > { %5072 = vmatmul.msk.f32.gmra.mxu3 %vm1956_vm1, %v5008_v47  ;;  %v6792_v36 = vpop.f32.mrf.mxu0  ;;  %v807_v47 = vld [vmem:[%s6041_s17 + $0x5a0] sm:$0xff]  ;;  %vm1814_vm15 = vcmp.eq.s32.totalorder %v6158_v12, %v1740_v39 }
 0x313   : > { %1055 = vmatmul.f32.gmra.mxu0 %v795_v55  ;;  %v5014_v35 = vsel %vm1814_vm15, 1.0, %v5823_v17 }
 0x314   : > { %v6812_v56 = vpop.f32.mrf.mxu1 }
 0x315   : > { %v2274_v53 = vpop.f32.mrf.mxu3 }
 0x316   : > { %v6795_v16 = vmul.f32 %v2274_v53, %v1415_v27  ;;  %v6803_v30 = vpop.f32.mrf.mxu2  ;;  %v812_v53 = vld [vmem:[%s6041_s17 + $0x5c8] sm:$0xff] }
 0x317   : > { %1267 = vmatmul.f32.gmra.mxu1 %v799_v14  ;;  %v813_v14 = vld [vmem:[%s6041_s17 + $0x5d0] sm:$0xff] }
 0x319   : > { %1476 = vmatmul.f32.gmra.mxu2 %v800_v31  ;;  %v1743_v31 = vpop.permute.xlu2 %1742 }
 0x31a   : > { %5073 = vmatmul.msk.f32.gmra.mxu3 %vm1956_vm1, %v5009_v6  ;;  %v6807_v38 = vpop.f32.mrf.mxu0  ;;  %vm1815_vm0 = vcmp.eq.s32.totalorder %v6158_v12, %v1743_v31 }
 0x31b   : > { %1058 = vmatmul.f32.gmra.mxu0 %v798_v63  ;;  %v5015_v44 = vsel %vm1815_vm0, 1.0, %v5823_v17 }
 0x31c   : > { %v6827_v9 = vpop.f32.mrf.mxu1 }
 0x31d   : > { %v2277_v24 = vpop.f32.mrf.mxu3 }
 0x31e   : > { %v6810_v18 = vmul.f32 %v2277_v24, %v1418_v21  ;;  %v6818_v51 = vpop.f32.mrf.mxu2  ;;  %v811_v21 = vld [vmem:[%s6041_s17 + $0x5c0] sm:$0xff] }
 0x31f   : > { %1270 = vmatmul.f32.gmra.mxu1 %v802_v40  ;;  %v815_v24 = vld [vmem:[%s6041_s17 + $0x5e0] sm:$0xff]  ;;  %v816_v40 = vld [vmem:[%s6041_s17 + $0x5e8] sm:$0xff] }
 0x321   : > { %1479 = vmatmul.f32.gmra.mxu2 %v803_v3  ;;  %v1746_v3 = vpop.permute.xlu0 %1745 }
 0x322   : > { %5074 = vmatmul.msk.f32.gmra.mxu3 %vm1956_vm1, %v5010_v37  ;;  %v6822_v42 = vpop.f32.mrf.mxu0  ;;  %vm1816_vm2 = vcmp.eq.s32.totalorder %v6158_v12, %v1746_v3 }
 0x323   : > { %1061 = vmatmul.f32.gmra.mxu0 %v801_v60  ;;  %v5016_v61 = vsel %vm1816_vm2, 1.0, %v5823_v17 }
 0x324   : > { %v6841_v22 = vpop.f32.mrf.mxu1 }
 0x325   : > { %v2280_v34 = vpop.f32.mrf.mxu3 }
 0x326   : > { %v6825_v25 = vmul.f32 %v2280_v34, %v1421_v45  ;;  %v6832_v5 = vpop.f32.mrf.mxu2  ;;  %v814_v45 = vld [vmem:[%s6041_s17 + $0x5d8] sm:$0xff] }
 0x327   : > { %1273 = vmatmul.f32.gmra.mxu1 %v805_v26  ;;  %v818_v34 = vld [vmem:[%s6041_s17 + $0x5f8] sm:$0xff] }
 0x329   : > { %1482 = vmatmul.f32.gmra.mxu2 %v806_v62 }
 0x32a   : > { %5075 = vmatmul.msk.f32.gmra.mxu3 %vm1956_vm1, %v5011_v29  ;;  %v6836_v8 = vpop.f32.mrf.mxu0 }
 0x32b   : > { %1064 = vmatmul.f32.gmra.mxu0 %v804_v2 }
 0x32c   : > { %v6855_v27 = vpop.f32.mrf.mxu1 }
 0x32d   : > { %v2283_v23 = vpop.f32.mrf.mxu3 }
 0x32e   : > { %v6839_v49 = vmul.f32 %v2283_v23, %v1424_v54  ;;  %v6846_v1 = vpop.f32.mrf.mxu2  ;;  %v817_v54 = vld [vmem:[%s6041_s17 + $0x5f0] sm:$0xff]  ;;  %v1749_v23 = vpop.permute.xlu1 %1748 }
 0x32f   : > { %1276 = vmatmul.f32.gmra.mxu1 %v808_v15  ;;  %vm1817_vm3 = vcmp.eq.s32.totalorder %v6158_v12, %v1749_v23 }
 0x331   : > { %1485 = vmatmul.f32.gmra.mxu2 %v809_v13  ;;  %v5017_v13 = vsel %vm1817_vm3, 1.0, %v5823_v17 }
 0x332   : > { %5076 = vmatmul.msk.f32.gmra.mxu3 %vm1956_vm1, %v5012_v4  ;;  %v6852_v59 = vpop.f32.mrf.mxu0 }
 0x333   : > { %1067 = vmatmul.f32.gmra.mxu0 %v807_v47 }
 0x334   : > { %v6869_v6 = vpop.f32.mrf.mxu1 }
 0x335   : > { %v6849_v41 = vpop.f32.mrf.mxu3 }
 0x336   : > { %v6860_v19 = vpop.f32.mrf.mxu2 }
 0x337   : > { %1279 = vmatmul.f32.gmra.mxu1 %v811_v21 }
 0x339   : > { %1488 = vmatmul.f32.gmra.mxu2 %v812_v53 }
 0x33a   : > { %5077 = vmatmul.msk.f32.gmra.mxu3 %vm1956_vm1, %v5013_v57  ;;  %v6866_v55 = vpop.f32.mrf.mxu0  ;;  %v1752_v57 = vpop.permute.xlu2 %1751 }
 0x33b   : > { %1070 = vmatmul.f32.gmra.mxu0 %v810_v43  ;;  %vm1818_vm4 = vcmp.eq.s32.totalorder %v6158_v12, %v1752_v57  ;;  %v1015_v57 = vadd.f32 %v6677_v48, %v6822_v42 }
 0x33c   : > { %v1235_v37 = vpop.f32.mrf.mxu1  ;;  %v5018_v31 = vsel %vm1818_vm4, 1.0, %v5823_v17 }
 0x33d   : > { %v6863_v10 = vpop.f32.mrf.mxu3  ;;  %v1224_v42 = vadd.f32 %v6827_v9, %v1015_v57 }
 0x33e   : > { %v6874_v28 = vpop.f32.mrf.mxu2 }
 0x33f   : > { %1282 = vmatmul.f32.gmra.mxu1 %v814_v45 }
 0x341   : > { %1491 = vmatmul.f32.gmra.mxu2 %v815_v24 }
 0x342   : > { %5078 = vmatmul.msk.f32.gmra.mxu3 %vm1956_vm1, %v5014_v35  ;;  %v1026_v63 = vpop.f32.mrf.mxu0 }
 0x343   : > { %1073 = vmatmul.f32.gmra.mxu0 %v813_v14 }
 0x344   : > { %v1238_v29 = vpop.f32.mrf.mxu1 }
 0x345   : > { %v6877_v11 = vpop.f32.mrf.mxu3 }
 0x346   : > { %v1444_v52 = vpop.f32.mrf.mxu2 }
 0x347   : > { %1285 = vmatmul.f32.gmra.mxu1 %v817_v54  ;;  %v1024_v54 = vadd.f32 %v6677_v48, %v6866_v55 }
 0x349   : > { %1494 = vmatmul.f32.gmra.mxu2 %v818_v34  ;;  %v1027_v34 = vadd.f32 %v6677_v48, %v1026_v63  ;;  %v1018_v63 = vadd.f32 %v6677_v48, %v6836_v8 }
 0x34a   : > { %5079 = vmatmul.msk.f32.gmra.mxu3 %vm1956_vm1, %v5015_v44  ;;  %v1029_v60 = vpop.f32.mrf.mxu0  ;;  %v1755_v44 = vpop.permute.xlu0 %1754 }
 0x34b   : > { %1076 = vmatmul.f32.gmra.mxu0 %v816_v40  ;;  %v1030_v14 = vadd.f32 %v6677_v48, %v1029_v60  ;;  %vm1819_vm5 = vcmp.eq.s32.totalorder %v6158_v12, %v1755_v44  ;;  %v1236_v60 = vadd.f32 %v1235_v37, %v1027_v34  ;;  %v1233_v12 = vadd.f32 %v6869_v6, %v1024_v54 }
 0x34c   : > { %v1241_v58 = vpop.f32.mrf.mxu1 }
 0x34d   : > { %v6885_v46 = vpop.f32.mrf.mxu3  ;;  %v1445_v37 = vadd.f32 %v1444_v52, %v1236_v60  ;;  %v1442_v8 = vadd.f32 %v6874_v28, %v1233_v12 }
 0x34e   : > { %v1447_v62 = vpop.f32.mrf.mxu2 }
 0x352   : > { %5080 = vmatmul.msk.f32.gmra.mxu3 %vm1956_vm1, %v5016_v61  ;;  %v1032_v26 = vpop.f32.mrf.mxu0  ;;  %v1239_v61 = vadd.f32 %v1238_v29, %v1030_v14 }
 0x353   : > { %v1033_v4 = vadd.f32 %v6677_v48, %v1032_v26 }
 0x354   : > { %v1244_v35 = vpop.f32.mrf.mxu1  ;;  %v1448_v55 = vadd.f32 %v1447_v62, %v1239_v61 }
 0x355   : > { %v6892_v2 = vpop.f32.mrf.mxu3  ;;  %v1242_v47 = vadd.f32 %v1241_v58, %v1033_v4  ;;  %v1021_v4 = vadd.f32 %v6677_v48, %v6852_v59 }
 0x356   : > { %v1450_v15 = vpop.f32.mrf.mxu2 }
 0x357   : > { %v1451_v39 = vadd.f32 %v1450_v15, %v1242_v47  ;;  %v1230_v59 = vadd.f32 %v6855_v27, %v1021_v4 }
 0x359   : > { %v1439_v27 = vadd.f32 %v6860_v19, %v1230_v59 }
 0x35a   : > { %5081 = vmatmul.msk.f32.gmra.mxu3 %vm1956_vm1, %v5017_v13  ;;  %v1035_v43 = vpop.f32.mrf.mxu0  ;;  %v5019_v13 = vsel %vm1819_vm5, 1.0, %v5823_v17  ;;  %v1012_v17 = vadd.f32 %v6677_v48, %v6807_v38 }
 0x35b   : > { %v1036_v21 = vadd.f32 %v6677_v48, %v1035_v43  ;;  %v2402_v9 = vmul.f32 %v6892_v2, %v1439_v27 }
 0x35c   : > { %v1247_v58 = vpop.f32.mrf.mxu1  ;;  %v1221_v38 = vadd.f32 %v6812_v56, %v1012_v17 }
 0x35d   : > { %v2301_v53 = vpop.f32.mrf.mxu3  ;;  %v1245_v24 = vadd.f32 %v1244_v35, %v1036_v21  ;;  %v1227_v21 = vadd.f32 %v6841_v22, %v1018_v63 }
 0x35e   : > { %v1453_v45 = vpop.f32.mrf.mxu2  ;;  %v2403_v28 = vmul.f32 %v2301_v53, %v1442_v8 }
 0x35f   : > { %v6903_v3 = vadd.f32 %v1453_v45, %v1245_v24  ;;  %v1436_v22 = vadd.f32 %v6846_v1, %v1227_v21 }
 0x361   : > { %v2401_v56 = vmul.f32 %v6885_v46, %v1436_v22 }
 0x362   : > { %5082 = vmatmul.msk.f32.gmra.mxu3 %vm1956_vm1, %v5018_v31  ;;  %v1038_v23 = vpop.f32.mrf.mxu0  ;;  %v1009_v31 = vadd.f32 %v6677_v48, %v6792_v36  ;;  %v1433_v36 = vadd.f32 %v6832_v5, %v1224_v42 }
 0x363   : > { %v1039_v26 = vadd.f32 %v6677_v48, %v1038_v23 }
 0x364   : > { %v1250_v24 = vpop.f32.mrf.mxu1  ;;  %v1218_v34 = vadd.f32 %v6797_v20, %v1009_v31  ;;  %v2400_v20 = vmul.f32 %v6877_v11, %v1433_v36 }
 0x365   : > { %v2304_v40 = vpop.f32.mrf.mxu3  ;;  %v1248_v47 = vadd.f32 %v1247_v58, %v1039_v26 }
 0x366   : > { %v1456_v29 = vpop.f32.mrf.mxu2  ;;  %v2404_v52 = vmul.f32 %v2304_v40, %v1445_v37  ;;  %v1430_v40 = vadd.f32 %v6818_v51, %v1221_v38  ;;  %v1427_v61 = vadd.f32 %v6803_v30, %v1218_v34 }
 0x367   : > { %v1457_v15 = vadd.f32 %v1456_v29, %v1248_v47 }
 0x368   : > { %v2399_v2 = vmul.f32 %v6863_v10, %v1430_v40 }
 0x36a   : > { %5083 = vmatmul.msk.f32.gmra.mxu3 %vm1956_vm1, %v5019_v13  ;;  %v1041_v35 = vpop.f32.mrf.mxu0 }
 0x36b   : > { %v1042_v62 = vadd.f32 %v6677_v48, %v1041_v35 }
 0x36c   : > { %v1253_v5 = vpop.f32.mrf.mxu1 }
 0x36d   : > { %v2307_v43 = vpop.f32.mrf.mxu3  ;;  %v1251_v14 = vadd.f32 %v1250_v24, %v1042_v62 }
 0x36e   : > { %v2405_v6 = vmul.f32 %v2307_v43, %v1448_v55  ;;  %v1459_v45 = vpop.f32.mrf.mxu2 }
 0x36f   : > { %v1460_v44 = vadd.f32 %v1459_v45, %v1251_v14 }
 0x370   : > { %2622 = vmatpush.msrb.mxu1 %v2405_v6 }
 0x372   : > { %2623 = vmatpush.msrb.mxu1 %v2404_v52  ;;  %v1044_v1 = vpop.f32.mrf.mxu0 }
 0x373   : > { %v1045_v53 = vadd.f32 %v6677_v48, %v1044_v1 }
 0x374   : > { %2624 = vmatpush.msrb.mxu1 %v2403_v28  ;;  %v1256_v11 = vpop.f32.mrf.mxu1 }
 0x375   : > { %v2310_v19 = vpop.f32.mrf.mxu3  ;;  %v1254_v23 = vadd.f32 %v1253_v5, %v1045_v53 }
 0x376   : > { %v6935_v54 = vmul.f32 %v2310_v19, %v1451_v39  ;;  %2625 = vmatpush.msrb.mxu1 %v2402_v9  ;;  %v1462_v26 = vpop.f32.mrf.mxu2  ;;  %v2398_v39 = vmul.f32 %v6849_v41, %v1427_v61 }
 0x377   : > { %v1463_v51 = vadd.f32 %v1462_v26, %v1254_v23 }
 0x378   : > { %2626 = vmatpush.msrb.mxu1 %v2401_v56 }
 0x37a   : > { %2627 = vmatpush.msrb.mxu1 %v2400_v20  ;;  %v1047_v60 = vpop.f32.mrf.mxu0 }
 0x37b   : > { %v1048_v30 = vadd.f32 %v6677_v48, %v1047_v60 }
 0x37c   : > { %2628 = vmatpush.msrb.mxu1 %v2399_v2  ;;  %v1259_v12 = vpop.f32.mrf.mxu1 }
 0x37d   : > { %v2313_v4 = vpop.f32.mrf.mxu3  ;;  %v1257_v58 = vadd.f32 %v1256_v11, %v1048_v30 }
 0x37e   : > { %v6944_v46 = vmul.f32 %v2313_v4, %v6903_v3  ;;  %2629 = vmatpush.msrb.mxu1 %v2398_v39  ;;  %v1465_v10 = vpop.f32.mrf.mxu2 }
 0x37f   : > { %v1466_v13 = vadd.f32 %v1465_v10, %v1257_v58 }
 0x380   : > { %2630 = vmatpush.msrb.mxu1 %v6839_v49 }
 0x382   : > { %2631 = vmatpush.msrb.mxu1 %v6825_v25  ;;  %v1050_v3 = vpop.f32.mrf.mxu0 }
 0x383   : > { %v1051_v63 = vadd.f32 %v6677_v48, %v1050_v3 }
 0x384   : > { %2632 = vmatpush.msrb.mxu1 %v6810_v18  ;;  %v1262_v57 = vpop.f32.mrf.mxu1 }
 0x385   : > { %v2316_v47 = vpop.f32.mrf.mxu3  ;;  %v1260_v49 = vadd.f32 %v1259_v12, %v1051_v63 }
 0x386   : > { %v6950_v41 = vmul.f32 %v2316_v47, %v1457_v15  ;;  %2633 = vmatpush.msrb.mxu1 %v6795_v16  ;;  %v1468_v55 = vpop.f32.mrf.mxu2 }
 0x387   : > { %v1469_v25 = vadd.f32 %v1468_v55, %v1260_v49  ;;  %v6985_v55 = vld [vmem:[%s6034_s24] sm:$0xf] }
 0x388   : > { %2634 = vmatpush.msrb.mxu1 %v6784_v0 }
 0x38a   : > { %2635 = vmatpush.msrb.mxu1 %v6770_v32  ;;  %v1053_v15 = vpop.f32.mrf.mxu0 }
 0x38b   : > { %v1054_v16 = vadd.f32 %v6677_v48, %v1053_v15 }
 0x38c   : > { %2636 = vmatpush.msrb.mxu1 %v6754_v50  ;;  %v1265_v8 = vpop.f32.mrf.mxu1 }
 0x38d   : > { %v2319_v29 = vpop.f32.mrf.mxu3  ;;  %v1263_v59 = vadd.f32 %v1262_v57, %v1054_v16 }
 0x38e   : > { %v6957_v18 = vmul.f32 %v2319_v29, %v1460_v44  ;;  %2637 = vmatpush.msrb.mxu1 %v6739_v33  ;;  %v1471_v37 = vpop.f32.mrf.mxu2  ;;  %v6991_v29 = vperm.slane %v6985_v55, 0 }
 0x38f   : > { %v1472_v0 = vadd.f32 %v1471_v37, %v1263_v59 }
 0x392   : > { %v1056_v32 = vpop.f32.mrf.mxu0 }
 0x393   : > { %v1057_v21 = vadd.f32 %v6677_v48, %v1056_v32 }
 0x394   : > { %v6968_v52 = vpop.f32.mrf.mxu1 }
 0x395   : > { %v2322_v43 = vpop.f32.mrf.mxu3  ;;  %v1266_v50 = vadd.f32 %v1265_v8, %v1057_v21 }
 0x396   : > { %v6961_v17 = vmul.f32 %v2322_v43, %v1463_v51  ;;  %v1474_v6 = vpop.f32.mrf.mxu2  ;;  %v5824_v43 = vmov 1.0  }
 0x397   : > { %v1475_v35 = vadd.f32 %v1474_v6, %v1266_v50  ;;  %v7000_v6 = vperm.slane %v6985_v55, 1 }
 0x39a   : > { %v1059_v33 = vpop.f32.mrf.mxu0 }
 0x39c   : > { %v1271_v28 = vpop.f32.mrf.mxu1 }
 0x39d   : > { %v2325_v62 = vpop.f32.mrf.mxu3 }
 0x39e   : > { %v6964_v31 = vmul.f32 %v2325_v62, %v1466_v13  ;;  %v6970_v24 = vpop.f32.mrf.mxu2  ;;  %v7006_v62 = vperm.slane %v6985_v55, 2 }
 0x3a2   : > { %v1062_v38 = vpop.f32.mrf.mxu0 }
 0x3a3   : > { %v1063_v59 = vadd.f32 %v6677_v48, %v1062_v38 }
 0x3a4   : > { %v1274_v9 = vpop.f32.mrf.mxu1 }
 0x3a5   : > { %v2328_v42 = vpop.f32.mrf.mxu3 }
 0x3a6   : > { %v6966_v27 = vmul.f32 %v2328_v42, %v1469_v25  ;;  %v1480_v44 = vpop.f32.mrf.mxu2  ;;  %v6988_v25 = vshrl.u32 %v1498_v7, 7  ;;  %v1060_v7 = vadd.f32 %v6677_v48, %v1059_v33  ;;  %v1272_v42 = vadd.f32 %v1271_v28, %v1063_v59 }
 0x3a8   : > { %vm2436_vm1 = vcmp.eq.s32.totalorder %v6988_v25, %v6991_v29  ;;  %vm2437_vm6 = vcmp.eq.s32.totalorder %v6988_v25, %v7000_v6  ;;  %vm2438_vm8 = vcmp.eq.s32.totalorder %v6988_v25, %v7006_v62  ;;  %v1481_v28 = vadd.f32 %v1480_v44, %v1272_v42 }
 0x3a9   : > { %5116 = vmatmul.msk.f32.vlgmr.msrb.gmra.mxu3 %vm2436_vm1, %v5824_v43  ;;  %5124 = vmatmul.msk.f32.vlgmr.msrb.gmra.mxu0 %vm2437_vm6, %v5824_v43 }
 0x3aa   : > { %v1065_v36 = vpop.f32.mrf.mxu0  ;;  %5132 = vmatmul.msk.f32.vlgmr.msrb.gmra.mxu1 %vm2438_vm8, %v5824_v43 }
 0x3ab   : > { %v1066_v15 = vadd.f32 %v6677_v48, %v1065_v36 }
 0x3ac   : > { %v1277_v53 = vpop.f32.mrf.mxu1 }
 0x3ad   : > { %v2331_v14 = vpop.f32.mrf.mxu3  ;;  %v1275_v21 = vadd.f32 %v1274_v9, %v1066_v15 }
 0x3ae   : > { %v6972_v22 = vmul.f32 %v2331_v14, %v1472_v0  ;;  %v1483_v40 = vpop.f32.mrf.mxu2 }
 0x3af   : > { %v1484_v33 = vadd.f32 %v1483_v40, %v1275_v21 }
 0x3b2   : > { %v1068_v56 = vpop.f32.mrf.mxu0 }
 0x3b3   : > { %v1069_v12 = vadd.f32 %v6677_v48, %v1068_v56 }
 0x3b4   : > { %v1280_v23 = vpop.f32.mrf.mxu1 }
 0x3b5   : > { %v2334_v45 = vpop.f32.mrf.mxu3  ;;  %v1278_v37 = vadd.f32 %v1277_v53, %v1069_v12 }
 0x3b6   : > { %v6974_v34 = vmul.f32 %v2334_v45, %v1475_v35  ;;  %v1486_v61 = vpop.f32.mrf.mxu2  ;;  %v7003_v35 = vadd.s32 8, %v6988_v25 }
 0x3b7   : > { %v1487_v14 = vadd.f32 %v1486_v61, %v1278_v37 }
 0x3b8   : > { %vm2440_vm7 = vcmp.eq.s32.totalorder %v7003_v35, %v6991_v29  ;;  %vm2441_vm9 = vcmp.eq.s32.totalorder %v7003_v35, %v7000_v6  ;;  %vm2442_vm10 = vcmp.eq.s32.totalorder %v7003_v35, %v7006_v62 }
 0x3b9   : > { %5117 = vmatmul.msk.f32.gmra.mxu3 %vm2440_vm7, %v5824_v43  ;;  %5125 = vmatmul.msk.f32.gmra.mxu0 %vm2441_vm9, %v5824_v43 }
 0x3ba   : > { %v1071_v20 = vpop.f32.mrf.mxu0  ;;  %5133 = vmatmul.msk.f32.gmra.mxu1 %vm2442_vm10, %v5824_v43 }
 0x3bb   : > { %v1072_v47 = vadd.f32 %v6677_v48, %v1071_v20 }
 0x3bc   : > { %v1283_v39 = vpop.f32.mrf.mxu1 }
 0x3bd   : > { %v6976_v19 = vpop.f32.mrf.mxu3  ;;  %v1281_v16 = vadd.f32 %v1280_v23, %v1072_v47  ;;  %v2532_v23 = vld [vmem:[#allocation17] sm:$0xff] }
 0x3be   : > { %v1489_v2 = vpop.f32.mrf.mxu2 }
 0x3bf   : > { %v1490_v8 = vadd.f32 %v1489_v2, %v1281_v16 }
 0x3c2   : > { %v1074_v51 = vpop.f32.mrf.mxu0 }
 0x3c3   : > { %v1075_v10 = vadd.f32 %v6677_v48, %v1074_v51 }
 0x3c4   : > { %v1286_v58 = vpop.f32.mrf.mxu1 }
 0x3c5   : > { %v6978_v1 = vpop.f32.mrf.mxu3  ;;  %v1284_v49 = vadd.f32 %v1283_v39, %v1075_v10 }
 0x3c6   : > { %v1492_v60 = vpop.f32.mrf.mxu2  ;;  %v2416_v40 = vmul.f32 %v6978_v1, %v1481_v28 }
 0x3c7   : > { %v1493_v0 = vadd.f32 %v1492_v60, %v1284_v49 }
 0x3ca   : > { %v1077_v30 = vpop.f32.mrf.mxu0 }
 0x3cb   : > { %v1078_v11 = vadd.f32 %v6677_v48, %v1077_v30  ;;  %v1269_v48 = vadd.f32 %v6968_v52, %v1060_v7  ;;  %v2425_v52 = vadd.s32 16, %v6988_v25 }
 0x3cd   : > { %v2343_v5 = vpop.f32.mrf.mxu3  ;;  %v1287_v3 = vadd.f32 %v1286_v58, %v1078_v11  ;;  %v1478_v9 = vadd.f32 %v6970_v24, %v1269_v48  ;;  %vm2444_vm11 = vcmp.eq.s32.totalorder %v2425_v52, %v6991_v29  ;;  %vm2445_vm12 = vcmp.eq.s32.totalorder %v2425_v52, %v7000_v6  ;;  %v2533_v58 = vld [vmem:[#allocation17 + $0x8] sm:$0xff] }
 0x3ce   : > { %v1495_v63 = vpop.f32.mrf.mxu2  ;;  %v2417_v56 = vmul.f32 %v2343_v5, %v1484_v33  ;;  %5118 = vmatmul.msk.f32.gmra.mxu3 %vm2444_vm11, %v5824_v43  ;;  %v2426_v24 = vadd.s32 24, %v6988_v25  ;;  %vm2446_vm13 = vcmp.eq.s32.totalorder %v2425_v52, %v7006_v62  ;;  %5126 = vmatmul.msk.f32.gmra.mxu0 %vm2445_vm12, %v5824_v43 }
 0x3cf   : > { %v1496_v57 = vadd.f32 %v1495_v63, %v1287_v3  ;;  %v2415_v44 = vmul.f32 %v6976_v19, %v1478_v9  ;;  %5134 = vmatmul.msk.f32.gmra.mxu1 %vm2446_vm13, %v5824_v43 }
 0x3d0   : > { %vm2448_vm14 = vcmp.eq.s32.totalorder %v2426_v24, %v6991_v29  ;;  %vm2449_vm15 = vcmp.eq.s32.totalorder %v2426_v24, %v7000_v6  ;;  %vm2450_vm0 = vcmp.eq.s32.totalorder %v2426_v24, %v7006_v62 }
 0x3d5   : > { %v2346_v26 = vpop.f32.mrf.mxu3 }
 0x3d6   : > { %v2418_v36 = vmul.f32 %v2346_v26, %v1487_v14  ;;  %5119 = vmatmul.msk.f32.gmra.mxu3 %vm2448_vm14, %v5824_v43  ;;  %5127 = vmatmul.msk.f32.gmra.mxu0 %vm2449_vm15, %v5824_v43 }
 0x3d7   : > { %5135 = vmatmul.msk.f32.gmra.mxu1 %vm2450_vm0, %v5824_v43 }
 0x3dd   : > { %v2349_v4 = vpop.f32.mrf.mxu3 }
 0x3de   : > { %v2419_v45 = vmul.f32 %v2349_v4, %v1490_v8 }
 0x3e5   : > { %v2352_v13 = vpop.f32.mrf.mxu3 }
 0x3e6   : > { %v2420_v38 = vmul.f32 %v2352_v13, %v1493_v0  ;;  %v2535_v0 = vld [vmem:[#allocation17 + $0x18] sm:$0xff] }
 0x3ed   : > { %v2355_v32 = vpop.f32.mrf.mxu3 }
 0x3ee   : > { %v2421_v50 = vmul.f32 %v2355_v32, %v1496_v57 }
 0x3f0   : > { %2663 = vmatpush.msrb.mxu2 %v2421_v50 }
 0x3f2   : > { %2664 = vmatpush.msrb.mxu2 %v2420_v38 }
 0x3f4   : > { %2665 = vmatpush.msrb.mxu2 %v2419_v45 }
 0x3f6   : > { %2666 = vmatpush.msrb.mxu2 %v2418_v36  ;;  %v2537_v36 = vld [vmem:[#allocation17 + $0x28] sm:$0xff] }
 0x3f8   : > { %2667 = vmatpush.msrb.mxu2 %v2417_v56 }
 0x3fa   : > { %2668 = vmatpush.msrb.mxu2 %v2416_v40 }
 0x3fc   : > { %2669 = vmatpush.msrb.mxu2 %v2415_v44 }
 0x3fe   : > { %2670 = vmatpush.msrb.mxu2 %v6974_v34  ;;  %v2435_v34 = vperm.slane %v6985_v55, 3  ;;  %v2534_v55 = vld [vmem:[#allocation17 + $0x10] sm:$0xff] }
 0x400   : > { %2671 = vmatpush.msrb.mxu2 %v6972_v22  ;;  %v2427_v22 = vadd.s32 32, %v6988_v25  ;;  %vm2439_vm3 = vcmp.eq.s32.totalorder %v6988_v25, %v2435_v34  ;;  %vm2443_vm6 = vcmp.eq.s32.totalorder %v7003_v35, %v2435_v34  ;;  %vm2447_vm10 = vcmp.eq.s32.totalorder %v2425_v52, %v2435_v34 }
 0x401   : > { %vm2451_vm14 = vcmp.eq.s32.totalorder %v2426_v24, %v2435_v34 }
 0x402   : > { %2672 = vmatpush.msrb.mxu2 %v6966_v27  ;;  %vm2452_vm2 = vcmp.eq.s32.totalorder %v2427_v22, %v6991_v29  ;;  %vm2453_vm4 = vcmp.eq.s32.totalorder %v2427_v22, %v7000_v6  ;;  %vm2454_vm5 = vcmp.eq.s32.totalorder %v2427_v22, %v7006_v62 }
 0x403   : > { %5120 = vmatmul.msk.f32.gmra.mxu3 %vm2452_vm2, %v5824_v43  ;;  %5128 = vmatmul.msk.f32.gmra.mxu0 %vm2453_vm4, %v5824_v43  ;;  %vm2455_vm2 = vcmp.eq.s32.totalorder %v2427_v22, %v2435_v34 }
 0x404   : > { %2673 = vmatpush.msrb.mxu2 %v6964_v31  ;;  %5136 = vmatmul.msk.f32.gmra.mxu1 %vm2454_vm5, %v5824_v43 }
 0x406   : > { %2674 = vmatpush.msrb.mxu2 %v6961_v17 }
 0x408   : > { %2675 = vmatpush.msrb.mxu2 %v6957_v18  ;;  %v2428_v18 = vadd.s32 40, %v6988_v25 }
 0x40a   : > { %2676 = vmatpush.msrb.mxu2 %v6950_v41  ;;  %vm2456_vm1 = vcmp.eq.s32.totalorder %v2428_v18, %v6991_v29  ;;  %vm2457_vm7 = vcmp.eq.s32.totalorder %v2428_v18, %v7000_v6  ;;  %vm2458_vm8 = vcmp.eq.s32.totalorder %v2428_v18, %v7006_v62 }
 0x40b   : > { %5121 = vmatmul.msk.f32.gmra.mxu3 %vm2456_vm1, %v5824_v43  ;;  %5129 = vmatmul.msk.f32.gmra.mxu0 %vm2457_vm7, %v5824_v43 }
 0x40c   : > { %2677 = vmatpush.msrb.mxu2 %v6944_v46  ;;  %5137 = vmatmul.msk.f32.gmra.mxu1 %vm2458_vm8, %v5824_v43  ;;  %v2430_v46 = vadd.s32 56, %v6988_v25 }
 0x40e   : > { %2678 = vmatpush.msrb.mxu2 %v6935_v54  ;;  %v2429_v54 = vadd.s32 48, %v6988_v25  ;;  %vm2464_vm13 = vcmp.eq.s32.totalorder %v2430_v46, %v6991_v29  ;;  %vm2465_vm15 = vcmp.eq.s32.totalorder %v2430_v46, %v7000_v6  ;;  %vm2466_vm0 = vcmp.eq.s32.totalorder %v2430_v46, %v7006_v62 }
 0x40f   : > { %5140 = vmatmul.msk.f32.vlgmr.msrb.gmra.mxu2 %vm2439_vm3, %v5824_v43  ;;  %vm2459_vm3 = vcmp.eq.s32.totalorder %v2428_v18, %v2435_v34  ;;  %vm2467_vm5 = vcmp.eq.s32.totalorder %v2430_v46, %v2435_v34  ;;  %v2538_v18 = vld [vmem:[#allocation17 + $0x30] sm:$0xff] }
 0x410   : > { %vm2460_vm9 = vcmp.eq.s32.totalorder %v2429_v54, %v6991_v29  ;;  %vm2461_vm11 = vcmp.eq.s32.totalorder %v2429_v54, %v7000_v6  ;;  %vm2462_vm12 = vcmp.eq.s32.totalorder %v2429_v54, %v7006_v62  ;;  %vm2463_vm4 = vcmp.eq.s32.totalorder %v2429_v54, %v2435_v34  ;;  %v2536_v62 = vld [vmem:[#allocation17 + $0x20] sm:$0xff] }
 0x413   : > { %5122 = vmatmul.msk.f32.gmra.mxu3 %vm2460_vm9, %v5824_v43  ;;  %5130 = vmatmul.msk.f32.gmra.mxu0 %vm2461_vm11, %v5824_v43 }
 0x414   : > { %5138 = vmatmul.msk.f32.gmra.mxu1 %vm2462_vm12, %v5824_v43 }
 0x417   : > { %5141 = vmatmul.msk.f32.gmra.mxu2 %vm2443_vm6, %v5824_v43 }
 0x41b   : > { %5123 = vmatmul.msk.f32.gmra.mxu3 %vm2464_vm13, %v5824_v43  ;;  %5131 = vmatmul.msk.f32.gmra.mxu0 %vm2465_vm15, %v5824_v43 }
 0x41c   : > { %5139 = vmatmul.msk.f32.gmra.mxu1 %vm2466_vm0, %v5824_v43 }
 0x41f   : > { %5142 = vmatmul.msk.f32.gmra.mxu2 %vm2447_vm10, %v5824_v43 }
 0x426   : > { %v2598_v17 = vpop.f32.mrf.mxu0 }
 0x427   : > { %5143 = vmatmul.msk.f32.gmra.mxu2 %vm2451_vm14, %v5824_v43  ;;  %v2639_v31 = vpop.f32.mrf.mxu1 }
 0x42c   : > { %v2557_v41 = vpop.f32.mrf.mxu3 }
 0x42d   : > { %v2599_v53 = vadd.f32 %v2598_v17, %v2557_v41 }
 0x42f   : > { %5144 = vmatmul.msk.f32.gmra.mxu2 %vm2455_vm2, %v5824_v43  ;;  %v2640_v5 = vadd.f32 %v2639_v31, %v2599_v53 }
 0x436   : > { %v2601_v19 = vpop.f32.mrf.mxu0 }
 0x437   : > { %5145 = vmatmul.msk.f32.gmra.mxu2 %vm2459_vm3, %v5824_v43  ;;  %v2642_v1 = vpop.f32.mrf.mxu1 }
 0x43c   : > { %v2560_v27 = vpop.f32.mrf.mxu3 }
 0x43d   : > { %v2602_v39 = vadd.f32 %v2601_v19, %v2560_v27  ;;  %v2539_v19 = vld [vmem:[#allocation17 + $0x38] sm:$0xff] }
 0x43f   : > { %5146 = vmatmul.msk.f32.gmra.mxu2 %vm2463_vm4, %v5824_v43  ;;  %v2643_v60 = vadd.f32 %v2642_v1, %v2602_v39 }
 0x447   : > { %5147 = vmatmul.msk.f32.gmra.mxu2 %vm2467_vm5, %v5824_v43 }
 0x44b   : > { %v2604_v20 = vpop.f32.mrf.mxu0 }
 0x44c   : > { %v2645_v26 = vpop.f32.mrf.mxu1 }
 0x451   : > { %v2563_v61 = vpop.f32.mrf.mxu3 }
 0x452   : > { %v2605_v47 = vadd.f32 %v2604_v20, %v2563_v61 }
 0x453   : > { %v2607_v11 = vpop.f32.mrf.mxu0 }
 0x454   : > { %v2648_v3 = vpop.f32.mrf.mxu1  ;;  %v2646_v12 = vadd.f32 %v2645_v26, %v2605_v47 }
 0x459   : > { %v2566_v30 = vpop.f32.mrf.mxu3 }
 0x45a   : > { %v2608_v16 = vadd.f32 %v2607_v11, %v2566_v30 }
 0x45c   : > { %v2649_v37 = vadd.f32 %v2648_v3, %v2608_v16 }
 0x480   : > { %v2610_v29 = vpop.f32.mrf.mxu0 }
 0x481   : > { %v2651_v59 = vpop.f32.mrf.mxu1 }
 0x486   : > { %v2569_v49 = vpop.f32.mrf.mxu3 }
 0x487   : > { %v2611_v7 = vadd.f32 %v2610_v29, %v2569_v49 }
 0x488   : > { %v2613_v8 = vpop.f32.mrf.mxu0 }
 0x489   : > { %v2652_v6 = vadd.f32 %v2651_v59, %v2611_v7  ;;  %v2654_v35 = vpop.f32.mrf.mxu1 }
 0x48e   : > { %v2572_v21 = vpop.f32.mrf.mxu3 }
 0x48f   : > { %v2614_v38 = vadd.f32 %v2613_v8, %v2572_v21 }
 0x490   : > { %v2616_v45 = vpop.f32.mrf.mxu0 }
 0x491   : > { %v2655_v28 = vadd.f32 %v2654_v35, %v2614_v38  ;;  %v2657_v56 = vpop.f32.mrf.mxu1 }
 0x492   : > { %v2680_v2 = vpop.f32.mrf.mxu2 }
 0x493   : > { %v2681_v51 = vadd.f32 %v2680_v2, %v2640_v5 }
 0x495   : > { %v2704_v4 = vadd.f32 %v2681_v51, %v2532_v23 }
 0x496   : > { %v2575_v33 = vpop.f32.mrf.mxu3 }
 0x497   : > { %2712 = vst [vmem:[#allocation17] sm:$0xff] %v2704_v4  ;;  %v2617_v40 = vadd.f32 %v2616_v45, %v2575_v33 }
 0x498   : > { %v2619_v34 = vpop.f32.mrf.mxu0 }
 0x499   : > { %v2658_v24 = vadd.f32 %v2657_v56, %v2617_v40  ;;  %v2660_v17 = vpop.f32.mrf.mxu1 }
 0x49a   : > { %v2683_v10 = vpop.f32.mrf.mxu2 }
 0x49b   : > { %v2684_v13 = vadd.f32 %v2683_v10, %v2643_v60 }
 0x49d   : > { %v2705_v63 = vadd.f32 %v2684_v13, %v2533_v58 }
 0x49e   : > { %v2578_v22 = vpop.f32.mrf.mxu3 }
 0x49f   : > { %2713 = vst [vmem:[#allocation17 + $0x8] sm:$0xff] %v2705_v63  ;;  %v2620_v41 = vadd.f32 %v2619_v34, %v2578_v22 }
 0x4a1   : > { %v2661_v27 = vadd.f32 %v2660_v17, %v2620_v41 }
 0x4a2   : > { %v2686_v25 = vpop.f32.mrf.mxu2 }
 0x4a3   : > { %v2687_v15 = vadd.f32 %v2686_v25, %v2646_v12 }
 0x4a5   : > { %v2706_v57 = vadd.f32 %v2687_v15, %v2534_v55 }
 0x4a7   : > { %2714 = vst [vmem:[#allocation17 + $0x10] sm:$0xff] %v2706_v57 }
 0x4aa   : > { %v2689_v43 = vpop.f32.mrf.mxu2 }
 0x4ab   : > { %v2690_v32 = vadd.f32 %v2689_v43, %v2649_v37 }
 0x4ad   : > { %v2707_v50 = vadd.f32 %v2690_v32, %v2535_v0 }
 0x4af   : > { %2715 = vst [vmem:[#allocation17 + $0x18] sm:$0xff] %v2707_v50 }
 0x4b2   : > { %v2692_v42 = vpop.f32.mrf.mxu2 }
 0x4b3   : > { %v2693_v14 = vadd.f32 %v2692_v42, %v2652_v6 }
 0x4b5   : > { %v2708_v48 = vadd.f32 %v2693_v14, %v2536_v62 }
 0x4b7   : > { %2716 = vst [vmem:[#allocation17 + $0x20] sm:$0xff] %v2708_v48 }
 0x4ba   : > { %v2695_v9 = vpop.f32.mrf.mxu2 }
 0x4bb   : > { %v2696_v52 = vadd.f32 %v2695_v9, %v2655_v28 }
 0x4bd   : > { %v2709_v44 = vadd.f32 %v2696_v52, %v2537_v36 }
 0x4bf   : > { %2717 = vst [vmem:[#allocation17 + $0x28] sm:$0xff] %v2709_v44 }
 0x4c2   : > { %v2698_v54 = vpop.f32.mrf.mxu2 }
 0x4c3   : > { %v2699_v46 = vadd.f32 %v2698_v54, %v2658_v24 }
 0x4c5   : > { %v2710_v31 = vadd.f32 %v2699_v46, %v2538_v18 }
 0x4c7   : > { %2718 = vst [vmem:[#allocation17 + $0x30] sm:$0xff] %v2710_v31 }
 0x4ca   : > { %v2701_v1 = vpop.f32.mrf.mxu2 }
 0x4cb   : > { %v2702_v53 = vadd.f32 %v2701_v1, %v2661_v27  ;;  %2723 = sbr.rel (%p5148_p1) target bundleno = 1737 (0x6c9), region = 100 }
 0x4cd   : > { %v2711_v61 = vadd.f32 %v2702_v53, %v2539_v19 }
 0x4cf   : > { %2719 = vst [vmem:[#allocation17 + $0x38] sm:$0xff] %v2711_v61 }
 0x4d0   : > { %v4308_v20 = vld [vmem:[#allocation15 + $0xf8] sm:$0xff]  ;;  %v4307_v23 = vld [vmem:[#allocation15 + $0xf0] sm:$0xff]  ;;  %v4306_v39 = vld [vmem:[#allocation15 + $0xe8] sm:$0xff]  ;;  %v5825_v18 = vmov 0.0  }
 0x4d1   : > { %v4407_v5 = vld [vmem:[#allocation15 + $0x178] sm:$0xff]  ;;  %4309 = vmatpush.msra.mxu0 %v4308_v20  ;;  %v4406_v26 = vld [vmem:[#allocation15 + $0x170] sm:$0xff]  ;;  %v4405_v60 = vld [vmem:[#allocation15 + $0x168] sm:$0xff] }
 0x4d2   : > { %4408 = vmatpush.msra.mxu2 %v4407_v5  ;;  %v4291_v2 = vld [vmem:[#allocation15 + $0x78] sm:$0xff]  ;;  %v4290_v4 = vld [vmem:[#allocation15 + $0x70] sm:$0xff]  ;;  %v4289_v11 = vld [vmem:[#allocation15 + $0x68] sm:$0xff] }
 0x4d3   : > { %v4473_v51 = vld [vmem:[#allocation15 + $0x1f8] sm:$0xff]  ;;  %4350 = vmatpush.msra.mxu1 %v4291_v2  ;;  %4310 = vmatpush.msra.mxu0 %v4307_v23  ;;  %v4472_v30 = vld [vmem:[#allocation15 + $0x1f0] sm:$0xff]  ;;  %v4305_v58 = vld [vmem:[#allocation15 + $0xe0] sm:$0xff] }
 0x4d4   : > { %4474 = vmatpush.msra.mxu3 %v4473_v51  ;;  %4409 = vmatpush.msra.mxu2 %v4406_v26  ;;  %v4404_v10 = vld [vmem:[#allocation15 + $0x160] sm:$0xff]  ;;  %v4471_v13 = vld [vmem:[#allocation15 + $0x1e8] sm:$0xff]  ;;  %v4304_v63 = vld [vmem:[#allocation15 + $0xd8] sm:$0xff] }
 0x4d5   : > { %4351 = vmatpush.msra.mxu1 %v4290_v4  ;;  %4311 = vmatpush.msra.mxu0 %v4306_v39  ;;  %v4288_v47 = vld [vmem:[#allocation15 + $0x60] sm:$0xff]  ;;  %v4403_v12 = vld [vmem:[#allocation15 + $0x158] sm:$0xff]  ;;  %v4303_v25 = vld [vmem:[#allocation15 + $0xd0] sm:$0xff] }
 0x4d6   : > { %4475 = vmatpush.msra.mxu3 %v4472_v30  ;;  %4410 = vmatpush.msra.mxu2 %v4405_v60  ;;  %v4470_v3 = vld [vmem:[#allocation15 + $0x1e0] sm:$0xff]  ;;  %v4287_v49 = vld [vmem:[#allocation15 + $0x58] sm:$0xff]  ;;  %v4402_v29 = vld [vmem:[#allocation15 + $0x150] sm:$0xff] }
 0x4d7   : > { %4352 = vmatpush.msra.mxu1 %v4289_v11  ;;  %4312 = vmatpush.msra.mxu0 %v4305_v58  ;;  %v4469_v55 = vld [vmem:[#allocation15 + $0x1d8] sm:$0xff]  ;;  %v4286_v15 = vld [vmem:[#allocation15 + $0x50] sm:$0xff]  ;;  %v4302_v57 = vld [vmem:[#allocation15 + $0xc8] sm:$0xff] }
 0x4d8   : > { %4476 = vmatpush.msra.mxu3 %v4471_v13  ;;  %4411 = vmatpush.msra.mxu2 %v4404_v10  ;;  %v4468_v16 = vld [vmem:[#allocation15 + $0x1d0] sm:$0xff]  ;;  %v4401_v59 = vld [vmem:[#allocation15 + $0x148] sm:$0xff]  ;;  %v4301_v43 = vld [vmem:[#allocation15 + $0xc0] sm:$0xff] }
 0x4d9   : > { %4353 = vmatpush.msra.mxu1 %v4288_v47  ;;  %4313 = vmatpush.msra.mxu0 %v4304_v63  ;;  %v4285_v37 = vld [vmem:[#allocation15 + $0x48] sm:$0xff]  ;;  %v4400_v32 = vld [vmem:[#allocation15 + $0x140] sm:$0xff]  ;;  %v4300_v8 = vld [vmem:[#allocation15 + $0xb8] sm:$0xff] }
 0x4da   : > { %4477 = vmatpush.msra.mxu3 %v4470_v3  ;;  %4412 = vmatpush.msra.mxu2 %v4403_v12  ;;  %v4467_v0 = vld [vmem:[#allocation15 + $0x1c8] sm:$0xff]  ;;  %v4284_v7 = vld [vmem:[#allocation15 + $0x40] sm:$0xff]  ;;  %v4399_v50 = vld [vmem:[#allocation15 + $0x138] sm:$0xff] }
 0x4db   : > { %4354 = vmatpush.msra.mxu1 %v4287_v49  ;;  %4314 = vmatpush.msra.mxu0 %v4303_v25  ;;  %v4466_v21 = vld [vmem:[#allocation15 + $0x1c0] sm:$0xff]  ;;  %v4283_v6 = vld [vmem:[#allocation15 + $0x38] sm:$0xff]  ;;  %v4299_v62 = vld [vmem:[#allocation15 + $0xb0] sm:$0xff] }
 0x4dc   : > { %4478 = vmatpush.msra.mxu3 %v4469_v55  ;;  %4413 = vmatpush.msra.mxu2 %v4402_v29  ;;  %v4465_v35 = vld [vmem:[#allocation15 + $0x1b8] sm:$0xff]  ;;  %v4398_v42 = vld [vmem:[#allocation15 + $0x130] sm:$0xff]  ;;  %v4298_v48 = vld [vmem:[#allocation15 + $0xa8] sm:$0xff] }
 0x4dd   : > { %4355 = vmatpush.msra.mxu1 %v4286_v15  ;;  %4315 = vmatpush.msra.mxu0 %v4302_v57  ;;  %v4282_v14 = vld [vmem:[#allocation15 + $0x30] sm:$0xff]  ;;  %v4397_v33 = vld [vmem:[#allocation15 + $0x128] sm:$0xff]  ;;  %v4297_v36 = vld [vmem:[#allocation15 + $0xa0] sm:$0xff] }
 0x4de   : > { %4479 = vmatpush.msra.mxu3 %v4468_v16  ;;  %4414 = vmatpush.msra.mxu2 %v4401_v59  ;;  %v4464_v38 = vld [vmem:[#allocation15 + $0x1b0] sm:$0xff]  ;;  %v4281_v45 = vld [vmem:[#allocation15 + $0x28] sm:$0xff]  ;;  %v4396_v9 = vld [vmem:[#allocation15 + $0x120] sm:$0xff] }
 0x4df   : > { %4356 = vmatpush.msra.mxu1 %v4285_v37  ;;  %4316 = vmatpush.msra.mxu0 %v4301_v43  ;;  %v4463_v28 = vld [vmem:[#allocation15 + $0x1a8] sm:$0xff]  ;;  %v7090_v56 = vld [vmem:[#allocation17] sm:$0xff]  ;;  %v4296_v44 = vld [vmem:[#allocation15 + $0x98] sm:$0xff] }
 0x4e0   : > { %4480 = vmatpush.msra.mxu3 %v4467_v0  ;;  %4415 = vmatpush.msra.mxu2 %v4400_v32  ;;  %v4280_v52 = vld [vmem:[#allocation15 + $0x20] sm:$0xff]  ;;  %vm2948_vm1 = vcmp.ge.f32.partialorder %v7090_v56, -2.0  ;;  %vm2956_vm6 = vcmp.lt.f32.partialorder %v7090_v56, -1.5  ;;  %vm2988_vm7 = vcmp.ge.f32.partialorder %v7090_v56, -1.5  ;;  %vm2996_vm8 = vcmp.lt.f32.partialorder %v7090_v56, -1.0  ;;  %v4395_v24 = vld [vmem:[#allocation15 + $0x118] sm:$0xff] }
 0x4e1   : > { %4357 = vmatpush.msra.mxu1 %v4284_v7  ;;  %4317 = vmatpush.msra.mxu0 %v4300_v8  ;;  %v4462_v40 = vld [vmem:[#allocation15 + $0x1a0] sm:$0xff]  ;;  %vm2964_vm9 = vmand %vm2948_vm1, %vm2956_vm6  ;;  %vm3028_vm10 = vcmp.ge.f32.partialorder %v7090_v56, -1.0  ;;  %vm3036_vm11 = vcmp.lt.f32.partialorder %v7090_v56, -0.5  ;;  %vm3068_vm12 = vcmp.ge.f32.partialorder %v7090_v56, -0.5  ;;  %vm3076_vm13 = vcmp.lt.f32.partialorder %v7090_v56, 0.0  ;;  %v4279_v22 = vld [vmem:[#allocation15 + $0x18] sm:$0xff] }
 0x4e2   : > { %4481 = vmatpush.msra.mxu3 %v4466_v21  ;;  %4416 = vmatpush.msra.mxu2 %v4399_v50  ;;  %v4461_v34 = vld [vmem:[#allocation15 + $0x198] sm:$0xff]  ;;  %v7101_v54 = vsel %vm2964_vm9, 1.0, %v5825_v18  ;;  %vm3004_vm14 = vmand %vm2988_vm7, %vm2996_vm8  ;;  %v7108_v46 = vadd.f32 2.0, %v7090_v56  ;;  %v3388_v41 = vsub.f32 -1.0, %v7090_v56  ;;  %v7112_v17 = vadd.f32 1.5, %v7090_v56  ;;  %v4295_v31 = vld [vmem:[#allocation15 + $0x90] sm:$0xff] }
 0x4e3   : > { %4358 = vmatpush.msra.mxu1 %v4283_v6  ;;  %4318 = vmatpush.msra.mxu0 %v4299_v62  ;;  %v4394_v27 = vld [vmem:[#allocation15 + $0x110] sm:$0xff]  ;;  %v5173_v19 = vsel %vm3004_vm14, 1.0, %v5825_v18  ;;  %vm3044_vm15 = vmand %vm3028_vm10, %vm3036_vm11  ;;  %v7120_v1 = vsub.f32 -0.5, %v7090_v56  ;;  %v7123_v53 = vadd.f32 1.0, %v7090_v56  ;;  %v3500_v61 = vsub.f32 0.0, %v7090_v56  ;;  %v4294_v39 = vld [vmem:[#allocation15 + $0x88] sm:$0xff] }
 0x4e4   : > { %4482 = vmatpush.msra.mxu3 %v4465_v35  ;;  %4417 = vmatpush.msra.mxu2 %v4398_v42  ;;  %v4278_v20 = vld [vmem:[#allocation15 + $0x10] sm:$0xff]  ;;  %v5181_v23 = vsel %vm3044_vm15, 1.0, %v5825_v18  ;;  %vm3084_vm0 = vmand %vm3068_vm12, %vm3076_vm13  ;;  %v3372_v2 = vmul.f32 2.0, %v7108_v46  ;;  %v3396_v26 = vmul.f32 2.0, %v3388_v41  ;;  %v3428_v51 = vmul.f32 2.0, %v7112_v17  ;;  %v4393_v4 = vld [vmem:[#allocation15 + $0x108] sm:$0xff] }
 0x4e5   : > { %4359 = vmatpush.msra.mxu1 %v4282_v14  ;;  %4319 = vmatpush.msra.mxu0 %v4298_v48  ;;  %v4460_v5 = vld [vmem:[#allocation15 + $0x190] sm:$0xff]  ;;  %v5189_v60 = vsel %vm3084_vm0, 1.0, %v5825_v18  ;;  %v3452_v30 = vmul.f32 2.0, %v7120_v1  ;;  %v3484_v11 = vmul.f32 2.0, %v7123_v53  ;;  %v3508_v58 = vmul.f32 2.0, %v3500_v61  ;;  %v4277_v10 = vld [vmem:[#allocation15 + $0x8] sm:$0xff] }
 0x4e6   : > { %4483 = vmatpush.msra.mxu3 %v4464_v38  ;;  %4418 = vmatpush.msra.mxu2 %v4397_v33  ;;  %v4459_v13 = vld [vmem:[#allocation15 + $0x188] sm:$0xff]  ;;  %v3380_v47 = vmul.f32 %v7101_v54, %v3372_v2  ;;  %v3404_v3 = vmul.f32 %v5173_v19, %v3396_v26  ;;  %v3436_v63 = vmul.f32 %v5173_v19, %v3428_v51  ;;  %v4293_v12 = vld [vmem:[#allocation15 + $0x80] sm:$0xff]  ;;  %v4036_v15 = vmul.f32 0.6666667, %v7108_v46  ;;  %v4671_v59 = vld [vmem:[#allocation15 + $0x378] sm:$0xff] }
 0x4e7   : > { %4360 = vmatpush.msra.mxu1 %v4281_v45  ;;  %4320 = vmatpush.msra.mxu0 %v4297_v36  ;;  %v4392_v49 = vld [vmem:[#allocation15 + $0x100] sm:$0xff]  ;;  %v3460_v55 = vmul.f32 %v5181_v23, %v3452_v30  ;;  %v3492_v25 = vmul.f32 %v5181_v23, %v3484_v11  ;;  %v3516_v29 = vmul.f32 %v5189_v60, %v3508_v58  ;;  %vm3108_vm2 = vcmp.ge.f32.partialorder %v7090_v56, 0.0  ;;  %v4539_v8 = vld [vmem:[#allocation15 + $0x278] sm:$0xff]  ;;  %v4670_v45 = vld [vmem:[#allocation15 + $0x370] sm:$0xff] }
 0x4e8   : > { %4484 = vmatpush.msra.mxu3 %v4463_v28  ;;  %4419 = vmatpush.msra.mxu2 %v4396_v9  ;;  %v3412_v16 = vadd.f32 %v3404_v3, %v3380_v47  ;;  %vm3116_vm3 = vcmp.lt.f32.partialorder %v7090_v56, 0.5  ;;  %v7143_v57 = vadd.f32 0.5, %v7090_v56  ;;  %v4276_v37 = vld [vmem:[#allocation15] sm:$0xff]  ;;  %v4052_v32 = vmul.f32 0.6666667, %v3500_v61  ;;  %v2907_v62 = vld [vmem:[#allocation14 + $0x78] sm:$0xff] }
 0x4e9   : > { %4361 = vmatpush.msra.mxu1 %v4280_v52  ;;  %4321 = vmatpush.msra.mxu0 %v4296_v44  ;;  %v3468_v0 = vadd.f32 %v3460_v55, %v3436_v63  ;;  %v3524_v43 = vadd.f32 %v3516_v29, %v3492_v25  ;;  %vm3124_vm4 = vmand %vm3108_vm2, %vm3116_vm3  ;;  %v3556_v7 = vsub.f32 0.5, %v7090_v56  ;;  %v4458_v21 = vld [vmem:[#allocation15 + $0x180] sm:$0xff]  ;;  %vm2908_vm5 = vcmp.ge.f32.partialorder %v7090_v56, -2.5  ;;  %v4605_v42 = vld [vmem:[#allocation15 + $0x2f8] sm:$0xff] }
 0x4ea   : > { %4485 = vmatpush.msra.mxu3 %v4462_v40  ;;  %4420 = vmatpush.msra.mxu2 %v4395_v24  ;;  %v3828_v50 = vmul.f32 %v7108_v46, %v3412_v16  ;;  %v5197_v6 = vsel %vm3124_vm4, 1.0, %v5825_v18  ;;  %v3540_v35 = vmul.f32 2.0, %v7143_v57  ;;  %v4538_v28 = vld [vmem:[#allocation15 + $0x270] sm:$0xff]  ;;  %v4076_v52 = vmul.f32 0.6666667, %v7112_v17 }
 0x4eb   : > { %4362 = vmatpush.msra.mxu1 %v4279_v22  ;;  %4322 = vmatpush.msra.mxu0 %v4295_v31  ;;  %v3836_v14 = vmul.f32 %v3468_v0, %v7120_v1  ;;  %v3852_v38 = vmul.f32 %v7112_v17, %v3468_v0  ;;  %v3860_v48 = vmul.f32 %v3524_v43, %v3500_v61  ;;  %v3564_v33 = vmul.f32 2.0, %v3556_v7  ;;  %v2906_v40 = vld [vmem:[#allocation14 + $0x70] sm:$0xff] }
 0x4ec   : > { %4486 = vmatpush.msra.mxu3 %v4461_v34  ;;  %4421 = vmatpush.msra.mxu2 %v4394_v27  ;;  %v3548_v36 = vmul.f32 %v5189_v60, %v3540_v35  ;;  %v3876_v9 = vmul.f32 %v7123_v53, %v3524_v43  ;;  %vm2916_vm1 = vcmp.lt.f32.partialorder %v7090_v56, -2.0  ;;  %v5237_v34 = vadd.f32 2.5, %v7090_v56  ;;  %v7165_v60 = vld [vmem:[#allocation17 + $0x8] sm:$0xff]  ;;  %v4604_v58 = vld [vmem:[#allocation15 + $0x2f0] sm:$0xff] }
 0x4ed   : > { %4363 = vmatpush.msra.mxu1 %v4278_v20  ;;  %4323 = vmatpush.msra.mxu0 %v4294_v39  ;;  %v3844_v44 = vadd.f32 %v3836_v14, %v3828_v50  ;;  %v3868_v24 = vadd.f32 %v3860_v48, %v3852_v38  ;;  %v3572_v22 = vmul.f32 %v5197_v6, %v3564_v33  ;;  %vm2924_vm6 = vmand %vm2908_vm5, %vm2916_vm1  ;;  %v4092_v46 = vmul.f32 0.6666667, %v3556_v7  ;;  %v4537_v48 = vld [vmem:[#allocation15 + $0x268] sm:$0xff] }
 0x4ee   : > { %4487 = vmatpush.msra.mxu3 %v4460_v5  ;;  %4422 = vmatpush.msra.mxu2 %v4393_v4  ;;  %v5157_v31 = vsel %vm2924_vm6, 1.0, %v5825_v18  ;;  %v3332_v17 = vsub.f32 -1.5, %v7090_v56  ;;  %v3812_v27 = vmul.f32 %v3412_v16, %v3388_v41  ;;  %v4012_v5 = vmul.f32 0.6666667, %v7120_v1  ;;  %v2905_v33 = vld [vmem:[#allocation14 + $0x68] sm:$0xff] }
 0x4ef   : > { %4364 = vmatpush.msra.mxu1 %v4277_v10  ;;  %4324 = vmatpush.msra.mxu0 %v4293_v12  ;;  %v4044_v19 = vmul.f32 %v4036_v15, %v3844_v44  ;;  %v4060_v61 = vmul.f32 %v4052_v32, %v3868_v24  ;;  %v3580_v20 = vadd.f32 %v3572_v22, %v3548_v36  ;;  %v3316_v2 = vmul.f32 2.0, %v5237_v34  ;;  %v4669_v10 = vld [vmem:[#allocation15 + $0x368] sm:$0xff] }
 0x4f0   : > { %4488 = vmatpush.msra.mxu3 %v4459_v13  ;;  %4423 = vmatpush.msra.mxu2 %v4392_v49  ;;  %v4084_v23 = vmul.f32 %v4076_v52, %v3868_v24  ;;  %v3340_v26 = vmul.f32 2.0, %v3332_v17  ;;  %v3996_v51 = vmul.f32 0.6666667, %v5237_v34  ;;  %vm3148_vm7 = vcmp.ge.f32.partialorder %v7090_v56, 0.5  ;;  %v4603_v52 = vld [vmem:[#allocation15 + $0x2e8] sm:$0xff] }
 0x4f1   : > { %4365 = vmatpush.msra.mxu1 %v4276_v37  ;;  %4540 = vmatpush.msrb.mxu0 %v4539_v8  ;;  %v4068_v39 = vadd.f32 %v4060_v61, %v4044_v19  ;;  %v3884_v4 = vmul.f32 %v3580_v20, %v3556_v7  ;;  %vm3156_vm8 = vcmp.lt.f32.partialorder %v7090_v56, 1.0  ;;  %v3324_v41 = vmul.f32 %v5157_v31, %v3316_v2  ;;  %v2904_v31 = vld [vmem:[#allocation14 + $0x60] sm:$0xff] }
 0x4f2   : > { %4672 = vmatpush.msrb.mxu2 %v4671_v59  ;;  %4489 = vmatpush.msra.mxu3 %v4458_v21  ;;  %v3348_v30 = vmul.f32 %v7101_v54, %v3340_v26  ;;  %vm3164_vm9 = vmand %vm3148_vm7, %vm3156_vm8  ;;  %v3588_v11 = vmul.f32 2.0, %v7090_v56  ;;  %v3604_v1 = vsub.f32 1.0, %v7090_v56  ;;  %v4020_v47 = vmul.f32 %v4012_v5, %v3844_v44  ;;  %v4536_v44 = vld [vmem:[#allocation15 + $0x260] sm:$0xff] }
 0x4f3   : > { %4606 = vmatpush.msrb.mxu1 %v4605_v42  ;;  %4541 = vmatpush.msrb.mxu0 %v4538_v28  ;;  %v3892_v13 = vadd.f32 %v3884_v4, %v3876_v9  ;;  %v5205_v3 = vsel %vm3164_vm9, 1.0, %v5825_v18  ;;  %v7172_v63 = vadd.f32 -0.5, %v7090_v56  ;;  %v4116_v54 = vmul.f32 0.6666667, %v7123_v53 }
 0x4f4   : > { %4721 = vmatpush.msrb.mxu3 %v2907_v62  ;;  %4673 = vmatpush.msrb.mxu2 %v4670_v45  ;;  %v3356_v12 = vadd.f32 %v3348_v30, %v3324_v41  ;;  %v3596_v49 = vmul.f32 %v5197_v6, %v3588_v11  ;;  %v3612_v55 = vmul.f32 2.0, %v3604_v1  ;;  %v3900_v15 = vmul.f32 %v7143_v57, %v3580_v20 }
 0x4f5   : > { %4325 = vmatmul.f32.vlgmr.msra.gmra.mxu0 %v4068_v39  ;;  %4607 = vmatpush.msrb.mxu1 %v4604_v58  ;;  %v4100_v25 = vmul.f32 %v4092_v46, %v3892_v13  ;;  %v3644_v29 = vmul.f32 2.0, %v7172_v63  ;;  %vm2949_vm10 = vcmp.ge.f32.partialorder %v7165_v60, -2.0  ;;  %v4132_v37 = vmul.f32 0.6666667, %v3604_v1 }
 0x4f6   : > { %4722 = vmatpush.msrb.mxu3 %v2906_v40  ;;  %4674 = vmatpush.msrb.mxu2 %v4669_v10  ;;  %v3804_v16 = vmul.f32 %v5237_v34, %v3356_v12  ;;  %v3620_v59 = vmul.f32 %v5205_v3, %v3612_v55  ;;  %vm2957_vm11 = vcmp.lt.f32.partialorder %v7165_v60, -1.5  ;;  %v4124_v0 = vmul.f32 %v4116_v54, %v3892_v13  ;;  %v4668_v40 = vld [vmem:[#allocation15 + $0x360] sm:$0xff] }
 0x4f7   : > { %v4108_v56 = vadd.f32 %v4100_v25, %v4084_v23  ;;  %vm2965_vm12 = vmand %vm2949_vm10, %vm2957_vm11  ;;  %vm2989_vm13 = vcmp.ge.f32.partialorder %v7165_v60, -1.5  ;;  %vm2997_vm14 = vcmp.lt.f32.partialorder %v7165_v60, -1.0  ;;  %v7183_v32 = vmul.f32 %v5205_v3, %v3644_v29  ;;  %4542 = vmatpush.msrb.mxu0 %v4537_v48  ;;  %4608 = vmatpush.msrb.mxu1 %v4603_v52 }
 0x4f8   : > { %v3820_v53 = vadd.f32 %v3812_v27, %v3804_v16  ;;  %v7181_v43 = vadd.f32 %v3620_v59, %v3596_v49  ;;  %vm3005_vm15 = vmand %vm2989_vm13, %vm2997_vm14  ;;  %vm3029_vm0 = vcmp.ge.f32.partialorder %v7165_v60, -1.0  ;;  %v7187_v7 = vsel %vm2965_vm12, 1.0, %v5825_v18  ;;  %4723 = vmatpush.msrb.mxu3 %v2905_v33  ;;  %4675 = vmatpush.msrb.mxu2 %v4668_v40  ;;  %v4602_v40 = vld [vmem:[#allocation15 + $0x2e0] sm:$0xff] }
 0x4f9   : > { %4424 = vmatmul.f32.vlgmr.msra.gmra.mxu2 %v4108_v56  ;;  %vm3037_vm2 = vcmp.lt.f32.partialorder %v7165_v60, -0.5  ;;  %vm3069_vm3 = vcmp.ge.f32.partialorder %v7165_v60, -0.5  ;;  %vm3077_vm4 = vcmp.lt.f32.partialorder %v7165_v60, 0.0  ;;  %v5246_v50 = vadd.f32 2.0, %v7165_v60  ;;  %4543 = vmatpush.msrb.mxu0 %v4536_v44  ;;  %v4667_v44 = vld [vmem:[#allocation15 + $0x358] sm:$0xff] }
 0x4fa   : > { %v4004_v21 = vmul.f32 %v3996_v51, %v3820_v53  ;;  %v3908_v8 = vmul.f32 %v7181_v43, %v3604_v1  ;;  %vm3045_vm5 = vmand %vm3029_vm0, %vm3037_vm2  ;;  %v3389_v6 = vsub.f32 -1.0, %v7165_v60  ;;  %v5174_v35 = vsel %vm3005_vm15, 1.0, %v5825_v18  ;;  %4724 = vmatpush.msrb.mxu3 %v2904_v31  ;;  %4609 = vmatpush.msrb.mxu1 %v4602_v40 }
 0x4fb   : > { %vm7196_vm1 = vmand %vm3069_vm3, %vm3077_vm4  ;;  %v5254_v42 = vadd.f32 1.5, %v7165_v60  ;;  %v7202_v14 = vsub.f32 -0.5, %v7165_v60  ;;  %v7205_v38 = vadd.f32 1.0, %v7165_v60  ;;  %v5182_v36 = vsel %vm3045_vm5, 1.0, %v5825_v18  ;;  %4676 = vmatpush.msrb.mxu2 %v4667_v44 }
 0x4fc   : > { %v4028_v45 = vadd.f32 %v4020_v47, %v4004_v21  ;;  %v7207_v28 = vadd.f32 %v3908_v8, %v3900_v15  ;;  %v3373_v9 = vmul.f32 2.0, %v5246_v50  ;;  %v3397_v24 = vmul.f32 2.0, %v3389_v6 }
 0x4fd   : > { %v3429_v22 = vmul.f32 2.0, %v5254_v42  ;;  %v3453_v34 = vmul.f32 2.0, %v7202_v14  ;;  %v3485_v46 = vmul.f32 2.0, %v7205_v38  ;;  %v5190_v27 = vsel %vm7196_vm1, 1.0, %v5825_v18 }
 0x4fe   : > { %4366 = vmatmul.f32.vlgmr.msra.gmra.mxu1 %v4028_v45  ;;  %v4140_v17 = vmul.f32 %v4132_v37, %v7207_v28  ;;  %v3381_v19 = vmul.f32 %v7187_v7, %v3373_v9  ;;  %v3501_v61 = vsub.f32 0.0, %v7165_v60  ;;  %v3405_v20 = vmul.f32 %v5174_v35, %v3397_v24 }
 0x4ff   : > { %v3437_v5 = vmul.f32 %v5174_v35, %v3429_v22  ;;  %v3461_v23 = vmul.f32 %v5182_v36, %v3453_v34  ;;  %v4037_v2 = vmul.f32 0.6666667, %v5246_v50  ;;  %v3493_v51 = vmul.f32 %v5182_v36, %v3485_v46  ;;  %v7243_v46 = vld [vmem:[#allocation17 + $0x10] sm:$0xff] }
 0x500   : > { %v4148_v26 = vadd.f32 %v4140_v17, %v4124_v0  ;;  %v3509_v39 = vmul.f32 2.0, %v3501_v61  ;;  %vm3109_vm6 = vcmp.ge.f32.partialorder %v7165_v60, 0.0  ;;  %v3413_v4 = vadd.f32 %v3405_v20, %v3381_v19 }
 0x501   : > { %v3469_v41 = vadd.f32 %v3461_v23, %v3437_v5  ;;  %vm3117_vm7 = vcmp.lt.f32.partialorder %v7165_v60, 0.5  ;;  %v7223_v30 = vadd.f32 0.5, %v7165_v60  ;;  %v4053_v1 = vmul.f32 0.6666667, %v3501_v61 }
 0x502   : > { %4490 = vmatmul.f32.vlgmr.msra.gmra.mxu3 %v4148_v26  ;;  %v3517_v11 = vmul.f32 %v5190_v27, %v3509_v39  ;;  %vm3125_vm8 = vmand %vm3109_vm6, %vm3117_vm7  ;;  %v3557_v58 = vsub.f32 0.5, %v7165_v60  ;;  %v4077_v10 = vmul.f32 0.6666667, %v5254_v42  ;;  %v3829_v13 = vmul.f32 %v5246_v50, %v3413_v4 }
 0x503   : > { %v3837_v47 = vmul.f32 %v3469_v41, %v7202_v14  ;;  %v5198_v3 = vsel %vm3125_vm8, 1.0, %v5825_v18  ;;  %vm2909_vm9 = vcmp.ge.f32.partialorder %v7165_v60, -2.5  ;;  %v3853_v49 = vmul.f32 %v5254_v42, %v3469_v41 }
 0x504   : > { %v3525_v12 = vadd.f32 %v3517_v11, %v3493_v51  ;;  %v3541_v55 = vmul.f32 2.0, %v7223_v30  ;;  %v3565_v54 = vmul.f32 2.0, %v3557_v58  ;;  %vm2917_vm10 = vcmp.lt.f32.partialorder %v7165_v60, -2.0 }
 0x505   : > { %v3845_v25 = vadd.f32 %v3837_v47, %v3829_v13  ;;  %v5238_v29 = vadd.f32 2.5, %v7165_v60  ;;  %v3333_v15 = vsub.f32 -1.5, %v7165_v60  ;;  %v4093_v56 = vmul.f32 0.6666667, %v3557_v58  ;;  %vm2925_vm11 = vmand %vm2909_vm9, %vm2917_vm10 }
 0x506   : > { %v3861_v16 = vmul.f32 %v3525_v12, %v3501_v61  ;;  %v3549_v59 = vmul.f32 %v5190_v27, %v3541_v55  ;;  %v3573_v37 = vmul.f32 %v5198_v3, %v3565_v54  ;;  %v3877_v0 = vmul.f32 %v7205_v38, %v3525_v12 }
 0x507   : > { %v5158_v53 = vsel %vm2925_vm11, 1.0, %v5825_v18  ;;  %v3317_v21 = vmul.f32 2.0, %v5238_v29  ;;  %v3341_v8 = vmul.f32 2.0, %v3333_v15  ;;  %v4045_v35 = vmul.f32 %v4037_v2, %v3845_v25 }
 0x508   : > { %v3869_v50 = vadd.f32 %v3861_v16, %v3853_v49  ;;  %v3581_v62 = vadd.f32 %v3573_v37, %v3549_v59  ;;  %v3813_v42 = vmul.f32 %v3413_v4, %v3389_v6  ;;  %v4013_v45 = vmul.f32 0.6666667, %v7202_v14 }
 0x509   : > { %v3325_v48 = vmul.f32 %v5158_v53, %v3317_v21  ;;  %v3349_v33 = vmul.f32 %v7187_v7, %v3341_v8  ;;  %vm3149_vm12 = vcmp.ge.f32.partialorder %v7165_v60, 0.5  ;;  %v3997_v52 = vmul.f32 0.6666667, %v5238_v29  ;;  %v4534_v53 = vld [vmem:[#allocation15 + $0x250] sm:$0xff] }
 0x50a   : > { %v4061_v36 = vmul.f32 %v4053_v1, %v3869_v50  ;;  %v3885_v9 = vmul.f32 %v3581_v62, %v3557_v58  ;;  %vm3157_vm13 = vcmp.lt.f32.partialorder %v7165_v60, 1.0  ;;  %v4085_v24 = vmul.f32 %v4077_v10, %v3869_v50 }
 0x50b   : > { %v3357_v22 = vadd.f32 %v3349_v33, %v3325_v48  ;;  %vm3165_vm14 = vmand %vm3149_vm12, %vm3157_vm13  ;;  %v3589_v34 = vmul.f32 2.0, %v7165_v60  ;;  %v3605_v6 = vsub.f32 1.0, %v7165_v60  ;;  %v4021_v31 = vmul.f32 %v4013_v45, %v3845_v25  ;;  %v4535_v25 = vld [vmem:[#allocation15 + $0x258] sm:$0xff] }
 0x50c   : > { %v4069_v7 = vadd.f32 %v4061_v36, %v4045_v35  ;;  %v3893_v14 = vadd.f32 %v3885_v9, %v3877_v0  ;;  %v7246_v17 = vsel %vm3165_vm14, 1.0, %v5825_v18  ;;  %v4117_v20 = vmul.f32 0.6666667, %v7205_v38  ;;  %4544 = vmatpush.msrb.mxu0 %v4535_v25  ;;  %v4666_v0 = vld [vmem:[#allocation15 + $0x350] sm:$0xff] }
 0x50d   : > { %v3805_v27 = vmul.f32 %v5238_v29, %v3357_v22  ;;  %v3597_v19 = vmul.f32 %v5198_v3, %v3589_v34  ;;  %v3613_v61 = vmul.f32 2.0, %v3605_v6  ;;  %v3901_v23 = vmul.f32 %v7223_v30, %v3581_v62  ;;  %v2903_v29 = vld [vmem:[#allocation14 + $0x58] sm:$0xff]  ;;  %v2902_v62 = vld [vmem:[#allocation14 + $0x50] sm:$0xff]  ;;  %4677 = vmatpush.msrb.mxu2 %v4666_v0 }
 0x50e   : > { %4328 = vmatmul.f32.gmra.mxu0 %v4069_v7  ;;  %v4101_v5 = vmul.f32 %v4093_v56, %v3893_v14  ;;  %vm2950_vm15 = vcmp.ge.f32.partialorder %v7243_v46, -2.0  ;;  %vm2958_vm0 = vcmp.lt.f32.partialorder %v7243_v46, -1.5  ;;  %v4133_v26 = vmul.f32 0.6666667, %v3605_v6  ;;  %v4601_v56 = vld [vmem:[#allocation15 + $0x2d8] sm:$0xff]  ;;  %4725 = vmatpush.msrb.mxu3 %v2903_v29 }
 0x50f   : > { %v3821_v60 = vadd.f32 %v3813_v42, %v3805_v27  ;;  %v3621_v2 = vmul.f32 %v7246_v17, %v3613_v61  ;;  %vm2966_vm2 = vmand %vm2950_vm15, %vm2958_vm0  ;;  %vm2990_vm3 = vcmp.ge.f32.partialorder %v7243_v46, -1.5  ;;  %v4125_v39 = vmul.f32 %v4117_v20, %v3893_v14  ;;  %4610 = vmatpush.msrb.mxu1 %v4601_v56  ;;  %4545 = vmatpush.msrb.mxu0 %v4534_v53  ;;  %v7312_v0 = vld [vmem:[#allocation17 + $0x18] sm:$0xff] }
 0x510   : > { %v4109_v51 = vadd.f32 %v4101_v5, %v4085_v24  ;;  %vm2998_vm4 = vcmp.lt.f32.partialorder %v7243_v46, -1.0  ;;  %vm3030_vm5 = vcmp.ge.f32.partialorder %v7243_v46, -1.0  ;;  %vm3038_vm6 = vcmp.lt.f32.partialorder %v7243_v46, -0.5  ;;  %4726 = vmatpush.msrb.mxu3 %v2902_v62 }
 0x511   : > { %v4005_v38 = vmul.f32 %v3997_v52, %v3821_v60  ;;  %v7256_v4 = vadd.f32 %v3621_v2, %v3597_v19  ;;  %vm3006_vm1 = vmand %vm2990_vm3, %vm2998_vm4  ;;  %vm3070_vm7 = vcmp.ge.f32.partialorder %v7243_v46, -0.5  ;;  %v7261_v41 = vsel %vm2966_vm2, 1.0, %v5825_v18 }
 0x512   : > { %4427 = vmatmul.f32.gmra.mxu2 %v4109_v51  ;;  %vm3046_vm8 = vmand %vm3030_vm5, %vm3038_vm6  ;;  %vm3078_vm9 = vcmp.lt.f32.partialorder %v7243_v46, 0.0  ;;  %v5247_v11 = vadd.f32 2.0, %v7243_v46  ;;  %v3390_v1 = vsub.f32 -1.0, %v7243_v46  ;;  %v5175_v13 = vsel %vm3006_vm1, 1.0, %v5825_v18 }
 0x513   : > { %v4029_v58 = vadd.f32 %v4021_v31, %v4005_v38  ;;  %v3909_v10 = vmul.f32 %v7256_v4, %v3605_v6  ;;  %vm7268_vm10 = vmand %vm3070_vm7, %vm3078_vm9  ;;  %v5255_v3 = vadd.f32 1.5, %v7243_v46  ;;  %v5183_v12 = vsel %vm3046_vm8, 1.0, %v5825_v18 }
 0x514   : > { %v3374_v49 = vmul.f32 2.0, %v5247_v11  ;;  %v3398_v55 = vmul.f32 2.0, %v3390_v1  ;;  %v7277_v54 = vsub.f32 -0.5, %v7243_v46  ;;  %v7282_v59 = vadd.f32 1.0, %v7243_v46 }
 0x515   : > { %4369 = vmatmul.f32.gmra.mxu1 %v4029_v58  ;;  %v7279_v15 = vadd.f32 %v3909_v10, %v3901_v23  ;;  %v3430_v16 = vmul.f32 2.0, %v5255_v3  ;;  %v3502_v37 = vsub.f32 0.0, %v7243_v46  ;;  %v5191_v21 = vsel %vm7268_vm10, 1.0, %v5825_v18 }
 0x516   : > { %v3382_v8 = vmul.f32 %v7261_v41, %v3374_v49  ;;  %v3406_v50 = vmul.f32 %v5175_v13, %v3398_v55  ;;  %v3454_v35 = vmul.f32 2.0, %v7277_v54  ;;  %v3486_v33 = vmul.f32 2.0, %v7282_v59 }
 0x517   : > { %v4141_v42 = vmul.f32 %v4133_v26, %v7279_v15  ;;  %v3438_v48 = vmul.f32 %v5175_v13, %v3430_v16  ;;  %v3510_v45 = vmul.f32 2.0, %v3502_v37  ;;  %v4038_v52 = vmul.f32 0.6666667, %v5247_v11 }
 0x518   : > { %v3414_v36 = vadd.f32 %v3406_v50, %v3382_v8  ;;  %v3462_v9 = vmul.f32 %v5183_v12, %v3454_v35  ;;  %vm3110_vm11 = vcmp.ge.f32.partialorder %v7243_v46, 0.0  ;;  %v3494_v44 = vmul.f32 %v5183_v12, %v3486_v33  ;;  %v4600_v50 = vld [vmem:[#allocation15 + $0x2d0] sm:$0xff]  ;;  %v4665_v35 = vld [vmem:[#allocation15 + $0x348] sm:$0xff] }
 0x519   : > { %v4149_v40 = vadd.f32 %v4141_v42, %v4125_v39  ;;  %v3518_v24 = vmul.f32 %v5191_v21, %v3510_v45  ;;  %vm3118_vm12 = vcmp.lt.f32.partialorder %v7243_v46, 0.5  ;;  %v7295_v6 = vadd.f32 0.5, %v7243_v46  ;;  %4611 = vmatpush.msrb.mxu1 %v4600_v50  ;;  %4678 = vmatpush.msrb.mxu2 %v4665_v35 }
 0x51a   : > { %v3470_v22 = vadd.f32 %v3462_v9, %v3438_v48  ;;  %v3830_v34 = vmul.f32 %v5247_v11, %v3414_v36  ;;  %vm3126_vm13 = vmand %vm3110_vm11, %vm3118_vm12  ;;  %v3558_v7 = vsub.f32 0.5, %v7243_v46  ;;  %v4054_v31 = vmul.f32 0.6666667, %v3502_v37 }
 0x51b   : > { %4493 = vmatmul.f32.gmra.mxu3 %v4149_v40  ;;  %v3526_v14 = vadd.f32 %v3518_v24, %v3494_v44  ;;  %v5199_v27 = vsel %vm3126_vm13, 1.0, %v5825_v18  ;;  %vm2910_vm14 = vcmp.ge.f32.partialorder %v7243_v46, -2.5  ;;  %v3542_v20 = vmul.f32 2.0, %v7295_v6 }
 0x51c   : > { %v3838_v19 = vmul.f32 %v3470_v22, %v7277_v54  ;;  %v3854_v61 = vmul.f32 %v5255_v3, %v3470_v22  ;;  %v3566_v5 = vmul.f32 2.0, %v3558_v7  ;;  %v4078_v2 = vmul.f32 0.6666667, %v5255_v3 }
 0x51d   : > { %v3862_v23 = vmul.f32 %v3526_v14, %v3502_v37  ;;  %v3878_v60 = vmul.f32 %v7282_v59, %v3526_v14  ;;  %vm2918_vm15 = vcmp.lt.f32.partialorder %v7243_v46, -2.0  ;;  %v3550_v51 = vmul.f32 %v5191_v21, %v3542_v20 }
 0x51e   : > { %v3846_v26 = vadd.f32 %v3838_v19, %v3830_v34  ;;  %v3574_v39 = vmul.f32 %v5199_v27, %v3566_v5  ;;  %vm2926_vm0 = vmand %vm2910_vm14, %vm2918_vm15  ;;  %v5239_v38 = vadd.f32 2.5, %v7243_v46  ;;  %v4094_v58 = vmul.f32 0.6666667, %v3558_v7 }
 0x51f   : > { %v3870_v11 = vadd.f32 %v3862_v23, %v3854_v61  ;;  %v5159_v10 = vsel %vm2926_vm0, 1.0, %v5825_v18  ;;  %v3334_v13 = vsub.f32 -1.5, %v7243_v46  ;;  %v3814_v3 = vmul.f32 %v3414_v36, %v3390_v1 }
 0x520   : > { %v4046_v47 = vmul.f32 %v4038_v52, %v3846_v26  ;;  %v3582_v12 = vadd.f32 %v3574_v39, %v3550_v51  ;;  %v3318_v49 = vmul.f32 2.0, %v5239_v38  ;;  %v3998_v29 = vmul.f32 0.6666667, %v5239_v38  ;;  %v4533_v51 = vld [vmem:[#allocation15 + $0x248] sm:$0xff] }
 0x521   : > { %v4062_v55 = vmul.f32 %v4054_v31, %v3870_v11  ;;  %v3342_v25 = vmul.f32 2.0, %v3334_v13  ;;  %v4014_v16 = vmul.f32 0.6666667, %v7277_v54  ;;  %vm3150_vm2 = vcmp.ge.f32.partialorder %v7243_v46, 0.5  ;;  %v2901_v39 = vld [vmem:[#allocation14 + $0x48] sm:$0xff]  ;;  %4546 = vmatpush.msrb.mxu0 %v4533_v51 }
 0x522   : > { %v3886_v37 = vmul.f32 %v3582_v12, %v3558_v7  ;;  %v3326_v56 = vmul.f32 %v5159_v10, %v3318_v49  ;;  %vm3158_vm3 = vcmp.lt.f32.partialorder %v7243_v46, 1.0  ;;  %v4086_v21 = vmul.f32 %v4078_v2, %v3870_v11  ;;  %4727 = vmatpush.msrb.mxu3 %v2901_v39  ;;  %v2900_v49 = vld [vmem:[#allocation14 + $0x40] sm:$0xff] }
 0x523   : > { %v4070_v53 = vadd.f32 %v4062_v55, %v4046_v47  ;;  %v3350_v8 = vmul.f32 %v7261_v41, %v3342_v25  ;;  %vm3166_vm4 = vmand %vm3150_vm2, %vm3158_vm3  ;;  %v3590_v1 = vmul.f32 2.0, %v7243_v46  ;;  %v4022_v42 = vmul.f32 %v4014_v16, %v3846_v26  ;;  %v4664_v47 = vld [vmem:[#allocation15 + $0x340] sm:$0xff] }
 0x524   : > { %v3894_v62 = vadd.f32 %v3886_v37, %v3878_v60  ;;  %v7317_v54 = vsel %vm3166_vm4, 1.0, %v5825_v18  ;;  %v3606_v48 = vsub.f32 1.0, %v7243_v46  ;;  %v3902_v45 = vmul.f32 %v7295_v6, %v3582_v12  ;;  %v4532_v12 = vld [vmem:[#allocation15 + $0x240] sm:$0xff]  ;;  %4679 = vmatpush.msrb.mxu2 %v4664_v47  ;;  %4728 = vmatpush.msrb.mxu3 %v2900_v49 }
 0x525   : > { %4331 = vmatmul.f32.gmra.mxu0 %v4070_v53  ;;  %v3358_v33 = vadd.f32 %v3350_v8, %v3326_v56  ;;  %v4118_v41 = vmul.f32 0.6666667, %v7282_v59  ;;  %vm2951_vm5 = vcmp.ge.f32.partialorder %v7312_v0, -2.0  ;;  %v3598_v9 = vmul.f32 %v5199_v27, %v3590_v1 }
 0x526   : > { %v4102_v36 = vmul.f32 %v4094_v58, %v3894_v62  ;;  %v3614_v52 = vmul.f32 2.0, %v3606_v48  ;;  %vm2959_vm1 = vcmp.lt.f32.partialorder %v7312_v0, -1.5  ;;  %v4134_v44 = vmul.f32 0.6666667, %v3606_v48  ;;  %4547 = vmatpush.msrb.mxu0 %v4532_v12 }
 0x527   : > { %v3806_v40 = vmul.f32 %v5239_v38, %v3358_v33  ;;  %vm2967_vm6 = vmand %vm2951_vm5, %vm2959_vm1  ;;  %vm2991_vm7 = vcmp.ge.f32.partialorder %v7312_v0, -1.5  ;;  %vm2999_vm8 = vcmp.lt.f32.partialorder %v7312_v0, -1.0  ;;  %v4126_v22 = vmul.f32 %v4118_v41, %v3894_v62  ;;  %v4599_v38 = vld [vmem:[#allocation15 + $0x2c8] sm:$0xff] }
 0x528   : > { %v4110_v46 = vadd.f32 %v4102_v36, %v4086_v21  ;;  %v3622_v24 = vmul.f32 %v7317_v54, %v3614_v52  ;;  %vm3007_vm9 = vmand %vm2991_vm7, %vm2999_vm8  ;;  %vm3031_vm10 = vcmp.ge.f32.partialorder %v7312_v0, -1.0  ;;  %v7329_v34 = vsel %vm2967_vm6, 1.0, %v5825_v18  ;;  %4612 = vmatpush.msrb.mxu1 %v4599_v38 }
 0x529   : > { %v3822_v59 = vadd.f32 %v3814_v3, %v3806_v40  ;;  %vm3039_vm11 = vcmp.lt.f32.partialorder %v7312_v0, -0.5  ;;  %vm3071_vm12 = vcmp.ge.f32.partialorder %v7312_v0, -0.5  ;;  %vm3079_vm14 = vcmp.lt.f32.partialorder %v7312_v0, 0.0 }
 0x52a   : > { %4430 = vmatmul.f32.gmra.mxu2 %v4110_v46  ;;  %v7333_v7 = vadd.f32 %v3622_v24, %v3598_v9  ;;  %vm3047_vm13 = vmand %vm3031_vm10, %vm3039_vm11  ;;  %v5248_v14 = vadd.f32 2.0, %v7312_v0  ;;  %v3391_v31 = vsub.f32 -1.0, %v7312_v0  ;;  %v5176_v19 = vsel %vm3007_vm9, 1.0, %v5825_v18 }
 0x52b   : > { %v4006_v27 = vmul.f32 %v3998_v29, %v3822_v59  ;;  %vm7339_vm15 = vmand %vm3071_vm12, %vm3079_vm14  ;;  %v5256_v20 = vadd.f32 1.5, %v7312_v0  ;;  %v7345_v5 = vsub.f32 -0.5, %v7312_v0  ;;  %v5184_v60 = vsel %vm3047_vm13, 1.0, %v5825_v18 }
 0x52c   : > { %v3910_v23 = vmul.f32 %v7333_v7, %v3606_v48  ;;  %v3375_v2 = vmul.f32 2.0, %v5248_v14  ;;  %v3399_v26 = vmul.f32 2.0, %v3391_v31  ;;  %v7353_v13 = vadd.f32 1.0, %v7312_v0 }
 0x52d   : > { %v4030_v11 = vadd.f32 %v4022_v42, %v4006_v27  ;;  %v3431_v58 = vmul.f32 2.0, %v5256_v20  ;;  %v3455_v10 = vmul.f32 2.0, %v7345_v5  ;;  %v3503_v29 = vsub.f32 0.0, %v7312_v0 }
 0x52e   : > { %v7355_v3 = vadd.f32 %v3910_v23, %v3902_v45  ;;  %v3383_v55 = vmul.f32 %v7329_v34, %v3375_v2  ;;  %v3407_v25 = vmul.f32 %v5176_v19, %v3399_v26  ;;  %v5192_v16 = vsel %vm7339_vm15, 1.0, %v5825_v18 }
 0x52f   : > { %4372 = vmatmul.f32.gmra.mxu1 %v4030_v11  ;;  %v3439_v37 = vmul.f32 %v5176_v19, %v3431_v58  ;;  %v3463_v56 = vmul.f32 %v5184_v60, %v3455_v10  ;;  %v3487_v53 = vmul.f32 2.0, %v7353_v13  ;;  %v3511_v1 = vmul.f32 2.0, %v3503_v29 }
 0x530   : > { %v4142_v21 = vmul.f32 %v4134_v44, %v7355_v3  ;;  %v3415_v8 = vadd.f32 %v3407_v25, %v3383_v55  ;;  %v4039_v50 = vmul.f32 0.6666667, %v5248_v14  ;;  %vm3111_vm0 = vcmp.ge.f32.partialorder %v7312_v0, 0.0  ;;  %v7384_v55 = vld [vmem:[#allocation17 + $0x20] sm:$0xff] }
 0x531   : > { %v3471_v35 = vadd.f32 %v3463_v56, %v3439_v37  ;;  %v3495_v62 = vmul.f32 %v5184_v60, %v3487_v53  ;;  %vm3119_vm2 = vcmp.lt.f32.partialorder %v7312_v0, 0.5  ;;  %v3519_v48 = vmul.f32 %v5192_v16, %v3511_v1  ;;  %v4598_v37 = vld [vmem:[#allocation15 + $0x2c0] sm:$0xff]  ;;  %v4663_v56 = vld [vmem:[#allocation15 + $0x338] sm:$0xff] }
 0x532   : > { %v4150_v42 = vadd.f32 %v4142_v21, %v4126_v22  ;;  %v3831_v33 = vmul.f32 %v5248_v14, %v3415_v8  ;;  %vm3127_vm3 = vmand %vm3111_vm0, %vm3119_vm2  ;;  %v7367_v45 = vadd.f32 0.5, %v7312_v0  ;;  %v4055_v9 = vmul.f32 0.6666667, %v3503_v29  ;;  %4613 = vmatpush.msrb.mxu1 %v4598_v37  ;;  %4680 = vmatpush.msrb.mxu2 %v4663_v56 }
 0x533   : > { %v3839_v41 = vmul.f32 %v3471_v35, %v7345_v5  ;;  %v3855_v36 = vmul.f32 %v5256_v20, %v3471_v35  ;;  %v3559_v52 = vsub.f32 0.5, %v7312_v0  ;;  %v3527_v40 = vadd.f32 %v3519_v48, %v3495_v62 }
 0x534   : > { %4496 = vmatmul.f32.gmra.mxu3 %v4150_v42  ;;  %v5200_v44 = vsel %vm3127_vm3, 1.0, %v5825_v18  ;;  %v3543_v46 = vmul.f32 2.0, %v7367_v45  ;;  %vm2911_vm4 = vcmp.ge.f32.partialorder %v7312_v0, -2.5  ;;  %v4079_v59 = vmul.f32 0.6666667, %v5256_v20 }
 0x535   : > { %v3847_v24 = vadd.f32 %v3839_v41, %v3831_v33  ;;  %v3567_v22 = vmul.f32 2.0, %v3559_v52  ;;  %vm2919_vm5 = vcmp.lt.f32.partialorder %v7312_v0, -2.0  ;;  %v3863_v14 = vmul.f32 %v3527_v40, %v3503_v29 }
 0x536   : > { %v3551_v27 = vmul.f32 %v5192_v16, %v3543_v46  ;;  %v4095_v19 = vmul.f32 0.6666667, %v3559_v52  ;;  %vm2927_vm1 = vmand %vm2911_vm4, %vm2919_vm5  ;;  %v5240_v61 = vadd.f32 2.5, %v7312_v0  ;;  %v3879_v60 = vmul.f32 %v7353_v13, %v3527_v40 }
 0x537   : > { %v3575_v23 = vmul.f32 %v5200_v44, %v3567_v22  ;;  %v5160_v2 = vsel %vm2927_vm1, 1.0, %v5825_v18  ;;  %v3335_v26 = vsub.f32 -1.5, %v7312_v0  ;;  %v3871_v51 = vadd.f32 %v3863_v14, %v3855_v36 }
 0x538   : > { %v4047_v39 = vmul.f32 %v4039_v50, %v3847_v24  ;;  %v3319_v38 = vmul.f32 2.0, %v5240_v61  ;;  %v3815_v20 = vmul.f32 %v3415_v8, %v3391_v31  ;;  %v4015_v10 = vmul.f32 0.6666667, %v7345_v5 }
 0x539   : > { %v3583_v11 = vadd.f32 %v3575_v23, %v3551_v27  ;;  %v3343_v58 = vmul.f32 2.0, %v3335_v26  ;;  %vm3151_vm6 = vcmp.ge.f32.partialorder %v7312_v0, 0.5  ;;  %v4063_v47 = vmul.f32 %v4055_v9, %v3871_v51  ;;  %v4597_v26 = vld [vmem:[#allocation15 + $0x2b8] sm:$0xff] }
 0x53a   : > { %v3327_v12 = vmul.f32 %v5160_v2, %v3319_v38  ;;  %v3999_v49 = vmul.f32 0.6666667, %v5240_v61  ;;  %vm3159_vm7 = vcmp.lt.f32.partialorder %v7312_v0, 1.0  ;;  %v4087_v29 = vmul.f32 %v4079_v59, %v3871_v51  ;;  %v2899_v2 = vld [vmem:[#allocation14 + $0x38] sm:$0xff]  ;;  %4614 = vmatpush.msrb.mxu1 %v4597_v26 }
 0x53b   : > { %v3887_v25 = vmul.f32 %v3583_v11, %v3559_v52  ;;  %v3351_v16 = vmul.f32 %v7329_v34, %v3343_v58  ;;  %vm3167_vm8 = vmand %vm3151_vm6, %vm3159_vm7  ;;  %v3591_v31 = vmul.f32 2.0, %v7312_v0  ;;  %v4071_v53 = vadd.f32 %v4063_v47, %v4047_v39  ;;  %4729 = vmatpush.msrb.mxu3 %v2899_v2  ;;  %v4530_v58 = vld [vmem:[#allocation15 + $0x230] sm:$0xff] }
 0x53c   : > { %v4023_v5 = vmul.f32 %v4015_v10, %v3847_v24  ;;  %v7389_v21 = vsel %vm3167_vm8, 1.0, %v5825_v18  ;;  %v3607_v8 = vsub.f32 1.0, %v7312_v0  ;;  %v3903_v35 = vmul.f32 %v7367_v45, %v3583_v11  ;;  %v4662_v11 = vld [vmem:[#allocation15 + $0x330] sm:$0xff] }
 0x53d   : > { %v3895_v1 = vadd.f32 %v3887_v25, %v3879_v60  ;;  %v3359_v50 = vadd.f32 %v3351_v16, %v3327_v12  ;;  %v4119_v34 = vmul.f32 0.6666667, %v7353_v13  ;;  %4334 = vmatmul.f32.gmra.mxu0 %v4071_v53  ;;  %v3599_v62 = vmul.f32 %v5200_v44, %v3591_v31  ;;  %v4531_v60 = vld [vmem:[#allocation15 + $0x238] sm:$0xff]  ;;  %v2898_v10 = vld [vmem:[#allocation14 + $0x30] sm:$0xff]  ;;  %4681 = vmatpush.msrb.mxu2 %v4662_v11 }
 0x53e   : > { %v3615_v42 = vmul.f32 2.0, %v3607_v8  ;;  %vm2952_vm9 = vcmp.ge.f32.partialorder %v7384_v55, -2.0  ;;  %vm2960_vm10 = vcmp.lt.f32.partialorder %v7384_v55, -1.5  ;;  %v4135_v41 = vmul.f32 0.6666667, %v3607_v8  ;;  %4548 = vmatpush.msrb.mxu0 %v4531_v60  ;;  %4730 = vmatpush.msrb.mxu3 %v2898_v10 }
 0x53f   : > { %v4103_v48 = vmul.f32 %v4095_v19, %v3895_v1  ;;  %v3807_v33 = vmul.f32 %v5240_v61, %v3359_v50  ;;  %vm2968_vm11 = vmand %vm2952_vm9, %vm2960_vm10  ;;  %vm2992_vm12 = vcmp.ge.f32.partialorder %v7384_v55, -1.5  ;;  %v4127_v36 = vmul.f32 %v4119_v34, %v3895_v1 }
 0x540   : > { %v3623_v0 = vmul.f32 %v7389_v21, %v3615_v42  ;;  %vm3000_vm13 = vcmp.lt.f32.partialorder %v7384_v55, -1.0  ;;  %vm3032_vm14 = vcmp.ge.f32.partialorder %v7384_v55, -1.0  ;;  %vm3040_vm0 = vcmp.lt.f32.partialorder %v7384_v55, -0.5  ;;  %4549 = vmatpush.msrb.mxu0 %v4530_v58 }
 0x541   : > { %v4111_v13 = vadd.f32 %v4103_v48, %v4087_v29  ;;  %v3823_v9 = vadd.f32 %v3815_v20, %v3807_v33  ;;  %vm3008_vm15 = vmand %vm2992_vm12, %vm3000_vm13  ;;  %vm3072_vm2 = vcmp.ge.f32.partialorder %v7384_v55, -0.5  ;;  %v7405_v40 = vsel %vm2968_vm11, 1.0, %v5825_v18 }
 0x542   : > { %v7402_v52 = vadd.f32 %v3623_v0, %v3599_v62  ;;  %vm3048_vm3 = vmand %vm3032_vm14, %vm3040_vm0  ;;  %vm3080_vm4 = vcmp.lt.f32.partialorder %v7384_v55, 0.0  ;;  %v5249_v44 = vadd.f32 2.0, %v7384_v55  ;;  %v5177_v24 = vsel %vm3008_vm15, 1.0, %v5825_v18 }
 0x543   : > { %4433 = vmatmul.f32.gmra.mxu2 %v4111_v13  ;;  %v4007_v46 = vmul.f32 %v3999_v49, %v3823_v9  ;;  %vm7410_vm5 = vmand %vm3072_vm2, %vm3080_vm4  ;;  %v3392_v59 = vsub.f32 -1.0, %v7384_v55  ;;  %v5257_v14 = vadd.f32 1.5, %v7384_v55  ;;  %v5185_v19 = vsel %vm3048_vm3, 1.0, %v5825_v18 }
 0x544   : > { %v3911_v27 = vmul.f32 %v7402_v52, %v3607_v8  ;;  %v3376_v61 = vmul.f32 2.0, %v5249_v44  ;;  %v7419_v23 = vsub.f32 -0.5, %v7384_v55  ;;  %v7424_v20 = vadd.f32 1.0, %v7384_v55 }
 0x545   : > { %v4031_v51 = vadd.f32 %v4023_v5, %v4007_v46  ;;  %v3400_v39 = vmul.f32 2.0, %v3392_v59  ;;  %v3432_v38 = vmul.f32 2.0, %v5257_v14  ;;  %v3504_v25 = vsub.f32 0.0, %v7384_v55 }
 0x546   : > { %v7426_v47 = vadd.f32 %v3911_v27, %v3903_v35  ;;  %v3384_v12 = vmul.f32 %v7405_v40, %v3376_v61  ;;  %v3456_v49 = vmul.f32 2.0, %v7419_v23  ;;  %v5193_v29 = vsel %vm7410_vm5, 1.0, %v5825_v18 }
 0x547   : > { %4375 = vmatmul.f32.gmra.mxu1 %v4031_v51  ;;  %v3408_v16 = vmul.f32 %v5177_v24, %v3400_v39  ;;  %v3440_v31 = vmul.f32 %v5177_v24, %v3432_v38  ;;  %v3488_v37 = vmul.f32 2.0, %v7424_v20  ;;  %v3512_v5 = vmul.f32 2.0, %v3504_v25 }
 0x548   : > { %v4143_v56 = vmul.f32 %v4135_v41, %v7426_v47  ;;  %v3464_v53 = vmul.f32 %v5185_v19, %v3456_v49  ;;  %v4040_v8 = vmul.f32 0.6666667, %v5249_v44  ;;  %vm3112_vm1 = vcmp.ge.f32.partialorder %v7384_v55, 0.0 }
 0x549   : > { %v3416_v1 = vadd.f32 %v3408_v16, %v3384_v12  ;;  %v3496_v50 = vmul.f32 %v5185_v19, %v3488_v37  ;;  %vm3120_vm6 = vcmp.lt.f32.partialorder %v7384_v55, 0.5  ;;  %v3520_v62 = vmul.f32 %v5193_v29, %v3512_v5  ;;  %v4661_v5 = vld [vmem:[#allocation15 + $0x328] sm:$0xff] }
 0x54a   : > { %v4151_v35 = vadd.f32 %v4143_v56, %v4127_v36  ;;  %v3472_v34 = vadd.f32 %v3464_v53, %v3440_v31  ;;  %vm3128_vm7 = vmand %vm3112_vm1, %vm3120_vm6  ;;  %v7439_v42 = vadd.f32 0.5, %v7384_v55  ;;  %v4056_v33 = vmul.f32 0.6666667, %v3504_v25  ;;  %v7457_v53 = vld [vmem:[#allocation17 + $0x28] sm:$0xff]  ;;  %4682 = vmatpush.msrb.mxu2 %v4661_v5 }
 0x54b   : > { %v3832_v48 = vmul.f32 %v5249_v44, %v3416_v1  ;;  %v5201_v41 = vsel %vm3128_vm7, 1.0, %v5825_v18  ;;  %v3560_v0 = vsub.f32 0.5, %v7384_v55  ;;  %v3528_v13 = vadd.f32 %v3520_v62, %v3496_v50 }
 0x54c   : > { %4499 = vmatmul.f32.gmra.mxu3 %v4151_v35  ;;  %v3840_v9 = vmul.f32 %v3472_v34, %v7419_v23  ;;  %v3856_v46 = vmul.f32 %v5257_v14, %v3472_v34  ;;  %v3544_v24 = vmul.f32 2.0, %v7439_v42  ;;  %v4080_v22 = vmul.f32 0.6666667, %v5257_v14 }
 0x54d   : > { %v3568_v36 = vmul.f32 2.0, %v3560_v0  ;;  %vm2912_vm8 = vcmp.ge.f32.partialorder %v7384_v55, -2.5  ;;  %vm2920_vm9 = vcmp.lt.f32.partialorder %v7384_v55, -2.0  ;;  %v3864_v44 = vmul.f32 %v3528_v13, %v3504_v25 }
 0x54e   : > { %v3848_v27 = vadd.f32 %v3840_v9, %v3832_v48  ;;  %v3552_v19 = vmul.f32 %v5193_v29, %v3544_v24  ;;  %v4096_v61 = vmul.f32 0.6666667, %v3560_v0  ;;  %vm2928_vm10 = vmand %vm2912_vm8, %vm2920_vm9  ;;  %v3880_v2 = vmul.f32 %v7424_v20, %v3528_v13 }
 0x54f   : > { %v3576_v60 = vmul.f32 %v5201_v41, %v3568_v36  ;;  %v5241_v26 = vadd.f32 2.5, %v7384_v55  ;;  %v3336_v51 = vsub.f32 -1.5, %v7384_v55  ;;  %v3872_v39 = vadd.f32 %v3864_v44, %v3856_v46 }
 0x550   : > { %v4048_v38 = vmul.f32 %v4040_v8, %v3848_v27  ;;  %v5161_v14 = vsel %vm2928_vm10, 1.0, %v5825_v18  ;;  %v4016_v11 = vmul.f32 0.6666667, %v7419_v23  ;;  %v3816_v49 = vmul.f32 %v3416_v1, %v3392_v59  ;;  %v4596_v23 = vld [vmem:[#allocation15 + $0x2b0] sm:$0xff] }
 0x551   : > { %v3584_v58 = vadd.f32 %v3576_v60, %v3552_v19  ;;  %v3320_v10 = vmul.f32 2.0, %v5241_v26  ;;  %v3344_v12 = vmul.f32 2.0, %v3336_v51  ;;  %v4064_v25 = vmul.f32 %v4056_v33, %v3872_v39  ;;  %4615 = vmatpush.msrb.mxu1 %v4596_v23 }
 0x552   : > { %v4088_v29 = vmul.f32 %v4080_v22, %v3872_v39  ;;  %v4000_v16 = vmul.f32 0.6666667, %v5241_v26  ;;  %vm3152_vm11 = vcmp.ge.f32.partialorder %v7384_v55, 0.5  ;;  %vm3160_vm12 = vcmp.lt.f32.partialorder %v7384_v55, 1.0 }
 0x553   : > { %v3888_v31 = vmul.f32 %v3584_v58, %v3560_v0  ;;  %v3328_v37 = vmul.f32 %v5161_v14, %v3320_v10  ;;  %v3352_v56 = vmul.f32 %v7405_v40, %v3344_v12  ;;  %v4072_v8 = vadd.f32 %v4064_v25, %v4048_v38  ;;  %vm3168_vm13 = vmand %vm3152_vm11, %vm3160_vm12  ;;  %v4529_v38 = vld [vmem:[#allocation15 + $0x228] sm:$0xff]  ;;  %v4660_v25 = vld [vmem:[#allocation15 + $0x320] sm:$0xff] }
 0x554   : > { %v4024_v50 = vmul.f32 %v4016_v11, %v3848_v27  ;;  %v3592_v59 = vmul.f32 2.0, %v7384_v55  ;;  %v3608_v1 = vsub.f32 1.0, %v7384_v55  ;;  %v7462_v62 = vsel %vm3168_vm13, 1.0, %v5825_v18  ;;  %v2897_v14 = vld [vmem:[#allocation14 + $0x28] sm:$0xff]  ;;  %4550 = vmatpush.msrb.mxu0 %v4529_v38  ;;  %4683 = vmatpush.msrb.mxu2 %v4660_v25 }
 0x555   : > { %v3896_v35 = vadd.f32 %v3888_v31, %v3880_v2  ;;  %v3360_v34 = vadd.f32 %v3352_v56, %v3328_v37  ;;  %v4120_v40 = vmul.f32 0.6666667, %v7424_v20  ;;  %4337 = vmatmul.f32.gmra.mxu0 %v4072_v8  ;;  %v3904_v0 = vmul.f32 %v7439_v42, %v3584_v58  ;;  %v4595_v11 = vld [vmem:[#allocation15 + $0x2a8] sm:$0xff]  ;;  %4731 = vmatpush.msrb.mxu3 %v2897_v14 }
 0x556   : > { %v3600_v48 = vmul.f32 %v5201_v41, %v3592_v59  ;;  %v3616_v33 = vmul.f32 2.0, %v3608_v1  ;;  %vm2953_vm14 = vcmp.ge.f32.partialorder %v7457_v53, -2.0  ;;  %v4136_v46 = vmul.f32 0.6666667, %v3608_v1  ;;  %4616 = vmatpush.msrb.mxu1 %v4595_v11 }
 0x557   : > { %v4104_v13 = vmul.f32 %v4096_v61, %v3896_v35  ;;  %v3808_v9 = vmul.f32 %v5241_v26, %v3360_v34  ;;  %vm2961_vm15 = vcmp.lt.f32.partialorder %v7457_v53, -1.5  ;;  %vm2993_vm2 = vcmp.ge.f32.partialorder %v7457_v53, -1.5 }
 0x558   : > { %v3624_v55 = vmul.f32 %v7462_v62, %v3616_v33  ;;  %vm2969_vm0 = vmand %vm2953_vm14, %vm2961_vm15  ;;  %vm3001_vm3 = vcmp.lt.f32.partialorder %v7457_v53, -1.0  ;;  %vm3033_vm4 = vcmp.ge.f32.partialorder %v7457_v53, -1.0  ;;  %v4128_v24 = vmul.f32 %v4120_v40, %v3896_v35 }
 0x559   : > { %v4112_v20 = vadd.f32 %v4104_v13, %v4088_v29  ;;  %v3824_v41 = vadd.f32 %v3816_v49, %v3808_v9  ;;  %vm3009_vm5 = vmand %vm2993_vm2, %vm3001_vm3  ;;  %vm3041_vm1 = vcmp.lt.f32.partialorder %v7457_v53, -0.5  ;;  %v7476_v22 = vsel %vm2969_vm0, 1.0, %v5825_v18  ;;  %v4528_v29 = vld [vmem:[#allocation15 + $0x220] sm:$0xff] }
 0x55a   : > { %v7473_v36 = vadd.f32 %v3624_v55, %v3600_v48  ;;  %vm3049_vm6 = vmand %vm3033_vm4, %vm3041_vm1  ;;  %vm3073_vm7 = vcmp.ge.f32.partialorder %v7457_v53, -0.5  ;;  %vm3081_vm8 = vcmp.lt.f32.partialorder %v7457_v53, 0.0  ;;  %v5178_v44 = vsel %vm3009_vm5, 1.0, %v5825_v18  ;;  %4551 = vmatpush.msrb.mxu0 %v4528_v29 }
 0x55b   : > { %4436 = vmatmul.f32.gmra.mxu2 %v4112_v20  ;;  %v4008_v27 = vmul.f32 %v4000_v16, %v3824_v41  ;;  %vm7481_vm9 = vmand %vm3073_vm7, %vm3081_vm8  ;;  %v5250_v61 = vadd.f32 2.0, %v7457_v53  ;;  %v3393_v60 = vsub.f32 -1.0, %v7457_v53  ;;  %v5186_v26 = vsel %vm3049_vm6, 1.0, %v5825_v18  ;;  %v2896_v16 = vld [vmem:[#allocation14 + $0x20] sm:$0xff] }
 0x55c   : > { %v3912_v2 = vmul.f32 %v7473_v36, %v3608_v1  ;;  %v5258_v51 = vadd.f32 1.5, %v7457_v53  ;;  %v7491_v39 = vsub.f32 -0.5, %v7457_v53  ;;  %v7496_v49 = vadd.f32 1.0, %v7457_v53  ;;  %4732 = vmatpush.msrb.mxu3 %v2896_v16 }
 0x55d   : > { %v4032_v58 = vadd.f32 %v4024_v50, %v4008_v27  ;;  %v3377_v10 = vmul.f32 2.0, %v5250_v61  ;;  %v3401_v12 = vmul.f32 2.0, %v3393_v60  ;;  %v3505_v23 = vsub.f32 0.0, %v7457_v53 }
 0x55e   : > { %v7498_v31 = vadd.f32 %v3912_v2, %v3904_v0  ;;  %v3433_v37 = vmul.f32 2.0, %v5258_v51  ;;  %v3457_v56 = vmul.f32 2.0, %v7491_v39  ;;  %v5194_v5 = vsel %vm7481_vm9, 1.0, %v5825_v18 }
 0x55f   : > { %4378 = vmatmul.f32.gmra.mxu1 %v4032_v58  ;;  %v3385_v8 = vmul.f32 %v7476_v22, %v3377_v10  ;;  %v3409_v50 = vmul.f32 %v5178_v44, %v3401_v12  ;;  %v3489_v59 = vmul.f32 2.0, %v7496_v49  ;;  %v3513_v40 = vmul.f32 2.0, %v3505_v23 }
 0x560   : > { %v4144_v1 = vmul.f32 %v4136_v46, %v7498_v31  ;;  %v3441_v35 = vmul.f32 %v5178_v44, %v3433_v37  ;;  %v3465_v34 = vmul.f32 %v5186_v26, %v3457_v56  ;;  %v4041_v0 = vmul.f32 0.6666667, %v5250_v61 }
 0x561   : > { %v3417_v48 = vadd.f32 %v3409_v50, %v3385_v8  ;;  %v3497_v33 = vmul.f32 %v5186_v26, %v3489_v59  ;;  %vm3113_vm10 = vcmp.ge.f32.partialorder %v7457_v53, 0.0  ;;  %v3521_v55 = vmul.f32 %v5194_v5, %v3513_v40 }
 0x562   : > { %v4152_v13 = vadd.f32 %v4144_v1, %v4128_v24  ;;  %v3473_v9 = vadd.f32 %v3465_v34, %v3441_v35  ;;  %vm3121_vm11 = vcmp.lt.f32.partialorder %v7457_v53, 0.5  ;;  %v4057_v41 = vmul.f32 0.6666667, %v3505_v23 }
 0x563   : > { %v3833_v20 = vmul.f32 %v5250_v61, %v3417_v48  ;;  %vm3129_vm12 = vmand %vm3113_vm10, %vm3121_vm11  ;;  %v7511_v27 = vadd.f32 0.5, %v7457_v53  ;;  %v3561_v46 = vsub.f32 0.5, %v7457_v53  ;;  %v3529_v44 = vadd.f32 %v3521_v55, %v3497_v33 }
 0x564   : > { %4502 = vmatmul.f32.gmra.mxu3 %v4152_v13  ;;  %v3841_v19 = vmul.f32 %v3473_v9, %v7491_v39  ;;  %v3857_v2 = vmul.f32 %v5258_v51, %v3473_v9  ;;  %v5202_v26 = vsel %vm3129_vm12, 1.0, %v5825_v18  ;;  %v4081_v14 = vmul.f32 0.6666667, %v5258_v51  ;;  %v4659_v13 = vld [vmem:[#allocation15 + $0x318] sm:$0xff] }
 0x565   : > { %v3545_v24 = vmul.f32 2.0, %v7511_v27  ;;  %v3569_v38 = vmul.f32 2.0, %v3561_v46  ;;  %vm2913_vm13 = vcmp.ge.f32.partialorder %v7457_v53, -2.5  ;;  %v3865_v11 = vmul.f32 %v3529_v44, %v3505_v23  ;;  %4684 = vmatpush.msrb.mxu2 %v4659_v13 }
 0x566   : > { %v3849_v61 = vadd.f32 %v3841_v19, %v3833_v20  ;;  %v4097_v58 = vmul.f32 0.6666667, %v3561_v46  ;;  %vm2921_vm14 = vcmp.lt.f32.partialorder %v7457_v53, -2.0  ;;  %v5242_v25 = vadd.f32 2.5, %v7457_v53 }
 0x567   : > { %v3553_v10 = vmul.f32 %v5194_v5, %v3545_v24  ;;  %v3577_v12 = vmul.f32 %v5202_v26, %v3569_v38  ;;  %vm2929_vm15 = vmand %vm2913_vm13, %vm2921_vm14  ;;  %v3337_v29 = vsub.f32 -1.5, %v7457_v53  ;;  %v3873_v16 = vadd.f32 %v3865_v11, %v3857_v2 }
 0x568   : > { %v4049_v37 = vmul.f32 %v4041_v0, %v3849_v61  ;;  %v3881_v56 = vmul.f32 %v7496_v49, %v3529_v44  ;;  %v5162_v51 = vsel %vm2929_vm15, 1.0, %v5825_v18  ;;  %v3321_v50 = vmul.f32 2.0, %v5242_v25  ;;  %v4594_v0 = vld [vmem:[#allocation15 + $0x2a0] sm:$0xff] }
 0x569   : > { %v3585_v8 = vadd.f32 %v3577_v12, %v3553_v10  ;;  %v3345_v59 = vmul.f32 2.0, %v3337_v29  ;;  %v3817_v23 = vmul.f32 %v3417_v48, %v3393_v60  ;;  %v4065_v1 = vmul.f32 %v4057_v41, %v3873_v16  ;;  %v7531_v48 = vld [vmem:[#allocation17 + $0x30] sm:$0xff]  ;;  %4617 = vmatpush.msrb.mxu1 %v4594_v0 }
 0x56a   : > { %v4001_v5 = vmul.f32 0.6666667, %v5242_v25  ;;  %v4017_v35 = vmul.f32 0.6666667, %v7491_v39  ;;  %vm3153_vm0 = vcmp.ge.f32.partialorder %v7457_v53, 0.5  ;;  %v3329_v40 = vmul.f32 %v5162_v51, %v3321_v50  ;;  %v4527_v50 = vld [vmem:[#allocation15 + $0x218] sm:$0xff] }
 0x56b   : > { %v3889_v34 = vmul.f32 %v3585_v8, %v3561_v46  ;;  %v3353_v33 = vmul.f32 %v7476_v22, %v3345_v59  ;;  %vm3161_vm2 = vcmp.lt.f32.partialorder %v7457_v53, 1.0  ;;  %v4073_v9 = vadd.f32 %v4065_v1, %v4049_v37  ;;  %v2895_v59 = vld [vmem:[#allocation14 + $0x18] sm:$0xff]  ;;  %4552 = vmatpush.msrb.mxu0 %v4527_v50 }
 0x56c   : > { %v4089_v55 = vmul.f32 %v4081_v14, %v3873_v16  ;;  %vm3169_vm3 = vmand %vm3153_vm0, %vm3161_vm2  ;;  %v3593_v20 = vmul.f32 2.0, %v7457_v53  ;;  %v3609_v60 = vsub.f32 1.0, %v7457_v53  ;;  %v4025_v46 = vmul.f32 %v4017_v35, %v3849_v61  ;;  %4733 = vmatpush.msrb.mxu3 %v2895_v59 }
 0x56d   : > { %v3897_v39 = vadd.f32 %v3889_v34, %v3881_v56  ;;  %v3361_v41 = vadd.f32 %v3353_v33, %v3329_v40  ;;  %v7534_v22 = vsel %vm3169_vm3, 1.0, %v5825_v18  ;;  %4340 = vmatmul.f32.gmra.mxu0 %v4073_v9  ;;  %v3905_v2 = vmul.f32 %v7511_v27, %v3585_v8  ;;  %v4593_v34 = vld [vmem:[#allocation15 + $0x298] sm:$0xff]  ;;  %v4658_v40 = vld [vmem:[#allocation15 + $0x310] sm:$0xff] }
 0x56e   : > { %v3601_v44 = vmul.f32 %v5202_v26, %v3593_v20  ;;  %v3617_v19 = vmul.f32 2.0, %v3609_v60  ;;  %v4121_v24 = vmul.f32 0.6666667, %v7496_v49  ;;  %vm2954_vm4 = vcmp.ge.f32.partialorder %v7531_v48, -2.0  ;;  %v4526_v33 = vld [vmem:[#allocation15 + $0x210] sm:$0xff]  ;;  %4618 = vmatpush.msrb.mxu1 %v4593_v34  ;;  %4685 = vmatpush.msrb.mxu2 %v4658_v40 }
 0x56f   : > { %v4105_v38 = vmul.f32 %v4097_v58, %v3897_v39  ;;  %v3809_v14 = vmul.f32 %v5242_v25, %v3361_v41  ;;  %vm2962_vm5 = vcmp.lt.f32.partialorder %v7531_v48, -1.5  ;;  %v4137_v11 = vmul.f32 0.6666667, %v3609_v60  ;;  %v2894_v20 = vld [vmem:[#allocation14 + $0x10] sm:$0xff]  ;;  %4553 = vmatpush.msrb.mxu0 %v4526_v33 }
 0x570   : > { %v3625_v53 = vmul.f32 %v7534_v22, %v3617_v19  ;;  %vm2970_vm1 = vmand %vm2954_vm4, %vm2962_vm5  ;;  %vm2994_vm6 = vcmp.ge.f32.partialorder %v7531_v48, -1.5  ;;  %vm3002_vm7 = vcmp.lt.f32.partialorder %v7531_v48, -1.0  ;;  %v4129_v10 = vmul.f32 %v4121_v24, %v3897_v39  ;;  %4734 = vmatpush.msrb.mxu3 %v2894_v20 }
 0x571   : > { %v4113_v26 = vadd.f32 %v4105_v38, %v4089_v55  ;;  %v3825_v61 = vadd.f32 %v3817_v23, %v3809_v14  ;;  %vm3010_vm8 = vmand %vm2994_vm6, %vm3002_vm7  ;;  %vm3034_vm9 = vcmp.ge.f32.partialorder %v7531_v48, -1.0  ;;  %v7547_v58 = vsel %vm2970_vm1, 1.0, %v5825_v18 }
 0x572   : > { %v7544_v49 = vadd.f32 %v3625_v53, %v3601_v44  ;;  %vm3042_vm10 = vcmp.lt.f32.partialorder %v7531_v48, -0.5  ;;  %vm3074_vm11 = vcmp.ge.f32.partialorder %v7531_v48, -0.5  ;;  %vm3082_vm13 = vcmp.lt.f32.partialorder %v7531_v48, 0.0 }
 0x573   : > { %4439 = vmatmul.f32.gmra.mxu2 %v4113_v26  ;;  %v4009_v12 = vmul.f32 %v4001_v5, %v3825_v61  ;;  %vm3050_vm12 = vmand %vm3034_vm9, %vm3042_vm10  ;;  %v5251_v25 = vadd.f32 2.0, %v7531_v48  ;;  %v3394_v29 = vsub.f32 -1.0, %v7531_v48  ;;  %v5179_v37 = vsel %vm3010_vm8, 1.0, %v5825_v18 }
 0x574   : > { %v3913_v16 = vmul.f32 %v7544_v49, %v3609_v60  ;;  %vm7556_vm14 = vmand %vm3074_vm11, %vm3082_vm13  ;;  %v5259_v51 = vadd.f32 1.5, %v7531_v48  ;;  %v7562_v8 = vsub.f32 -0.5, %v7531_v48  ;;  %v5187_v1 = vsel %vm3050_vm12, 1.0, %v5825_v18 }
 0x575   : > { %v4033_v23 = vadd.f32 %v4025_v46, %v4009_v12  ;;  %v3378_v5 = vmul.f32 2.0, %v5251_v25  ;;  %v3402_v35 = vmul.f32 2.0, %v3394_v29  ;;  %v7571_v55 = vadd.f32 1.0, %v7531_v48 }
 0x576   : > { %v7567_v0 = vadd.f32 %v3913_v16, %v3905_v2  ;;  %v3434_v13 = vmul.f32 2.0, %v5259_v51  ;;  %v3458_v9 = vmul.f32 2.0, %v7562_v8  ;;  %v5195_v60 = vsel %vm7556_vm14, 1.0, %v5825_v18 }
 0x577   : > { %4381 = vmatmul.f32.gmra.mxu1 %v4033_v23  ;;  %v3386_v39 = vmul.f32 %v7547_v58, %v3378_v5  ;;  %v3410_v41 = vmul.f32 %v5179_v37, %v3402_v35  ;;  %v3506_v46 = vsub.f32 0.0, %v7531_v48  ;;  %v3490_v24 = vmul.f32 2.0, %v7571_v55 }
 0x578   : > { %v4145_v44 = vmul.f32 %v4137_v11, %v7567_v0  ;;  %v3442_v19 = vmul.f32 %v5179_v37, %v3434_v13  ;;  %v3466_v2 = vmul.f32 %v5187_v1, %v3458_v9  ;;  %v4042_v53 = vmul.f32 0.6666667, %v5251_v25 }
 0x579   : > { %v3418_v38 = vadd.f32 %v3410_v41, %v3386_v39  ;;  %v3514_v14 = vmul.f32 2.0, %v3506_v46  ;;  %vm3114_vm15 = vcmp.ge.f32.partialorder %v7531_v48, 0.0  ;;  %v3498_v12 = vmul.f32 %v5187_v1, %v3490_v24 }
 0x57a   : > { %v4153_v26 = vadd.f32 %v4145_v44, %v4129_v10  ;;  %v3474_v61 = vadd.f32 %v3466_v2, %v3442_v19  ;;  %vm3122_vm0 = vcmp.lt.f32.partialorder %v7531_v48, 0.5  ;;  %v7583_v11 = vadd.f32 0.5, %v7531_v48 }
 0x57b   : > { %v3522_v16 = vmul.f32 %v5195_v60, %v3514_v14  ;;  %v3834_v56 = vmul.f32 %v5251_v25, %v3418_v38  ;;  %vm3130_vm2 = vmand %vm3114_vm15, %vm3122_vm0  ;;  %v3562_v37 = vsub.f32 0.5, %v7531_v48  ;;  %v4058_v23 = vmul.f32 0.6666667, %v3506_v46 }
 0x57c   : > { %4505 = vmatmul.f32.gmra.mxu3 %v4153_v26  ;;  %v3842_v50 = vmul.f32 %v3474_v61, %v7562_v8  ;;  %v3858_v59 = vmul.f32 %v5259_v51, %v3474_v61  ;;  %v5203_v5 = vsel %vm3130_vm2, 1.0, %v5825_v18  ;;  %v3546_v1 = vmul.f32 2.0, %v7583_v11 }
 0x57d   : > { %v3530_v10 = vadd.f32 %v3522_v16, %v3498_v12  ;;  %v3570_v35 = vmul.f32 2.0, %v3562_v37  ;;  %v4082_v34 = vmul.f32 0.6666667, %v5259_v51  ;;  %vm2914_vm3 = vcmp.ge.f32.partialorder %v7531_v48, -2.5 }
 0x57e   : > { %v3850_v40 = vadd.f32 %v3842_v50, %v3834_v56  ;;  %vm2922_vm4 = vcmp.lt.f32.partialorder %v7531_v48, -2.0  ;;  %v5243_v25 = vadd.f32 2.5, %v7531_v48  ;;  %v3554_v13 = vmul.f32 %v5195_v60, %v3546_v1  ;;  %v7600_v56 = vld [vmem:[#allocation17 + $0x38] sm:$0xff] }
 0x57f   : > { %v3866_v33 = vmul.f32 %v3530_v10, %v3506_v46  ;;  %v3578_v9 = vmul.f32 %v5203_v5, %v3570_v35  ;;  %v4098_v20 = vmul.f32 0.6666667, %v3562_v37  ;;  %vm2930_vm5 = vmand %vm2914_vm3, %vm2922_vm4  ;;  %v3882_v39 = vmul.f32 %v7571_v55, %v3530_v10  ;;  %v4657_v10 = vld [vmem:[#allocation15 + $0x308] sm:$0xff] }
 0x580   : > { %v5163_v41 = vsel %vm2930_vm5, 1.0, %v5825_v18  ;;  %v3322_v44 = vmul.f32 2.0, %v5243_v25  ;;  %v3338_v19 = vsub.f32 -1.5, %v7531_v48  ;;  %v4050_v2 = vmul.f32 %v4042_v53, %v3850_v40  ;;  %4686 = vmatpush.msrb.mxu2 %v4657_v10  ;;  %v4591_v10 = vld [vmem:[#allocation15 + $0x288] sm:$0xff] }
 0x581   : > { %v3874_v51 = vadd.f32 %v3866_v33, %v3858_v59  ;;  %v3586_v24 = vadd.f32 %v3578_v9, %v3554_v13  ;;  %v3818_v14 = vmul.f32 %v3418_v38, %v3394_v29  ;;  %v4018_v60 = vmul.f32 0.6666667, %v7562_v8  ;;  %v4592_v38 = vld [vmem:[#allocation15 + $0x290] sm:$0xff] }
 0x582   : > { %v3330_v26 = vmul.f32 %v5163_v41, %v3322_v44  ;;  %v3346_v61 = vmul.f32 2.0, %v3338_v19  ;;  %vm3154_vm1 = vcmp.ge.f32.partialorder %v7531_v48, 0.5  ;;  %v4002_v16 = vmul.f32 0.6666667, %v5243_v25  ;;  %4619 = vmatpush.msrb.mxu1 %v4592_v38 }
 0x583   : > { %v4066_v46 = vmul.f32 %v4058_v23, %v3874_v51  ;;  %v3890_v12 = vmul.f32 %v3586_v24, %v3562_v37  ;;  %vm3162_vm6 = vcmp.lt.f32.partialorder %v7531_v48, 1.0  ;;  %v4090_v50 = vmul.f32 %v4082_v34, %v3874_v51 }
 0x584   : > { %v3354_v53 = vmul.f32 %v7547_v58, %v3346_v61  ;;  %vm3170_vm7 = vmand %vm3154_vm1, %vm3162_vm6  ;;  %v3594_v59 = vmul.f32 2.0, %v7531_v48  ;;  %v3610_v29 = vsub.f32 1.0, %v7531_v48  ;;  %v4026_v35 = vmul.f32 %v4018_v60, %v3850_v40  ;;  %4620 = vmatpush.msrb.mxu1 %v4591_v10 }
 0x585   : > { %v4074_v8 = vadd.f32 %v4066_v46, %v4050_v2  ;;  %v3898_v1 = vadd.f32 %v3890_v12, %v3882_v39  ;;  %v7606_v37 = vsel %vm3170_vm7, 1.0, %v5825_v18  ;;  %v4122_v58 = vmul.f32 0.6666667, %v7571_v55 }
 0x586   : > { %v3362_v23 = vadd.f32 %v3354_v53, %v3330_v26  ;;  %v3602_v33 = vmul.f32 %v5203_v5, %v3594_v59  ;;  %v3618_v34 = vmul.f32 2.0, %v3610_v29  ;;  %v3906_v9 = vmul.f32 %v7583_v11, %v3586_v24 }
 0x587   : > { %4343 = vmatmul.f32.gmra.mxu0 %v4074_v8  ;;  %v4106_v13 = vmul.f32 %v4098_v20, %v3898_v1  ;;  %vm2955_vm8 = vcmp.ge.f32.partialorder %v7600_v56, -2.0  ;;  %vm2963_vm9 = vcmp.lt.f32.partialorder %v7600_v56, -1.5  ;;  %v4138_v39 = vmul.f32 0.6666667, %v3610_v29  ;;  %v4656_v8 = vld [vmem:[#allocation15 + $0x300] sm:$0xff] }
 0x588   : > { %v3810_v48 = vmul.f32 %v5243_v25, %v3362_v23  ;;  %v3626_v40 = vmul.f32 %v7606_v37, %v3618_v34  ;;  %vm2971_vm10 = vmand %vm2955_vm8, %vm2963_vm9  ;;  %vm2995_vm11 = vcmp.ge.f32.partialorder %v7600_v56, -1.5  ;;  %v4130_v5 = vmul.f32 %v4122_v58, %v3898_v1  ;;  %v4524_v1 = vld [vmem:[#allocation15 + $0x200] sm:$0xff]  ;;  %4687 = vmatpush.msrb.mxu2 %v4656_v8 }
 0x589   : > { %v4114_v41 = vadd.f32 %v4106_v13, %v4090_v50  ;;  %vm3003_vm12 = vcmp.lt.f32.partialorder %v7600_v56, -1.0  ;;  %vm3035_vm13 = vcmp.ge.f32.partialorder %v7600_v56, -1.0  ;;  %vm3043_vm15 = vcmp.lt.f32.partialorder %v7600_v56, -0.5  ;;  %v2893_v50 = vld [vmem:[#allocation14 + $0x8] sm:$0xff] }
 0x58a   : > { %v3826_v55 = vadd.f32 %v3818_v14, %v3810_v48  ;;  %v7616_v20 = vadd.f32 %v3626_v40, %v3602_v33  ;;  %vm3011_vm14 = vmand %vm2995_vm11, %vm3003_vm12  ;;  %vm3075_vm0 = vcmp.ge.f32.partialorder %v7600_v56, -0.5  ;;  %v7621_v25 = vsel %vm2971_vm10, 1.0, %v5825_v18  ;;  %4735 = vmatpush.msrb.mxu3 %v2893_v50 }
 0x58b   : > { %4442 = vmatmul.f32.gmra.mxu2 %v4114_v41  ;;  %vm3051_vm2 = vmand %vm3035_vm13, %vm3043_vm15  ;;  %vm3083_vm3 = vcmp.lt.f32.partialorder %v7600_v56, 0.0  ;;  %v5252_v44 = vadd.f32 2.0, %v7600_v56  ;;  %v3395_v19 = vsub.f32 -1.0, %v7600_v56  ;;  %v5180_v24 = vsel %vm3011_vm14, 1.0, %v5825_v18  ;;  %v4590_v41 = vld [vmem:[#allocation15 + $0x280] sm:$0xff] }
 0x58c   : > { %v4010_v51 = vmul.f32 %v4002_v16, %v3826_v55  ;;  %v3914_v2 = vmul.f32 %v7616_v20, %v3610_v29  ;;  %v5260_v14 = vadd.f32 1.5, %v7600_v56  ;;  %v5188_v26 = vsel %vm3051_vm2, 1.0, %v5825_v18  ;;  %vm7630_vm4 = vmand %vm3075_vm0, %vm3083_vm3  ;;  %v4525_v16 = vld [vmem:[#allocation15 + $0x208] sm:$0xff]  ;;  %4621 = vmatpush.msrb.mxu1 %v4590_v41 }
 0x58d   : > { %v3379_v60 = vmul.f32 2.0, %v5252_v44  ;;  %v3403_v46 = vmul.f32 2.0, %v3395_v19  ;;  %v7637_v12 = vsub.f32 -0.5, %v7600_v56  ;;  %v7642_v38 = vadd.f32 1.0, %v7600_v56  ;;  %4554 = vmatpush.msrb.mxu0 %v4525_v16 }
 0x58e   : > { %v4034_v53 = vadd.f32 %v4026_v35, %v4010_v51  ;;  %v7639_v59 = vadd.f32 %v3914_v2, %v3906_v9  ;;  %v3435_v29 = vmul.f32 2.0, %v5260_v14  ;;  %v3507_v58 = vsub.f32 0.0, %v7600_v56  ;;  %v2892_v35 = vld [vmem:[#allocation14] sm:$0xff] }
 0x58f   : > { %v3387_v23 = vmul.f32 %v7621_v25, %v3379_v60  ;;  %v3411_v33 = vmul.f32 %v5180_v24, %v3403_v46  ;;  %v3459_v34 = vmul.f32 2.0, %v7637_v12  ;;  %v5196_v9 = vsel %vm7630_vm4, 1.0, %v5825_v18  ;;  %4555 = vmatpush.msrb.mxu0 %v4524_v1  ;;  %4736 = vmatpush.msrb.mxu3 %v2892_v35 }
 0x590   : > { %8168 = vst [vmem:[#allocation25_spill] sm:$0xff] %v7639_v59  ;;  %4384 = vmatmul.f32.gmra.mxu1 %v4034_v53  ;;  %v4146_v13 = vmul.f32 %v4138_v39, %v7639_v59  ;;  %v3443_v48 = vmul.f32 %v5180_v24, %v3435_v29  ;;  %v3491_v40 = vmul.f32 2.0, %v7642_v38  ;;  %v3515_v2 = vmul.f32 2.0, %v3507_v58 }
 0x591   : > { %v3419_v55 = vadd.f32 %v3411_v33, %v3387_v23  ;;  %v3467_v51 = vmul.f32 %v5188_v26, %v3459_v34  ;;  %v4043_v60 = vmul.f32 0.6666667, %v5252_v44  ;;  %vm3115_vm5 = vcmp.ge.f32.partialorder %v7600_v56, 0.0 }
 0x592   : > { %v4154_v46 = vadd.f32 %v4146_v13, %v4130_v5  ;;  %v3499_v16 = vmul.f32 %v5188_v26, %v3491_v40  ;;  %vm3123_vm1 = vcmp.lt.f32.partialorder %v7600_v56, 0.5  ;;  %v3523_v61 = vmul.f32 %v5196_v9, %v3515_v2 }
 0x593   : > { %v3475_v39 = vadd.f32 %v3467_v51, %v3443_v48  ;;  %v3835_v50 = vmul.f32 %v5252_v44, %v3419_v55  ;;  %vm3131_vm6 = vmand %vm3115_vm5, %vm3123_vm1  ;;  %v7655_v24 = vadd.f32 0.5, %v7600_v56  ;;  %v4059_v53 = vmul.f32 0.6666667, %v3507_v58 }
 0x594   : > { %4508 = vmatmul.f32.gmra.mxu3 %v4154_v46  ;;  %v5204_v29 = vsel %vm3131_vm6, 1.0, %v5825_v18  ;;  %v3563_v10 = vsub.f32 0.5, %v7600_v56  ;;  %vm2915_vm7 = vcmp.ge.f32.partialorder %v7600_v56, -2.5  ;;  %v3531_v5 = vadd.f32 %v3523_v61, %v3499_v16 }
 0x595   : > { %v3843_v26 = vmul.f32 %v3475_v39, %v7637_v12  ;;  %v3859_v8 = vmul.f32 %v5260_v14, %v3475_v39  ;;  %v3547_v1 = vmul.f32 2.0, %v7655_v24  ;;  %v4083_v44 = vmul.f32 0.6666667, %v5260_v14 }
 0x596   : > { %v3571_v23 = vmul.f32 2.0, %v3563_v10  ;;  %vm2923_vm8 = vcmp.lt.f32.partialorder %v7600_v56, -2.0  ;;  %v5244_v33 = vadd.f32 2.5, %v7600_v56  ;;  %v3867_v35 = vmul.f32 %v3531_v5, %v3507_v58 }
 0x597   : > { %v3851_v34 = vadd.f32 %v3843_v26, %v3835_v50  ;;  %v3555_v13 = vmul.f32 %v5196_v9, %v3547_v1  ;;  %v4099_v48 = vmul.f32 0.6666667, %v3563_v10  ;;  %vm2931_vm9 = vmand %vm2915_vm7, %vm2923_vm8  ;;  %v3339_v2 = vsub.f32 -1.5, %v7600_v56 }
 0x598   : > { %v3579_v40 = vmul.f32 %v5204_v29, %v3571_v23  ;;  %v5164_v41 = vsel %vm2931_vm9, 1.0, %v5825_v18  ;;  %v3323_v51 = vmul.f32 2.0, %v5244_v33  ;;  %v3875_v46 = vadd.f32 %v3867_v35, %v3859_v8 }
 0x599   : > { %v4051_v16 = vmul.f32 %v4043_v60, %v3851_v34  ;;  %v3883_v39 = vmul.f32 %v7642_v38, %v3531_v5  ;;  %v3819_v14 = vmul.f32 %v3419_v55, %v3395_v19  ;;  %v3347_v50 = vmul.f32 2.0, %v3339_v2 }
 0x59a   : > { %v3587_v61 = vadd.f32 %v3579_v40, %v3555_v13  ;;  %v3331_v59 = vmul.f32 %v5164_v41, %v3323_v51  ;;  %v4019_v58 = vmul.f32 0.6666667, %v7637_v12  ;;  %v4067_v9 = vmul.f32 %v4059_v53, %v3875_v46 }
 0x59b   : > { %v4003_v26 = vmul.f32 0.6666667, %v5244_v33  ;;  %vm3155_vm10 = vcmp.ge.f32.partialorder %v7600_v56, 0.5  ;;  %vm3163_vm11 = vcmp.lt.f32.partialorder %v7600_v56, 1.0  ;;  %v4091_v23 = vmul.f32 %v4083_v44, %v3875_v46 }
 0x59c   : > { %v3891_v1 = vmul.f32 %v3587_v61, %v3563_v10  ;;  %v3355_v60 = vmul.f32 %v7621_v25, %v3347_v50  ;;  %vm3171_vm12 = vmand %vm3155_vm10, %vm3163_vm11  ;;  %v3595_v5 = vmul.f32 2.0, %v7600_v56  ;;  %v4075_v8 = vadd.f32 %v4067_v9, %v4051_v16  ;;  %v7680_v25 = vld [vmem:[#allocation17] sm:$0xff] }
 0x59d   : > { %v4027_v19 = vmul.f32 %v4019_v58, %v3851_v34  ;;  %v7675_v55 = vsel %vm3171_vm12, 1.0, %v5825_v18  ;;  %v3611_v12 = vsub.f32 1.0, %v7600_v56  ;;  %v3907_v13 = vmul.f32 %v7655_v24, %v3587_v61 }
 0x59e   : > { %v3899_v53 = vadd.f32 %v3891_v1, %v3883_v39  ;;  %v3363_v35 = vadd.f32 %v3355_v60, %v3331_v59  ;;  %v4123_v40 = vmul.f32 0.6666667, %v7642_v38  ;;  %4346 = vmatmul.f32.gmra.mxu0 %v4075_v8  ;;  %v3603_v10 = vmul.f32 %v5204_v29, %v3595_v5 }
 0x59f   : > { %v3619_v44 = vmul.f32 2.0, %v3611_v12  ;;  %vm3188_vm13 = vcmp.ge.f32.partialorder %v7680_v25, 1.0  ;;  %vm3196_vm14 = vcmp.lt.f32.partialorder %v7680_v25, 1.5  ;;  %v4139_v51 = vmul.f32 0.6666667, %v3611_v12 }
 0x5a0   : > { %v4107_v34 = vmul.f32 %v4099_v48, %v3899_v53  ;;  %v3811_v41 = vmul.f32 %v5244_v33, %v3363_v35  ;;  %vm3204_vm15 = vmand %vm3188_vm13, %vm3196_vm14  ;;  %v3660_v56 = vsub.f32 1.5, %v7680_v25  ;;  %v4131_v2 = vmul.f32 %v4123_v40, %v3899_v53 }
 0x5a1   : > { %v3627_v59 = vmul.f32 %v7675_v55, %v3619_v44  ;;  %v5213_v38 = vsel %vm3204_vm15, 1.0, %v5825_v18  ;;  %v4156_v29 = vmul.f32 0.6666667, %v7143_v57  ;;  %v3924_v61 = vmul.f32 %v7680_v25, %v7181_v43 }
 0x5a2   : > { %v4115_v46 = vadd.f32 %v4107_v34, %v4091_v23  ;;  %v3827_v16 = vadd.f32 %v3819_v14, %v3811_v41  ;;  %v3668_v39 = vmul.f32 2.0, %v3660_v56  ;;  %v4172_v33 = vmul.f32 0.6666667, %v3660_v56 }
 0x5a3   : > { %v7690_v50 = vadd.f32 %v3627_v59, %v3603_v10  ;;  %vm3228_vm0 = vcmp.ge.f32.partialorder %v7680_v25, 1.5  ;;  %vm3236_vm2 = vcmp.lt.f32.partialorder %v7680_v25, 2.0  ;;  %vm3268_vm4 = vcmp.ge.f32.partialorder %v7680_v25, 2.0 }
 0x5a4   : > { %4445 = vmatmul.f32.gmra.mxu2 %v4115_v46  ;;  %v4011_v48 = vmul.f32 %v4003_v26, %v3827_v16  ;;  %v3676_v58 = vmul.f32 %v5213_v38, %v3668_v39  ;;  %vm3244_vm3 = vmand %vm3228_vm0, %vm3236_vm2  ;;  %vm3276_vm5 = vcmp.lt.f32.partialorder %v7680_v25, 2.5  ;;  %v4164_v14 = vmul.f32 %v4156_v29, %v7207_v28 }
 0x5a5   : > { %v3915_v57 = vmul.f32 %v7690_v50, %v3611_v12  ;;  %vm3284_vm1 = vmand %vm3268_vm4, %vm3276_vm5  ;;  %v5285_v43 = vadd.f32 -1.0, %v7680_v25  ;;  %v3716_v9 = vsub.f32 2.0, %v7680_v25  ;;  %v5221_v26 = vsel %vm3244_vm3, 1.0, %v5825_v18 }
 0x5a6   : > { %v4035_v1 = vadd.f32 %v4027_v19, %v4011_v48  ;;  %v3684_v23 = vadd.f32 %v3676_v58, %v7183_v32  ;;  %v5293_v60 = vadd.f32 -1.5, %v7680_v25  ;;  %v3772_v12 = vsub.f32 2.5, %v7680_v25 }
 0x5a7   : > { %v7703_v5 = vadd.f32 %v3915_v57, %v3907_v13  ;;  %v3700_v8 = vmul.f32 2.0, %v5285_v43  ;;  %v3724_v53 = vmul.f32 2.0, %v3716_v9  ;;  %v5229_v35 = vsel %vm3284_vm1, 1.0, %v5825_v18 }
 0x5a8   : > { %4387 = vmatmul.f32.gmra.mxu1 %v4035_v1  ;;  %v3932_v28 = vmul.f32 %v3684_v23, %v3660_v56  ;;  %v3756_v40 = vmul.f32 2.0, %v5293_v60  ;;  %v3948_v10 = vmul.f32 %v7172_v63, %v3684_v23  ;;  %v3780_v34 = vmul.f32 2.0, %v3772_v12  ;;  %v7712_v1 = vld [vmem:[#allocation17 + $0x8] sm:$0xff] }
 0x5a9   : > { %v4147_v19 = vmul.f32 %v4139_v51, %v7703_v5  ;;  %v3708_v32 = vmul.f32 %v5213_v38, %v3700_v8  ;;  %v3732_v44 = vmul.f32 %v5221_v26, %v3724_v53  ;;  %v4236_v13 = vmul.f32 0.6666667, %v7172_v63 }
 0x5aa   : > { %v3940_v41 = vadd.f32 %v3932_v28, %v3924_v61  ;;  %v3764_v59 = vmul.f32 %v5221_v26, %v3756_v40  ;;  %v4252_v29 = vmul.f32 0.6666667, %v3772_v12  ;;  %v3788_v39 = vmul.f32 %v5229_v35, %v3780_v34 }
 0x5ab   : > { %v4155_v46 = vadd.f32 %v4147_v19, %v4131_v2  ;;  %v3740_v16 = vadd.f32 %v3732_v44, %v3708_v32  ;;  %v4196_v56 = vmul.f32 0.6666667, %v7680_v25  ;;  %v4212_v58 = vmul.f32 0.6666667, %v3716_v9 }
 0x5ac   : > { %v4180_v48 = vmul.f32 %v4172_v33, %v3940_v41  ;;  %v5149_v57 = vmul.f32 -1.442695, %v7680_v25  ;;  %vm3189_vm6 = vcmp.ge.f32.partialorder %v7712_v1, 1.0  ;;  %v3796_v51 = vadd.f32 %v3788_v39, %v3764_v59 }
 0x5ad   : > { %4511 = vmatmul.f32.gmra.mxu3 %v4155_v46  ;;  %v3956_v38 = vmul.f32 %v3740_v16, %v3716_v9  ;;  %v3972_v61 = vmul.f32 %v5285_v43, %v3740_v16  ;;  %vm3197_vm7 = vcmp.lt.f32.partialorder %v7712_v1, 1.5  ;;  %v5278_v2 = vadd.f32 -0.5, %v7712_v1 }
 0x5ae   : > { %v4188_v63 = vadd.f32 %v4180_v48, %v4164_v14  ;;  %5443 = vpow2.f32 %v5149_v57  ;;  %vm3205_vm8 = vmand %vm3189_vm6, %vm3197_vm7  ;;  %v3661_v33 = vsub.f32 1.5, %v7712_v1  ;;  %v3980_v26 = vmul.f32 %v3796_v51, %v3772_v12 }
 0x5af   : > { %v3964_v23 = vadd.f32 %v3956_v38, %v3948_v10  ;;  %v4204_v60 = vmul.f32 %v4196_v56, %v3940_v41  ;;  %v5214_v8 = vsel %vm3205_vm8, 1.0, %v5825_v18  ;;  %v3645_v53 = vmul.f32 2.0, %v5278_v2 }
 0x5b0   : > { %4556 = vmatmul.f32.vlgmr.msrb.gmra.mxu0 %v4188_v63  ;;  %v3669_v28 = vmul.f32 2.0, %v3661_v33  ;;  %v3925_v43 = vmul.f32 %v7712_v1, %v7256_v4  ;;  %v3988_v9 = vadd.f32 %v3980_v26, %v3972_v61  ;;  %vm3229_vm9 = vcmp.ge.f32.partialorder %v7712_v1, 1.5 }
 0x5b1   : > { %v4244_v35 = vmul.f32 %v4236_v13, %v3964_v23  ;;  %v4220_v14 = vmul.f32 %v4212_v58, %v3964_v23  ;;  %v3653_v40 = vmul.f32 %v7246_v17, %v3645_v53  ;;  %v4157_v10 = vmul.f32 0.6666667, %v7223_v30 }
 0x5b2   : > { %v3677_v19 = vmul.f32 %v5214_v8, %v3669_v28  ;;  %vm3237_vm10 = vcmp.lt.f32.partialorder %v7712_v1, 2.0  ;;  %v4260_v12 = vmul.f32 %v4252_v29, %v3988_v9  ;;  %vm3269_vm12 = vcmp.ge.f32.partialorder %v7712_v1, 2.0 }
 0x5b3   : > { %v4228_v32 = vadd.f32 %v4220_v14, %v4204_v60  ;;  %vm3245_vm11 = vmand %vm3229_vm9, %vm3237_vm10  ;;  %vm3277_vm13 = vcmp.lt.f32.partialorder %v7712_v1, 2.5  ;;  %v4173_v34 = vmul.f32 0.6666667, %v3661_v33  ;;  %v5286_v17 = vadd.f32 -1.0, %v7712_v1 }
 0x5b4   : > { %v5444_v4 = vpop.eup %5443  ;;  %v3685_v44 = vadd.f32 %v3677_v19, %v3653_v40  ;;  %vm7727_vm14 = vmand %vm3269_vm12, %vm3277_vm13  ;;  %v3717_v30 = vsub.f32 2.0, %v7712_v1  ;;  %v4268_v59 = vadd.f32 %v4260_v12, %v4244_v35  ;;  %v5222_v29 = vsel %vm3245_vm11, 1.0, %v5825_v18 }
 0x5b5   : > { %4622 = vmatmul.f32.vlgmr.msrb.gmra.mxu1 %v4228_v32  ;;  %v2756_v13 = vadd.f32 1.0, %v5444_v4  ;;  %v5294_v46 = vadd.f32 -1.5, %v7712_v1  ;;  %v3701_v39 = vmul.f32 2.0, %v5286_v17  ;;  %v3773_v48 = vsub.f32 2.5, %v7712_v1 }
 0x5b6   : > { %v3933_v16 = vmul.f32 %v3685_v44, %v3661_v33  ;;  %v3725_v56 = vmul.f32 2.0, %v3717_v30  ;;  %4688 = vmatmul.f32.vlgmr.msrb.gmra.mxu2 %v4268_v59  ;;  %v4165_v57 = vmul.f32 %v4157_v10, %v7279_v15  ;;  %v5230_v51 = vsel %vm7727_vm14, 1.0, %v5825_v18 }
 0x5b7   : > { %5445 = vrcp.f32 %v2756_v13  ;;  %v2773_v58 = vand.u32 2147483647, %v2756_v13  ;;  %v3709_v61 = vmul.f32 %v5214_v8, %v3701_v39  ;;  %v3757_v23 = vmul.f32 2.0, %v5294_v46 }
 0x5b8   : > { %v3941_v38 = vadd.f32 %v3933_v16, %v3925_v43  ;;  %v3733_v63 = vmul.f32 %v5222_v29, %v3725_v56  ;;  %vm2769_vm15 = vweird.f32 %v2756_v13  ;;  %v3781_v26 = vmul.f32 2.0, %v3773_v48 }
 0x5b9   : > { %v3765_v53 = vmul.f32 %v5222_v29, %v3757_v23  ;;  %v3949_v28 = vmul.f32 %v5278_v2, %v3685_v44  ;;  %v2775_v9 = vand.u32 2147483648, %v2756_v13  ;;  %v4237_v14 = vmul.f32 0.6666667, %v5278_v2 }
 0x5ba   : > { %v4181_v33 = vmul.f32 %v4173_v34, %v3941_v38  ;;  %v3741_v60 = vadd.f32 %v3733_v63, %v3709_v61  ;;  %v3789_v35 = vmul.f32 %v5230_v51, %v3781_v26  ;;  %v4197_v40 = vmul.f32 0.6666667, %v7712_v1  ;;  %v7746_v34 = vld [vmem:[#allocation17 + $0x10] sm:$0xff] }
 0x5bb   : > { %vm7741_vm0 = vcmp.eq.f32.partialorder %v2773_v58, 8.507059e+37  ;;  %v4213_v8 = vmul.f32 0.6666667, %v3717_v30  ;;  %v5150_v10 = vmul.f32 -1.442695, %v7712_v1  ;;  %vm3190_vm2 = vcmp.ge.f32.partialorder %v7746_v34, 1.0 }
 0x5bc   : > { %v4189_v19 = vadd.f32 %v4181_v33, %v4165_v57  ;;  %v3957_v43 = vmul.f32 %v3741_v60, %v3717_v30  ;;  %v3797_v32 = vadd.f32 %v3789_v35, %v3765_v53  ;;  %v3973_v4 = vmul.f32 %v5286_v17, %v3741_v60 }
 0x5bd   : > { %v5446_v12 = vpop.eup %5445  ;;  %vm3198_vm3 = vcmp.lt.f32.partialorder %v7746_v34, 1.5  ;;  %v4205_v41 = vmul.f32 %v4197_v40, %v3941_v38  ;;  %5447 = vpow2.f32 %v5150_v10  ;;  %v4253_v29 = vmul.f32 0.6666667, %v3773_v48 }
 0x5be   : > { %v2765_v2 = vmul.f32 %v5446_v12, %v2756_v13  ;;  %4559 = vmatmul.f32.gmra.mxu0 %v4189_v19  ;;  %v3965_v44 = vadd.f32 %v3957_v43, %v3949_v28  ;;  %vm3206_vm4 = vmand %vm3190_vm2, %vm3198_vm3  ;;  %v3981_v59 = vmul.f32 %v3797_v32, %v3773_v48  ;;  %v5279_v30 = vadd.f32 -0.5, %v7746_v34 }
 0x5bf   : > { %v3662_v46 = vsub.f32 1.5, %v7746_v34  ;;  %vm2770_vm5 = vweird.f32 %v5446_v12  ;;  %v5215_v39 = vsel %vm3206_vm4, 1.0, %v5825_v18  ;;  %v2776_v63 = vor.u32 1.1754944e-38, %v2775_v9 }
 0x5c0   : > { %v2766_v16 = vsub.f32 1.0, %v2765_v2  ;;  %v4221_v17 = vmul.f32 %v4213_v8, %v3965_v44  ;;  %v3989_v56 = vadd.f32 %v3981_v59, %v3973_v4  ;;  %v4245_v58 = vmul.f32 %v4237_v14, %v3965_v44  ;;  %vm7755_vm6 = vmor %vm2769_vm15, %vm2770_vm5 }
 0x5c1   : > { %v3646_v57 = vmul.f32 2.0, %v5279_v30  ;;  %v3670_v51 = vmul.f32 2.0, %v3662_v46  ;;  %vm3230_vm1 = vcmp.ge.f32.partialorder %v7746_v34, 1.5  ;;  %v4158_v60 = vmul.f32 0.6666667, %v7295_v6 }
 0x5c2   : > { %v2767_v61 = vmul.f32 %v5446_v12, %v2766_v16  ;;  %v4229_v38 = vadd.f32 %v4221_v17, %v4205_v41  ;;  %v4261_v23 = vmul.f32 %v4253_v29, %v3989_v56  ;;  %vm3238_vm7 = vcmp.lt.f32.partialorder %v7746_v34, 2.0 }
 0x5c3   : > { %v3654_v26 = vmul.f32 %v7317_v54, %v3646_v57  ;;  %v3678_v33 = vmul.f32 %v5215_v39, %v3670_v51  ;;  %v5448_v53 = vpop.eup %5447  ;;  %vm3270_vm8 = vcmp.ge.f32.partialorder %v7746_v34, 2.0  ;;  %vm3278_vm9 = vcmp.lt.f32.partialorder %v7746_v34, 2.5  ;;  %vm3246_vm10 = vmand %vm3230_vm1, %vm3238_vm7 }
 0x5c4   : > { %v2768_v28 = vadd.f32 %v5446_v12, %v2767_v61  ;;  %4625 = vmatmul.f32.gmra.mxu1 %v4229_v38  ;;  %v4269_v13 = vadd.f32 %v4261_v23, %v4245_v58  ;;  %v7764_v9 = vadd.f32 1.0, %v5448_v53  ;;  %v5287_v54 = vadd.f32 -1.0, %v7746_v34  ;;  %vm3286_vm11 = vmand %vm3270_vm8, %vm3278_vm9 }
 0x5c5   : > { %v3686_v35 = vadd.f32 %v3678_v33, %v3654_v26  ;;  %v3926_v14 = vmul.f32 %v7746_v34, %v7333_v7  ;;  %v3718_v40 = vsub.f32 2.0, %v7746_v34  ;;  %v5295_v19 = vadd.f32 -1.5, %v7746_v34 }
 0x5c6   : > { %v2772_v6 = vsel %vm7755_vm6, %v5446_v12, %v2768_v28  ;;  %4691 = vmatmul.f32.gmra.mxu2 %v4269_v13  ;;  %5449 = vrcp.f32 %v7764_v9  ;;  %v4174_v8 = vmul.f32 0.6666667, %v3662_v46  ;;  %v2788_v32 = vand.u32 2147483647, %v7764_v9 }
 0x5c7   : > { %v2777_v43 = vsel %vm7741_vm0, %v2776_v63, %v2772_v6  ;;  %v3934_v4 = vmul.f32 %v3686_v35, %v3662_v46  ;;  %v5223_v12 = vsel %vm3246_vm10, 1.0, %v5825_v18  ;;  %v4166_v7 = vmul.f32 %v4158_v60, %v7355_v3  ;;  %v7797_v60 = vld [vmem:[#allocation17 + $0x18] sm:$0xff] }
 0x5c8   : > { %v2884_v10 = vmul.f32 %v7680_v25, %v2777_v43  ;;  %v3702_v15 = vmul.f32 2.0, %v5287_v54  ;;  %v3726_v2 = vmul.f32 2.0, %v3718_v40  ;;  %v3758_v44 = vmul.f32 2.0, %v5295_v19 }
 0x5c9   : > { %vm2784_vm12 = vweird.f32 %v7764_v9  ;;  %v2790_v25 = vand.u32 2147483648, %v7764_v9  ;;  %v3942_v41 = vadd.f32 %v3934_v4, %v3926_v14  ;;  %v3774_v59 = vsub.f32 2.5, %v7746_v34 }
 0x5ca   : > { %4737 = vmatmul.f32.vlgmr.msrb.gmra.mxu3 %v2884_v10  ;;  %v5231_v29 = vsel %vm3286_vm11, 1.0, %v5825_v18  ;;  %v3710_v46 = vmul.f32 %v5215_v39, %v3702_v15  ;;  %v3734_v16 = vmul.f32 %v5223_v12, %v3726_v2  ;;  %v3950_v17 = vmul.f32 %v5279_v30, %v3686_v35 }
 0x5cb   : > { %vm7790_vm13 = vcmp.eq.f32.partialorder %v2788_v32, 8.507059e+37  ;;  %v4182_v3 = vmul.f32 %v4174_v8, %v3942_v41  ;;  %v3766_v58 = vmul.f32 %v5223_v12, %v3758_v44  ;;  %v3782_v57 = vmul.f32 2.0, %v3774_v59 }
 0x5cc   : > { %v4238_v51 = vmul.f32 0.6666667, %v5279_v30  ;;  %v5450_v61 = vpop.eup %5449  ;;  %v3742_v63 = vadd.f32 %v3734_v16, %v3710_v46  ;;  %v4198_v38 = vmul.f32 0.6666667, %v7746_v34  ;;  %v4214_v48 = vmul.f32 0.6666667, %v3718_v40 }
 0x5cd   : > { %v5151_v23 = vmul.f32 -1.442695, %v7746_v34  ;;  %v2780_v26 = vmul.f32 %v5450_v61, %v7764_v9  ;;  %v4190_v39 = vadd.f32 %v4182_v3, %v4166_v7  ;;  %v3790_v33 = vmul.f32 %v5231_v29, %v3782_v57 }
 0x5ce   : > { %vm3191_vm14 = vcmp.ge.f32.partialorder %v7797_v60, 1.0  ;;  %vm2785_vm15 = vweird.f32 %v5450_v61  ;;  %v3958_v53 = vmul.f32 %v3742_v63, %v3718_v40  ;;  %v3974_v28 = vmul.f32 %v5287_v54, %v3742_v63 }
 0x5cf   : > { %5451 = vpow2.f32 %v5151_v23  ;;  %v2781_v30 = vsub.f32 1.0, %v2780_v26  ;;  %4562 = vmatmul.f32.gmra.mxu0 %v4190_v39  ;;  %v3798_v13 = vadd.f32 %v3790_v33, %v3766_v58  ;;  %vm3199_vm0 = vcmp.lt.f32.partialorder %v7797_v60, 1.5  ;;  %vm7807_vm3 = vmor %vm2784_vm12, %vm2785_vm15 }
 0x5d0   : > { %v5280_v35 = vadd.f32 -0.5, %v7797_v60  ;;  %v3966_v6 = vadd.f32 %v3958_v53, %v3950_v17  ;;  %v4254_v14 = vmul.f32 0.6666667, %v3774_v59  ;;  %v4206_v19 = vmul.f32 %v4198_v38, %v3942_v41  ;;  %vm3207_vm2 = vmand %vm3191_vm14, %vm3199_vm0 }
 0x5d1   : > { %v3663_v43 = vsub.f32 1.5, %v7797_v60  ;;  %v2782_v8 = vmul.f32 %v5450_v61, %v2781_v30  ;;  %v3982_v10 = vmul.f32 %v3798_v13, %v3774_v59  ;;  %v5216_v32 = vsel %vm3207_vm2, 1.0, %v5825_v18 }
 0x5d2   : > { %v3647_v40 = vmul.f32 2.0, %v5280_v35  ;;  %v2791_v4 = vor.u32 1.1754944e-38, %v2790_v25  ;;  %v4222_v12 = vmul.f32 %v4214_v48, %v3966_v6  ;;  %v4159_v15 = vmul.f32 0.6666667, %v7367_v45 }
 0x5d3   : > { %v3671_v7 = vmul.f32 2.0, %v3663_v43  ;;  %v2783_v2 = vadd.f32 %v5450_v61, %v2782_v8  ;;  %v3990_v44 = vadd.f32 %v3982_v10, %v3974_v28  ;;  %v4246_v41 = vmul.f32 %v4238_v51, %v3966_v6 }
 0x5d4   : > { %v3655_v59 = vmul.f32 %v7389_v21, %v3647_v40  ;;  %v4230_v46 = vadd.f32 %v4222_v12, %v4206_v19  ;;  %vm3231_vm4 = vcmp.ge.f32.partialorder %v7797_v60, 1.5  ;;  %vm3239_vm5 = vcmp.lt.f32.partialorder %v7797_v60, 2.0 }
 0x5d5   : > { %v5452_v29 = vpop.eup %5451  ;;  %v3679_v16 = vmul.f32 %v5216_v32, %v3671_v7  ;;  %v2787_v9 = vsel %vm7807_vm3, %v5450_v61, %v2783_v2  ;;  %v4262_v25 = vmul.f32 %v4254_v14, %v3990_v44  ;;  %vm3247_vm1 = vmand %vm3231_vm4, %vm3239_vm5  ;;  %vm3271_vm6 = vcmp.ge.f32.partialorder %v7797_v60, 2.0 }
 0x5d6   : > { %v7817_v17 = vadd.f32 1.0, %v5452_v29  ;;  %v2792_v45 = vsel %vm7790_vm13, %v2791_v4, %v2787_v9  ;;  %4628 = vmatmul.f32.gmra.mxu1 %v4230_v46  ;;  %v3927_v3 = vmul.f32 %v7797_v60, %v7402_v52  ;;  %vm3279_vm7 = vcmp.lt.f32.partialorder %v7797_v60, 2.5 }
 0x5d7   : > { %v3687_v21 = vadd.f32 %v3679_v16, %v3655_v59  ;;  %v2885_v58 = vmul.f32 %v7712_v1, %v2792_v45  ;;  %v4270_v57 = vadd.f32 %v4262_v25, %v4246_v41  ;;  %v4167_v51 = vmul.f32 %v4159_v15, %v7426_v47  ;;  %vm3287_vm8 = vmand %vm3271_vm6, %vm3279_vm7 }
 0x5d8   : > { %5453 = vrcp.f32 %v7817_v17  ;;  %vm2799_vm9 = vweird.f32 %v7817_v17  ;;  %v4175_v56 = vmul.f32 0.6666667, %v3663_v43  ;;  %v5224_v63 = vsel %vm3247_vm1, 1.0, %v5825_v18 }
 0x5d9   : > { %v3935_v61 = vmul.f32 %v3687_v21, %v3663_v43  ;;  %4740 = vmatmul.f32.gmra.mxu3 %v2885_v58  ;;  %4694 = vmatmul.f32.gmra.mxu2 %v4270_v57  ;;  %v5288_v52 = vadd.f32 -1.0, %v7797_v60  ;;  %v3719_v38 = vsub.f32 2.0, %v7797_v60  ;;  %v5296_v1 = vadd.f32 -1.5, %v7797_v60 }
 0x5da   : > { %v3775_v48 = vsub.f32 2.5, %v7797_v60  ;;  %v2803_v23 = vand.u32 2147483647, %v7817_v17  ;;  %v2805_v47 = vand.u32 2147483648, %v7817_v17  ;;  %v5232_v39 = vsel %vm3287_vm8, 1.0, %v5825_v18 }
 0x5db   : > { %v3943_v26 = vadd.f32 %v3935_v61, %v3927_v3  ;;  %v3703_v33 = vmul.f32 2.0, %v5288_v52  ;;  %v3727_v53 = vmul.f32 2.0, %v3719_v38  ;;  %v3759_v28 = vmul.f32 2.0, %v5296_v1 }
 0x5dc   : > { %v3783_v30 = vmul.f32 2.0, %v3775_v48  ;;  %v3951_v6 = vmul.f32 %v5280_v35, %v3687_v21  ;;  %v4239_v14 = vmul.f32 0.6666667, %v5280_v35  ;;  %v4255_v19 = vmul.f32 0.6666667, %v3775_v48  ;;  %v7840_v35 = vld [vmem:[#allocation17 + $0x20] sm:$0xff] }
 0x5dd   : > { %v4183_v13 = vmul.f32 %v4175_v56, %v3943_v26  ;;  %v3711_v8 = vmul.f32 %v5216_v32, %v3703_v33  ;;  %v3735_v10 = vmul.f32 %v5224_v63, %v3727_v53  ;;  %v3767_v40 = vmul.f32 %v5224_v63, %v3759_v28 }
 0x5de   : > { %v5454_v43 = vpop.eup %5453  ;;  %v3791_v54 = vmul.f32 %v5232_v39, %v3783_v30  ;;  %v4199_v7 = vmul.f32 0.6666667, %v7797_v60  ;;  %v4215_v44 = vmul.f32 0.6666667, %v3719_v38  ;;  %v5152_v41 = vmul.f32 -1.442695, %v7797_v60 }
 0x5df   : > { %v2795_v4 = vmul.f32 %v5454_v43, %v7817_v17  ;;  %vm2800_vm10 = vweird.f32 %v5454_v43  ;;  %v4191_v12 = vadd.f32 %v4183_v13, %v4167_v51  ;;  %v3743_v15 = vadd.f32 %v3735_v10, %v3711_v8 }
 0x5e0   : > { %v3799_v2 = vadd.f32 %v3791_v54, %v3767_v40  ;;  %vm3192_vm11 = vcmp.ge.f32.partialorder %v7840_v35, 1.0  ;;  %vm3200_vm12 = vcmp.lt.f32.partialorder %v7840_v35, 1.5  ;;  %v7845_v32 = vadd.f32 -0.5, %v7840_v35  ;;  %vm7852_vm14 = vmor %vm2799_vm9, %vm2800_vm10 }
 0x5e1   : > { %v2796_v59 = vsub.f32 1.0, %v2795_v4  ;;  %4565 = vmatmul.f32.gmra.mxu0 %v4191_v12  ;;  %v3959_v29 = vmul.f32 %v3743_v15, %v3719_v38  ;;  %v3975_v46 = vmul.f32 %v5288_v52, %v3743_v15  ;;  %5455 = vpow2.f32 %v5152_v41  ;;  %vm3208_vm13 = vmand %vm3192_vm11, %vm3200_vm12 }
 0x5e2   : > { %v3983_v16 = vmul.f32 %v3799_v2, %v3775_v48  ;;  %v2806_v25 = vor.u32 1.1754944e-38, %v2805_v47  ;;  %v3648_v45 = vmul.f32 2.0, %v7845_v32  ;;  %v3664_v21 = vsub.f32 1.5, %v7840_v35 }
 0x5e3   : > { %v2797_v9 = vmul.f32 %v5454_v43, %v2796_v59  ;;  %v3967_v58 = vadd.f32 %v3959_v29, %v3951_v6  ;;  %v4207_v51 = vmul.f32 %v4199_v7, %v3943_v26  ;;  %v5217_v61 = vsel %vm3208_vm13, 1.0, %v5825_v18 }
 0x5e4   : > { %v3991_v57 = vadd.f32 %v3983_v16, %v3975_v46  ;;  %vm2804_vm15 = vcmp.eq.f32.partialorder %v2803_v23, 8.507059e+37  ;;  %v3656_v63 = vmul.f32 %v7462_v62, %v3648_v45  ;;  %v3672_v52 = vmul.f32 2.0, %v3664_v21 }
 0x5e5   : > { %v2798_v56 = vadd.f32 %v5454_v43, %v2797_v9  ;;  %v4247_v38 = vmul.f32 %v4239_v14, %v3967_v58  ;;  %v4223_v48 = vmul.f32 %v4215_v44, %v3967_v58  ;;  %v3928_v17 = vmul.f32 %v7840_v35, %v7473_v36  ;;  %v7891_v58 = vld [vmem:[#allocation17 + $0x28] sm:$0xff] }
 0x5e6   : > { %v4263_v1 = vmul.f32 %v4255_v19, %v3991_v57  ;;  %v3680_v39 = vmul.f32 %v5217_v61, %v3672_v52  ;;  %vm3232_vm0 = vcmp.ge.f32.partialorder %v7840_v35, 1.5  ;;  %vm3240_vm2 = vcmp.lt.f32.partialorder %v7840_v35, 2.0 }
 0x5e7   : > { %v2802_v47 = vsel %vm7852_vm14, %v5454_v43, %v2798_v56  ;;  %v5456_v26 = vpop.eup %5455  ;;  %v4231_v53 = vadd.f32 %v4223_v48, %v4207_v51  ;;  %vm3248_vm3 = vmand %vm3232_vm0, %vm3240_vm2  ;;  %vm3272_vm4 = vcmp.ge.f32.partialorder %v7840_v35, 2.0  ;;  %v4160_v30 = vmul.f32 0.6666667, %v7439_v42 }
 0x5e8   : > { %v2807_v33 = vsel %vm2804_vm15, %v2806_v25, %v2802_v47  ;;  %v4271_v23 = vadd.f32 %v4263_v1, %v4247_v38  ;;  %v7866_v28 = vadd.f32 1.0, %v5456_v26  ;;  %v3688_v36 = vadd.f32 %v3680_v39, %v3656_v63 }
 0x5e9   : > { %v2886_v62 = vmul.f32 %v7746_v34, %v2807_v33  ;;  %4631 = vmatmul.f32.gmra.mxu1 %v4231_v53  ;;  %vm3280_vm5 = vcmp.lt.f32.partialorder %v7840_v35, 2.5  ;;  %v5289_v13 = vadd.f32 -1.0, %v7840_v35  ;;  %v3720_v6 = vsub.f32 2.0, %v7840_v35 }
 0x5ea   : > { %4697 = vmatmul.f32.gmra.mxu2 %v4271_v23  ;;  %v5297_v14 = vadd.f32 -1.5, %v7840_v35  ;;  %5457 = vrcp.f32 %v7866_v28  ;;  %v4176_v19 = vmul.f32 0.6666667, %v3664_v21  ;;  %v5225_v34 = vsel %vm3248_vm3, 1.0, %v5825_v18  ;;  %vm3288_vm1 = vmand %vm3272_vm4, %vm3280_vm5 }
 0x5eb   : > { %4743 = vmatmul.f32.gmra.mxu3 %v2886_v62  ;;  %v2818_v42 = vand.u32 2147483647, %v7866_v28  ;;  %v3936_v43 = vmul.f32 %v3688_v36, %v3664_v21  ;;  %v3704_v8 = vmul.f32 2.0, %v5289_v13  ;;  %v3728_v10 = vmul.f32 2.0, %v3720_v6 }
 0x5ec   : > { %vm2814_vm6 = vweird.f32 %v7866_v28  ;;  %v4168_v40 = vmul.f32 %v4160_v30, %v7498_v31  ;;  %v3760_v54 = vmul.f32 2.0, %v5297_v14  ;;  %v3776_v4 = vsub.f32 2.5, %v7840_v35 }
 0x5ed   : > { %v3944_v12 = vadd.f32 %v3936_v43, %v3928_v17  ;;  %v5233_v7 = vsel %vm3288_vm1, 1.0, %v5825_v18  ;;  %v3712_v15 = vmul.f32 %v5217_v61, %v3704_v8  ;;  %v3736_v2 = vmul.f32 %v5225_v34, %v3728_v10 }
 0x5ee   : > { %v2820_v44 = vand.u32 2147483648, %v7866_v28  ;;  %v3768_v41 = vmul.f32 %v5225_v34, %v3760_v54  ;;  %v3784_v59 = vmul.f32 2.0, %v3776_v4  ;;  %v3952_v29 = vmul.f32 %v7845_v32, %v3688_v36 }
 0x5ef   : > { %vm7884_vm7 = vcmp.eq.f32.partialorder %v2818_v42, 8.507059e+37  ;;  %v4184_v16 = vmul.f32 %v4176_v19, %v3944_v12  ;;  %v3744_v31 = vadd.f32 %v3736_v2, %v3712_v15  ;;  %v4240_v9 = vmul.f32 0.6666667, %v7845_v32 }
 0x5f0   : > { %v4200_v25 = vmul.f32 0.6666667, %v7840_v35  ;;  %v5458_v45 = vpop.eup %5457  ;;  %v3792_v21 = vmul.f32 %v5233_v7, %v3784_v59  ;;  %v5153_v3 = vmul.f32 -1.442695, %v7840_v35  ;;  %vm3193_vm8 = vcmp.ge.f32.partialorder %v7891_v58, 1.0 }
 0x5f1   : > { %vm3201_vm9 = vcmp.lt.f32.partialorder %v7891_v58, 1.5  ;;  %v2810_v57 = vmul.f32 %v5458_v45, %v7866_v28  ;;  %v4192_v51 = vadd.f32 %v4184_v16, %v4168_v40  ;;  %v3960_v61 = vmul.f32 %v3744_v31, %v3720_v6 }
 0x5f2   : > { %v4216_v56 = vmul.f32 0.6666667, %v3720_v6  ;;  %vm2815_vm10 = vweird.f32 %v5458_v45  ;;  %v3800_v63 = vadd.f32 %v3792_v21, %v3768_v41  ;;  %v3976_v32 = vmul.f32 %v5289_v13, %v3744_v31  ;;  %vm3209_vm11 = vmand %vm3193_vm8, %vm3201_vm9 }
 0x5f3   : > { %5459 = vpow2.f32 %v5153_v3  ;;  %v2811_v52 = vsub.f32 1.0, %v2810_v57  ;;  %4568 = vmatmul.f32.gmra.mxu0 %v4192_v51  ;;  %v3968_v38 = vadd.f32 %v3960_v61, %v3952_v29  ;;  %v4208_v1 = vmul.f32 %v4200_v25, %v3944_v12  ;;  %vm7902_vm12 = vmor %vm2814_vm6, %vm2815_vm10 }
 0x5f4   : > { %v5282_v48 = vadd.f32 -0.5, %v7891_v58  ;;  %v2821_v17 = vor.u32 1.1754944e-38, %v2820_v44  ;;  %v3984_v47 = vmul.f32 %v3800_v63, %v3776_v4  ;;  %v4256_v39 = vmul.f32 0.6666667, %v3776_v4 }
 0x5f5   : > { %v3665_v26 = vsub.f32 1.5, %v7891_v58  ;;  %v2812_v33 = vmul.f32 %v5458_v45, %v2811_v52  ;;  %v4224_v23 = vmul.f32 %v4216_v56, %v3968_v38  ;;  %v5218_v53 = vsel %vm3209_vm11, 1.0, %v5825_v18 }
 0x5f6   : > { %v3649_v62 = vmul.f32 2.0, %v5282_v48  ;;  %v3992_v30 = vadd.f32 %v3984_v47, %v3976_v32  ;;  %v4248_v13 = vmul.f32 %v4240_v9, %v3968_v38  ;;  %v4161_v14 = vmul.f32 0.6666667, %v7511_v27 }
 0x5f7   : > { %v3673_v6 = vmul.f32 2.0, %v3665_v26  ;;  %v2813_v19 = vadd.f32 %v5458_v45, %v2812_v33  ;;  %v4232_v34 = vadd.f32 %v4224_v23, %v4208_v1  ;;  %vm3233_vm13 = vcmp.ge.f32.partialorder %v7891_v58, 1.5 }
 0x5f8   : > { %v3657_v42 = vmul.f32 %v7534_v22, %v3649_v62  ;;  %v4264_v8 = vmul.f32 %v4256_v39, %v3992_v30  ;;  %vm3241_vm14 = vcmp.lt.f32.partialorder %v7891_v58, 2.0  ;;  %vm3273_vm15 = vcmp.ge.f32.partialorder %v7891_v58, 2.0 }
 0x5f9   : > { %v5460_v43 = vpop.eup %5459  ;;  %v3681_v10 = vmul.f32 %v5218_v53, %v3673_v6  ;;  %v2817_v28 = vsel %vm7902_vm12, %v5458_v45, %v2813_v19  ;;  %4634 = vmatmul.f32.gmra.mxu1 %v4232_v34  ;;  %vm3281_vm0 = vcmp.lt.f32.partialorder %v7891_v58, 2.5  ;;  %v5290_v27 = vadd.f32 -1.0, %v7891_v58  ;;  %vm3249_vm2 = vmand %vm3233_vm13, %vm3241_vm14 }
 0x5fa   : > { %v7913_v40 = vadd.f32 1.0, %v5460_v43  ;;  %v2822_v22 = vsel %vm7884_vm7, %v2821_v17, %v2817_v28  ;;  %v4272_v54 = vadd.f32 %v4264_v8, %v4248_v13  ;;  %v3929_v12 = vmul.f32 %v7891_v58, %v7544_v49  ;;  %vm3289_vm3 = vmand %vm3273_vm15, %vm3281_vm0 }
 0x5fb   : > { %v3689_v4 = vadd.f32 %v3681_v10, %v3657_v42  ;;  %v2887_v7 = vmul.f32 %v7797_v60, %v2822_v22  ;;  %v4169_v15 = vmul.f32 %v4161_v14, %v7567_v0  ;;  %v4177_v2 = vmul.f32 0.6666667, %v3665_v26 }
 0x5fc   : > { %5461 = vrcp.f32 %v7913_v40  ;;  %4700 = vmatmul.f32.gmra.mxu2 %v4272_v54  ;;  %v2833_v44 = vand.u32 2147483647, %v7913_v40  ;;  %v2835_v41 = vand.u32 2147483648, %v7913_v40  ;;  %v3705_v49 = vmul.f32 2.0, %v5290_v27 }
 0x5fd   : > { %v3937_v59 = vmul.f32 %v3689_v4, %v3665_v26  ;;  %4746 = vmatmul.f32.gmra.mxu3 %v2887_v7  ;;  %v5226_v29 = vsel %vm3249_vm2, 1.0, %v5825_v18  ;;  %v3721_v60 = vsub.f32 2.0, %v7891_v58  ;;  %v5298_v46 = vadd.f32 -1.5, %v7891_v58 }
 0x5fe   : > { %v3777_v0 = vsub.f32 2.5, %v7891_v58  ;;  %vm2829_vm4 = vweird.f32 %v7913_v40  ;;  %v2836_v16 = vor.u32 1.1754944e-38, %v2835_v41  ;;  %v5234_v9 = vsel %vm3289_vm3, 1.0, %v5825_v18 }
 0x5ff   : > { %v3945_v31 = vadd.f32 %v3937_v59, %v3929_v12  ;;  %v3713_v25 = vmul.f32 %v5218_v53, %v3705_v49  ;;  %v3729_v45 = vmul.f32 2.0, %v3721_v60  ;;  %v3761_v21 = vmul.f32 2.0, %v5298_v46  ;;  %v7943_v53 = vld [vmem:[#allocation17 + $0x30] sm:$0xff] }
 0x600   : > { %v3785_v3 = vmul.f32 2.0, %v3777_v0  ;;  %vm7936_vm5 = vcmp.eq.f32.partialorder %v2833_v44, 8.507059e+37  ;;  %v3953_v61 = vmul.f32 %v5282_v48, %v3689_v4  ;;  %v4241_v56 = vmul.f32 0.6666667, %v5282_v48 }
 0x601   : > { %v4185_v51 = vmul.f32 %v4177_v2, %v3945_v31  ;;  %v4257_v63 = vmul.f32 0.6666667, %v3777_v0  ;;  %v3737_v52 = vmul.f32 %v5226_v29, %v3729_v45  ;;  %v3769_v38 = vmul.f32 %v5226_v29, %v3761_v21 }
 0x602   : > { %v5462_v32 = vpop.eup %5461  ;;  %v3793_v1 = vmul.f32 %v5234_v9, %v3785_v3  ;;  %v5154_v17 = vmul.f32 -1.442695, %v7891_v58  ;;  %v4201_v26 = vmul.f32 0.6666667, %v7891_v58  ;;  %vm3194_vm6 = vcmp.ge.f32.partialorder %v7943_v53, 1.0 }
 0x603   : > { %v2825_v47 = vmul.f32 %v5462_v32, %v7913_v40  ;;  %vm2830_vm1 = vweird.f32 %v5462_v32  ;;  %v4193_v39 = vadd.f32 %v4185_v51, %v4169_v15  ;;  %v3745_v33 = vadd.f32 %v3737_v52, %v3713_v25 }
 0x604   : > { %v3801_v23 = vadd.f32 %v3793_v1, %v3769_v38  ;;  %5463 = vpow2.f32 %v5154_v17  ;;  %vm3202_vm7 = vcmp.lt.f32.partialorder %v7943_v53, 1.5  ;;  %v7948_v62 = vadd.f32 -0.5, %v7943_v53  ;;  %vm7956_vm9 = vmor %vm2829_vm4, %vm2830_vm1 }
 0x605   : > { %v2826_v48 = vsub.f32 1.0, %v2825_v47  ;;  %4571 = vmatmul.f32.gmra.mxu0 %v4193_v39  ;;  %v3666_v36 = vsub.f32 1.5, %v7943_v53  ;;  %v3961_v30 = vmul.f32 %v3745_v33, %v3721_v60  ;;  %v3977_v13 = vmul.f32 %v5290_v27, %v3745_v33  ;;  %vm3210_vm8 = vmand %vm3194_vm6, %vm3202_vm7 }
 0x606   : > { %v3985_v6 = vmul.f32 %v3801_v23, %v3777_v0  ;;  %v4217_v14 = vmul.f32 0.6666667, %v3721_v60  ;;  %v5219_v34 = vsel %vm3210_vm8, 1.0, %v5825_v18  ;;  %v3650_v42 = vmul.f32 2.0, %v7948_v62 }
 0x607   : > { %v2827_v19 = vmul.f32 %v5462_v32, %v2826_v48  ;;  %v3674_v43 = vmul.f32 2.0, %v3666_v36  ;;  %v3969_v10 = vadd.f32 %v3961_v30, %v3953_v61  ;;  %v4209_v22 = vmul.f32 %v4201_v26, %v3945_v31  ;;  %v8189_v31 = vld [vmem:[#allocation25_spill] sm:$0xff] }
 0x608   : > { %v3993_v28 = vadd.f32 %v3985_v6, %v3977_v13  ;;  %v3930_v27 = vmul.f32 %v7943_v53, %v7616_v20  ;;  %v3658_v4 = vmul.f32 %v7606_v37, %v3650_v42  ;;  %v4162_v7 = vmul.f32 0.6666667, %v7583_v11 }
 0x609   : > { %v2828_v54 = vadd.f32 %v5462_v32, %v2827_v19  ;;  %v3682_v12 = vmul.f32 %v5219_v34, %v3674_v43  ;;  %v4249_v2 = vmul.f32 %v4241_v56, %v3969_v10  ;;  %v4225_v40 = vmul.f32 %v4217_v14, %v3969_v10  ;;  %v7991_v43 = vld [vmem:[#allocation17 + $0x38] sm:$0xff] }
 0x60a   : > { %v5464_v15 = vpop.eup %5463  ;;  %v4265_v44 = vmul.f32 %v4257_v63, %v3993_v28  ;;  %vm3234_vm10 = vcmp.ge.f32.partialorder %v7943_v53, 1.5  ;;  %vm3242_vm11 = vcmp.lt.f32.partialorder %v7943_v53, 2.0  ;;  %vm3274_vm12 = vcmp.ge.f32.partialorder %v7943_v53, 2.0 }
 0x60b   : > { %v2832_v41 = vsel %vm7956_vm9, %v5462_v32, %v2828_v54  ;;  %v7967_v59 = vadd.f32 1.0, %v5464_v15  ;;  %v3690_v49 = vadd.f32 %v3682_v12, %v3658_v4  ;;  %v4233_v29 = vadd.f32 %v4225_v40, %v4209_v22  ;;  %vm3250_vm13 = vmand %vm3234_vm10, %vm3242_vm11 }
 0x60c   : > { %v2837_v37 = vsel %vm7936_vm5, %v2836_v16, %v2832_v41  ;;  %v4273_v20 = vadd.f32 %v4265_v44, %v4249_v2  ;;  %v4178_v60 = vmul.f32 0.6666667, %v3666_v36  ;;  %v4170_v9 = vmul.f32 %v4162_v7, %v8189_v31 }
 0x60d   : > { %v2888_v11 = vmul.f32 %v7840_v35, %v2837_v37  ;;  %5465 = vrcp.f32 %v7967_v59  ;;  %4637 = vmatmul.f32.gmra.mxu1 %v4233_v29  ;;  %v2850_v46 = vand.u32 2147483648, %v7967_v59  ;;  %v3938_v0 = vmul.f32 %v3690_v49, %v3666_v36 }
 0x60e   : > { %4703 = vmatmul.f32.gmra.mxu2 %v4273_v20  ;;  %vm3282_vm14 = vcmp.lt.f32.partialorder %v7943_v53, 2.5  ;;  %vm2844_vm15 = vweird.f32 %v7967_v59  ;;  %v5291_v16 = vadd.f32 -1.0, %v7943_v53  ;;  %v3722_v35 = vsub.f32 2.0, %v7943_v53 }
 0x60f   : > { %4749 = vmatmul.f32.gmra.mxu3 %v2888_v11  ;;  %vm3290_vm0 = vmand %vm3274_vm12, %vm3282_vm14  ;;  %v5299_v25 = vadd.f32 -1.5, %v7943_v53  ;;  %v2848_v45 = vand.u32 2147483647, %v7967_v59  ;;  %v3946_v21 = vadd.f32 %v3938_v0, %v3930_v27  ;;  %v5227_v3 = vsel %vm3250_vm13, 1.0, %v5825_v18 }
 0x610   : > { %v3778_v57 = vsub.f32 2.5, %v7943_v53  ;;  %v5235_v51 = vsel %vm3290_vm0, 1.0, %v5825_v18  ;;  %v3706_v61 = vmul.f32 2.0, %v5291_v16  ;;  %v3730_v56 = vmul.f32 2.0, %v3722_v35 }
 0x611   : > { %v3762_v63 = vmul.f32 2.0, %v5299_v25  ;;  %v2851_v32 = vor.u32 1.1754944e-38, %v2850_v46  ;;  %v4186_v52 = vmul.f32 %v4178_v60, %v3946_v21  ;;  %v3954_v1 = vmul.f32 %v7948_v62, %v3690_v49 }
 0x612   : > { %v3786_v38 = vmul.f32 2.0, %v3778_v57  ;;  %v3714_v47 = vmul.f32 %v5219_v34, %v3706_v61  ;;  %v3738_v39 = vmul.f32 %v5227_v3, %v3730_v56  ;;  %v4242_v33 = vmul.f32 0.6666667, %v7948_v62 }
 0x613   : > { %v5466_v17 = vpop.eup %5465  ;;  %v3770_v26 = vmul.f32 %v5227_v3, %v3762_v63  ;;  %v4194_v48 = vadd.f32 %v4186_v52, %v4170_v9  ;;  %v4202_v30 = vmul.f32 0.6666667, %v7943_v53  ;;  %v4218_v6 = vmul.f32 0.6666667, %v3722_v35 }
 0x614   : > { %v2840_v23 = vmul.f32 %v5466_v17, %v7967_v59  ;;  %v3794_v36 = vmul.f32 %v5235_v51, %v3786_v38  ;;  %vm2845_vm2 = vweird.f32 %v5466_v17  ;;  %v3746_v13 = vadd.f32 %v3738_v39, %v3714_v47  ;;  %v8033_v47 = vpop.f32.mrf.mxu0  ;;  %v8035_v39 = vpop.f32.mrf.mxu1 }
 0x615   : > { %v5155_v14 = vmul.f32 -1.442695, %v7943_v53  ;;  %4574 = vmatmul.f32.gmra.mxu0 %v4194_v48  ;;  %vm3195_vm3 = vcmp.ge.f32.partialorder %v7991_v43, 1.0  ;;  %vm3203_vm4 = vcmp.lt.f32.partialorder %v7991_v43, 1.5  ;;  %v7996_v8 = vadd.f32 -0.5, %v7991_v43  ;;  %vm8002_vm1 = vmor %vm2844_vm15, %vm2845_vm2  ;;  %v8039_v48 = vpop.f32.mrf.mxu2 }
 0x616   : > { %v2841_v19 = vsub.f32 1.0, %v2840_v23  ;;  %v3802_v42 = vadd.f32 %v3794_v36, %v3770_v26  ;;  %v3962_v62 = vmul.f32 %v3746_v13, %v3722_v35  ;;  %v3978_v34 = vmul.f32 %v5291_v16, %v3746_v13  ;;  %vm3211_vm5 = vmand %vm3195_vm3, %vm3203_vm4 }
 0x617   : > { %5467 = vpow2.f32 %v5155_v14  ;;  %v4258_v22 = vmul.f32 0.6666667, %v3778_v57  ;;  %v3667_v27 = vsub.f32 1.5, %v7991_v43  ;;  %v4210_v12 = vmul.f32 %v4202_v30, %v3946_v21 }
 0x618   : > { %v2842_v10 = vmul.f32 %v5466_v17, %v2841_v19  ;;  %v3986_v28 = vmul.f32 %v3802_v42, %v3778_v57  ;;  %v3970_v4 = vadd.f32 %v3962_v62, %v3954_v1  ;;  %v5220_v7 = vsel %vm3211_vm5, 1.0, %v5825_v18 }
 0x619   : > { %v3651_v15 = vmul.f32 2.0, %v7996_v8  ;;  %vm2849_vm6 = vcmp.eq.f32.partialorder %v2848_v45, 8.507059e+37  ;;  %v3675_v40 = vmul.f32 2.0, %v3667_v27  ;;  %v4163_v59 = vmul.f32 0.6666667, %v7655_v24 }
 0x61a   : > { %v2843_v2 = vadd.f32 %v5466_v17, %v2842_v10  ;;  %v3994_v44 = vadd.f32 %v3986_v28, %v3978_v34  ;;  %v4250_v41 = vmul.f32 %v4242_v33, %v3970_v4  ;;  %v4226_v49 = vmul.f32 %v4218_v6, %v3970_v4 }
 0x61b   : > { %v3659_v37 = vmul.f32 %v7675_v55, %v3651_v15  ;;  %v3683_v11 = vmul.f32 %v5220_v7, %v3675_v40  ;;  %vm3235_vm7 = vcmp.ge.f32.partialorder %v7991_v43, 1.5  ;;  %vm3243_vm8 = vcmp.lt.f32.partialorder %v7991_v43, 2.0 }
 0x61c   : > { %v2847_v20 = vsel %vm8002_vm1, %v5466_v17, %v2843_v2  ;;  %v4266_v29 = vmul.f32 %v4258_v22, %v3994_v44  ;;  %v4234_v0 = vadd.f32 %v4226_v49, %v4210_v12  ;;  %vm3275_vm9 = vcmp.ge.f32.partialorder %v7991_v43, 2.0  ;;  %vm3251_vm10 = vmand %vm3235_vm7, %vm3243_vm8 }
 0x61d   : > { %v5468_v60 = vpop.eup %5467  ;;  %v2852_v46 = vsel %vm2849_vm6, %v2851_v32, %v2847_v20  ;;  %v3691_v24 = vadd.f32 %v3683_v11, %v3659_v37  ;;  %v3931_v16 = vmul.f32 %v7991_v43, %v7690_v50  ;;  %vm3283_vm11 = vcmp.lt.f32.partialorder %v7991_v43, 2.5  ;;  %v8055_v37 = vpop.f32.mrf.mxu1 }
 0x61e   : > { %v2889_v31 = vmul.f32 %v7891_v58, %v2852_v46  ;;  %v4274_v9 = vadd.f32 %v4266_v29, %v4250_v41  ;;  %v8016_v55 = vadd.f32 1.0, %v5468_v60  ;;  %4640 = vmatmul.f32.gmra.mxu1 %v4234_v0  ;;  %v5292_v35 = vadd.f32 -1.0, %v7991_v43  ;;  %vm3291_vm12 = vmand %vm3275_vm9, %vm3283_vm11  ;;  %v8057_v29 = vpop.f32.mrf.mxu2 }
 0x61f   : > { %v3723_v25 = vsub.f32 2.0, %v7991_v43  ;;  %v5228_v58 = vsel %vm3251_vm10, 1.0, %v5825_v18  ;;  %v3939_v45 = vmul.f32 %v3691_v24, %v3667_v27  ;;  %v4179_v21 = vmul.f32 0.6666667, %v3667_v27 }
 0x620   : > { %4752 = vmatmul.f32.gmra.mxu3 %v2889_v31  ;;  %4706 = vmatmul.f32.gmra.mxu2 %v4274_v9  ;;  %5469 = vrcp.f32 %v8016_v55  ;;  %v3707_v3 = vmul.f32 2.0, %v5292_v35  ;;  %v4171_v50 = vmul.f32 %v4163_v59, %v7703_v5  ;;  %v5300_v51 = vadd.f32 -1.5, %v7991_v43 }
 0x621   : > { %v3731_v57 = vmul.f32 2.0, %v3723_v25  ;;  %v3779_v61 = vsub.f32 2.5, %v7991_v43  ;;  %v3947_v56 = vadd.f32 %v3939_v45, %v3931_v16  ;;  %v5236_v63 = vsel %vm3291_vm12, 1.0, %v5825_v18  ;;  %v8041_v18 = vpop.f32.mrf.mxu3 }
 0x622   : > { %v3715_v32 = vmul.f32 %v5220_v7, %v3707_v3  ;;  %vm2859_vm13 = vweird.f32 %v8016_v55  ;;  %v2863_v38 = vand.u32 2147483647, %v8016_v55  ;;  %v3763_v1 = vmul.f32 2.0, %v5300_v51 }
 0x623   : > { %v3739_v52 = vmul.f32 %v5228_v58, %v3731_v57  ;;  %v3787_v17 = vmul.f32 2.0, %v3779_v61  ;;  %v4187_v5 = vmul.f32 %v4179_v21, %v3947_v56  ;;  %v3955_v33 = vmul.f32 %v7996_v8, %v3691_v24 }
 0x624   : > { %v4203_v23 = vmul.f32 0.6666667, %v7991_v43  ;;  %v2865_v30 = vand.u32 2147483648, %v8016_v55  ;;  %v3771_v13 = vmul.f32 %v5228_v58, %v3763_v1  ;;  %v5156_v14 = vmul.f32 -1.442695, %v7991_v43 }
 0x625   : > { %v3747_v26 = vadd.f32 %v3739_v52, %v3715_v32  ;;  %v3795_v6 = vmul.f32 %v5236_v63, %v3787_v17  ;;  %v4195_v42 = vadd.f32 %v4187_v5, %v4171_v50  ;;  %v4219_v34 = vmul.f32 0.6666667, %v3723_v25 }
 0x626   : > { %v5470_v36 = vpop.eup %5469  ;;  %v4243_v22 = vmul.f32 0.6666667, %v7996_v8  ;;  %5471 = vpow2.f32 %v5156_v14  ;;  %v4211_v4 = vmul.f32 %v4203_v23, %v3947_v56  ;;  %v4259_v7 = vmul.f32 0.6666667, %v3779_v61  ;;  %v8053_v8 = vpop.f32.mrf.mxu0 }
 0x627   : > { %v2855_v19 = vmul.f32 %v5470_v36, %v8016_v55  ;;  %v3963_v62 = vmul.f32 %v3747_v26, %v3723_v25  ;;  %v3803_v10 = vadd.f32 %v3795_v6, %v3771_v13  ;;  %v3979_v28 = vmul.f32 %v5292_v35, %v3747_v26  ;;  %4577 = vmatmul.f32.gmra.mxu0 %v4195_v42  ;;  %v8066_v35 = vpop.f32.mrf.mxu1  ;;  %v8068_v25 = vpop.f32.mrf.mxu2 }
 0x628   : > { %vm2860_vm14 = vweird.f32 %v5470_v36  ;;  %v2866_v40 = vor.u32 1.1754944e-38, %v2865_v30  ;;  %vm2864_vm0 = vcmp.eq.f32.partialorder %v2863_v38, 8.507059e+37 }
 0x629   : > { %v2856_v27 = vsub.f32 1.0, %v2855_v19  ;;  %v3971_v54 = vadd.f32 %v3963_v62, %v3955_v33  ;;  %v3987_v12 = vmul.f32 %v3803_v10, %v3779_v61  ;;  %vm8049_vm15 = vmor %vm2859_vm13, %vm2860_vm14  ;;  %v8059_v11 = vpop.f32.mrf.mxu3 }
 0x62b   : > { %v2857_v15 = vmul.f32 %v5470_v36, %v2856_v27  ;;  %v4227_v2 = vmul.f32 %v4219_v34, %v3971_v54  ;;  %v3995_v41 = vadd.f32 %v3987_v12, %v3979_v28  ;;  %v4251_v49 = vmul.f32 %v4243_v22, %v3971_v54 }
 0x62c   : > { %v5472_v60 = vpop.eup %5471 }
 0x62d   : > { %v2858_v59 = vadd.f32 %v5470_v36, %v2857_v15  ;;  %v4235_v20 = vadd.f32 %v4227_v2, %v4211_v4  ;;  %v4267_v46 = vmul.f32 %v4259_v7, %v3995_v41  ;;  %v2763_v31 = vadd.f32 1.0, %v5472_v60 }
 0x62e   : > { %v8064_v16 = vpop.f32.mrf.mxu0  ;;  %v4368_v2 = vadd.f32 %v8035_v39, %v8033_v47 }
 0x62f   : > { %v2862_v0 = vsel %vm8049_vm15, %v5470_v36, %v2858_v59  ;;  %4643 = vmatmul.f32.gmra.mxu1 %v4235_v20  ;;  %v4275_v55 = vadd.f32 %v4267_v46, %v4251_v49  ;;  %5473 = vrcp.f32 %v2763_v31  ;;  %v2880_v3 = vand.u32 2147483648, %v2763_v31  ;;  %v8074_v61 = vpop.f32.mrf.mxu1  ;;  %v8076_v63 = vpop.f32.mrf.mxu2 }
 0x630   : > { %v2867_v9 = vsel %vm2864_vm0, %v2866_v40, %v2862_v0  ;;  %vm2874_vm2 = vweird.f32 %v2763_v31  ;;  %v2878_v50 = vand.u32 2147483647, %v2763_v31  ;;  %v4449_v49 = vadd.f32 %v8039_v48, %v4368_v2 }
 0x631   : > { %v2890_v24 = vmul.f32 %v7943_v53, %v2867_v9  ;;  %4709 = vmatmul.f32.gmra.mxu2 %v4275_v55  ;;  %v8070_v58 = vpop.f32.mrf.mxu3  ;;  %v2881_v56 = vor.u32 1.1754944e-38, %v2880_v3 }
 0x632   : > { %vm2879_vm5 = vcmp.eq.f32.partialorder %v2878_v50, 8.507059e+37  ;;  %v4515_v60 = vadd.f32 %v8041_v18, %v4449_v49  ;;  %v4374_v18 = vadd.f32 %v8066_v35, %v8064_v16 }
 0x633   : > { %4755 = vmatmul.f32.gmra.mxu3 %v2890_v24 }
 0x635   : > { %v5474_v45 = vpop.eup %5473 }
 0x636   : > { %v2870_v21 = vmul.f32 %v5474_v45, %v2763_v31  ;;  %vm2875_vm3 = vweird.f32 %v5474_v45  ;;  %v8072_v53 = vpop.f32.mrf.mxu0  ;;  %v4371_v31 = vadd.f32 %v8055_v37, %v8053_v8  ;;  %v4451_v8 = vadd.f32 %v8068_v25, %v4374_v18 }
 0x637   : > { %vm2876_vm4 = vmor %vm2874_vm2, %vm2875_vm3  ;;  %v4379_v26 = vpop.f32.mrf.mxu1  ;;  %v4437_v23 = vpop.f32.mrf.mxu2 }
 0x638   : > { %v2871_v57 = vsub.f32 1.0, %v2870_v21  ;;  %v4450_v47 = vadd.f32 %v8057_v29, %v4371_v31  ;;  %v4517_v29 = vadd.f32 %v8070_v58, %v4451_v8 }
 0x639   : > { %v8078_v32 = vpop.f32.mrf.mxu3 }
 0x63a   : > { %v2872_v51 = vmul.f32 %v5474_v45, %v2871_v57  ;;  %v4516_v21 = vadd.f32 %v8059_v11, %v4450_v47  ;;  %v4377_v11 = vadd.f32 %v8074_v61, %v8072_v53 }
 0x63c   : > { %v2873_v52 = vadd.f32 %v5474_v45, %v2872_v51  ;;  %v4452_v16 = vadd.f32 %v8076_v63, %v4377_v11 }
 0x63e   : > { %v2877_v38 = vsel %vm2876_vm4, %v5474_v45, %v2873_v52  ;;  %v4338_v5 = vpop.f32.mrf.mxu0  ;;  %v4518_v25 = vadd.f32 %v8078_v32, %v4452_v16 }
 0x63f   : > { %v2882_v1 = vsel %vm2879_vm5, %v2881_v56, %v2877_v38  ;;  %v4380_v33 = vadd.f32 %v4379_v26, %v4338_v5  ;;  %v4382_v14 = vpop.f32.mrf.mxu1  ;;  %v4440_v42 = vpop.f32.mrf.mxu2 }
 0x640   : > { %v2891_v17 = vmul.f32 %v7991_v43, %v2882_v1 }
 0x641   : > { %v4503_v36 = vpop.f32.mrf.mxu3  ;;  %v4453_v30 = vadd.f32 %v4437_v23, %v4380_v33 }
 0x642   : > { %4758 = vmatmul.f32.gmra.mxu3 %v2891_v17 }
 0x643   : > { %v8081_v13 = vadd.f32 %v4503_v36, %v4453_v30 }
 0x646   : > { %v4341_v6 = vpop.f32.mrf.mxu0 }
 0x647   : > { %v4383_v19 = vadd.f32 %v4382_v14, %v4341_v6  ;;  %v4385_v22 = vpop.f32.mrf.mxu1  ;;  %v4443_v27 = vpop.f32.mrf.mxu2 }
 0x649   : > { %v4506_v62 = vpop.f32.mrf.mxu3  ;;  %v4454_v34 = vadd.f32 %v4440_v42, %v4383_v19 }
 0x64b   : > { %v8083_v10 = vadd.f32 %v4506_v62, %v4454_v34 }
 0x64e   : > { %v4344_v28 = vpop.f32.mrf.mxu0 }
 0x64f   : > { %v4386_v43 = vadd.f32 %v4385_v22, %v4344_v28  ;;  %v4388_v15 = vpop.f32.mrf.mxu1  ;;  %v4446_v40 = vpop.f32.mrf.mxu2 }
 0x651   : > { %v4509_v54 = vpop.f32.mrf.mxu3  ;;  %v4455_v4 = vadd.f32 %v4443_v27, %v4386_v43 }
 0x653   : > { %v8085_v12 = vadd.f32 %v4509_v54, %v4455_v4 }
 0x656   : > { %v4347_v7 = vpop.f32.mrf.mxu0 }
 0x657   : > { %v4389_v44 = vadd.f32 %v4388_v15, %v4347_v7  ;;  %v4623_v0 = vpop.f32.mrf.mxu1  ;;  %v4689_v55 = vpop.f32.mrf.mxu2 }
 0x659   : > { %v4512_v41 = vpop.f32.mrf.mxu3  ;;  %v4456_v59 = vadd.f32 %v4446_v40, %v4389_v44 }
 0x65b   : > { %v8090_v20 = vadd.f32 %v4512_v41, %v4456_v59 }
 0x65e   : > { %v4557_v46 = vpop.f32.mrf.mxu0 }
 0x65f   : > { %v4581_v9 = vadd.f32 %v4557_v46, %v4515_v60  ;;  %v4626_v57 = vpop.f32.mrf.mxu1  ;;  %v4692_v51 = vpop.f32.mrf.mxu2 }
 0x661   : > { %v4738_v24 = vpop.f32.mrf.mxu3  ;;  %v4647_v39 = vadd.f32 %v4623_v0, %v4581_v9 }
 0x663   : > { %v4713_v45 = vadd.f32 %v4689_v55, %v4647_v39 }
 0x665   : > { %v4739_v48 = vadd.f32 %v4738_v24, %v4713_v45 }
 0x666   : > { %v4560_v3 = vpop.f32.mrf.mxu0 }
 0x667   : > { %v4582_v50 = vadd.f32 %v4560_v3, %v4516_v21  ;;  %4762 = vst [vmem:[#allocation17] sm:$0xff] %v4739_v48  ;;  %v4629_v17 = vpop.f32.mrf.mxu1  ;;  %v4695_v26 = vpop.f32.mrf.mxu2 }
 0x669   : > { %v4741_v56 = vpop.f32.mrf.mxu3  ;;  %v4648_v37 = vadd.f32 %v4626_v57, %v4582_v50 }
 0x66b   : > { %v4714_v52 = vadd.f32 %v4692_v51, %v4648_v37 }
 0x66d   : > { %v4742_v38 = vadd.f32 %v4741_v56, %v4714_v52 }
 0x66e   : > { %v4563_v1 = vpop.f32.mrf.mxu0 }
 0x66f   : > { %v4583_v5 = vadd.f32 %v4563_v1, %v4517_v29  ;;  %4763 = vst [vmem:[#allocation17 + $0x8] sm:$0xff] %v4742_v38  ;;  %v4632_v6 = vpop.f32.mrf.mxu1  ;;  %v4698_v14 = vpop.f32.mrf.mxu2 }
 0x671   : > { %v4649_v35 = vadd.f32 %v4629_v17, %v4583_v5  ;;  %v4744_v33 = vpop.f32.mrf.mxu3 }
 0x673   : > { %v4715_v23 = vadd.f32 %v4695_v26, %v4649_v35 }
 0x675   : > { %v4745_v36 = vadd.f32 %v4744_v33, %v4715_v23 }
 0x676   : > { %v4566_v30 = vpop.f32.mrf.mxu0 }
 0x677   : > { %v4584_v58 = vadd.f32 %v4566_v30, %v4518_v25  ;;  %4764 = vst [vmem:[#allocation17 + $0x10] sm:$0xff] %v4745_v36  ;;  %v4635_v63 = vpop.f32.mrf.mxu1 }
 0x679   : > { %v4650_v19 = vadd.f32 %v4632_v6, %v4584_v58 }
 0x67b   : > { %v4716_v42 = vadd.f32 %v4698_v14, %v4650_v19 }
 0x67e   : > { %v4569_v61 = vpop.f32.mrf.mxu0 }
 0x67f   : > { %v4585_v34 = vadd.f32 %v4569_v61, %v8081_v13  ;;  %v4701_v28 = vpop.f32.mrf.mxu2 }
 0x680   : > { %v4747_v62 = vpop.f32.mrf.mxu3 }
 0x681   : > { %v4748_v53 = vadd.f32 %v4747_v62, %v4716_v42  ;;  %v4651_v22 = vadd.f32 %v4635_v63, %v4585_v34 }
 0x683   : > { %4765 = vst [vmem:[#allocation17 + $0x18] sm:$0xff] %v4748_v53  ;;  %v4717_v43 = vadd.f32 %v4701_v28, %v4651_v22 }
 0x686   : > { %v4572_v54 = vpop.f32.mrf.mxu0 }
 0x687   : > { %v4586_v4 = vadd.f32 %v4572_v54, %v8083_v10 }
 0x68a   : > { %v4638_v7 = vpop.f32.mrf.mxu1 }
 0x68b   : > { %v4652_v2 = vadd.f32 %v4638_v7, %v4586_v4 }
 0x691   : > { %v4704_v15 = vpop.f32.mrf.mxu2 }
 0x692   : > { %v4750_v27 = vpop.f32.mrf.mxu3  ;;  %v4718_v44 = vadd.f32 %v4704_v15, %v4652_v2  ;;  %v4575_v49 = vpop.f32.mrf.mxu0 }
 0x693   : > { %v4751_v32 = vadd.f32 %v4750_v27, %v4717_v43  ;;  %v4587_v13 = vadd.f32 %v4575_v49, %v8085_v12 }
 0x695   : > { %4766 = vst [vmem:[#allocation17 + $0x20] sm:$0xff] %v4751_v32 }
 0x69b   : > { %v4641_v59 = vpop.f32.mrf.mxu1 }
 0x69c   : > { %v4653_v46 = vadd.f32 %v4641_v59, %v4587_v13 }
 0x6a3   : > { %v4753_v40 = vpop.f32.mrf.mxu3  ;;  %v4707_v60 = vpop.f32.mrf.mxu2 }
 0x6a4   : > { %v4754_v41 = vadd.f32 %v4753_v40, %v4718_v44  ;;  %v4719_v0 = vadd.f32 %v4707_v60, %v4653_v46  ;;  %v4578_v55 = vpop.f32.mrf.mxu0 }
 0x6a5   : > { %v4588_v10 = vadd.f32 %v4578_v55, %v8090_v20 }
 0x6a6   : > { %4767 = vst [vmem:[#allocation17 + $0x28] sm:$0xff] %v4754_v41 }
 0x6ac   : > { %v4644_v24 = vpop.f32.mrf.mxu1 }
 0x6ad   : > { %v4654_v39 = vadd.f32 %v4644_v24, %v4588_v10 }
 0x6b4   : > { %v4710_v47 = vpop.f32.mrf.mxu2 }
 0x6b5   : > { %v4720_v45 = vadd.f32 %v4710_v47, %v4654_v39 }
 0x6b6   : > { %v4756_v31 = vpop.f32.mrf.mxu3 }
 0x6b7   : > { %v4757_v9 = vadd.f32 %v4756_v31, %v4719_v0 }
 0x6b9   : > { %4768 = vst [vmem:[#allocation17 + $0x30] sm:$0xff] %v4757_v9 }
 0x6c5   : > { %v4759_v21 = vpop.f32.mrf.mxu3 }
 0x6c6   : > { %v4760_v48 = vadd.f32 %v4759_v21, %v4720_v45 }
 0x6c8   : > { %4769 = vst [vmem:[#allocation17 + $0x38] sm:$0xff] %v4760_v48 }
 0x6c9 PF: > { %p5385_p3 = scmp.eq.s32.totalorder %s5908_s20, 2  ;;  %s5826_s24 = smov [#allocation17]  }
 0x6ca   : > { %s4775_s17 = sshll.u32 %s5826_s24, 4  ;;  %s4777_s12 = sshll.u32 %s8136_s10, 4  ;;  %s4776_s17 = int_to_ptr.vmem [resolvable:$true] %s4775_s17  ;;  %s4778_s12 = int_to_ptr.hbm [resolvable:$true] %s4777_s12 }
 0x6cb   : > { %s5827_s6 = smov 128   ;;  %s5828_s30 = smov 8  }
 0x6cc   : > { %5343 = dma.vmem_to_hbm [thread:$0]  (%p5385_p3), %s4776_s17, 1024, %s4778_s12, [#allocation5], %s5827_s6, %s5827_s6, %s5828_s30  }
 0x6cd   : > { %5792 = dma.done.wait (%p5385_p3), [#allocation5], 1024  }
 0x6ce   : > { %5794 = vsyncadd (%p5385_p3), [#allocation5], 4294966272 }
 0x6cf PF: > { %p27_p13 = scmp.ge.s32.totalorder %s5966_s29, 5   ;;  %s8194_s13 = smov %s5801_s14 }
 0x6d0   : > { %s8195_s14 = smov %s5805_s15  ;;  %s8196_s15 = smov %s5978_s23 }
 0x6d1   : > { %s8197_s16 = smov %s5966_s29  ;;  %29 = sbr.rel (!%p27_p13) target bundleno = 16 (0x10), region = 151 }
 0x6d6   :  { %4794 = vsyncpa [#allocation4], 1 }
 0x6d7   :  { %4796 = vsyncpa [#allocation4 + $0x1], 1 }
 0x6d8   :  { %4797 = vsyncpa [#allocation7], 1 }
 0x6d9   :  { %4799 = vsyncpa [#allocation7 + $0x1], 1 }
 0x6da   :  { %4800 = vsyncpa [#allocation10], 1 }
 0x6db   :  { %4801 = vsyncpa [#allocation13], 1 }
 0x6dc   :  { %4802 = vsyncpa [#allocation16], 1 }
 0x6dd   :  { %4803 = vsyncpa [#allocation5], 1 }
 0x6de   :  { %4805 = vsyncpa [#allocation5 + $0x1], 1 }

</bundles_post_ra>
